<compile_context>
chip_gen: v7x
topology: tpu7x:2x2x1
jax: 0.10.0
libtpu: 0.0.40
codegen_flags: <defaults>
</compile_context>

<pallas_src>
import numpy as np
import jax
import jax.numpy as jnp
from jax.experimental import pallas as pl
from jax.experimental.pallas import tpu as pltpu  # noqa: F401  (TPU target)

# ---------------- config (small synthetic ViT) ----------------
B = 2          # batch
C = 4          # input channels
HW = 16        # spatial size (H == W)
P = 4          # patch size
N = (HW // P) ** 2      # 16 patches
S = N + 1               # +cls token -> 17
D = 32         # hidden dim
H = 4          # attention heads
DH = D // H    # head dim = 8
MLP = 4 * D    # 128
LAYERS = 2
EPS = 1e-5
K = C * P * P  # flattened patch size = 64


def _gelu_tanh(x):
    # tanh-approx GELU (EUP-friendly); used identically in kernel & reference.
    c = 0.7978845608028654  # sqrt(2/pi)
    return 0.5 * x * (1.0 + jnp.tanh(c * (x + 0.044715 * x * x * x)))


def _layernorm(v, g, b):
    mu = jnp.mean(v, axis=-1, keepdims=True)
    var = jnp.mean((v - mu) ** 2, axis=-1, keepdims=True)
    return (v - mu) * jax.lax.rsqrt(var + EPS) * g + b


# ---------------- the fused Pallas kernel ----------------

def vit_fused_kernel(patches_ref, w_pe_ref, add_ref,
                     ln1g_ref, ln1b_ref,
                     wq_ref, bq_ref, wk_ref, bk_ref, wv_ref, bv_ref,
                     wo_ref, bo_ref,
                     ln2g_ref, ln2b_ref,
                     w1_ref, b1_ref, w2_ref, b2_ref,
                     lng_ref, lnb_ref,
                     o_ref):
    scale = 1.0 / (DH ** 0.5)

    # ---- patch embedding + cls token + positional embedding ----
    # `patches` has a zero row prepended at seq position 0 and `add` carries
    # (cls + pos[0]) / (b_pe + pos[1:]) so no in-kernel concat is needed.
    w_pe = w_pe_ref[...]                                         # (K, D)
    add = add_ref[...]                                           # (S, D)
    xs = [jnp.dot(patches_ref[bi], w_pe,
                  preferred_element_type=jnp.float32) + add      # (S, D)
          for bi in range(B)]

    # ---- transformer encoder layers (static unroll; weights stay in VMEM) ----
    for l in range(LAYERS):
        g1, be1 = ln1g_ref[l], ln1b_ref[l]                       # (1, D)
        g2, be2 = ln2g_ref[l], ln2b_ref[l]                       # (1, D)
        wq_l, wk_l, wv_l = wq_ref[l], wk_ref[l], wv_ref[l]       # (H, D, DH)
        bq_l, bk_l, bv_l = bq_ref[l], bk_ref[l], bv_ref[l]       # (H, 1, DH)
        wo_l = wo_ref[l]                                         # (H, DH, D)
        bo_l = bo_ref[l]                                         # (1, D)
        w1_l, mb1 = w1_ref[l], b1_ref[l]                         # (D, MLP), (1, MLP)
        w2_l, mb2 = w2_ref[l], b2_ref[l]                         # (MLP, D), (1, D)

        for bi in range(B):
            x = xs[bi]                                           # (S, D)

            # --- multi-head self-attention (pre-LN) ---
            h = _layernorm(x, g1, be1)
            # output projection folded per head: every intermediate that is
            # accumulated stays a lane-aligned (S, D) tile (no concat).
            attn = jnp.zeros((S, D), jnp.float32)
            for hd in range(H):
                qh = jnp.dot(h, wq_l[hd],
                             preferred_element_type=jnp.float32) + bq_l[hd]   # (S, DH)
                kh = jnp.dot(h, wk_l[hd],
                             preferred_element_type=jnp.float32) + bk_l[hd]
                vh = jnp.dot(h, wv_l[hd],
                             preferred_element_type=jnp.float32) + bv_l[hd]
                s = jax.lax.dot_general(qh, kh, (((1,), (1,)), ((), ())),
                                        preferred_element_type=jnp.float32) * scale
                s = s - jnp.max(s, axis=-1, keepdims=True)
                p = jnp.exp(s)
                p = p * pl.reciprocal(jnp.sum(p, axis=-1, keepdims=True),
                                      approx=True)
                oh = jnp.dot(p, vh, preferred_element_type=jnp.float32)       # (S, DH)
                attn = attn + jnp.dot(oh, wo_l[hd],
                                      preferred_element_type=jnp.float32)     # (S, D)
            x = x + attn + bo_l                                  # residual 1

            # --- MLP (pre-LN) ---
            h2 = _layernorm(x, g2, be2)
            m = jnp.dot(h2, w1_l, preferred_element_type=jnp.float32) + mb1   # (S, MLP)
            m = _gelu_tanh(m)
            m = jnp.dot(m, w2_l, preferred_element_type=jnp.float32) + mb2    # (S, D)
            xs[bi] = x + m                                       # residual 2

    # ---- cls token + final LayerNorm; only (B, D) ever goes back to HBM ----
    cls = jnp.concatenate([xs[bi][0:1, :] for bi in range(B)], axis=0)        # (B, D)
    o_ref[...] = _layernorm(cls, lng_ref[...], lnb_ref[...]).astype(o_ref.dtype)


# ---------------- wrapper (plain-JAX data prep + single pallas_call) ----------------

def extract_patches(x):
    # x: (B, C, HW, HW) NCHW -> (B, N, C*P*P), patch flatten order (C, P, P)
    xp = x.reshape(B, C, HW // P, P, HW // P, P)
    xp = xp.transpose(0, 2, 4, 1, 3, 5)                     # (B, Hp, Wp, C, P, P)
    return xp.reshape(B, N, K)


def _prepare_params(params):
    # additive term: row 0 = cls + pos[0]; rows 1..N = b_pe + pos[1:]
    pos = params["pos"][0]                                  # (S, D)
    add = jnp.concatenate([params["cls"].reshape(1, D) + pos[0:1],
                           pos[1:] + params["b_pe"]], axis=0)   # (S, D)

    keys = ("ln1g", "ln1b", "wq", "bq", "wk", "bk", "wv", "bv",
            "wo", "bo", "ln2g", "ln2b", "w1", "b1", "w2", "b2")
    acc = {k: [] for k in keys}
    for (g1, be1, wqkv, bqkv, wo, bo, g2, be2, w1, bb1, w2, bb2) in params["layers"]:
        acc["ln1g"].append(g1)
        acc["ln1b"].append(be1)
        # split fused QKV and expose heads on a leading axis so the kernel
        # never slices the lane (feature) dimension.
        for name, off in (("q", 0), ("k", 1), ("v", 2)):
            acc["w" + name].append(
                wqkv[:, off * D:(off + 1) * D].reshape(D, H, DH).transpose(1, 0, 2))
            acc["b" + name].append(
                bqkv[:, off * D:(off + 1) * D].reshape(H, 1, DH))
        acc["wo"].append(wo.reshape(H, DH, D))
        acc["bo"].append(bo)
        acc["ln2g"].append(g2)
        acc["ln2b"].append(be2)
        acc["w1"].append(w1)
        acc["b1"].append(bb1)
        acc["w2"].append(w2)
        acc["b2"].append(bb2)
    return add, {k: jnp.stack(v, axis=0) for k, v in acc.items()}


@jax.jit
def vit_extractor(x, params):
    patches = extract_patches(x)                             # (B, N, K)
    # zero row at seq position 0 (the cls slot); its embedding comes from `add`
    patches = jnp.concatenate(
        [jnp.zeros((B, 1, K), jnp.float32), patches], axis=1)    # (B, S, K)
    add, lp = _prepare_params(params)
    return pl.pallas_call(
        vit_fused_kernel,
        out_shape=jax.ShapeDtypeStruct((B, D), jnp.float32),
    )(patches, params["w_pe"], add,
      lp["ln1g"], lp["ln1b"],
      lp["wq"], lp["bq"], lp["wk"], lp["bk"], lp["wv"], lp["bv"],
      lp["wo"], lp["bo"],
      lp["ln2g"], lp["ln2b"],
      lp["w1"], lp["b1"], lp["w2"], lp["b2"],
      params["ln_g"], params["ln_b"])


# ---------------- pure-JAX reference (for correctness check) ----------------

def ref_block(x, lp):
    (g1, b1, wqkv, bqkv, wo, bo, g2, b2, w1, bb1, w2, bb2) = lp
    h = _layernorm(x, g1, b1)
    qkv = h @ wqkv + bqkv
    q, k, v = qkv[..., :D], qkv[..., D:2 * D], qkv[..., 2 * D:]
    qh = q.reshape(B, S, H, DH).transpose(0, 2, 1, 3)
    kh = k.reshape(B, S, H, DH).transpose(0, 2, 1, 3)
    vh = v.reshape(B, S, H, DH).transpose(0, 2, 1, 3)
    s = jnp.einsum("bhqd,bhkd->bhqk", qh, kh) / (DH ** 0.5)
    p = jax.nn.softmax(s, axis=-1)
    attn = jnp.einsum("bhqk,bhkd->bhqd", p, vh).transpose(0, 2, 1, 3).reshape(B, S, D)
    x = x + attn @ wo + bo
    h2 = _layernorm(x, g2, b2)
    m = _gelu_tanh(h2 @ w1 + bb1) @ w2 + bb2
    return x + m


def vit_reference(x, params):
    patches = extract_patches(x)
    tok = patches @ params["w_pe"] + params["b_pe"]
    cls = jnp.broadcast_to(params["cls"], (B, 1, D))
    xseq = jnp.concatenate([cls, tok], axis=1) + params["pos"]
    for lp in params["layers"]:
        xseq = ref_block(xseq, lp)
    cls_out = xseq[:, 0, :]
    return _layernorm(cls_out, params["ln_g"], params["ln_b"])


# ---------------- deterministic parameter init ----------------

def init_params(key):
    ks = jax.random.split(key, 4 + LAYERS)
    scale = 0.02
    params = {
        "w_pe": scale * jax.random.normal(ks[0], (K, D), jnp.float32),
        "b_pe": jnp.zeros((1, D), jnp.float32),
        "cls": scale * jax.random.normal(ks[1], (1, 1, D), jnp.float32),
        "pos": scale * jax.random.normal(ks[2], (1, S, D), jnp.float32),
        "ln_g": jnp.ones((1, D), jnp.float32),
        "ln_b": jnp.zeros((1, D), jnp.float32),
        "layers": [],
    }
    for l in range(LAYERS):
        lk = jax.random.split(ks[4 + l], 4)
        layer = (
            jnp.ones((1, D), jnp.float32),                                   # ln1 gamma
            jnp.zeros((1, D), jnp.float32),                                  # ln1 beta
            scale * jax.random.normal(lk[0], (D, 3 * D), jnp.float32),       # Wqkv
            jnp.zeros((1, 3 * D), jnp.float32),                              # bqkv
            scale * jax.random.normal(lk[1], (D, D), jnp.float32),           # Wo
            jnp.zeros((1, D), jnp.float32),                                  # bo
            jnp.ones((1, D), jnp.float32),                                   # ln2 gamma
            jnp.zeros((1, D), jnp.float32),                                  # ln2 beta
            scale * jax.random.normal(lk[2], (D, MLP), jnp.float32),         # W1
            jnp.zeros((1, MLP), jnp.float32),                                # b1
            scale * jax.random.normal(lk[3], (MLP, D), jnp.float32),         # W2
            jnp.zeros((1, D), jnp.float32),                                  # b2
        )
        params["layers"].append(layer)
    return params


if __name__ == "__main__":
    key = jax.random.PRNGKey(0)
    kx, kp = jax.random.split(key)
    x = jax.random.normal(kx, (B, C, HW, HW), jnp.float32)   # NCHW, like PyTorch
    params = init_params(kp)

    out = jax.block_until_ready(vit_extractor(x, params))    # (B, D)
    ref = jax.block_until_ready(vit_reference(x, params))

    assert out.shape == (B, D), out.shape
    # tolerance slightly relaxed vs. 1e-4 because the softmax denominator uses
    # the EUP approximate reciprocal (pl.reciprocal(..., approx=True)).
    np.testing.assert_allclose(np.asarray(out), np.asarray(ref),
                               rtol=1e-3, atol=1e-3)
    print("KERNEL_OK")
</pallas_src>

<mosaic_0001>
module attributes {stable_mosaic.version = 11 : i64} {
  func.func @vit_fused_kernel(%arg0: memref<2x17x64xf32, #tpu.memory_space<vmem>>, %arg1: memref<64x32xf32, #tpu.memory_space<vmem>>, %arg2: memref<17x32xf32, #tpu.memory_space<vmem>>, %arg3: memref<2x1x32xf32, #tpu.memory_space<vmem>>, %arg4: memref<2x1x32xf32, #tpu.memory_space<vmem>>, %arg5: memref<2x4x32x8xf32, #tpu.memory_space<vmem>>, %arg6: memref<2x4x1x8xf32, #tpu.memory_space<vmem>>, %arg7: memref<2x4x32x8xf32, #tpu.memory_space<vmem>>, %arg8: memref<2x4x1x8xf32, #tpu.memory_space<vmem>>, %arg9: memref<2x4x32x8xf32, #tpu.memory_space<vmem>>, %arg10: memref<2x4x1x8xf32, #tpu.memory_space<vmem>>, %arg11: memref<2x4x8x32xf32, #tpu.memory_space<vmem>>, %arg12: memref<2x1x32xf32, #tpu.memory_space<vmem>>, %arg13: memref<2x1x32xf32, #tpu.memory_space<vmem>>, %arg14: memref<2x1x32xf32, #tpu.memory_space<vmem>>, %arg15: memref<2x32x128xf32, #tpu.memory_space<vmem>>, %arg16: memref<2x1x128xf32, #tpu.memory_space<vmem>>, %arg17: memref<2x128x32xf32, #tpu.memory_space<vmem>>, %arg18: memref<2x1x32xf32, #tpu.memory_space<vmem>>, %arg19: memref<1x32xf32, #tpu.memory_space<vmem>>, %arg20: memref<1x32xf32, #tpu.memory_space<vmem>>, %arg21: memref<2x32xf32, #tpu.memory_space<vmem>>) attributes {dimension_semantics = [], scalar_prefetch = 0 : i64, scratch_operands = 0 : i64, tpu.core_type = #tpu.core_type<tc>} {
    %c0 = arith.constant 0 : index
    %c0_0 = arith.constant 0 : index
    %0 = vector.load %arg1[%c0, %c0_0] : memref<64x32xf32, #tpu.memory_space<vmem>>, vector<64x32xf32>
    %c0_1 = arith.constant 0 : index
    %c0_2 = arith.constant 0 : index
    %1 = vector.load %arg2[%c0_1, %c0_2] : memref<17x32xf32, #tpu.memory_space<vmem>>, vector<17x32xf32>
    %c0_3 = arith.constant 0 : index
    %c0_4 = arith.constant 0 : index
    %c0_5 = arith.constant 0 : index
    %2 = vector.load %arg0[%c0_3, %c0_4, %c0_5] : memref<2x17x64xf32, #tpu.memory_space<vmem>>, vector<1x17x64xf32>
    %3 = vector.shape_cast %2 : vector<1x17x64xf32> to vector<17x64xf32>
    %cst = arith.constant dense<0.000000e+00> : vector<17x32xf32>
    %4 = tpu.matmul %3, %0, %cst {dimension_numbers = #tpu.dot_dimension_numbers<[1], [0], [0], [1], [0, 0, 1, 1], [], []>} : vector<17x64xf32>, vector<64x32xf32>, vector<17x32xf32> -> vector<17x32xf32>
    %5 = arith.addf %4, %1 : vector<17x32xf32>
    %c1 = arith.constant 1 : index
    %c0_6 = arith.constant 0 : index
    %c0_7 = arith.constant 0 : index
    %6 = vector.load %arg0[%c1, %c0_6, %c0_7] : memref<2x17x64xf32, #tpu.memory_space<vmem>>, vector<1x17x64xf32>
    %7 = vector.shape_cast %6 : vector<1x17x64xf32> to vector<17x64xf32>
    %cst_8 = arith.constant dense<0.000000e+00> : vector<17x32xf32>
    %8 = tpu.matmul %7, %0, %cst_8 {dimension_numbers = #tpu.dot_dimension_numbers<[1], [0], [0], [1], [0, 0, 1, 1], [], []>} : vector<17x64xf32>, vector<64x32xf32>, vector<17x32xf32> -> vector<17x32xf32>
    %9 = arith.addf %8, %1 : vector<17x32xf32>
    %c0_9 = arith.constant 0 : index
    %c0_10 = arith.constant 0 : index
    %c0_11 = arith.constant 0 : index
    %10 = vector.load %arg3[%c0_9, %c0_10, %c0_11] : memref<2x1x32xf32, #tpu.memory_space<vmem>>, vector<1x1x32xf32>
    %11 = vector.shape_cast %10 : vector<1x1x32xf32> to vector<1x32xf32>
    %c0_12 = arith.constant 0 : index
    %c0_13 = arith.constant 0 : index
    %c0_14 = arith.constant 0 : index
    %12 = vector.load %arg4[%c0_12, %c0_13, %c0_14] : memref<2x1x32xf32, #tpu.memory_space<vmem>>, vector<1x1x32xf32>
    %13 = vector.shape_cast %12 : vector<1x1x32xf32> to vector<1x32xf32>
    %c0_15 = arith.constant 0 : index
    %c0_16 = arith.constant 0 : index
    %c0_17 = arith.constant 0 : index
    %14 = vector.load %arg13[%c0_15, %c0_16, %c0_17] : memref<2x1x32xf32, #tpu.memory_space<vmem>>, vector<1x1x32xf32>
    %15 = vector.shape_cast %14 : vector<1x1x32xf32> to vector<1x32xf32>
    %c0_18 = arith.constant 0 : index
    %c0_19 = arith.constant 0 : index
    %c0_20 = arith.constant 0 : index
    %16 = vector.load %arg14[%c0_18, %c0_19, %c0_20] : memref<2x1x32xf32, #tpu.memory_space<vmem>>, vector<1x1x32xf32>
    %17 = vector.shape_cast %16 : vector<1x1x32xf32> to vector<1x32xf32>
    %c0_21 = arith.constant 0 : index
    %c0_22 = arith.constant 0 : index
    %c0_23 = arith.constant 0 : index
    %c0_24 = arith.constant 0 : index
    %18 = vector.load %arg5[%c0_21, %c0_22, %c0_23, %c0_24] : memref<2x4x32x8xf32, #tpu.memory_space<vmem>>, vector<1x4x32x8xf32>
    %19 = vector.shape_cast %18 : vector<1x4x32x8xf32> to vector<4x32x8xf32>
    %c0_25 = arith.constant 0 : index
    %c0_26 = arith.constant 0 : index
    %c0_27 = arith.constant 0 : index
    %c0_28 = arith.constant 0 : index
    %20 = vector.load %arg7[%c0_25, %c0_26, %c0_27, %c0_28] : memref<2x4x32x8xf32, #tpu.memory_space<vmem>>, vector<1x4x32x8xf32>
    %21 = vector.shape_cast %20 : vector<1x4x32x8xf32> to vector<4x32x8xf32>
    %c0_29 = arith.constant 0 : index
    %c0_30 = arith.constant 0 : index
    %c0_31 = arith.constant 0 : index
    %c0_32 = arith.constant 0 : index
    %22 = vector.load %arg9[%c0_29, %c0_30, %c0_31, %c0_32] : memref<2x4x32x8xf32, #tpu.memory_space<vmem>>, vector<1x4x32x8xf32>
    %23 = vector.shape_cast %22 : vector<1x4x32x8xf32> to vector<4x32x8xf32>
    %c0_33 = arith.constant 0 : index
    %c0_34 = arith.constant 0 : index
    %c0_35 = arith.constant 0 : index
    %c0_36 = arith.constant 0 : index
    %24 = vector.load %arg6[%c0_33, %c0_34, %c0_35, %c0_36] : memref<2x4x1x8xf32, #tpu.memory_space<vmem>>, vector<1x4x1x8xf32>
    %25 = vector.shape_cast %24 : vector<1x4x1x8xf32> to vector<4x1x8xf32>
    %c0_37 = arith.constant 0 : index
    %c0_38 = arith.constant 0 : index
    %c0_39 = arith.constant 0 : index
    %c0_40 = arith.constant 0 : index
    %26 = vector.load %arg8[%c0_37, %c0_38, %c0_39, %c0_40] : memref<2x4x1x8xf32, #tpu.memory_space<vmem>>, vector<1x4x1x8xf32>
    %27 = vector.shape_cast %26 : vector<1x4x1x8xf32> to vector<4x1x8xf32>
    %c0_41 = arith.constant 0 : index
    %c0_42 = arith.constant 0 : index
    %c0_43 = arith.constant 0 : index
    %c0_44 = arith.constant 0 : index
    %28 = vector.load %arg10[%c0_41, %c0_42, %c0_43, %c0_44] : memref<2x4x1x8xf32, #tpu.memory_space<vmem>>, vector<1x4x1x8xf32>
    %29 = vector.shape_cast %28 : vector<1x4x1x8xf32> to vector<4x1x8xf32>
    %c0_45 = arith.constant 0 : index
    %c0_46 = arith.constant 0 : index
    %c0_47 = arith.constant 0 : index
    %c0_48 = arith.constant 0 : index
    %30 = vector.load %arg11[%c0_45, %c0_46, %c0_47, %c0_48] : memref<2x4x8x32xf32, #tpu.memory_space<vmem>>, vector<1x4x8x32xf32>
    %31 = vector.shape_cast %30 : vector<1x4x8x32xf32> to vector<4x8x32xf32>
    %c0_49 = arith.constant 0 : index
    %c0_50 = arith.constant 0 : index
    %c0_51 = arith.constant 0 : index
    %32 = vector.load %arg12[%c0_49, %c0_50, %c0_51] : memref<2x1x32xf32, #tpu.memory_space<vmem>>, vector<1x1x32xf32>
    %33 = vector.shape_cast %32 : vector<1x1x32xf32> to vector<1x32xf32>
    %c0_52 = arith.constant 0 : index
    %c0_53 = arith.constant 0 : index
    %c0_54 = arith.constant 0 : index
    %34 = vector.load %arg15[%c0_52, %c0_53, %c0_54] : memref<2x32x128xf32, #tpu.memory_space<vmem>>, vector<1x32x128xf32>
    %35 = vector.shape_cast %34 : vector<1x32x128xf32> to vector<32x128xf32>
    %c0_55 = arith.constant 0 : index
    %c0_56 = arith.constant 0 : index
    %c0_57 = arith.constant 0 : index
    %36 = vector.load %arg16[%c0_55, %c0_56, %c0_57] : memref<2x1x128xf32, #tpu.memory_space<vmem>>, vector<1x1x128xf32>
    %37 = vector.shape_cast %36 : vector<1x1x128xf32> to vector<1x128xf32>
    %c0_58 = arith.constant 0 : index
    %c0_59 = arith.constant 0 : index
    %c0_60 = arith.constant 0 : index
    %38 = vector.load %arg17[%c0_58, %c0_59, %c0_60] : memref<2x128x32xf32, #tpu.memory_space<vmem>>, vector<1x128x32xf32>
    %39 = vector.shape_cast %38 : vector<1x128x32xf32> to vector<128x32xf32>
    %c0_61 = arith.constant 0 : index
    %c0_62 = arith.constant 0 : index
    %c0_63 = arith.constant 0 : index
    %40 = vector.load %arg18[%c0_61, %c0_62, %c0_63] : memref<2x1x32xf32, #tpu.memory_space<vmem>>, vector<1x1x32xf32>
    %41 = vector.shape_cast %40 : vector<1x1x32xf32> to vector<1x32xf32>
    %cst_64 = arith.constant dense<0.000000e+00> : vector<17xf32>
    %42 = vector.multi_reduction <add>, %5, %cst_64 [1] : vector<17x32xf32> to vector<17xf32>
    %43 = vector.shape_cast %42 : vector<17xf32> to vector<17x1xf32>
    %cst_65 = arith.constant 3.200000e+01 : f32
    %44 = vector.broadcast %cst_65 : f32 to vector<17x1xf32>
    %45 = arith.divf %43, %44 : vector<17x1xf32>
    %46 = vector.broadcast %45 : vector<17x1xf32> to vector<17x32xf32>
    %47 = arith.subf %5, %46 : vector<17x32xf32>
    %48 = arith.mulf %47, %47 : vector<17x32xf32>
    %cst_66 = arith.constant dense<0.000000e+00> : vector<17xf32>
    %49 = vector.multi_reduction <add>, %48, %cst_66 [1] : vector<17x32xf32> to vector<17xf32>
    %50 = vector.shape_cast %49 : vector<17xf32> to vector<17x1xf32>
    %cst_67 = arith.constant 3.200000e+01 : f32
    %51 = vector.broadcast %cst_67 : f32 to vector<17x1xf32>
    %52 = arith.divf %50, %51 : vector<17x1xf32>
    %53 = vector.broadcast %45 : vector<17x1xf32> to vector<17x32xf32>
    %54 = arith.subf %5, %53 : vector<17x32xf32>
    %cst_68 = arith.constant 9.99999974E-6 : f32
    %55 = vector.broadcast %cst_68 : f32 to vector<17x1xf32>
    %56 = arith.addf %52, %55 : vector<17x1xf32>
    %57 = math.rsqrt %56 : vector<17x1xf32>
    %58 = vector.broadcast %57 : vector<17x1xf32> to vector<17x32xf32>
    %59 = arith.mulf %54, %58 : vector<17x32xf32>
    %60 = vector.broadcast %11 : vector<1x32xf32> to vector<17x32xf32>
    %61 = arith.mulf %59, %60 : vector<17x32xf32>
    %62 = vector.broadcast %13 : vector<1x32xf32> to vector<17x32xf32>
    %63 = arith.addf %61, %62 : vector<17x32xf32>
    %cst_69 = arith.constant 0.000000e+00 : f32
    %64 = vector.broadcast %cst_69 : f32 to vector<17x32xf32>
    %65 = vector.extract_strided_slice %19 {offsets = [0, 0, 0], sizes = [1, 32, 8], strides = [1, 1, 1]} : vector<4x32x8xf32> to vector<1x32x8xf32>
    %66 = vector.shape_cast %65 : vector<1x32x8xf32> to vector<32x8xf32>
    %cst_70 = arith.constant dense<0.000000e+00> : vector<17x8xf32>
    %67 = tpu.matmul %63, %66, %cst_70 {dimension_numbers = #tpu.dot_dimension_numbers<[1], [0], [0], [1], [0, 0, 1, 1], [], []>} : vector<17x32xf32>, vector<32x8xf32>, vector<17x8xf32> -> vector<17x8xf32>
    %68 = vector.extract_strided_slice %25 {offsets = [0, 0, 0], sizes = [1, 1, 8], strides = [1, 1, 1]} : vector<4x1x8xf32> to vector<1x1x8xf32>
    %69 = vector.shape_cast %68 : vector<1x1x8xf32> to vector<1x8xf32>
    %70 = vector.broadcast %69 : vector<1x8xf32> to vector<17x8xf32>
    %71 = arith.addf %67, %70 : vector<17x8xf32>
    %72 = vector.extract_strided_slice %21 {offsets = [0, 0, 0], sizes = [1, 32, 8], strides = [1, 1, 1]} : vector<4x32x8xf32> to vector<1x32x8xf32>
    %73 = vector.shape_cast %72 : vector<1x32x8xf32> to vector<32x8xf32>
    %cst_71 = arith.constant dense<0.000000e+00> : vector<17x8xf32>
    %74 = tpu.matmul %63, %73, %cst_71 {dimension_numbers = #tpu.dot_dimension_numbers<[1], [0], [0], [1], [0, 0, 1, 1], [], []>} : vector<17x32xf32>, vector<32x8xf32>, vector<17x8xf32> -> vector<17x8xf32>
    %75 = vector.extract_strided_slice %27 {offsets = [0, 0, 0], sizes = [1, 1, 8], strides = [1, 1, 1]} : vector<4x1x8xf32> to vector<1x1x8xf32>
    %76 = vector.shape_cast %75 : vector<1x1x8xf32> to vector<1x8xf32>
    %77 = vector.broadcast %76 : vector<1x8xf32> to vector<17x8xf32>
    %78 = arith.addf %74, %77 : vector<17x8xf32>
    %79 = vector.extract_strided_slice %23 {offsets = [0, 0, 0], sizes = [1, 32, 8], strides = [1, 1, 1]} : vector<4x32x8xf32> to vector<1x32x8xf32>
    %80 = vector.shape_cast %79 : vector<1x32x8xf32> to vector<32x8xf32>
    %cst_72 = arith.constant dense<0.000000e+00> : vector<17x8xf32>
    %81 = tpu.matmul %63, %80, %cst_72 {dimension_numbers = #tpu.dot_dimension_numbers<[1], [0], [0], [1], [0, 0, 1, 1], [], []>} : vector<17x32xf32>, vector<32x8xf32>, vector<17x8xf32> -> vector<17x8xf32>
    %82 = vector.extract_strided_slice %29 {offsets = [0, 0, 0], sizes = [1, 1, 8], strides = [1, 1, 1]} : vector<4x1x8xf32> to vector<1x1x8xf32>
    %83 = vector.shape_cast %82 : vector<1x1x8xf32> to vector<1x8xf32>
    %84 = vector.broadcast %83 : vector<1x8xf32> to vector<17x8xf32>
    %85 = arith.addf %81, %84 : vector<17x8xf32>
    %cst_73 = arith.constant dense<0.000000e+00> : vector<17x17xf32>
    %86 = tpu.matmul %71, %78, %cst_73 {dimension_numbers = #tpu.dot_dimension_numbers<[1], [1], [0], [0], [0, 0, 1, 0], [], []>} : vector<17x8xf32>, vector<17x8xf32>, vector<17x17xf32> -> vector<17x17xf32>
    %cst_74 = arith.constant 0.353553385 : f32
    %87 = vector.broadcast %cst_74 : f32 to vector<17x17xf32>
    %88 = arith.mulf %86, %87 : vector<17x17xf32>
    %cst_75 = arith.constant dense<0xFF800000> : vector<17xf32>
    %89 = vector.multi_reduction <maximumf>, %88, %cst_75 [1] : vector<17x17xf32> to vector<17xf32>
    %90 = vector.shape_cast %89 : vector<17xf32> to vector<17x1xf32>
    %91 = vector.broadcast %90 : vector<17x1xf32> to vector<17x17xf32>
    %92 = arith.subf %88, %91 : vector<17x17xf32>
    %93 = math.exp %92 : vector<17x17xf32>
    %cst_76 = arith.constant dense<0.000000e+00> : vector<17xf32>
    %94 = vector.multi_reduction <add>, %93, %cst_76 [1] : vector<17x17xf32> to vector<17xf32>
    %95 = vector.shape_cast %94 : vector<17xf32> to vector<17x1xf32>
    %96 = tpu.reciprocal %95 {approx = true} : vector<17x1xf32> -> vector<17x1xf32>
    %97 = vector.broadcast %96 : vector<17x1xf32> to vector<17x17xf32>
    %98 = arith.mulf %93, %97 : vector<17x17xf32>
    %cst_77 = arith.constant dense<0.000000e+00> : vector<17x8xf32>
    %99 = tpu.matmul %98, %85, %cst_77 {dimension_numbers = #tpu.dot_dimension_numbers<[1], [0], [0], [1], [0, 0, 1, 1], [], []>} : vector<17x17xf32>, vector<17x8xf32>, vector<17x8xf32> -> vector<17x8xf32>
    %100 = vector.extract_strided_slice %31 {offsets = [0, 0, 0], sizes = [1, 8, 32], strides = [1, 1, 1]} : vector<4x8x32xf32> to vector<1x8x32xf32>
    %101 = vector.shape_cast %100 : vector<1x8x32xf32> to vector<8x32xf32>
    %cst_78 = arith.constant dense<0.000000e+00> : vector<17x32xf32>
    %102 = tpu.matmul %99, %101, %cst_78 {dimension_numbers = #tpu.dot_dimension_numbers<[1], [0], [0], [1], [0, 0, 1, 1], [], []>} : vector<17x8xf32>, vector<8x32xf32>, vector<17x32xf32> -> vector<17x32xf32>
    %103 = arith.addf %64, %102 : vector<17x32xf32>
    %104 = vector.extract_strided_slice %19 {offsets = [1, 0, 0], sizes = [1, 32, 8], strides = [1, 1, 1]} : vector<4x32x8xf32> to vector<1x32x8xf32>
    %105 = vector.shape_cast %104 : vector<1x32x8xf32> to vector<32x8xf32>
    %cst_79 = arith.constant dense<0.000000e+00> : vector<17x8xf32>
    %106 = tpu.matmul %63, %105, %cst_79 {dimension_numbers = #tpu.dot_dimension_numbers<[1], [0], [0], [1], [0, 0, 1, 1], [], []>} : vector<17x32xf32>, vector<32x8xf32>, vector<17x8xf32> -> vector<17x8xf32>
    %107 = vector.extract_strided_slice %25 {offsets = [1, 0, 0], sizes = [1, 1, 8], strides = [1, 1, 1]} : vector<4x1x8xf32> to vector<1x1x8xf32>
    %108 = vector.shape_cast %107 : vector<1x1x8xf32> to vector<1x8xf32>
    %109 = vector.broadcast %108 : vector<1x8xf32> to vector<17x8xf32>
    %110 = arith.addf %106, %109 : vector<17x8xf32>
    %111 = vector.extract_strided_slice %21 {offsets = [1, 0, 0], sizes = [1, 32, 8], strides = [1, 1, 1]} : vector<4x32x8xf32> to vector<1x32x8xf32>
    %112 = vector.shape_cast %111 : vector<1x32x8xf32> to vector<32x8xf32>
    %cst_80 = arith.constant dense<0.000000e+00> : vector<17x8xf32>
    %113 = tpu.matmul %63, %112, %cst_80 {dimension_numbers = #tpu.dot_dimension_numbers<[1], [0], [0], [1], [0, 0, 1, 1], [], []>} : vector<17x32xf32>, vector<32x8xf32>, vector<17x8xf32> -> vector<17x8xf32>
    %114 = vector.extract_strided_slice %27 {offsets = [1, 0, 0], sizes = [1, 1, 8], strides = [1, 1, 1]} : vector<4x1x8xf32> to vector<1x1x8xf32>
    %115 = vector.shape_cast %114 : vector<1x1x8xf32> to vector<1x8xf32>
    %116 = vector.broadcast %115 : vector<1x8xf32> to vector<17x8xf32>
    %117 = arith.addf %113, %116 : vector<17x8xf32>
    %118 = vector.extract_strided_slice %23 {offsets = [1, 0, 0], sizes = [1, 32, 8], strides = [1, 1, 1]} : vector<4x32x8xf32> to vector<1x32x8xf32>
    %119 = vector.shape_cast %118 : vector<1x32x8xf32> to vector<32x8xf32>
    %cst_81 = arith.constant dense<0.000000e+00> : vector<17x8xf32>
    %120 = tpu.matmul %63, %119, %cst_81 {dimension_numbers = #tpu.dot_dimension_numbers<[1], [0], [0], [1], [0, 0, 1, 1], [], []>} : vector<17x32xf32>, vector<32x8xf32>, vector<17x8xf32> -> vector<17x8xf32>
    %121 = vector.extract_strided_slice %29 {offsets = [1, 0, 0], sizes = [1, 1, 8], strides = [1, 1, 1]} : vector<4x1x8xf32> to vector<1x1x8xf32>
    %122 = vector.shape_cast %121 : vector<1x1x8xf32> to vector<1x8xf32>
    %123 = vector.broadcast %122 : vector<1x8xf32> to vector<17x8xf32>
    %124 = arith.addf %120, %123 : vector<17x8xf32>
    %cst_82 = arith.constant dense<0.000000e+00> : vector<17x17xf32>
    %125 = tpu.matmul %110, %117, %cst_82 {dimension_numbers = #tpu.dot_dimension_numbers<[1], [1], [0], [0], [0, 0, 1, 0], [], []>} : vector<17x8xf32>, vector<17x8xf32>, vector<17x17xf32> -> vector<17x17xf32>
    %cst_83 = arith.constant 0.353553385 : f32
    %126 = vector.broadcast %cst_83 : f32 to vector<17x17xf32>
    %127 = arith.mulf %125, %126 : vector<17x17xf32>
    %cst_84 = arith.constant dense<0xFF800000> : vector<17xf32>
    %128 = vector.multi_reduction <maximumf>, %127, %cst_84 [1] : vector<17x17xf32> to vector<17xf32>
    %129 = vector.shape_cast %128 : vector<17xf32> to vector<17x1xf32>
    %130 = vector.broadcast %129 : vector<17x1xf32> to vector<17x17xf32>
    %131 = arith.subf %127, %130 : vector<17x17xf32>
    %132 = math.exp %131 : vector<17x17xf32>
    %cst_85 = arith.constant dense<0.000000e+00> : vector<17xf32>
    %133 = vector.multi_reduction <add>, %132, %cst_85 [1] : vector<17x17xf32> to vector<17xf32>
    %134 = vector.shape_cast %133 : vector<17xf32> to vector<17x1xf32>
    %135 = tpu.reciprocal %134 {approx = true} : vector<17x1xf32> -> vector<17x1xf32>
    %136 = vector.broadcast %135 : vector<17x1xf32> to vector<17x17xf32>
    %137 = arith.mulf %132, %136 : vector<17x17xf32>
    %cst_86 = arith.constant dense<0.000000e+00> : vector<17x8xf32>
    %138 = tpu.matmul %137, %124, %cst_86 {dimension_numbers = #tpu.dot_dimension_numbers<[1], [0], [0], [1], [0, 0, 1, 1], [], []>} : vector<17x17xf32>, vector<17x8xf32>, vector<17x8xf32> -> vector<17x8xf32>
    %139 = vector.extract_strided_slice %31 {offsets = [1, 0, 0], sizes = [1, 8, 32], strides = [1, 1, 1]} : vector<4x8x32xf32> to vector<1x8x32xf32>
    %140 = vector.shape_cast %139 : vector<1x8x32xf32> to vector<8x32xf32>
    %cst_87 = arith.constant dense<0.000000e+00> : vector<17x32xf32>
    %141 = tpu.matmul %138, %140, %cst_87 {dimension_numbers = #tpu.dot_dimension_numbers<[1], [0], [0], [1], [0, 0, 1, 1], [], []>} : vector<17x8xf32>, vector<8x32xf32>, vector<17x32xf32> -> vector<17x32xf32>
    %142 = arith.addf %103, %141 : vector<17x32xf32>
    %143 = vector.extract_strided_slice %19 {offsets = [2, 0, 0], sizes = [1, 32, 8], strides = [1, 1, 1]} : vector<4x32x8xf32> to vector<1x32x8xf32>
    %144 = vector.shape_cast %143 : vector<1x32x8xf32> to vector<32x8xf32>
    %cst_88 = arith.constant dense<0.000000e+00> : vector<17x8xf32>
    %145 = tpu.matmul %63, %144, %cst_88 {dimension_numbers = #tpu.dot_dimension_numbers<[1], [0], [0], [1], [0, 0, 1, 1], [], []>} : vector<17x32xf32>, vector<32x8xf32>, vector<17x8xf32> -> vector<17x8xf32>
    %146 = vector.extract_strided_slice %25 {offsets = [2, 0, 0], sizes = [1, 1, 8], strides = [1, 1, 1]} : vector<4x1x8xf32> to vector<1x1x8xf32>
    %147 = vector.shape_cast %146 : vector<1x1x8xf32> to vector<1x8xf32>
    %148 = vector.broadcast %147 : vector<1x8xf32> to vector<17x8xf32>
    %149 = arith.addf %145, %148 : vector<17x8xf32>
    %150 = vector.extract_strided_slice %21 {offsets = [2, 0, 0], sizes = [1, 32, 8], strides = [1, 1, 1]} : vector<4x32x8xf32> to vector<1x32x8xf32>
    %151 = vector.shape_cast %150 : vector<1x32x8xf32> to vector<32x8xf32>
    %cst_89 = arith.constant dense<0.000000e+00> : vector<17x8xf32>
    %152 = tpu.matmul %63, %151, %cst_89 {dimension_numbers = #tpu.dot_dimension_numbers<[1], [0], [0], [1], [0, 0, 1, 1], [], []>} : vector<17x32xf32>, vector<32x8xf32>, vector<17x8xf32> -> vector<17x8xf32>
    %153 = vector.extract_strided_slice %27 {offsets = [2, 0, 0], sizes = [1, 1, 8], strides = [1, 1, 1]} : vector<4x1x8xf32> to vector<1x1x8xf32>
    %154 = vector.shape_cast %153 : vector<1x1x8xf32> to vector<1x8xf32>
    %155 = vector.broadcast %154 : vector<1x8xf32> to vector<17x8xf32>
    %156 = arith.addf %152, %155 : vector<17x8xf32>
    %157 = vector.extract_strided_slice %23 {offsets = [2, 0, 0], sizes = [1, 32, 8], strides = [1, 1, 1]} : vector<4x32x8xf32> to vector<1x32x8xf32>
    %158 = vector.shape_cast %157 : vector<1x32x8xf32> to vector<32x8xf32>
    %cst_90 = arith.constant dense<0.000000e+00> : vector<17x8xf32>
    %159 = tpu.matmul %63, %158, %cst_90 {dimension_numbers = #tpu.dot_dimension_numbers<[1], [0], [0], [1], [0, 0, 1, 1], [], []>} : vector<17x32xf32>, vector<32x8xf32>, vector<17x8xf32> -> vector<17x8xf32>
    %160 = vector.extract_strided_slice %29 {offsets = [2, 0, 0], sizes = [1, 1, 8], strides = [1, 1, 1]} : vector<4x1x8xf32> to vector<1x1x8xf32>
    %161 = vector.shape_cast %160 : vector<1x1x8xf32> to vector<1x8xf32>
    %162 = vector.broadcast %161 : vector<1x8xf32> to vector<17x8xf32>
    %163 = arith.addf %159, %162 : vector<17x8xf32>
    %cst_91 = arith.constant dense<0.000000e+00> : vector<17x17xf32>
    %164 = tpu.matmul %149, %156, %cst_91 {dimension_numbers = #tpu.dot_dimension_numbers<[1], [1], [0], [0], [0, 0, 1, 0], [], []>} : vector<17x8xf32>, vector<17x8xf32>, vector<17x17xf32> -> vector<17x17xf32>
    %cst_92 = arith.constant 0.353553385 : f32
    %165 = vector.broadcast %cst_92 : f32 to vector<17x17xf32>
    %166 = arith.mulf %164, %165 : vector<17x17xf32>
    %cst_93 = arith.constant dense<0xFF800000> : vector<17xf32>
    %167 = vector.multi_reduction <maximumf>, %166, %cst_93 [1] : vector<17x17xf32> to vector<17xf32>
    %168 = vector.shape_cast %167 : vector<17xf32> to vector<17x1xf32>
    %169 = vector.broadcast %168 : vector<17x1xf32> to vector<17x17xf32>
    %170 = arith.subf %166, %169 : vector<17x17xf32>
    %171 = math.exp %170 : vector<17x17xf32>
    %cst_94 = arith.constant dense<0.000000e+00> : vector<17xf32>
    %172 = vector.multi_reduction <add>, %171, %cst_94 [1] : vector<17x17xf32> to vector<17xf32>
    %173 = vector.shape_cast %172 : vector<17xf32> to vector<17x1xf32>
    %174 = tpu.reciprocal %173 {approx = true} : vector<17x1xf32> -> vector<17x1xf32>
    %175 = vector.broadcast %174 : vector<17x1xf32> to vector<17x17xf32>
    %176 = arith.mulf %171, %175 : vector<17x17xf32>
    %cst_95 = arith.constant dense<0.000000e+00> : vector<17x8xf32>
    %177 = tpu.matmul %176, %163, %cst_95 {dimension_numbers = #tpu.dot_dimension_numbers<[1], [0], [0], [1], [0, 0, 1, 1], [], []>} : vector<17x17xf32>, vector<17x8xf32>, vector<17x8xf32> -> vector<17x8xf32>
    %178 = vector.extract_strided_slice %31 {offsets = [2, 0, 0], sizes = [1, 8, 32], strides = [1, 1, 1]} : vector<4x8x32xf32> to vector<1x8x32xf32>
    %179 = vector.shape_cast %178 : vector<1x8x32xf32> to vector<8x32xf32>
    %cst_96 = arith.constant dense<0.000000e+00> : vector<17x32xf32>
    %180 = tpu.matmul %177, %179, %cst_96 {dimension_numbers = #tpu.dot_dimension_numbers<[1], [0], [0], [1], [0, 0, 1, 1], [], []>} : vector<17x8xf32>, vector<8x32xf32>, vector<17x32xf32> -> vector<17x32xf32>
    %181 = arith.addf %142, %180 : vector<17x32xf32>
    %182 = vector.extract_strided_slice %19 {offsets = [3, 0, 0], sizes = [1, 32, 8], strides = [1, 1, 1]} : vector<4x32x8xf32> to vector<1x32x8xf32>
    %183 = vector.shape_cast %182 : vector<1x32x8xf32> to vector<32x8xf32>
    %cst_97 = arith.constant dense<0.000000e+00> : vector<17x8xf32>
    %184 = tpu.matmul %63, %183, %cst_97 {dimension_numbers = #tpu.dot_dimension_numbers<[1], [0], [0], [1], [0, 0, 1, 1], [], []>} : vector<17x32xf32>, vector<32x8xf32>, vector<17x8xf32> -> vector<17x8xf32>
    %185 = vector.extract_strided_slice %25 {offsets = [3, 0, 0], sizes = [1, 1, 8], strides = [1, 1, 1]} : vector<4x1x8xf32> to vector<1x1x8xf32>
    %186 = vector.shape_cast %185 : vector<1x1x8xf32> to vector<1x8xf32>
    %187 = vector.broadcast %186 : vector<1x8xf32> to vector<17x8xf32>
    %188 = arith.addf %184, %187 : vector<17x8xf32>
    %189 = vector.extract_strided_slice %21 {offsets = [3, 0, 0], sizes = [1, 32, 8], strides = [1, 1, 1]} : vector<4x32x8xf32> to vector<1x32x8xf32>
    %190 = vector.shape_cast %189 : vector<1x32x8xf32> to vector<32x8xf32>
    %cst_98 = arith.constant dense<0.000000e+00> : vector<17x8xf32>
    %191 = tpu.matmul %63, %190, %cst_98 {dimension_numbers = #tpu.dot_dimension_numbers<[1], [0], [0], [1], [0, 0, 1, 1], [], []>} : vector<17x32xf32>, vector<32x8xf32>, vector<17x8xf32> -> vector<17x8xf32>
    %192 = vector.extract_strided_slice %27 {offsets = [3, 0, 0], sizes = [1, 1, 8], strides = [1, 1, 1]} : vector<4x1x8xf32> to vector<1x1x8xf32>
    %193 = vector.shape_cast %192 : vector<1x1x8xf32> to vector<1x8xf32>
    %194 = vector.broadcast %193 : vector<1x8xf32> to vector<17x8xf32>
    %195 = arith.addf %191, %194 : vector<17x8xf32>
    %196 = vector.extract_strided_slice %23 {offsets = [3, 0, 0], sizes = [1, 32, 8], strides = [1, 1, 1]} : vector<4x32x8xf32> to vector<1x32x8xf32>
    %197 = vector.shape_cast %196 : vector<1x32x8xf32> to vector<32x8xf32>
    %cst_99 = arith.constant dense<0.000000e+00> : vector<17x8xf32>
    %198 = tpu.matmul %63, %197, %cst_99 {dimension_numbers = #tpu.dot_dimension_numbers<[1], [0], [0], [1], [0, 0, 1, 1], [], []>} : vector<17x32xf32>, vector<32x8xf32>, vector<17x8xf32> -> vector<17x8xf32>
    %199 = vector.extract_strided_slice %29 {offsets = [3, 0, 0], sizes = [1, 1, 8], strides = [1, 1, 1]} : vector<4x1x8xf32> to vector<1x1x8xf32>
    %200 = vector.shape_cast %199 : vector<1x1x8xf32> to vector<1x8xf32>
    %201 = vector.broadcast %200 : vector<1x8xf32> to vector<17x8xf32>
    %202 = arith.addf %198, %201 : vector<17x8xf32>
    %cst_100 = arith.constant dense<0.000000e+00> : vector<17x17xf32>
    %203 = tpu.matmul %188, %195, %cst_100 {dimension_numbers = #tpu.dot_dimension_numbers<[1], [1], [0], [0], [0, 0, 1, 0], [], []>} : vector<17x8xf32>, vector<17x8xf32>, vector<17x17xf32> -> vector<17x17xf32>
    %cst_101 = arith.constant 0.353553385 : f32
    %204 = vector.broadcast %cst_101 : f32 to vector<17x17xf32>
    %205 = arith.mulf %203, %204 : vector<17x17xf32>
    %cst_102 = arith.constant dense<0xFF800000> : vector<17xf32>
    %206 = vector.multi_reduction <maximumf>, %205, %cst_102 [1] : vector<17x17xf32> to vector<17xf32>
    %207 = vector.shape_cast %206 : vector<17xf32> to vector<17x1xf32>
    %208 = vector.broadcast %207 : vector<17x1xf32> to vector<17x17xf32>
    %209 = arith.subf %205, %208 : vector<17x17xf32>
    %210 = math.exp %209 : vector<17x17xf32>
    %cst_103 = arith.constant dense<0.000000e+00> : vector<17xf32>
    %211 = vector.multi_reduction <add>, %210, %cst_103 [1] : vector<17x17xf32> to vector<17xf32>
    %212 = vector.shape_cast %211 : vector<17xf32> to vector<17x1xf32>
    %213 = tpu.reciprocal %212 {approx = true} : vector<17x1xf32> -> vector<17x1xf32>
    %214 = vector.broadcast %213 : vector<17x1xf32> to vector<17x17xf32>
    %215 = arith.mulf %210, %214 : vector<17x17xf32>
    %cst_104 = arith.constant dense<0.000000e+00> : vector<17x8xf32>
    %216 = tpu.matmul %215, %202, %cst_104 {dimension_numbers = #tpu.dot_dimension_numbers<[1], [0], [0], [1], [0, 0, 1, 1], [], []>} : vector<17x17xf32>, vector<17x8xf32>, vector<17x8xf32> -> vector<17x8xf32>
    %217 = vector.extract_strided_slice %31 {offsets = [3, 0, 0], sizes = [1, 8, 32], strides = [1, 1, 1]} : vector<4x8x32xf32> to vector<1x8x32xf32>
    %218 = vector.shape_cast %217 : vector<1x8x32xf32> to vector<8x32xf32>
    %cst_105 = arith.constant dense<0.000000e+00> : vector<17x32xf32>
    %219 = tpu.matmul %216, %218, %cst_105 {dimension_numbers = #tpu.dot_dimension_numbers<[1], [0], [0], [1], [0, 0, 1, 1], [], []>} : vector<17x8xf32>, vector<8x32xf32>, vector<17x32xf32> -> vector<17x32xf32>
    %220 = arith.addf %181, %219 : vector<17x32xf32>
    %221 = arith.addf %5, %220 : vector<17x32xf32>
    %222 = vector.broadcast %33 : vector<1x32xf32> to vector<17x32xf32>
    %223 = arith.addf %221, %222 : vector<17x32xf32>
    %cst_106 = arith.constant dense<0.000000e+00> : vector<17xf32>
    %224 = vector.multi_reduction <add>, %223, %cst_106 [1] : vector<17x32xf32> to vector<17xf32>
    %225 = vector.shape_cast %224 : vector<17xf32> to vector<17x1xf32>
    %cst_107 = arith.constant 3.200000e+01 : f32
    %226 = vector.broadcast %cst_107 : f32 to vector<17x1xf32>
    %227 = arith.divf %225, %226 : vector<17x1xf32>
    %228 = vector.broadcast %227 : vector<17x1xf32> to vector<17x32xf32>
    %229 = arith.subf %223, %228 : vector<17x32xf32>
    %230 = arith.mulf %229, %229 : vector<17x32xf32>
    %cst_108 = arith.constant dense<0.000000e+00> : vector<17xf32>
    %231 = vector.multi_reduction <add>, %230, %cst_108 [1] : vector<17x32xf32> to vector<17xf32>
    %232 = vector.shape_cast %231 : vector<17xf32> to vector<17x1xf32>
    %cst_109 = arith.constant 3.200000e+01 : f32
    %233 = vector.broadcast %cst_109 : f32 to vector<17x1xf32>
    %234 = arith.divf %232, %233 : vector<17x1xf32>
    %235 = vector.broadcast %227 : vector<17x1xf32> to vector<17x32xf32>
    %236 = arith.subf %223, %235 : vector<17x32xf32>
    %cst_110 = arith.constant 9.99999974E-6 : f32
    %237 = vector.broadcast %cst_110 : f32 to vector<17x1xf32>
    %238 = arith.addf %234, %237 : vector<17x1xf32>
    %239 = math.rsqrt %238 : vector<17x1xf32>
    %240 = vector.broadcast %239 : vector<17x1xf32> to vector<17x32xf32>
    %241 = arith.mulf %236, %240 : vector<17x32xf32>
    %242 = vector.broadcast %15 : vector<1x32xf32> to vector<17x32xf32>
    %243 = arith.mulf %241, %242 : vector<17x32xf32>
    %244 = vector.broadcast %17 : vector<1x32xf32> to vector<17x32xf32>
    %245 = arith.addf %243, %244 : vector<17x32xf32>
    %cst_111 = arith.constant dense<0.000000e+00> : vector<17x128xf32>
    %246 = tpu.matmul %245, %35, %cst_111 {dimension_numbers = #tpu.dot_dimension_numbers<[1], [0], [0], [1], [0, 0, 1, 1], [], []>} : vector<17x32xf32>, vector<32x128xf32>, vector<17x128xf32> -> vector<17x128xf32>
    %247 = vector.broadcast %37 : vector<1x128xf32> to vector<17x128xf32>
    %248 = arith.addf %246, %247 : vector<17x128xf32>
    %cst_112 = arith.constant 5.000000e-01 : f32
    %249 = vector.broadcast %cst_112 : f32 to vector<17x128xf32>
    %250 = arith.mulf %249, %248 : vector<17x128xf32>
    %cst_113 = arith.constant 4.471500e-02 : f32
    %251 = vector.broadcast %cst_113 : f32 to vector<17x128xf32>
    %252 = arith.mulf %251, %248 : vector<17x128xf32>
    %253 = arith.mulf %252, %248 : vector<17x128xf32>
    %254 = arith.mulf %253, %248 : vector<17x128xf32>
    %255 = arith.addf %248, %254 : vector<17x128xf32>
    %cst_114 = arith.constant 0.797884583 : f32
    %256 = vector.broadcast %cst_114 : f32 to vector<17x128xf32>
    %257 = arith.mulf %256, %255 : vector<17x128xf32>
    %258 = math.tanh %257 : vector<17x128xf32>
    %cst_115 = arith.constant 1.000000e+00 : f32
    %259 = vector.broadcast %cst_115 : f32 to vector<17x128xf32>
    %260 = arith.addf %259, %258 : vector<17x128xf32>
    %261 = arith.mulf %250, %260 : vector<17x128xf32>
    %cst_116 = arith.constant dense<0.000000e+00> : vector<17x32xf32>
    %262 = tpu.matmul %261, %39, %cst_116 {dimension_numbers = #tpu.dot_dimension_numbers<[1], [0], [0], [1], [0, 0, 1, 1], [], []>} : vector<17x128xf32>, vector<128x32xf32>, vector<17x32xf32> -> vector<17x32xf32>
    %263 = vector.broadcast %41 : vector<1x32xf32> to vector<17x32xf32>
    %264 = arith.addf %262, %263 : vector<17x32xf32>
    %265 = arith.addf %223, %264 : vector<17x32xf32>
    %cst_117 = arith.constant dense<0.000000e+00> : vector<17xf32>
    %266 = vector.multi_reduction <add>, %9, %cst_117 [1] : vector<17x32xf32> to vector<17xf32>
    %267 = vector.shape_cast %266 : vector<17xf32> to vector<17x1xf32>
    %cst_118 = arith.constant 3.200000e+01 : f32
    %268 = vector.broadcast %cst_118 : f32 to vector<17x1xf32>
    %269 = arith.divf %267, %268 : vector<17x1xf32>
    %270 = vector.broadcast %269 : vector<17x1xf32> to vector<17x32xf32>
    %271 = arith.subf %9, %270 : vector<17x32xf32>
    %272 = arith.mulf %271, %271 : vector<17x32xf32>
    %cst_119 = arith.constant dense<0.000000e+00> : vector<17xf32>
    %273 = vector.multi_reduction <add>, %272, %cst_119 [1] : vector<17x32xf32> to vector<17xf32>
    %274 = vector.shape_cast %273 : vector<17xf32> to vector<17x1xf32>
    %cst_120 = arith.constant 3.200000e+01 : f32
    %275 = vector.broadcast %cst_120 : f32 to vector<17x1xf32>
    %276 = arith.divf %274, %275 : vector<17x1xf32>
    %277 = vector.broadcast %269 : vector<17x1xf32> to vector<17x32xf32>
    %278 = arith.subf %9, %277 : vector<17x32xf32>
    %cst_121 = arith.constant 9.99999974E-6 : f32
    %279 = vector.broadcast %cst_121 : f32 to vector<17x1xf32>
    %280 = arith.addf %276, %279 : vector<17x1xf32>
    %281 = math.rsqrt %280 : vector<17x1xf32>
    %282 = vector.broadcast %281 : vector<17x1xf32> to vector<17x32xf32>
    %283 = arith.mulf %278, %282 : vector<17x32xf32>
    %284 = vector.broadcast %11 : vector<1x32xf32> to vector<17x32xf32>
    %285 = arith.mulf %283, %284 : vector<17x32xf32>
    %286 = vector.broadcast %13 : vector<1x32xf32> to vector<17x32xf32>
    %287 = arith.addf %285, %286 : vector<17x32xf32>
    %cst_122 = arith.constant 0.000000e+00 : f32
    %288 = vector.broadcast %cst_122 : f32 to vector<17x32xf32>
    %289 = vector.extract_strided_slice %19 {offsets = [0, 0, 0], sizes = [1, 32, 8], strides = [1, 1, 1]} : vector<4x32x8xf32> to vector<1x32x8xf32>
    %290 = vector.shape_cast %289 : vector<1x32x8xf32> to vector<32x8xf32>
    %cst_123 = arith.constant dense<0.000000e+00> : vector<17x8xf32>
    %291 = tpu.matmul %287, %290, %cst_123 {dimension_numbers = #tpu.dot_dimension_numbers<[1], [0], [0], [1], [0, 0, 1, 1], [], []>} : vector<17x32xf32>, vector<32x8xf32>, vector<17x8xf32> -> vector<17x8xf32>
    %292 = vector.extract_strided_slice %25 {offsets = [0, 0, 0], sizes = [1, 1, 8], strides = [1, 1, 1]} : vector<4x1x8xf32> to vector<1x1x8xf32>
    %293 = vector.shape_cast %292 : vector<1x1x8xf32> to vector<1x8xf32>
    %294 = vector.broadcast %293 : vector<1x8xf32> to vector<17x8xf32>
    %295 = arith.addf %291, %294 : vector<17x8xf32>
    %296 = vector.extract_strided_slice %21 {offsets = [0, 0, 0], sizes = [1, 32, 8], strides = [1, 1, 1]} : vector<4x32x8xf32> to vector<1x32x8xf32>
    %297 = vector.shape_cast %296 : vector<1x32x8xf32> to vector<32x8xf32>
    %cst_124 = arith.constant dense<0.000000e+00> : vector<17x8xf32>
    %298 = tpu.matmul %287, %297, %cst_124 {dimension_numbers = #tpu.dot_dimension_numbers<[1], [0], [0], [1], [0, 0, 1, 1], [], []>} : vector<17x32xf32>, vector<32x8xf32>, vector<17x8xf32> -> vector<17x8xf32>
    %299 = vector.extract_strided_slice %27 {offsets = [0, 0, 0], sizes = [1, 1, 8], strides = [1, 1, 1]} : vector<4x1x8xf32> to vector<1x1x8xf32>
    %300 = vector.shape_cast %299 : vector<1x1x8xf32> to vector<1x8xf32>
    %301 = vector.broadcast %300 : vector<1x8xf32> to vector<17x8xf32>
    %302 = arith.addf %298, %301 : vector<17x8xf32>
    %303 = vector.extract_strided_slice %23 {offsets = [0, 0, 0], sizes = [1, 32, 8], strides = [1, 1, 1]} : vector<4x32x8xf32> to vector<1x32x8xf32>
    %304 = vector.shape_cast %303 : vector<1x32x8xf32> to vector<32x8xf32>
    %cst_125 = arith.constant dense<0.000000e+00> : vector<17x8xf32>
    %305 = tpu.matmul %287, %304, %cst_125 {dimension_numbers = #tpu.dot_dimension_numbers<[1], [0], [0], [1], [0, 0, 1, 1], [], []>} : vector<17x32xf32>, vector<32x8xf32>, vector<17x8xf32> -> vector<17x8xf32>
    %306 = vector.extract_strided_slice %29 {offsets = [0, 0, 0], sizes = [1, 1, 8], strides = [1, 1, 1]} : vector<4x1x8xf32> to vector<1x1x8xf32>
    %307 = vector.shape_cast %306 : vector<1x1x8xf32> to vector<1x8xf32>
    %308 = vector.broadcast %307 : vector<1x8xf32> to vector<17x8xf32>
    %309 = arith.addf %305, %308 : vector<17x8xf32>
    %cst_126 = arith.constant dense<0.000000e+00> : vector<17x17xf32>
    %310 = tpu.matmul %295, %302, %cst_126 {dimension_numbers = #tpu.dot_dimension_numbers<[1], [1], [0], [0], [0, 0, 1, 0], [], []>} : vector<17x8xf32>, vector<17x8xf32>, vector<17x17xf32> -> vector<17x17xf32>
    %cst_127 = arith.constant 0.353553385 : f32
    %311 = vector.broadcast %cst_127 : f32 to vector<17x17xf32>
    %312 = arith.mulf %310, %311 : vector<17x17xf32>
    %cst_128 = arith.constant dense<0xFF800000> : vector<17xf32>
    %313 = vector.multi_reduction <maximumf>, %312, %cst_128 [1] : vector<17x17xf32> to vector<17xf32>
    %314 = vector.shape_cast %313 : vector<17xf32> to vector<17x1xf32>
    %315 = vector.broadcast %314 : vector<17x1xf32> to vector<17x17xf32>
    %316 = arith.subf %312, %315 : vector<17x17xf32>
    %317 = math.exp %316 : vector<17x17xf32>
    %cst_129 = arith.constant dense<0.000000e+00> : vector<17xf32>
    %318 = vector.multi_reduction <add>, %317, %cst_129 [1] : vector<17x17xf32> to vector<17xf32>
    %319 = vector.shape_cast %318 : vector<17xf32> to vector<17x1xf32>
    %320 = tpu.reciprocal %319 {approx = true} : vector<17x1xf32> -> vector<17x1xf32>
    %321 = vector.broadcast %320 : vector<17x1xf32> to vector<17x17xf32>
    %322 = arith.mulf %317, %321 : vector<17x17xf32>
    %cst_130 = arith.constant dense<0.000000e+00> : vector<17x8xf32>
    %323 = tpu.matmul %322, %309, %cst_130 {dimension_numbers = #tpu.dot_dimension_numbers<[1], [0], [0], [1], [0, 0, 1, 1], [], []>} : vector<17x17xf32>, vector<17x8xf32>, vector<17x8xf32> -> vector<17x8xf32>
    %324 = vector.extract_strided_slice %31 {offsets = [0, 0, 0], sizes = [1, 8, 32], strides = [1, 1, 1]} : vector<4x8x32xf32> to vector<1x8x32xf32>
    %325 = vector.shape_cast %324 : vector<1x8x32xf32> to vector<8x32xf32>
    %cst_131 = arith.constant dense<0.000000e+00> : vector<17x32xf32>
    %326 = tpu.matmul %323, %325, %cst_131 {dimension_numbers = #tpu.dot_dimension_numbers<[1], [0], [0], [1], [0, 0, 1, 1], [], []>} : vector<17x8xf32>, vector<8x32xf32>, vector<17x32xf32> -> vector<17x32xf32>
    %327 = arith.addf %288, %326 : vector<17x32xf32>
    %328 = vector.extract_strided_slice %19 {offsets = [1, 0, 0], sizes = [1, 32, 8], strides = [1, 1, 1]} : vector<4x32x8xf32> to vector<1x32x8xf32>
    %329 = vector.shape_cast %328 : vector<1x32x8xf32> to vector<32x8xf32>
    %cst_132 = arith.constant dense<0.000000e+00> : vector<17x8xf32>
    %330 = tpu.matmul %287, %329, %cst_132 {dimension_numbers = #tpu.dot_dimension_numbers<[1], [0], [0], [1], [0, 0, 1, 1], [], []>} : vector<17x32xf32>, vector<32x8xf32>, vector<17x8xf32> -> vector<17x8xf32>
    %331 = vector.extract_strided_slice %25 {offsets = [1, 0, 0], sizes = [1, 1, 8], strides = [1, 1, 1]} : vector<4x1x8xf32> to vector<1x1x8xf32>
    %332 = vector.shape_cast %331 : vector<1x1x8xf32> to vector<1x8xf32>
    %333 = vector.broadcast %332 : vector<1x8xf32> to vector<17x8xf32>
    %334 = arith.addf %330, %333 : vector<17x8xf32>
    %335 = vector.extract_strided_slice %21 {offsets = [1, 0, 0], sizes = [1, 32, 8], strides = [1, 1, 1]} : vector<4x32x8xf32> to vector<1x32x8xf32>
    %336 = vector.shape_cast %335 : vector<1x32x8xf32> to vector<32x8xf32>
    %cst_133 = arith.constant dense<0.000000e+00> : vector<17x8xf32>
    %337 = tpu.matmul %287, %336, %cst_133 {dimension_numbers = #tpu.dot_dimension_numbers<[1], [0], [0], [1], [0, 0, 1, 1], [], []>} : vector<17x32xf32>, vector<32x8xf32>, vector<17x8xf32> -> vector<17x8xf32>
    %338 = vector.extract_strided_slice %27 {offsets = [1, 0, 0], sizes = [1, 1, 8], strides = [1, 1, 1]} : vector<4x1x8xf32> to vector<1x1x8xf32>
    %339 = vector.shape_cast %338 : vector<1x1x8xf32> to vector<1x8xf32>
    %340 = vector.broadcast %339 : vector<1x8xf32> to vector<17x8xf32>
    %341 = arith.addf %337, %340 : vector<17x8xf32>
    %342 = vector.extract_strided_slice %23 {offsets = [1, 0, 0], sizes = [1, 32, 8], strides = [1, 1, 1]} : vector<4x32x8xf32> to vector<1x32x8xf32>
    %343 = vector.shape_cast %342 : vector<1x32x8xf32> to vector<32x8xf32>
    %cst_134 = arith.constant dense<0.000000e+00> : vector<17x8xf32>
    %344 = tpu.matmul %287, %343, %cst_134 {dimension_numbers = #tpu.dot_dimension_numbers<[1], [0], [0], [1], [0, 0, 1, 1], [], []>} : vector<17x32xf32>, vector<32x8xf32>, vector<17x8xf32> -> vector<17x8xf32>
    %345 = vector.extract_strided_slice %29 {offsets = [1, 0, 0], sizes = [1, 1, 8], strides = [1, 1, 1]} : vector<4x1x8xf32> to vector<1x1x8xf32>
    %346 = vector.shape_cast %345 : vector<1x1x8xf32> to vector<1x8xf32>
    %347 = vector.broadcast %346 : vector<1x8xf32> to vector<17x8xf32>
    %348 = arith.addf %344, %347 : vector<17x8xf32>
    %cst_135 = arith.constant dense<0.000000e+00> : vector<17x17xf32>
    %349 = tpu.matmul %334, %341, %cst_135 {dimension_numbers = #tpu.dot_dimension_numbers<[1], [1], [0], [0], [0, 0, 1, 0], [], []>} : vector<17x8xf32>, vector<17x8xf32>, vector<17x17xf32> -> vector<17x17xf32>
    %cst_136 = arith.constant 0.353553385 : f32
    %350 = vector.broadcast %cst_136 : f32 to vector<17x17xf32>
    %351 = arith.mulf %349, %350 : vector<17x17xf32>
    %cst_137 = arith.constant dense<0xFF800000> : vector<17xf32>
    %352 = vector.multi_reduction <maximumf>, %351, %cst_137 [1] : vector<17x17xf32> to vector<17xf32>
    %353 = vector.shape_cast %352 : vector<17xf32> to vector<17x1xf32>
    %354 = vector.broadcast %353 : vector<17x1xf32> to vector<17x17xf32>
    %355 = arith.subf %351, %354 : vector<17x17xf32>
    %356 = math.exp %355 : vector<17x17xf32>
    %cst_138 = arith.constant dense<0.000000e+00> : vector<17xf32>
    %357 = vector.multi_reduction <add>, %356, %cst_138 [1] : vector<17x17xf32> to vector<17xf32>
    %358 = vector.shape_cast %357 : vector<17xf32> to vector<17x1xf32>
    %359 = tpu.reciprocal %358 {approx = true} : vector<17x1xf32> -> vector<17x1xf32>
    %360 = vector.broadcast %359 : vector<17x1xf32> to vector<17x17xf32>
    %361 = arith.mulf %356, %360 : vector<17x17xf32>
    %cst_139 = arith.constant dense<0.000000e+00> : vector<17x8xf32>
    %362 = tpu.matmul %361, %348, %cst_139 {dimension_numbers = #tpu.dot_dimension_numbers<[1], [0], [0], [1], [0, 0, 1, 1], [], []>} : vector<17x17xf32>, vector<17x8xf32>, vector<17x8xf32> -> vector<17x8xf32>
    %363 = vector.extract_strided_slice %31 {offsets = [1, 0, 0], sizes = [1, 8, 32], strides = [1, 1, 1]} : vector<4x8x32xf32> to vector<1x8x32xf32>
    %364 = vector.shape_cast %363 : vector<1x8x32xf32> to vector<8x32xf32>
    %cst_140 = arith.constant dense<0.000000e+00> : vector<17x32xf32>
    %365 = tpu.matmul %362, %364, %cst_140 {dimension_numbers = #tpu.dot_dimension_numbers<[1], [0], [0], [1], [0, 0, 1, 1], [], []>} : vector<17x8xf32>, vector<8x32xf32>, vector<17x32xf32> -> vector<17x32xf32>
    %366 = arith.addf %327, %365 : vector<17x32xf32>
    %367 = vector.extract_strided_slice %19 {offsets = [2, 0, 0], sizes = [1, 32, 8], strides = [1, 1, 1]} : vector<4x32x8xf32> to vector<1x32x8xf32>
    %368 = vector.shape_cast %367 : vector<1x32x8xf32> to vector<32x8xf32>
    %cst_141 = arith.constant dense<0.000000e+00> : vector<17x8xf32>
    %369 = tpu.matmul %287, %368, %cst_141 {dimension_numbers = #tpu.dot_dimension_numbers<[1], [0], [0], [1], [0, 0, 1, 1], [], []>} : vector<17x32xf32>, vector<32x8xf32>, vector<17x8xf32> -> vector<17x8xf32>
    %370 = vector.extract_strided_slice %25 {offsets = [2, 0, 0], sizes = [1, 1, 8], strides = [1, 1, 1]} : vector<4x1x8xf32> to vector<1x1x8xf32>
    %371 = vector.shape_cast %370 : vector<1x1x8xf32> to vector<1x8xf32>
    %372 = vector.broadcast %371 : vector<1x8xf32> to vector<17x8xf32>
    %373 = arith.addf %369, %372 : vector<17x8xf32>
    %374 = vector.extract_strided_slice %21 {offsets = [2, 0, 0], sizes = [1, 32, 8], strides = [1, 1, 1]} : vector<4x32x8xf32> to vector<1x32x8xf32>
    %375 = vector.shape_cast %374 : vector<1x32x8xf32> to vector<32x8xf32>
    %cst_142 = arith.constant dense<0.000000e+00> : vector<17x8xf32>
    %376 = tpu.matmul %287, %375, %cst_142 {dimension_numbers = #tpu.dot_dimension_numbers<[1], [0], [0], [1], [0, 0, 1, 1], [], []>} : vector<17x32xf32>, vector<32x8xf32>, vector<17x8xf32> -> vector<17x8xf32>
    %377 = vector.extract_strided_slice %27 {offsets = [2, 0, 0], sizes = [1, 1, 8], strides = [1, 1, 1]} : vector<4x1x8xf32> to vector<1x1x8xf32>
    %378 = vector.shape_cast %377 : vector<1x1x8xf32> to vector<1x8xf32>
    %379 = vector.broadcast %378 : vector<1x8xf32> to vector<17x8xf32>
    %380 = arith.addf %376, %379 : vector<17x8xf32>
    %381 = vector.extract_strided_slice %23 {offsets = [2, 0, 0], sizes = [1, 32, 8], strides = [1, 1, 1]} : vector<4x32x8xf32> to vector<1x32x8xf32>
    %382 = vector.shape_cast %381 : vector<1x32x8xf32> to vector<32x8xf32>
    %cst_143 = arith.constant dense<0.000000e+00> : vector<17x8xf32>
    %383 = tpu.matmul %287, %382, %cst_143 {dimension_numbers = #tpu.dot_dimension_numbers<[1], [0], [0], [1], [0, 0, 1, 1], [], []>} : vector<17x32xf32>, vector<32x8xf32>, vector<17x8xf32> -> vector<17x8xf32>
    %384 = vector.extract_strided_slice %29 {offsets = [2, 0, 0], sizes = [1, 1, 8], strides = [1, 1, 1]} : vector<4x1x8xf32> to vector<1x1x8xf32>
    %385 = vector.shape_cast %384 : vector<1x1x8xf32> to vector<1x8xf32>
    %386 = vector.broadcast %385 : vector<1x8xf32> to vector<17x8xf32>
    %387 = arith.addf %383, %386 : vector<17x8xf32>
    %cst_144 = arith.constant dense<0.000000e+00> : vector<17x17xf32>
    %388 = tpu.matmul %373, %380, %cst_144 {dimension_numbers = #tpu.dot_dimension_numbers<[1], [1], [0], [0], [0, 0, 1, 0], [], []>} : vector<17x8xf32>, vector<17x8xf32>, vector<17x17xf32> -> vector<17x17xf32>
    %cst_145 = arith.constant 0.353553385 : f32
    %389 = vector.broadcast %cst_145 : f32 to vector<17x17xf32>
    %390 = arith.mulf %388, %389 : vector<17x17xf32>
    %cst_146 = arith.constant dense<0xFF800000> : vector<17xf32>
    %391 = vector.multi_reduction <maximumf>, %390, %cst_146 [1] : vector<17x17xf32> to vector<17xf32>
    %392 = vector.shape_cast %391 : vector<17xf32> to vector<17x1xf32>
    %393 = vector.broadcast %392 : vector<17x1xf32> to vector<17x17xf32>
    %394 = arith.subf %390, %393 : vector<17x17xf32>
    %395 = math.exp %394 : vector<17x17xf32>
    %cst_147 = arith.constant dense<0.000000e+00> : vector<17xf32>
    %396 = vector.multi_reduction <add>, %395, %cst_147 [1] : vector<17x17xf32> to vector<17xf32>
    %397 = vector.shape_cast %396 : vector<17xf32> to vector<17x1xf32>
    %398 = tpu.reciprocal %397 {approx = true} : vector<17x1xf32> -> vector<17x1xf32>
    %399 = vector.broadcast %398 : vector<17x1xf32> to vector<17x17xf32>
    %400 = arith.mulf %395, %399 : vector<17x17xf32>
    %cst_148 = arith.constant dense<0.000000e+00> : vector<17x8xf32>
    %401 = tpu.matmul %400, %387, %cst_148 {dimension_numbers = #tpu.dot_dimension_numbers<[1], [0], [0], [1], [0, 0, 1, 1], [], []>} : vector<17x17xf32>, vector<17x8xf32>, vector<17x8xf32> -> vector<17x8xf32>
    %402 = vector.extract_strided_slice %31 {offsets = [2, 0, 0], sizes = [1, 8, 32], strides = [1, 1, 1]} : vector<4x8x32xf32> to vector<1x8x32xf32>
    %403 = vector.shape_cast %402 : vector<1x8x32xf32> to vector<8x32xf32>
    %cst_149 = arith.constant dense<0.000000e+00> : vector<17x32xf32>
    %404 = tpu.matmul %401, %403, %cst_149 {dimension_numbers = #tpu.dot_dimension_numbers<[1], [0], [0], [1], [0, 0, 1, 1], [], []>} : vector<17x8xf32>, vector<8x32xf32>, vector<17x32xf32> -> vector<17x32xf32>
    %405 = arith.addf %366, %404 : vector<17x32xf32>
    %406 = vector.extract_strided_slice %19 {offsets = [3, 0, 0], sizes = [1, 32, 8], strides = [1, 1, 1]} : vector<4x32x8xf32> to vector<1x32x8xf32>
    %407 = vector.shape_cast %406 : vector<1x32x8xf32> to vector<32x8xf32>
    %cst_150 = arith.constant dense<0.000000e+00> : vector<17x8xf32>
    %408 = tpu.matmul %287, %407, %cst_150 {dimension_numbers = #tpu.dot_dimension_numbers<[1], [0], [0], [1], [0, 0, 1, 1], [], []>} : vector<17x32xf32>, vector<32x8xf32>, vector<17x8xf32> -> vector<17x8xf32>
    %409 = vector.extract_strided_slice %25 {offsets = [3, 0, 0], sizes = [1, 1, 8], strides = [1, 1, 1]} : vector<4x1x8xf32> to vector<1x1x8xf32>
    %410 = vector.shape_cast %409 : vector<1x1x8xf32> to vector<1x8xf32>
    %411 = vector.broadcast %410 : vector<1x8xf32> to vector<17x8xf32>
    %412 = arith.addf %408, %411 : vector<17x8xf32>
    %413 = vector.extract_strided_slice %21 {offsets = [3, 0, 0], sizes = [1, 32, 8], strides = [1, 1, 1]} : vector<4x32x8xf32> to vector<1x32x8xf32>
    %414 = vector.shape_cast %413 : vector<1x32x8xf32> to vector<32x8xf32>
    %cst_151 = arith.constant dense<0.000000e+00> : vector<17x8xf32>
    %415 = tpu.matmul %287, %414, %cst_151 {dimension_numbers = #tpu.dot_dimension_numbers<[1], [0], [0], [1], [0, 0, 1, 1], [], []>} : vector<17x32xf32>, vector<32x8xf32>, vector<17x8xf32> -> vector<17x8xf32>
    %416 = vector.extract_strided_slice %27 {offsets = [3, 0, 0], sizes = [1, 1, 8], strides = [1, 1, 1]} : vector<4x1x8xf32> to vector<1x1x8xf32>
    %417 = vector.shape_cast %416 : vector<1x1x8xf32> to vector<1x8xf32>
    %418 = vector.broadcast %417 : vector<1x8xf32> to vector<17x8xf32>
    %419 = arith.addf %415, %418 : vector<17x8xf32>
    %420 = vector.extract_strided_slice %23 {offsets = [3, 0, 0], sizes = [1, 32, 8], strides = [1, 1, 1]} : vector<4x32x8xf32> to vector<1x32x8xf32>
    %421 = vector.shape_cast %420 : vector<1x32x8xf32> to vector<32x8xf32>
    %cst_152 = arith.constant dense<0.000000e+00> : vector<17x8xf32>
    %422 = tpu.matmul %287, %421, %cst_152 {dimension_numbers = #tpu.dot_dimension_numbers<[1], [0], [0], [1], [0, 0, 1, 1], [], []>} : vector<17x32xf32>, vector<32x8xf32>, vector<17x8xf32> -> vector<17x8xf32>
    %423 = vector.extract_strided_slice %29 {offsets = [3, 0, 0], sizes = [1, 1, 8], strides = [1, 1, 1]} : vector<4x1x8xf32> to vector<1x1x8xf32>
    %424 = vector.shape_cast %423 : vector<1x1x8xf32> to vector<1x8xf32>
    %425 = vector.broadcast %424 : vector<1x8xf32> to vector<17x8xf32>
    %426 = arith.addf %422, %425 : vector<17x8xf32>
    %cst_153 = arith.constant dense<0.000000e+00> : vector<17x17xf32>
    %427 = tpu.matmul %412, %419, %cst_153 {dimension_numbers = #tpu.dot_dimension_numbers<[1], [1], [0], [0], [0, 0, 1, 0], [], []>} : vector<17x8xf32>, vector<17x8xf32>, vector<17x17xf32> -> vector<17x17xf32>
    %cst_154 = arith.constant 0.353553385 : f32
    %428 = vector.broadcast %cst_154 : f32 to vector<17x17xf32>
    %429 = arith.mulf %427, %428 : vector<17x17xf32>
    %cst_155 = arith.constant dense<0xFF800000> : vector<17xf32>
    %430 = vector.multi_reduction <maximumf>, %429, %cst_155 [1] : vector<17x17xf32> to vector<17xf32>
    %431 = vector.shape_cast %430 : vector<17xf32> to vector<17x1xf32>
    %432 = vector.broadcast %431 : vector<17x1xf32> to vector<17x17xf32>
    %433 = arith.subf %429, %432 : vector<17x17xf32>
    %434 = math.exp %433 : vector<17x17xf32>
    %cst_156 = arith.constant dense<0.000000e+00> : vector<17xf32>
    %435 = vector.multi_reduction <add>, %434, %cst_156 [1] : vector<17x17xf32> to vector<17xf32>
    %436 = vector.shape_cast %435 : vector<17xf32> to vector<17x1xf32>
    %437 = tpu.reciprocal %436 {approx = true} : vector<17x1xf32> -> vector<17x1xf32>
    %438 = vector.broadcast %437 : vector<17x1xf32> to vector<17x17xf32>
    %439 = arith.mulf %434, %438 : vector<17x17xf32>
    %cst_157 = arith.constant dense<0.000000e+00> : vector<17x8xf32>
    %440 = tpu.matmul %439, %426, %cst_157 {dimension_numbers = #tpu.dot_dimension_numbers<[1], [0], [0], [1], [0, 0, 1, 1], [], []>} : vector<17x17xf32>, vector<17x8xf32>, vector<17x8xf32> -> vector<17x8xf32>
    %441 = vector.extract_strided_slice %31 {offsets = [3, 0, 0], sizes = [1, 8, 32], strides = [1, 1, 1]} : vector<4x8x32xf32> to vector<1x8x32xf32>
    %442 = vector.shape_cast %441 : vector<1x8x32xf32> to vector<8x32xf32>
    %cst_158 = arith.constant dense<0.000000e+00> : vector<17x32xf32>
    %443 = tpu.matmul %440, %442, %cst_158 {dimension_numbers = #tpu.dot_dimension_numbers<[1], [0], [0], [1], [0, 0, 1, 1], [], []>} : vector<17x8xf32>, vector<8x32xf32>, vector<17x32xf32> -> vector<17x32xf32>
    %444 = arith.addf %405, %443 : vector<17x32xf32>
    %445 = arith.addf %9, %444 : vector<17x32xf32>
    %446 = vector.broadcast %33 : vector<1x32xf32> to vector<17x32xf32>
    %447 = arith.addf %445, %446 : vector<17x32xf32>
    %cst_159 = arith.constant dense<0.000000e+00> : vector<17xf32>
    %448 = vector.multi_reduction <add>, %447, %cst_159 [1] : vector<17x32xf32> to vector<17xf32>
    %449 = vector.shape_cast %448 : vector<17xf32> to vector<17x1xf32>
    %cst_160 = arith.constant 3.200000e+01 : f32
    %450 = vector.broadcast %cst_160 : f32 to vector<17x1xf32>
    %451 = arith.divf %449, %450 : vector<17x1xf32>
    %452 = vector.broadcast %451 : vector<17x1xf32> to vector<17x32xf32>
    %453 = arith.subf %447, %452 : vector<17x32xf32>
    %454 = arith.mulf %453, %453 : vector<17x32xf32>
    %cst_161 = arith.constant dense<0.000000e+00> : vector<17xf32>
    %455 = vector.multi_reduction <add>, %454, %cst_161 [1] : vector<17x32xf32> to vector<17xf32>
    %456 = vector.shape_cast %455 : vector<17xf32> to vector<17x1xf32>
    %cst_162 = arith.constant 3.200000e+01 : f32
    %457 = vector.broadcast %cst_162 : f32 to vector<17x1xf32>
    %458 = arith.divf %456, %457 : vector<17x1xf32>
    %459 = vector.broadcast %451 : vector<17x1xf32> to vector<17x32xf32>
    %460 = arith.subf %447, %459 : vector<17x32xf32>
    %cst_163 = arith.constant 9.99999974E-6 : f32
    %461 = vector.broadcast %cst_163 : f32 to vector<17x1xf32>
    %462 = arith.addf %458, %461 : vector<17x1xf32>
    %463 = math.rsqrt %462 : vector<17x1xf32>
    %464 = vector.broadcast %463 : vector<17x1xf32> to vector<17x32xf32>
    %465 = arith.mulf %460, %464 : vector<17x32xf32>
    %466 = vector.broadcast %15 : vector<1x32xf32> to vector<17x32xf32>
    %467 = arith.mulf %465, %466 : vector<17x32xf32>
    %468 = vector.broadcast %17 : vector<1x32xf32> to vector<17x32xf32>
    %469 = arith.addf %467, %468 : vector<17x32xf32>
    %cst_164 = arith.constant dense<0.000000e+00> : vector<17x128xf32>
    %470 = tpu.matmul %469, %35, %cst_164 {dimension_numbers = #tpu.dot_dimension_numbers<[1], [0], [0], [1], [0, 0, 1, 1], [], []>} : vector<17x32xf32>, vector<32x128xf32>, vector<17x128xf32> -> vector<17x128xf32>
    %471 = vector.broadcast %37 : vector<1x128xf32> to vector<17x128xf32>
    %472 = arith.addf %470, %471 : vector<17x128xf32>
    %cst_165 = arith.constant 5.000000e-01 : f32
    %473 = vector.broadcast %cst_165 : f32 to vector<17x128xf32>
    %474 = arith.mulf %473, %472 : vector<17x128xf32>
    %cst_166 = arith.constant 4.471500e-02 : f32
    %475 = vector.broadcast %cst_166 : f32 to vector<17x128xf32>
    %476 = arith.mulf %475, %472 : vector<17x128xf32>
    %477 = arith.mulf %476, %472 : vector<17x128xf32>
    %478 = arith.mulf %477, %472 : vector<17x128xf32>
    %479 = arith.addf %472, %478 : vector<17x128xf32>
    %cst_167 = arith.constant 0.797884583 : f32
    %480 = vector.broadcast %cst_167 : f32 to vector<17x128xf32>
    %481 = arith.mulf %480, %479 : vector<17x128xf32>
    %482 = math.tanh %481 : vector<17x128xf32>
    %cst_168 = arith.constant 1.000000e+00 : f32
    %483 = vector.broadcast %cst_168 : f32 to vector<17x128xf32>
    %484 = arith.addf %483, %482 : vector<17x128xf32>
    %485 = arith.mulf %474, %484 : vector<17x128xf32>
    %cst_169 = arith.constant dense<0.000000e+00> : vector<17x32xf32>
    %486 = tpu.matmul %485, %39, %cst_169 {dimension_numbers = #tpu.dot_dimension_numbers<[1], [0], [0], [1], [0, 0, 1, 1], [], []>} : vector<17x128xf32>, vector<128x32xf32>, vector<17x32xf32> -> vector<17x32xf32>
    %487 = vector.broadcast %41 : vector<1x32xf32> to vector<17x32xf32>
    %488 = arith.addf %486, %487 : vector<17x32xf32>
    %489 = arith.addf %447, %488 : vector<17x32xf32>
    %c1_170 = arith.constant 1 : index
    %c0_171 = arith.constant 0 : index
    %c0_172 = arith.constant 0 : index
    %490 = vector.load %arg3[%c1_170, %c0_171, %c0_172] : memref<2x1x32xf32, #tpu.memory_space<vmem>>, vector<1x1x32xf32>
    %491 = vector.shape_cast %490 : vector<1x1x32xf32> to vector<1x32xf32>
    %c1_173 = arith.constant 1 : index
    %c0_174 = arith.constant 0 : index
    %c0_175 = arith.constant 0 : index
    %492 = vector.load %arg4[%c1_173, %c0_174, %c0_175] : memref<2x1x32xf32, #tpu.memory_space<vmem>>, vector<1x1x32xf32>
    %493 = vector.shape_cast %492 : vector<1x1x32xf32> to vector<1x32xf32>
    %c1_176 = arith.constant 1 : index
    %c0_177 = arith.constant 0 : index
    %c0_178 = arith.constant 0 : index
    %494 = vector.load %arg13[%c1_176, %c0_177, %c0_178] : memref<2x1x32xf32, #tpu.memory_space<vmem>>, vector<1x1x32xf32>
    %495 = vector.shape_cast %494 : vector<1x1x32xf32> to vector<1x32xf32>
    %c1_179 = arith.constant 1 : index
    %c0_180 = arith.constant 0 : index
    %c0_181 = arith.constant 0 : index
    %496 = vector.load %arg14[%c1_179, %c0_180, %c0_181] : memref<2x1x32xf32, #tpu.memory_space<vmem>>, vector<1x1x32xf32>
    %497 = vector.shape_cast %496 : vector<1x1x32xf32> to vector<1x32xf32>
    %c1_182 = arith.constant 1 : index
    %c0_183 = arith.constant 0 : index
    %c0_184 = arith.constant 0 : index
    %c0_185 = arith.constant 0 : index
    %498 = vector.load %arg5[%c1_182, %c0_183, %c0_184, %c0_185] : memref<2x4x32x8xf32, #tpu.memory_space<vmem>>, vector<1x4x32x8xf32>
    %499 = vector.shape_cast %498 : vector<1x4x32x8xf32> to vector<4x32x8xf32>
    %c1_186 = arith.constant 1 : index
    %c0_187 = arith.constant 0 : index
    %c0_188 = arith.constant 0 : index
    %c0_189 = arith.constant 0 : index
    %500 = vector.load %arg7[%c1_186, %c0_187, %c0_188, %c0_189] : memref<2x4x32x8xf32, #tpu.memory_space<vmem>>, vector<1x4x32x8xf32>
    %501 = vector.shape_cast %500 : vector<1x4x32x8xf32> to vector<4x32x8xf32>
    %c1_190 = arith.constant 1 : index
    %c0_191 = arith.constant 0 : index
    %c0_192 = arith.constant 0 : index
    %c0_193 = arith.constant 0 : index
    %502 = vector.load %arg9[%c1_190, %c0_191, %c0_192, %c0_193] : memref<2x4x32x8xf32, #tpu.memory_space<vmem>>, vector<1x4x32x8xf32>
    %503 = vector.shape_cast %502 : vector<1x4x32x8xf32> to vector<4x32x8xf32>
    %c1_194 = arith.constant 1 : index
    %c0_195 = arith.constant 0 : index
    %c0_196 = arith.constant 0 : index
    %c0_197 = arith.constant 0 : index
    %504 = vector.load %arg6[%c1_194, %c0_195, %c0_196, %c0_197] : memref<2x4x1x8xf32, #tpu.memory_space<vmem>>, vector<1x4x1x8xf32>
    %505 = vector.shape_cast %504 : vector<1x4x1x8xf32> to vector<4x1x8xf32>
    %c1_198 = arith.constant 1 : index
    %c0_199 = arith.constant 0 : index
    %c0_200 = arith.constant 0 : index
    %c0_201 = arith.constant 0 : index
    %506 = vector.load %arg8[%c1_198, %c0_199, %c0_200, %c0_201] : memref<2x4x1x8xf32, #tpu.memory_space<vmem>>, vector<1x4x1x8xf32>
    %507 = vector.shape_cast %506 : vector<1x4x1x8xf32> to vector<4x1x8xf32>
    %c1_202 = arith.constant 1 : index
    %c0_203 = arith.constant 0 : index
    %c0_204 = arith.constant 0 : index
    %c0_205 = arith.constant 0 : index
    %508 = vector.load %arg10[%c1_202, %c0_203, %c0_204, %c0_205] : memref<2x4x1x8xf32, #tpu.memory_space<vmem>>, vector<1x4x1x8xf32>
    %509 = vector.shape_cast %508 : vector<1x4x1x8xf32> to vector<4x1x8xf32>
    %c1_206 = arith.constant 1 : index
    %c0_207 = arith.constant 0 : index
    %c0_208 = arith.constant 0 : index
    %c0_209 = arith.constant 0 : index
    %510 = vector.load %arg11[%c1_206, %c0_207, %c0_208, %c0_209] : memref<2x4x8x32xf32, #tpu.memory_space<vmem>>, vector<1x4x8x32xf32>
    %511 = vector.shape_cast %510 : vector<1x4x8x32xf32> to vector<4x8x32xf32>
    %c1_210 = arith.constant 1 : index
    %c0_211 = arith.constant 0 : index
    %c0_212 = arith.constant 0 : index
    %512 = vector.load %arg12[%c1_210, %c0_211, %c0_212] : memref<2x1x32xf32, #tpu.memory_space<vmem>>, vector<1x1x32xf32>
    %513 = vector.shape_cast %512 : vector<1x1x32xf32> to vector<1x32xf32>
    %c1_213 = arith.constant 1 : index
    %c0_214 = arith.constant 0 : index
    %c0_215 = arith.constant 0 : index
    %514 = vector.load %arg15[%c1_213, %c0_214, %c0_215] : memref<2x32x128xf32, #tpu.memory_space<vmem>>, vector<1x32x128xf32>
    %515 = vector.shape_cast %514 : vector<1x32x128xf32> to vector<32x128xf32>
    %c1_216 = arith.constant 1 : index
    %c0_217 = arith.constant 0 : index
    %c0_218 = arith.constant 0 : index
    %516 = vector.load %arg16[%c1_216, %c0_217, %c0_218] : memref<2x1x128xf32, #tpu.memory_space<vmem>>, vector<1x1x128xf32>
    %517 = vector.shape_cast %516 : vector<1x1x128xf32> to vector<1x128xf32>
    %c1_219 = arith.constant 1 : index
    %c0_220 = arith.constant 0 : index
    %c0_221 = arith.constant 0 : index
    %518 = vector.load %arg17[%c1_219, %c0_220, %c0_221] : memref<2x128x32xf32, #tpu.memory_space<vmem>>, vector<1x128x32xf32>
    %519 = vector.shape_cast %518 : vector<1x128x32xf32> to vector<128x32xf32>
    %c1_222 = arith.constant 1 : index
    %c0_223 = arith.constant 0 : index
    %c0_224 = arith.constant 0 : index
    %520 = vector.load %arg18[%c1_222, %c0_223, %c0_224] : memref<2x1x32xf32, #tpu.memory_space<vmem>>, vector<1x1x32xf32>
    %521 = vector.shape_cast %520 : vector<1x1x32xf32> to vector<1x32xf32>
    %cst_225 = arith.constant dense<0.000000e+00> : vector<17xf32>
    %522 = vector.multi_reduction <add>, %265, %cst_225 [1] : vector<17x32xf32> to vector<17xf32>
    %523 = vector.shape_cast %522 : vector<17xf32> to vector<17x1xf32>
    %cst_226 = arith.constant 3.200000e+01 : f32
    %524 = vector.broadcast %cst_226 : f32 to vector<17x1xf32>
    %525 = arith.divf %523, %524 : vector<17x1xf32>
    %526 = vector.broadcast %525 : vector<17x1xf32> to vector<17x32xf32>
    %527 = arith.subf %265, %526 : vector<17x32xf32>
    %528 = arith.mulf %527, %527 : vector<17x32xf32>
    %cst_227 = arith.constant dense<0.000000e+00> : vector<17xf32>
    %529 = vector.multi_reduction <add>, %528, %cst_227 [1] : vector<17x32xf32> to vector<17xf32>
    %530 = vector.shape_cast %529 : vector<17xf32> to vector<17x1xf32>
    %cst_228 = arith.constant 3.200000e+01 : f32
    %531 = vector.broadcast %cst_228 : f32 to vector<17x1xf32>
    %532 = arith.divf %530, %531 : vector<17x1xf32>
    %533 = vector.broadcast %525 : vector<17x1xf32> to vector<17x32xf32>
    %534 = arith.subf %265, %533 : vector<17x32xf32>
    %cst_229 = arith.constant 9.99999974E-6 : f32
    %535 = vector.broadcast %cst_229 : f32 to vector<17x1xf32>
    %536 = arith.addf %532, %535 : vector<17x1xf32>
    %537 = math.rsqrt %536 : vector<17x1xf32>
    %538 = vector.broadcast %537 : vector<17x1xf32> to vector<17x32xf32>
    %539 = arith.mulf %534, %538 : vector<17x32xf32>
    %540 = vector.broadcast %491 : vector<1x32xf32> to vector<17x32xf32>
    %541 = arith.mulf %539, %540 : vector<17x32xf32>
    %542 = vector.broadcast %493 : vector<1x32xf32> to vector<17x32xf32>
    %543 = arith.addf %541, %542 : vector<17x32xf32>
    %cst_230 = arith.constant 0.000000e+00 : f32
    %544 = vector.broadcast %cst_230 : f32 to vector<17x32xf32>
    %545 = vector.extract_strided_slice %499 {offsets = [0, 0, 0], sizes = [1, 32, 8], strides = [1, 1, 1]} : vector<4x32x8xf32> to vector<1x32x8xf32>
    %546 = vector.shape_cast %545 : vector<1x32x8xf32> to vector<32x8xf32>
    %cst_231 = arith.constant dense<0.000000e+00> : vector<17x8xf32>
    %547 = tpu.matmul %543, %546, %cst_231 {dimension_numbers = #tpu.dot_dimension_numbers<[1], [0], [0], [1], [0, 0, 1, 1], [], []>} : vector<17x32xf32>, vector<32x8xf32>, vector<17x8xf32> -> vector<17x8xf32>
    %548 = vector.extract_strided_slice %505 {offsets = [0, 0, 0], sizes = [1, 1, 8], strides = [1, 1, 1]} : vector<4x1x8xf32> to vector<1x1x8xf32>
    %549 = vector.shape_cast %548 : vector<1x1x8xf32> to vector<1x8xf32>
    %550 = vector.broadcast %549 : vector<1x8xf32> to vector<17x8xf32>
    %551 = arith.addf %547, %550 : vector<17x8xf32>
    %552 = vector.extract_strided_slice %501 {offsets = [0, 0, 0], sizes = [1, 32, 8], strides = [1, 1, 1]} : vector<4x32x8xf32> to vector<1x32x8xf32>
    %553 = vector.shape_cast %552 : vector<1x32x8xf32> to vector<32x8xf32>
    %cst_232 = arith.constant dense<0.000000e+00> : vector<17x8xf32>
    %554 = tpu.matmul %543, %553, %cst_232 {dimension_numbers = #tpu.dot_dimension_numbers<[1], [0], [0], [1], [0, 0, 1, 1], [], []>} : vector<17x32xf32>, vector<32x8xf32>, vector<17x8xf32> -> vector<17x8xf32>
    %555 = vector.extract_strided_slice %507 {offsets = [0, 0, 0], sizes = [1, 1, 8], strides = [1, 1, 1]} : vector<4x1x8xf32> to vector<1x1x8xf32>
    %556 = vector.shape_cast %555 : vector<1x1x8xf32> to vector<1x8xf32>
    %557 = vector.broadcast %556 : vector<1x8xf32> to vector<17x8xf32>
    %558 = arith.addf %554, %557 : vector<17x8xf32>
    %559 = vector.extract_strided_slice %503 {offsets = [0, 0, 0], sizes = [1, 32, 8], strides = [1, 1, 1]} : vector<4x32x8xf32> to vector<1x32x8xf32>
    %560 = vector.shape_cast %559 : vector<1x32x8xf32> to vector<32x8xf32>
    %cst_233 = arith.constant dense<0.000000e+00> : vector<17x8xf32>
    %561 = tpu.matmul %543, %560, %cst_233 {dimension_numbers = #tpu.dot_dimension_numbers<[1], [0], [0], [1], [0, 0, 1, 1], [], []>} : vector<17x32xf32>, vector<32x8xf32>, vector<17x8xf32> -> vector<17x8xf32>
    %562 = vector.extract_strided_slice %509 {offsets = [0, 0, 0], sizes = [1, 1, 8], strides = [1, 1, 1]} : vector<4x1x8xf32> to vector<1x1x8xf32>
    %563 = vector.shape_cast %562 : vector<1x1x8xf32> to vector<1x8xf32>
    %564 = vector.broadcast %563 : vector<1x8xf32> to vector<17x8xf32>
    %565 = arith.addf %561, %564 : vector<17x8xf32>
    %cst_234 = arith.constant dense<0.000000e+00> : vector<17x17xf32>
    %566 = tpu.matmul %551, %558, %cst_234 {dimension_numbers = #tpu.dot_dimension_numbers<[1], [1], [0], [0], [0, 0, 1, 0], [], []>} : vector<17x8xf32>, vector<17x8xf32>, vector<17x17xf32> -> vector<17x17xf32>
    %cst_235 = arith.constant 0.353553385 : f32
    %567 = vector.broadcast %cst_235 : f32 to vector<17x17xf32>
    %568 = arith.mulf %566, %567 : vector<17x17xf32>
    %cst_236 = arith.constant dense<0xFF800000> : vector<17xf32>
    %569 = vector.multi_reduction <maximumf>, %568, %cst_236 [1] : vector<17x17xf32> to vector<17xf32>
    %570 = vector.shape_cast %569 : vector<17xf32> to vector<17x1xf32>
    %571 = vector.broadcast %570 : vector<17x1xf32> to vector<17x17xf32>
    %572 = arith.subf %568, %571 : vector<17x17xf32>
    %573 = math.exp %572 : vector<17x17xf32>
    %cst_237 = arith.constant dense<0.000000e+00> : vector<17xf32>
    %574 = vector.multi_reduction <add>, %573, %cst_237 [1] : vector<17x17xf32> to vector<17xf32>
    %575 = vector.shape_cast %574 : vector<17xf32> to vector<17x1xf32>
    %576 = tpu.reciprocal %575 {approx = true} : vector<17x1xf32> -> vector<17x1xf32>
    %577 = vector.broadcast %576 : vector<17x1xf32> to vector<17x17xf32>
    %578 = arith.mulf %573, %577 : vector<17x17xf32>
    %cst_238 = arith.constant dense<0.000000e+00> : vector<17x8xf32>
    %579 = tpu.matmul %578, %565, %cst_238 {dimension_numbers = #tpu.dot_dimension_numbers<[1], [0], [0], [1], [0, 0, 1, 1], [], []>} : vector<17x17xf32>, vector<17x8xf32>, vector<17x8xf32> -> vector<17x8xf32>
    %580 = vector.extract_strided_slice %511 {offsets = [0, 0, 0], sizes = [1, 8, 32], strides = [1, 1, 1]} : vector<4x8x32xf32> to vector<1x8x32xf32>
    %581 = vector.shape_cast %580 : vector<1x8x32xf32> to vector<8x32xf32>
    %cst_239 = arith.constant dense<0.000000e+00> : vector<17x32xf32>
    %582 = tpu.matmul %579, %581, %cst_239 {dimension_numbers = #tpu.dot_dimension_numbers<[1], [0], [0], [1], [0, 0, 1, 1], [], []>} : vector<17x8xf32>, vector<8x32xf32>, vector<17x32xf32> -> vector<17x32xf32>
    %583 = arith.addf %544, %582 : vector<17x32xf32>
    %584 = vector.extract_strided_slice %499 {offsets = [1, 0, 0], sizes = [1, 32, 8], strides = [1, 1, 1]} : vector<4x32x8xf32> to vector<1x32x8xf32>
    %585 = vector.shape_cast %584 : vector<1x32x8xf32> to vector<32x8xf32>
    %cst_240 = arith.constant dense<0.000000e+00> : vector<17x8xf32>
    %586 = tpu.matmul %543, %585, %cst_240 {dimension_numbers = #tpu.dot_dimension_numbers<[1], [0], [0], [1], [0, 0, 1, 1], [], []>} : vector<17x32xf32>, vector<32x8xf32>, vector<17x8xf32> -> vector<17x8xf32>
    %587 = vector.extract_strided_slice %505 {offsets = [1, 0, 0], sizes = [1, 1, 8], strides = [1, 1, 1]} : vector<4x1x8xf32> to vector<1x1x8xf32>
    %588 = vector.shape_cast %587 : vector<1x1x8xf32> to vector<1x8xf32>
    %589 = vector.broadcast %588 : vector<1x8xf32> to vector<17x8xf32>
    %590 = arith.addf %586, %589 : vector<17x8xf32>
    %591 = vector.extract_strided_slice %501 {offsets = [1, 0, 0], sizes = [1, 32, 8], strides = [1, 1, 1]} : vector<4x32x8xf32> to vector<1x32x8xf32>
    %592 = vector.shape_cast %591 : vector<1x32x8xf32> to vector<32x8xf32>
    %cst_241 = arith.constant dense<0.000000e+00> : vector<17x8xf32>
    %593 = tpu.matmul %543, %592, %cst_241 {dimension_numbers = #tpu.dot_dimension_numbers<[1], [0], [0], [1], [0, 0, 1, 1], [], []>} : vector<17x32xf32>, vector<32x8xf32>, vector<17x8xf32> -> vector<17x8xf32>
    %594 = vector.extract_strided_slice %507 {offsets = [1, 0, 0], sizes = [1, 1, 8], strides = [1, 1, 1]} : vector<4x1x8xf32> to vector<1x1x8xf32>
    %595 = vector.shape_cast %594 : vector<1x1x8xf32> to vector<1x8xf32>
    %596 = vector.broadcast %595 : vector<1x8xf32> to vector<17x8xf32>
    %597 = arith.addf %593, %596 : vector<17x8xf32>
    %598 = vector.extract_strided_slice %503 {offsets = [1, 0, 0], sizes = [1, 32, 8], strides = [1, 1, 1]} : vector<4x32x8xf32> to vector<1x32x8xf32>
    %599 = vector.shape_cast %598 : vector<1x32x8xf32> to vector<32x8xf32>
    %cst_242 = arith.constant dense<0.000000e+00> : vector<17x8xf32>
    %600 = tpu.matmul %543, %599, %cst_242 {dimension_numbers = #tpu.dot_dimension_numbers<[1], [0], [0], [1], [0, 0, 1, 1], [], []>} : vector<17x32xf32>, vector<32x8xf32>, vector<17x8xf32> -> vector<17x8xf32>
    %601 = vector.extract_strided_slice %509 {offsets = [1, 0, 0], sizes = [1, 1, 8], strides = [1, 1, 1]} : vector<4x1x8xf32> to vector<1x1x8xf32>
    %602 = vector.shape_cast %601 : vector<1x1x8xf32> to vector<1x8xf32>
    %603 = vector.broadcast %602 : vector<1x8xf32> to vector<17x8xf32>
    %604 = arith.addf %600, %603 : vector<17x8xf32>
    %cst_243 = arith.constant dense<0.000000e+00> : vector<17x17xf32>
    %605 = tpu.matmul %590, %597, %cst_243 {dimension_numbers = #tpu.dot_dimension_numbers<[1], [1], [0], [0], [0, 0, 1, 0], [], []>} : vector<17x8xf32>, vector<17x8xf32>, vector<17x17xf32> -> vector<17x17xf32>
    %cst_244 = arith.constant 0.353553385 : f32
    %606 = vector.broadcast %cst_244 : f32 to vector<17x17xf32>
    %607 = arith.mulf %605, %606 : vector<17x17xf32>
    %cst_245 = arith.constant dense<0xFF800000> : vector<17xf32>
    %608 = vector.multi_reduction <maximumf>, %607, %cst_245 [1] : vector<17x17xf32> to vector<17xf32>
    %609 = vector.shape_cast %608 : vector<17xf32> to vector<17x1xf32>
    %610 = vector.broadcast %609 : vector<17x1xf32> to vector<17x17xf32>
    %611 = arith.subf %607, %610 : vector<17x17xf32>
    %612 = math.exp %611 : vector<17x17xf32>
    %cst_246 = arith.constant dense<0.000000e+00> : vector<17xf32>
    %613 = vector.multi_reduction <add>, %612, %cst_246 [1] : vector<17x17xf32> to vector<17xf32>
    %614 = vector.shape_cast %613 : vector<17xf32> to vector<17x1xf32>
    %615 = tpu.reciprocal %614 {approx = true} : vector<17x1xf32> -> vector<17x1xf32>
    %616 = vector.broadcast %615 : vector<17x1xf32> to vector<17x17xf32>
    %617 = arith.mulf %612, %616 : vector<17x17xf32>
    %cst_247 = arith.constant dense<0.000000e+00> : vector<17x8xf32>
    %618 = tpu.matmul %617, %604, %cst_247 {dimension_numbers = #tpu.dot_dimension_numbers<[1], [0], [0], [1], [0, 0, 1, 1], [], []>} : vector<17x17xf32>, vector<17x8xf32>, vector<17x8xf32> -> vector<17x8xf32>
    %619 = vector.extract_strided_slice %511 {offsets = [1, 0, 0], sizes = [1, 8, 32], strides = [1, 1, 1]} : vector<4x8x32xf32> to vector<1x8x32xf32>
    %620 = vector.shape_cast %619 : vector<1x8x32xf32> to vector<8x32xf32>
    %cst_248 = arith.constant dense<0.000000e+00> : vector<17x32xf32>
    %621 = tpu.matmul %618, %620, %cst_248 {dimension_numbers = #tpu.dot_dimension_numbers<[1], [0], [0], [1], [0, 0, 1, 1], [], []>} : vector<17x8xf32>, vector<8x32xf32>, vector<17x32xf32> -> vector<17x32xf32>
    %622 = arith.addf %583, %621 : vector<17x32xf32>
    %623 = vector.extract_strided_slice %499 {offsets = [2, 0, 0], sizes = [1, 32, 8], strides = [1, 1, 1]} : vector<4x32x8xf32> to vector<1x32x8xf32>
    %624 = vector.shape_cast %623 : vector<1x32x8xf32> to vector<32x8xf32>
    %cst_249 = arith.constant dense<0.000000e+00> : vector<17x8xf32>
    %625 = tpu.matmul %543, %624, %cst_249 {dimension_numbers = #tpu.dot_dimension_numbers<[1], [0], [0], [1], [0, 0, 1, 1], [], []>} : vector<17x32xf32>, vector<32x8xf32>, vector<17x8xf32> -> vector<17x8xf32>
    %626 = vector.extract_strided_slice %505 {offsets = [2, 0, 0], sizes = [1, 1, 8], strides = [1, 1, 1]} : vector<4x1x8xf32> to vector<1x1x8xf32>
    %627 = vector.shape_cast %626 : vector<1x1x8xf32> to vector<1x8xf32>
    %628 = vector.broadcast %627 : vector<1x8xf32> to vector<17x8xf32>
    %629 = arith.addf %625, %628 : vector<17x8xf32>
    %630 = vector.extract_strided_slice %501 {offsets = [2, 0, 0], sizes = [1, 32, 8], strides = [1, 1, 1]} : vector<4x32x8xf32> to vector<1x32x8xf32>
    %631 = vector.shape_cast %630 : vector<1x32x8xf32> to vector<32x8xf32>
    %cst_250 = arith.constant dense<0.000000e+00> : vector<17x8xf32>
    %632 = tpu.matmul %543, %631, %cst_250 {dimension_numbers = #tpu.dot_dimension_numbers<[1], [0], [0], [1], [0, 0, 1, 1], [], []>} : vector<17x32xf32>, vector<32x8xf32>, vector<17x8xf32> -> vector<17x8xf32>
    %633 = vector.extract_strided_slice %507 {offsets = [2, 0, 0], sizes = [1, 1, 8], strides = [1, 1, 1]} : vector<4x1x8xf32> to vector<1x1x8xf32>
    %634 = vector.shape_cast %633 : vector<1x1x8xf32> to vector<1x8xf32>
    %635 = vector.broadcast %634 : vector<1x8xf32> to vector<17x8xf32>
    %636 = arith.addf %632, %635 : vector<17x8xf32>
    %637 = vector.extract_strided_slice %503 {offsets = [2, 0, 0], sizes = [1, 32, 8], strides = [1, 1, 1]} : vector<4x32x8xf32> to vector<1x32x8xf32>
    %638 = vector.shape_cast %637 : vector<1x32x8xf32> to vector<32x8xf32>
    %cst_251 = arith.constant dense<0.000000e+00> : vector<17x8xf32>
    %639 = tpu.matmul %543, %638, %cst_251 {dimension_numbers = #tpu.dot_dimension_numbers<[1], [0], [0], [1], [0, 0, 1, 1], [], []>} : vector<17x32xf32>, vector<32x8xf32>, vector<17x8xf32> -> vector<17x8xf32>
    %640 = vector.extract_strided_slice %509 {offsets = [2, 0, 0], sizes = [1, 1, 8], strides = [1, 1, 1]} : vector<4x1x8xf32> to vector<1x1x8xf32>
    %641 = vector.shape_cast %640 : vector<1x1x8xf32> to vector<1x8xf32>
    %642 = vector.broadcast %641 : vector<1x8xf32> to vector<17x8xf32>
    %643 = arith.addf %639, %642 : vector<17x8xf32>
    %cst_252 = arith.constant dense<0.000000e+00> : vector<17x17xf32>
    %644 = tpu.matmul %629, %636, %cst_252 {dimension_numbers = #tpu.dot_dimension_numbers<[1], [1], [0], [0], [0, 0, 1, 0], [], []>} : vector<17x8xf32>, vector<17x8xf32>, vector<17x17xf32> -> vector<17x17xf32>
    %cst_253 = arith.constant 0.353553385 : f32
    %645 = vector.broadcast %cst_253 : f32 to vector<17x17xf32>
    %646 = arith.mulf %644, %645 : vector<17x17xf32>
    %cst_254 = arith.constant dense<0xFF800000> : vector<17xf32>
    %647 = vector.multi_reduction <maximumf>, %646, %cst_254 [1] : vector<17x17xf32> to vector<17xf32>
    %648 = vector.shape_cast %647 : vector<17xf32> to vector<17x1xf32>
    %649 = vector.broadcast %648 : vector<17x1xf32> to vector<17x17xf32>
    %650 = arith.subf %646, %649 : vector<17x17xf32>
    %651 = math.exp %650 : vector<17x17xf32>
    %cst_255 = arith.constant dense<0.000000e+00> : vector<17xf32>
    %652 = vector.multi_reduction <add>, %651, %cst_255 [1] : vector<17x17xf32> to vector<17xf32>
    %653 = vector.shape_cast %652 : vector<17xf32> to vector<17x1xf32>
    %654 = tpu.reciprocal %653 {approx = true} : vector<17x1xf32> -> vector<17x1xf32>
    %655 = vector.broadcast %654 : vector<17x1xf32> to vector<17x17xf32>
    %656 = arith.mulf %651, %655 : vector<17x17xf32>
    %cst_256 = arith.constant dense<0.000000e+00> : vector<17x8xf32>
    %657 = tpu.matmul %656, %643, %cst_256 {dimension_numbers = #tpu.dot_dimension_numbers<[1], [0], [0], [1], [0, 0, 1, 1], [], []>} : vector<17x17xf32>, vector<17x8xf32>, vector<17x8xf32> -> vector<17x8xf32>
    %658 = vector.extract_strided_slice %511 {offsets = [2, 0, 0], sizes = [1, 8, 32], strides = [1, 1, 1]} : vector<4x8x32xf32> to vector<1x8x32xf32>
    %659 = vector.shape_cast %658 : vector<1x8x32xf32> to vector<8x32xf32>
    %cst_257 = arith.constant dense<0.000000e+00> : vector<17x32xf32>
    %660 = tpu.matmul %657, %659, %cst_257 {dimension_numbers = #tpu.dot_dimension_numbers<[1], [0], [0], [1], [0, 0, 1, 1], [], []>} : vector<17x8xf32>, vector<8x32xf32>, vector<17x32xf32> -> vector<17x32xf32>
    %661 = arith.addf %622, %660 : vector<17x32xf32>
    %662 = vector.extract_strided_slice %499 {offsets = [3, 0, 0], sizes = [1, 32, 8], strides = [1, 1, 1]} : vector<4x32x8xf32> to vector<1x32x8xf32>
    %663 = vector.shape_cast %662 : vector<1x32x8xf32> to vector<32x8xf32>
    %cst_258 = arith.constant dense<0.000000e+00> : vector<17x8xf32>
    %664 = tpu.matmul %543, %663, %cst_258 {dimension_numbers = #tpu.dot_dimension_numbers<[1], [0], [0], [1], [0, 0, 1, 1], [], []>} : vector<17x32xf32>, vector<32x8xf32>, vector<17x8xf32> -> vector<17x8xf32>
    %665 = vector.extract_strided_slice %505 {offsets = [3, 0, 0], sizes = [1, 1, 8], strides = [1, 1, 1]} : vector<4x1x8xf32> to vector<1x1x8xf32>
    %666 = vector.shape_cast %665 : vector<1x1x8xf32> to vector<1x8xf32>
    %667 = vector.broadcast %666 : vector<1x8xf32> to vector<17x8xf32>
    %668 = arith.addf %664, %667 : vector<17x8xf32>
    %669 = vector.extract_strided_slice %501 {offsets = [3, 0, 0], sizes = [1, 32, 8], strides = [1, 1, 1]} : vector<4x32x8xf32> to vector<1x32x8xf32>
    %670 = vector.shape_cast %669 : vector<1x32x8xf32> to vector<32x8xf32>
    %cst_259 = arith.constant dense<0.000000e+00> : vector<17x8xf32>
    %671 = tpu.matmul %543, %670, %cst_259 {dimension_numbers = #tpu.dot_dimension_numbers<[1], [0], [0], [1], [0, 0, 1, 1], [], []>} : vector<17x32xf32>, vector<32x8xf32>, vector<17x8xf32> -> vector<17x8xf32>
    %672 = vector.extract_strided_slice %507 {offsets = [3, 0, 0], sizes = [1, 1, 8], strides = [1, 1, 1]} : vector<4x1x8xf32> to vector<1x1x8xf32>
    %673 = vector.shape_cast %672 : vector<1x1x8xf32> to vector<1x8xf32>
    %674 = vector.broadcast %673 : vector<1x8xf32> to vector<17x8xf32>
    %675 = arith.addf %671, %674 : vector<17x8xf32>
    %676 = vector.extract_strided_slice %503 {offsets = [3, 0, 0], sizes = [1, 32, 8], strides = [1, 1, 1]} : vector<4x32x8xf32> to vector<1x32x8xf32>
    %677 = vector.shape_cast %676 : vector<1x32x8xf32> to vector<32x8xf32>
    %cst_260 = arith.constant dense<0.000000e+00> : vector<17x8xf32>
    %678 = tpu.matmul %543, %677, %cst_260 {dimension_numbers = #tpu.dot_dimension_numbers<[1], [0], [0], [1], [0, 0, 1, 1], [], []>} : vector<17x32xf32>, vector<32x8xf32>, vector<17x8xf32> -> vector<17x8xf32>
    %679 = vector.extract_strided_slice %509 {offsets = [3, 0, 0], sizes = [1, 1, 8], strides = [1, 1, 1]} : vector<4x1x8xf32> to vector<1x1x8xf32>
    %680 = vector.shape_cast %679 : vector<1x1x8xf32> to vector<1x8xf32>
    %681 = vector.broadcast %680 : vector<1x8xf32> to vector<17x8xf32>
    %682 = arith.addf %678, %681 : vector<17x8xf32>
    %cst_261 = arith.constant dense<0.000000e+00> : vector<17x17xf32>
    %683 = tpu.matmul %668, %675, %cst_261 {dimension_numbers = #tpu.dot_dimension_numbers<[1], [1], [0], [0], [0, 0, 1, 0], [], []>} : vector<17x8xf32>, vector<17x8xf32>, vector<17x17xf32> -> vector<17x17xf32>
    %cst_262 = arith.constant 0.353553385 : f32
    %684 = vector.broadcast %cst_262 : f32 to vector<17x17xf32>
    %685 = arith.mulf %683, %684 : vector<17x17xf32>
    %cst_263 = arith.constant dense<0xFF800000> : vector<17xf32>
    %686 = vector.multi_reduction <maximumf>, %685, %cst_263 [1] : vector<17x17xf32> to vector<17xf32>
    %687 = vector.shape_cast %686 : vector<17xf32> to vector<17x1xf32>
    %688 = vector.broadcast %687 : vector<17x1xf32> to vector<17x17xf32>
    %689 = arith.subf %685, %688 : vector<17x17xf32>
    %690 = math.exp %689 : vector<17x17xf32>
    %cst_264 = arith.constant dense<0.000000e+00> : vector<17xf32>
    %691 = vector.multi_reduction <add>, %690, %cst_264 [1] : vector<17x17xf32> to vector<17xf32>
    %692 = vector.shape_cast %691 : vector<17xf32> to vector<17x1xf32>
    %693 = tpu.reciprocal %692 {approx = true} : vector<17x1xf32> -> vector<17x1xf32>
    %694 = vector.broadcast %693 : vector<17x1xf32> to vector<17x17xf32>
    %695 = arith.mulf %690, %694 : vector<17x17xf32>
    %cst_265 = arith.constant dense<0.000000e+00> : vector<17x8xf32>
    %696 = tpu.matmul %695, %682, %cst_265 {dimension_numbers = #tpu.dot_dimension_numbers<[1], [0], [0], [1], [0, 0, 1, 1], [], []>} : vector<17x17xf32>, vector<17x8xf32>, vector<17x8xf32> -> vector<17x8xf32>
    %697 = vector.extract_strided_slice %511 {offsets = [3, 0, 0], sizes = [1, 8, 32], strides = [1, 1, 1]} : vector<4x8x32xf32> to vector<1x8x32xf32>
    %698 = vector.shape_cast %697 : vector<1x8x32xf32> to vector<8x32xf32>
    %cst_266 = arith.constant dense<0.000000e+00> : vector<17x32xf32>
    %699 = tpu.matmul %696, %698, %cst_266 {dimension_numbers = #tpu.dot_dimension_numbers<[1], [0], [0], [1], [0, 0, 1, 1], [], []>} : vector<17x8xf32>, vector<8x32xf32>, vector<17x32xf32> -> vector<17x32xf32>
    %700 = arith.addf %661, %699 : vector<17x32xf32>
    %701 = arith.addf %265, %700 : vector<17x32xf32>
    %702 = vector.broadcast %513 : vector<1x32xf32> to vector<17x32xf32>
    %703 = arith.addf %701, %702 : vector<17x32xf32>
    %cst_267 = arith.constant dense<0.000000e+00> : vector<17xf32>
    %704 = vector.multi_reduction <add>, %703, %cst_267 [1] : vector<17x32xf32> to vector<17xf32>
    %705 = vector.shape_cast %704 : vector<17xf32> to vector<17x1xf32>
    %cst_268 = arith.constant 3.200000e+01 : f32
    %706 = vector.broadcast %cst_268 : f32 to vector<17x1xf32>
    %707 = arith.divf %705, %706 : vector<17x1xf32>
    %708 = vector.broadcast %707 : vector<17x1xf32> to vector<17x32xf32>
    %709 = arith.subf %703, %708 : vector<17x32xf32>
    %710 = arith.mulf %709, %709 : vector<17x32xf32>
    %cst_269 = arith.constant dense<0.000000e+00> : vector<17xf32>
    %711 = vector.multi_reduction <add>, %710, %cst_269 [1] : vector<17x32xf32> to vector<17xf32>
    %712 = vector.shape_cast %711 : vector<17xf32> to vector<17x1xf32>
    %cst_270 = arith.constant 3.200000e+01 : f32
    %713 = vector.broadcast %cst_270 : f32 to vector<17x1xf32>
    %714 = arith.divf %712, %713 : vector<17x1xf32>
    %715 = vector.broadcast %707 : vector<17x1xf32> to vector<17x32xf32>
    %716 = arith.subf %703, %715 : vector<17x32xf32>
    %cst_271 = arith.constant 9.99999974E-6 : f32
    %717 = vector.broadcast %cst_271 : f32 to vector<17x1xf32>
    %718 = arith.addf %714, %717 : vector<17x1xf32>
    %719 = math.rsqrt %718 : vector<17x1xf32>
    %720 = vector.broadcast %719 : vector<17x1xf32> to vector<17x32xf32>
    %721 = arith.mulf %716, %720 : vector<17x32xf32>
    %722 = vector.broadcast %495 : vector<1x32xf32> to vector<17x32xf32>
    %723 = arith.mulf %721, %722 : vector<17x32xf32>
    %724 = vector.broadcast %497 : vector<1x32xf32> to vector<17x32xf32>
    %725 = arith.addf %723, %724 : vector<17x32xf32>
    %cst_272 = arith.constant dense<0.000000e+00> : vector<17x128xf32>
    %726 = tpu.matmul %725, %515, %cst_272 {dimension_numbers = #tpu.dot_dimension_numbers<[1], [0], [0], [1], [0, 0, 1, 1], [], []>} : vector<17x32xf32>, vector<32x128xf32>, vector<17x128xf32> -> vector<17x128xf32>
    %727 = vector.broadcast %517 : vector<1x128xf32> to vector<17x128xf32>
    %728 = arith.addf %726, %727 : vector<17x128xf32>
    %cst_273 = arith.constant 5.000000e-01 : f32
    %729 = vector.broadcast %cst_273 : f32 to vector<17x128xf32>
    %730 = arith.mulf %729, %728 : vector<17x128xf32>
    %cst_274 = arith.constant 4.471500e-02 : f32
    %731 = vector.broadcast %cst_274 : f32 to vector<17x128xf32>
    %732 = arith.mulf %731, %728 : vector<17x128xf32>
    %733 = arith.mulf %732, %728 : vector<17x128xf32>
    %734 = arith.mulf %733, %728 : vector<17x128xf32>
    %735 = arith.addf %728, %734 : vector<17x128xf32>
    %cst_275 = arith.constant 0.797884583 : f32
    %736 = vector.broadcast %cst_275 : f32 to vector<17x128xf32>
    %737 = arith.mulf %736, %735 : vector<17x128xf32>
    %738 = math.tanh %737 : vector<17x128xf32>
    %cst_276 = arith.constant 1.000000e+00 : f32
    %739 = vector.broadcast %cst_276 : f32 to vector<17x128xf32>
    %740 = arith.addf %739, %738 : vector<17x128xf32>
    %741 = arith.mulf %730, %740 : vector<17x128xf32>
    %cst_277 = arith.constant dense<0.000000e+00> : vector<17x32xf32>
    %742 = tpu.matmul %741, %519, %cst_277 {dimension_numbers = #tpu.dot_dimension_numbers<[1], [0], [0], [1], [0, 0, 1, 1], [], []>} : vector<17x128xf32>, vector<128x32xf32>, vector<17x32xf32> -> vector<17x32xf32>
    %743 = vector.broadcast %521 : vector<1x32xf32> to vector<17x32xf32>
    %744 = arith.addf %742, %743 : vector<17x32xf32>
    %745 = arith.addf %703, %744 : vector<17x32xf32>
    %cst_278 = arith.constant dense<0.000000e+00> : vector<17xf32>
    %746 = vector.multi_reduction <add>, %489, %cst_278 [1] : vector<17x32xf32> to vector<17xf32>
    %747 = vector.shape_cast %746 : vector<17xf32> to vector<17x1xf32>
    %cst_279 = arith.constant 3.200000e+01 : f32
    %748 = vector.broadcast %cst_279 : f32 to vector<17x1xf32>
    %749 = arith.divf %747, %748 : vector<17x1xf32>
    %750 = vector.broadcast %749 : vector<17x1xf32> to vector<17x32xf32>
    %751 = arith.subf %489, %750 : vector<17x32xf32>
    %752 = arith.mulf %751, %751 : vector<17x32xf32>
    %cst_280 = arith.constant dense<0.000000e+00> : vector<17xf32>
    %753 = vector.multi_reduction <add>, %752, %cst_280 [1] : vector<17x32xf32> to vector<17xf32>
    %754 = vector.shape_cast %753 : vector<17xf32> to vector<17x1xf32>
    %cst_281 = arith.constant 3.200000e+01 : f32
    %755 = vector.broadcast %cst_281 : f32 to vector<17x1xf32>
    %756 = arith.divf %754, %755 : vector<17x1xf32>
    %757 = vector.broadcast %749 : vector<17x1xf32> to vector<17x32xf32>
    %758 = arith.subf %489, %757 : vector<17x32xf32>
    %cst_282 = arith.constant 9.99999974E-6 : f32
    %759 = vector.broadcast %cst_282 : f32 to vector<17x1xf32>
    %760 = arith.addf %756, %759 : vector<17x1xf32>
    %761 = math.rsqrt %760 : vector<17x1xf32>
    %762 = vector.broadcast %761 : vector<17x1xf32> to vector<17x32xf32>
    %763 = arith.mulf %758, %762 : vector<17x32xf32>
    %764 = vector.broadcast %491 : vector<1x32xf32> to vector<17x32xf32>
    %765 = arith.mulf %763, %764 : vector<17x32xf32>
    %766 = vector.broadcast %493 : vector<1x32xf32> to vector<17x32xf32>
    %767 = arith.addf %765, %766 : vector<17x32xf32>
    %cst_283 = arith.constant 0.000000e+00 : f32
    %768 = vector.broadcast %cst_283 : f32 to vector<17x32xf32>
    %769 = vector.extract_strided_slice %499 {offsets = [0, 0, 0], sizes = [1, 32, 8], strides = [1, 1, 1]} : vector<4x32x8xf32> to vector<1x32x8xf32>
    %770 = vector.shape_cast %769 : vector<1x32x8xf32> to vector<32x8xf32>
    %cst_284 = arith.constant dense<0.000000e+00> : vector<17x8xf32>
    %771 = tpu.matmul %767, %770, %cst_284 {dimension_numbers = #tpu.dot_dimension_numbers<[1], [0], [0], [1], [0, 0, 1, 1], [], []>} : vector<17x32xf32>, vector<32x8xf32>, vector<17x8xf32> -> vector<17x8xf32>
    %772 = vector.extract_strided_slice %505 {offsets = [0, 0, 0], sizes = [1, 1, 8], strides = [1, 1, 1]} : vector<4x1x8xf32> to vector<1x1x8xf32>
    %773 = vector.shape_cast %772 : vector<1x1x8xf32> to vector<1x8xf32>
    %774 = vector.broadcast %773 : vector<1x8xf32> to vector<17x8xf32>
    %775 = arith.addf %771, %774 : vector<17x8xf32>
    %776 = vector.extract_strided_slice %501 {offsets = [0, 0, 0], sizes = [1, 32, 8], strides = [1, 1, 1]} : vector<4x32x8xf32> to vector<1x32x8xf32>
    %777 = vector.shape_cast %776 : vector<1x32x8xf32> to vector<32x8xf32>
    %cst_285 = arith.constant dense<0.000000e+00> : vector<17x8xf32>
    %778 = tpu.matmul %767, %777, %cst_285 {dimension_numbers = #tpu.dot_dimension_numbers<[1], [0], [0], [1], [0, 0, 1, 1], [], []>} : vector<17x32xf32>, vector<32x8xf32>, vector<17x8xf32> -> vector<17x8xf32>
    %779 = vector.extract_strided_slice %507 {offsets = [0, 0, 0], sizes = [1, 1, 8], strides = [1, 1, 1]} : vector<4x1x8xf32> to vector<1x1x8xf32>
    %780 = vector.shape_cast %779 : vector<1x1x8xf32> to vector<1x8xf32>
    %781 = vector.broadcast %780 : vector<1x8xf32> to vector<17x8xf32>
    %782 = arith.addf %778, %781 : vector<17x8xf32>
    %783 = vector.extract_strided_slice %503 {offsets = [0, 0, 0], sizes = [1, 32, 8], strides = [1, 1, 1]} : vector<4x32x8xf32> to vector<1x32x8xf32>
    %784 = vector.shape_cast %783 : vector<1x32x8xf32> to vector<32x8xf32>
    %cst_286 = arith.constant dense<0.000000e+00> : vector<17x8xf32>
    %785 = tpu.matmul %767, %784, %cst_286 {dimension_numbers = #tpu.dot_dimension_numbers<[1], [0], [0], [1], [0, 0, 1, 1], [], []>} : vector<17x32xf32>, vector<32x8xf32>, vector<17x8xf32> -> vector<17x8xf32>
    %786 = vector.extract_strided_slice %509 {offsets = [0, 0, 0], sizes = [1, 1, 8], strides = [1, 1, 1]} : vector<4x1x8xf32> to vector<1x1x8xf32>
    %787 = vector.shape_cast %786 : vector<1x1x8xf32> to vector<1x8xf32>
    %788 = vector.broadcast %787 : vector<1x8xf32> to vector<17x8xf32>
    %789 = arith.addf %785, %788 : vector<17x8xf32>
    %cst_287 = arith.constant dense<0.000000e+00> : vector<17x17xf32>
    %790 = tpu.matmul %775, %782, %cst_287 {dimension_numbers = #tpu.dot_dimension_numbers<[1], [1], [0], [0], [0, 0, 1, 0], [], []>} : vector<17x8xf32>, vector<17x8xf32>, vector<17x17xf32> -> vector<17x17xf32>
    %cst_288 = arith.constant 0.353553385 : f32
    %791 = vector.broadcast %cst_288 : f32 to vector<17x17xf32>
    %792 = arith.mulf %790, %791 : vector<17x17xf32>
    %cst_289 = arith.constant dense<0xFF800000> : vector<17xf32>
    %793 = vector.multi_reduction <maximumf>, %792, %cst_289 [1] : vector<17x17xf32> to vector<17xf32>
    %794 = vector.shape_cast %793 : vector<17xf32> to vector<17x1xf32>
    %795 = vector.broadcast %794 : vector<17x1xf32> to vector<17x17xf32>
    %796 = arith.subf %792, %795 : vector<17x17xf32>
    %797 = math.exp %796 : vector<17x17xf32>
    %cst_290 = arith.constant dense<0.000000e+00> : vector<17xf32>
    %798 = vector.multi_reduction <add>, %797, %cst_290 [1] : vector<17x17xf32> to vector<17xf32>
    %799 = vector.shape_cast %798 : vector<17xf32> to vector<17x1xf32>
    %800 = tpu.reciprocal %799 {approx = true} : vector<17x1xf32> -> vector<17x1xf32>
    %801 = vector.broadcast %800 : vector<17x1xf32> to vector<17x17xf32>
    %802 = arith.mulf %797, %801 : vector<17x17xf32>
    %cst_291 = arith.constant dense<0.000000e+00> : vector<17x8xf32>
    %803 = tpu.matmul %802, %789, %cst_291 {dimension_numbers = #tpu.dot_dimension_numbers<[1], [0], [0], [1], [0, 0, 1, 1], [], []>} : vector<17x17xf32>, vector<17x8xf32>, vector<17x8xf32> -> vector<17x8xf32>
    %804 = vector.extract_strided_slice %511 {offsets = [0, 0, 0], sizes = [1, 8, 32], strides = [1, 1, 1]} : vector<4x8x32xf32> to vector<1x8x32xf32>
    %805 = vector.shape_cast %804 : vector<1x8x32xf32> to vector<8x32xf32>
    %cst_292 = arith.constant dense<0.000000e+00> : vector<17x32xf32>
    %806 = tpu.matmul %803, %805, %cst_292 {dimension_numbers = #tpu.dot_dimension_numbers<[1], [0], [0], [1], [0, 0, 1, 1], [], []>} : vector<17x8xf32>, vector<8x32xf32>, vector<17x32xf32> -> vector<17x32xf32>
    %807 = arith.addf %768, %806 : vector<17x32xf32>
    %808 = vector.extract_strided_slice %499 {offsets = [1, 0, 0], sizes = [1, 32, 8], strides = [1, 1, 1]} : vector<4x32x8xf32> to vector<1x32x8xf32>
    %809 = vector.shape_cast %808 : vector<1x32x8xf32> to vector<32x8xf32>
    %cst_293 = arith.constant dense<0.000000e+00> : vector<17x8xf32>
    %810 = tpu.matmul %767, %809, %cst_293 {dimension_numbers = #tpu.dot_dimension_numbers<[1], [0], [0], [1], [0, 0, 1, 1], [], []>} : vector<17x32xf32>, vector<32x8xf32>, vector<17x8xf32> -> vector<17x8xf32>
    %811 = vector.extract_strided_slice %505 {offsets = [1, 0, 0], sizes = [1, 1, 8], strides = [1, 1, 1]} : vector<4x1x8xf32> to vector<1x1x8xf32>
    %812 = vector.shape_cast %811 : vector<1x1x8xf32> to vector<1x8xf32>
    %813 = vector.broadcast %812 : vector<1x8xf32> to vector<17x8xf32>
    %814 = arith.addf %810, %813 : vector<17x8xf32>
    %815 = vector.extract_strided_slice %501 {offsets = [1, 0, 0], sizes = [1, 32, 8], strides = [1, 1, 1]} : vector<4x32x8xf32> to vector<1x32x8xf32>
    %816 = vector.shape_cast %815 : vector<1x32x8xf32> to vector<32x8xf32>
    %cst_294 = arith.constant dense<0.000000e+00> : vector<17x8xf32>
    %817 = tpu.matmul %767, %816, %cst_294 {dimension_numbers = #tpu.dot_dimension_numbers<[1], [0], [0], [1], [0, 0, 1, 1], [], []>} : vector<17x32xf32>, vector<32x8xf32>, vector<17x8xf32> -> vector<17x8xf32>
    %818 = vector.extract_strided_slice %507 {offsets = [1, 0, 0], sizes = [1, 1, 8], strides = [1, 1, 1]} : vector<4x1x8xf32> to vector<1x1x8xf32>
    %819 = vector.shape_cast %818 : vector<1x1x8xf32> to vector<1x8xf32>
    %820 = vector.broadcast %819 : vector<1x8xf32> to vector<17x8xf32>
    %821 = arith.addf %817, %820 : vector<17x8xf32>
    %822 = vector.extract_strided_slice %503 {offsets = [1, 0, 0], sizes = [1, 32, 8], strides = [1, 1, 1]} : vector<4x32x8xf32> to vector<1x32x8xf32>
    %823 = vector.shape_cast %822 : vector<1x32x8xf32> to vector<32x8xf32>
    %cst_295 = arith.constant dense<0.000000e+00> : vector<17x8xf32>
    %824 = tpu.matmul %767, %823, %cst_295 {dimension_numbers = #tpu.dot_dimension_numbers<[1], [0], [0], [1], [0, 0, 1, 1], [], []>} : vector<17x32xf32>, vector<32x8xf32>, vector<17x8xf32> -> vector<17x8xf32>
    %825 = vector.extract_strided_slice %509 {offsets = [1, 0, 0], sizes = [1, 1, 8], strides = [1, 1, 1]} : vector<4x1x8xf32> to vector<1x1x8xf32>
    %826 = vector.shape_cast %825 : vector<1x1x8xf32> to vector<1x8xf32>
    %827 = vector.broadcast %826 : vector<1x8xf32> to vector<17x8xf32>
    %828 = arith.addf %824, %827 : vector<17x8xf32>
    %cst_296 = arith.constant dense<0.000000e+00> : vector<17x17xf32>
    %829 = tpu.matmul %814, %821, %cst_296 {dimension_numbers = #tpu.dot_dimension_numbers<[1], [1], [0], [0], [0, 0, 1, 0], [], []>} : vector<17x8xf32>, vector<17x8xf32>, vector<17x17xf32> -> vector<17x17xf32>
    %cst_297 = arith.constant 0.353553385 : f32
    %830 = vector.broadcast %cst_297 : f32 to vector<17x17xf32>
    %831 = arith.mulf %829, %830 : vector<17x17xf32>
    %cst_298 = arith.constant dense<0xFF800000> : vector<17xf32>
    %832 = vector.multi_reduction <maximumf>, %831, %cst_298 [1] : vector<17x17xf32> to vector<17xf32>
    %833 = vector.shape_cast %832 : vector<17xf32> to vector<17x1xf32>
    %834 = vector.broadcast %833 : vector<17x1xf32> to vector<17x17xf32>
    %835 = arith.subf %831, %834 : vector<17x17xf32>
    %836 = math.exp %835 : vector<17x17xf32>
    %cst_299 = arith.constant dense<0.000000e+00> : vector<17xf32>
    %837 = vector.multi_reduction <add>, %836, %cst_299 [1] : vector<17x17xf32> to vector<17xf32>
    %838 = vector.shape_cast %837 : vector<17xf32> to vector<17x1xf32>
    %839 = tpu.reciprocal %838 {approx = true} : vector<17x1xf32> -> vector<17x1xf32>
    %840 = vector.broadcast %839 : vector<17x1xf32> to vector<17x17xf32>
    %841 = arith.mulf %836, %840 : vector<17x17xf32>
    %cst_300 = arith.constant dense<0.000000e+00> : vector<17x8xf32>
    %842 = tpu.matmul %841, %828, %cst_300 {dimension_numbers = #tpu.dot_dimension_numbers<[1], [0], [0], [1], [0, 0, 1, 1], [], []>} : vector<17x17xf32>, vector<17x8xf32>, vector<17x8xf32> -> vector<17x8xf32>
    %843 = vector.extract_strided_slice %511 {offsets = [1, 0, 0], sizes = [1, 8, 32], strides = [1, 1, 1]} : vector<4x8x32xf32> to vector<1x8x32xf32>
    %844 = vector.shape_cast %843 : vector<1x8x32xf32> to vector<8x32xf32>
    %cst_301 = arith.constant dense<0.000000e+00> : vector<17x32xf32>
    %845 = tpu.matmul %842, %844, %cst_301 {dimension_numbers = #tpu.dot_dimension_numbers<[1], [0], [0], [1], [0, 0, 1, 1], [], []>} : vector<17x8xf32>, vector<8x32xf32>, vector<17x32xf32> -> vector<17x32xf32>
    %846 = arith.addf %807, %845 : vector<17x32xf32>
    %847 = vector.extract_strided_slice %499 {offsets = [2, 0, 0], sizes = [1, 32, 8], strides = [1, 1, 1]} : vector<4x32x8xf32> to vector<1x32x8xf32>
    %848 = vector.shape_cast %847 : vector<1x32x8xf32> to vector<32x8xf32>
    %cst_302 = arith.constant dense<0.000000e+00> : vector<17x8xf32>
    %849 = tpu.matmul %767, %848, %cst_302 {dimension_numbers = #tpu.dot_dimension_numbers<[1], [0], [0], [1], [0, 0, 1, 1], [], []>} : vector<17x32xf32>, vector<32x8xf32>, vector<17x8xf32> -> vector<17x8xf32>
    %850 = vector.extract_strided_slice %505 {offsets = [2, 0, 0], sizes = [1, 1, 8], strides = [1, 1, 1]} : vector<4x1x8xf32> to vector<1x1x8xf32>
    %851 = vector.shape_cast %850 : vector<1x1x8xf32> to vector<1x8xf32>
    %852 = vector.broadcast %851 : vector<1x8xf32> to vector<17x8xf32>
    %853 = arith.addf %849, %852 : vector<17x8xf32>
    %854 = vector.extract_strided_slice %501 {offsets = [2, 0, 0], sizes = [1, 32, 8], strides = [1, 1, 1]} : vector<4x32x8xf32> to vector<1x32x8xf32>
    %855 = vector.shape_cast %854 : vector<1x32x8xf32> to vector<32x8xf32>
    %cst_303 = arith.constant dense<0.000000e+00> : vector<17x8xf32>
    %856 = tpu.matmul %767, %855, %cst_303 {dimension_numbers = #tpu.dot_dimension_numbers<[1], [0], [0], [1], [0, 0, 1, 1], [], []>} : vector<17x32xf32>, vector<32x8xf32>, vector<17x8xf32> -> vector<17x8xf32>
    %857 = vector.extract_strided_slice %507 {offsets = [2, 0, 0], sizes = [1, 1, 8], strides = [1, 1, 1]} : vector<4x1x8xf32> to vector<1x1x8xf32>
    %858 = vector.shape_cast %857 : vector<1x1x8xf32> to vector<1x8xf32>
    %859 = vector.broadcast %858 : vector<1x8xf32> to vector<17x8xf32>
    %860 = arith.addf %856, %859 : vector<17x8xf32>
    %861 = vector.extract_strided_slice %503 {offsets = [2, 0, 0], sizes = [1, 32, 8], strides = [1, 1, 1]} : vector<4x32x8xf32> to vector<1x32x8xf32>
    %862 = vector.shape_cast %861 : vector<1x32x8xf32> to vector<32x8xf32>
    %cst_304 = arith.constant dense<0.000000e+00> : vector<17x8xf32>
    %863 = tpu.matmul %767, %862, %cst_304 {dimension_numbers = #tpu.dot_dimension_numbers<[1], [0], [0], [1], [0, 0, 1, 1], [], []>} : vector<17x32xf32>, vector<32x8xf32>, vector<17x8xf32> -> vector<17x8xf32>
    %864 = vector.extract_strided_slice %509 {offsets = [2, 0, 0], sizes = [1, 1, 8], strides = [1, 1, 1]} : vector<4x1x8xf32> to vector<1x1x8xf32>
    %865 = vector.shape_cast %864 : vector<1x1x8xf32> to vector<1x8xf32>
    %866 = vector.broadcast %865 : vector<1x8xf32> to vector<17x8xf32>
    %867 = arith.addf %863, %866 : vector<17x8xf32>
    %cst_305 = arith.constant dense<0.000000e+00> : vector<17x17xf32>
    %868 = tpu.matmul %853, %860, %cst_305 {dimension_numbers = #tpu.dot_dimension_numbers<[1], [1], [0], [0], [0, 0, 1, 0], [], []>} : vector<17x8xf32>, vector<17x8xf32>, vector<17x17xf32> -> vector<17x17xf32>
    %cst_306 = arith.constant 0.353553385 : f32
    %869 = vector.broadcast %cst_306 : f32 to vector<17x17xf32>
    %870 = arith.mulf %868, %869 : vector<17x17xf32>
    %cst_307 = arith.constant dense<0xFF800000> : vector<17xf32>
    %871 = vector.multi_reduction <maximumf>, %870, %cst_307 [1] : vector<17x17xf32> to vector<17xf32>
    %872 = vector.shape_cast %871 : vector<17xf32> to vector<17x1xf32>
    %873 = vector.broadcast %872 : vector<17x1xf32> to vector<17x17xf32>
    %874 = arith.subf %870, %873 : vector<17x17xf32>
    %875 = math.exp %874 : vector<17x17xf32>
    %cst_308 = arith.constant dense<0.000000e+00> : vector<17xf32>
    %876 = vector.multi_reduction <add>, %875, %cst_308 [1] : vector<17x17xf32> to vector<17xf32>
    %877 = vector.shape_cast %876 : vector<17xf32> to vector<17x1xf32>
    %878 = tpu.reciprocal %877 {approx = true} : vector<17x1xf32> -> vector<17x1xf32>
    %879 = vector.broadcast %878 : vector<17x1xf32> to vector<17x17xf32>
    %880 = arith.mulf %875, %879 : vector<17x17xf32>
    %cst_309 = arith.constant dense<0.000000e+00> : vector<17x8xf32>
    %881 = tpu.matmul %880, %867, %cst_309 {dimension_numbers = #tpu.dot_dimension_numbers<[1], [0], [0], [1], [0, 0, 1, 1], [], []>} : vector<17x17xf32>, vector<17x8xf32>, vector<17x8xf32> -> vector<17x8xf32>
    %882 = vector.extract_strided_slice %511 {offsets = [2, 0, 0], sizes = [1, 8, 32], strides = [1, 1, 1]} : vector<4x8x32xf32> to vector<1x8x32xf32>
    %883 = vector.shape_cast %882 : vector<1x8x32xf32> to vector<8x32xf32>
    %cst_310 = arith.constant dense<0.000000e+00> : vector<17x32xf32>
    %884 = tpu.matmul %881, %883, %cst_310 {dimension_numbers = #tpu.dot_dimension_numbers<[1], [0], [0], [1], [0, 0, 1, 1], [], []>} : vector<17x8xf32>, vector<8x32xf32>, vector<17x32xf32> -> vector<17x32xf32>
    %885 = arith.addf %846, %884 : vector<17x32xf32>
    %886 = vector.extract_strided_slice %499 {offsets = [3, 0, 0], sizes = [1, 32, 8], strides = [1, 1, 1]} : vector<4x32x8xf32> to vector<1x32x8xf32>
    %887 = vector.shape_cast %886 : vector<1x32x8xf32> to vector<32x8xf32>
    %cst_311 = arith.constant dense<0.000000e+00> : vector<17x8xf32>
    %888 = tpu.matmul %767, %887, %cst_311 {dimension_numbers = #tpu.dot_dimension_numbers<[1], [0], [0], [1], [0, 0, 1, 1], [], []>} : vector<17x32xf32>, vector<32x8xf32>, vector<17x8xf32> -> vector<17x8xf32>
    %889 = vector.extract_strided_slice %505 {offsets = [3, 0, 0], sizes = [1, 1, 8], strides = [1, 1, 1]} : vector<4x1x8xf32> to vector<1x1x8xf32>
    %890 = vector.shape_cast %889 : vector<1x1x8xf32> to vector<1x8xf32>
    %891 = vector.broadcast %890 : vector<1x8xf32> to vector<17x8xf32>
    %892 = arith.addf %888, %891 : vector<17x8xf32>
    %893 = vector.extract_strided_slice %501 {offsets = [3, 0, 0], sizes = [1, 32, 8], strides = [1, 1, 1]} : vector<4x32x8xf32> to vector<1x32x8xf32>
    %894 = vector.shape_cast %893 : vector<1x32x8xf32> to vector<32x8xf32>
    %cst_312 = arith.constant dense<0.000000e+00> : vector<17x8xf32>
    %895 = tpu.matmul %767, %894, %cst_312 {dimension_numbers = #tpu.dot_dimension_numbers<[1], [0], [0], [1], [0, 0, 1, 1], [], []>} : vector<17x32xf32>, vector<32x8xf32>, vector<17x8xf32> -> vector<17x8xf32>
    %896 = vector.extract_strided_slice %507 {offsets = [3, 0, 0], sizes = [1, 1, 8], strides = [1, 1, 1]} : vector<4x1x8xf32> to vector<1x1x8xf32>
    %897 = vector.shape_cast %896 : vector<1x1x8xf32> to vector<1x8xf32>
    %898 = vector.broadcast %897 : vector<1x8xf32> to vector<17x8xf32>
    %899 = arith.addf %895, %898 : vector<17x8xf32>
    %900 = vector.extract_strided_slice %503 {offsets = [3, 0, 0], sizes = [1, 32, 8], strides = [1, 1, 1]} : vector<4x32x8xf32> to vector<1x32x8xf32>
    %901 = vector.shape_cast %900 : vector<1x32x8xf32> to vector<32x8xf32>
    %cst_313 = arith.constant dense<0.000000e+00> : vector<17x8xf32>
    %902 = tpu.matmul %767, %901, %cst_313 {dimension_numbers = #tpu.dot_dimension_numbers<[1], [0], [0], [1], [0, 0, 1, 1], [], []>} : vector<17x32xf32>, vector<32x8xf32>, vector<17x8xf32> -> vector<17x8xf32>
    %903 = vector.extract_strided_slice %509 {offsets = [3, 0, 0], sizes = [1, 1, 8], strides = [1, 1, 1]} : vector<4x1x8xf32> to vector<1x1x8xf32>
    %904 = vector.shape_cast %903 : vector<1x1x8xf32> to vector<1x8xf32>
    %905 = vector.broadcast %904 : vector<1x8xf32> to vector<17x8xf32>
    %906 = arith.addf %902, %905 : vector<17x8xf32>
    %cst_314 = arith.constant dense<0.000000e+00> : vector<17x17xf32>
    %907 = tpu.matmul %892, %899, %cst_314 {dimension_numbers = #tpu.dot_dimension_numbers<[1], [1], [0], [0], [0, 0, 1, 0], [], []>} : vector<17x8xf32>, vector<17x8xf32>, vector<17x17xf32> -> vector<17x17xf32>
    %cst_315 = arith.constant 0.353553385 : f32
    %908 = vector.broadcast %cst_315 : f32 to vector<17x17xf32>
    %909 = arith.mulf %907, %908 : vector<17x17xf32>
    %cst_316 = arith.constant dense<0xFF800000> : vector<17xf32>
    %910 = vector.multi_reduction <maximumf>, %909, %cst_316 [1] : vector<17x17xf32> to vector<17xf32>
    %911 = vector.shape_cast %910 : vector<17xf32> to vector<17x1xf32>
    %912 = vector.broadcast %911 : vector<17x1xf32> to vector<17x17xf32>
    %913 = arith.subf %909, %912 : vector<17x17xf32>
    %914 = math.exp %913 : vector<17x17xf32>
    %cst_317 = arith.constant dense<0.000000e+00> : vector<17xf32>
    %915 = vector.multi_reduction <add>, %914, %cst_317 [1] : vector<17x17xf32> to vector<17xf32>
    %916 = vector.shape_cast %915 : vector<17xf32> to vector<17x1xf32>
    %917 = tpu.reciprocal %916 {approx = true} : vector<17x1xf32> -> vector<17x1xf32>
    %918 = vector.broadcast %917 : vector<17x1xf32> to vector<17x17xf32>
    %919 = arith.mulf %914, %918 : vector<17x17xf32>
    %cst_318 = arith.constant dense<0.000000e+00> : vector<17x8xf32>
    %920 = tpu.matmul %919, %906, %cst_318 {dimension_numbers = #tpu.dot_dimension_numbers<[1], [0], [0], [1], [0, 0, 1, 1], [], []>} : vector<17x17xf32>, vector<17x8xf32>, vector<17x8xf32> -> vector<17x8xf32>
    %921 = vector.extract_strided_slice %511 {offsets = [3, 0, 0], sizes = [1, 8, 32], strides = [1, 1, 1]} : vector<4x8x32xf32> to vector<1x8x32xf32>
    %922 = vector.shape_cast %921 : vector<1x8x32xf32> to vector<8x32xf32>
    %cst_319 = arith.constant dense<0.000000e+00> : vector<17x32xf32>
    %923 = tpu.matmul %920, %922, %cst_319 {dimension_numbers = #tpu.dot_dimension_numbers<[1], [0], [0], [1], [0, 0, 1, 1], [], []>} : vector<17x8xf32>, vector<8x32xf32>, vector<17x32xf32> -> vector<17x32xf32>
    %924 = arith.addf %885, %923 : vector<17x32xf32>
    %925 = arith.addf %489, %924 : vector<17x32xf32>
    %926 = vector.broadcast %513 : vector<1x32xf32> to vector<17x32xf32>
    %927 = arith.addf %925, %926 : vector<17x32xf32>
    %cst_320 = arith.constant dense<0.000000e+00> : vector<17xf32>
    %928 = vector.multi_reduction <add>, %927, %cst_320 [1] : vector<17x32xf32> to vector<17xf32>
    %929 = vector.shape_cast %928 : vector<17xf32> to vector<17x1xf32>
    %cst_321 = arith.constant 3.200000e+01 : f32
    %930 = vector.broadcast %cst_321 : f32 to vector<17x1xf32>
    %931 = arith.divf %929, %930 : vector<17x1xf32>
    %932 = vector.broadcast %931 : vector<17x1xf32> to vector<17x32xf32>
    %933 = arith.subf %927, %932 : vector<17x32xf32>
    %934 = arith.mulf %933, %933 : vector<17x32xf32>
    %cst_322 = arith.constant dense<0.000000e+00> : vector<17xf32>
    %935 = vector.multi_reduction <add>, %934, %cst_322 [1] : vector<17x32xf32> to vector<17xf32>
    %936 = vector.shape_cast %935 : vector<17xf32> to vector<17x1xf32>
    %cst_323 = arith.constant 3.200000e+01 : f32
    %937 = vector.broadcast %cst_323 : f32 to vector<17x1xf32>
    %938 = arith.divf %936, %937 : vector<17x1xf32>
    %939 = vector.broadcast %931 : vector<17x1xf32> to vector<17x32xf32>
    %940 = arith.subf %927, %939 : vector<17x32xf32>
    %cst_324 = arith.constant 9.99999974E-6 : f32
    %941 = vector.broadcast %cst_324 : f32 to vector<17x1xf32>
    %942 = arith.addf %938, %941 : vector<17x1xf32>
    %943 = math.rsqrt %942 : vector<17x1xf32>
    %944 = vector.broadcast %943 : vector<17x1xf32> to vector<17x32xf32>
    %945 = arith.mulf %940, %944 : vector<17x32xf32>
    %946 = vector.broadcast %495 : vector<1x32xf32> to vector<17x32xf32>
    %947 = arith.mulf %945, %946 : vector<17x32xf32>
    %948 = vector.broadcast %497 : vector<1x32xf32> to vector<17x32xf32>
    %949 = arith.addf %947, %948 : vector<17x32xf32>
    %cst_325 = arith.constant dense<0.000000e+00> : vector<17x128xf32>
    %950 = tpu.matmul %949, %515, %cst_325 {dimension_numbers = #tpu.dot_dimension_numbers<[1], [0], [0], [1], [0, 0, 1, 1], [], []>} : vector<17x32xf32>, vector<32x128xf32>, vector<17x128xf32> -> vector<17x128xf32>
    %951 = vector.broadcast %517 : vector<1x128xf32> to vector<17x128xf32>
    %952 = arith.addf %950, %951 : vector<17x128xf32>
    %cst_326 = arith.constant 5.000000e-01 : f32
    %953 = vector.broadcast %cst_326 : f32 to vector<17x128xf32>
    %954 = arith.mulf %953, %952 : vector<17x128xf32>
    %cst_327 = arith.constant 4.471500e-02 : f32
    %955 = vector.broadcast %cst_327 : f32 to vector<17x128xf32>
    %956 = arith.mulf %955, %952 : vector<17x128xf32>
    %957 = arith.mulf %956, %952 : vector<17x128xf32>
    %958 = arith.mulf %957, %952 : vector<17x128xf32>
    %959 = arith.addf %952, %958 : vector<17x128xf32>
    %cst_328 = arith.constant 0.797884583 : f32
    %960 = vector.broadcast %cst_328 : f32 to vector<17x128xf32>
    %961 = arith.mulf %960, %959 : vector<17x128xf32>
    %962 = math.tanh %961 : vector<17x128xf32>
    %cst_329 = arith.constant 1.000000e+00 : f32
    %963 = vector.broadcast %cst_329 : f32 to vector<17x128xf32>
    %964 = arith.addf %963, %962 : vector<17x128xf32>
    %965 = arith.mulf %954, %964 : vector<17x128xf32>
    %cst_330 = arith.constant dense<0.000000e+00> : vector<17x32xf32>
    %966 = tpu.matmul %965, %519, %cst_330 {dimension_numbers = #tpu.dot_dimension_numbers<[1], [0], [0], [1], [0, 0, 1, 1], [], []>} : vector<17x128xf32>, vector<128x32xf32>, vector<17x32xf32> -> vector<17x32xf32>
    %967 = vector.broadcast %521 : vector<1x32xf32> to vector<17x32xf32>
    %968 = arith.addf %966, %967 : vector<17x32xf32>
    %969 = arith.addf %927, %968 : vector<17x32xf32>
    %970 = vector.extract_strided_slice %745 {offsets = [0, 0], sizes = [1, 32], strides = [1, 1]} : vector<17x32xf32> to vector<1x32xf32>
    %971 = vector.extract_strided_slice %969 {offsets = [0, 0], sizes = [1, 32], strides = [1, 1]} : vector<17x32xf32> to vector<1x32xf32>
    %972 = tpu.concatenate %970, %971 in 0 : vector<1x32xf32>, vector<1x32xf32> -> vector<2x32xf32>
    %c0_331 = arith.constant 0 : index
    %c0_332 = arith.constant 0 : index
    %973 = vector.load %arg19[%c0_331, %c0_332] : memref<1x32xf32, #tpu.memory_space<vmem>>, vector<1x32xf32>
    %c0_333 = arith.constant 0 : index
    %c0_334 = arith.constant 0 : index
    %974 = vector.load %arg20[%c0_333, %c0_334] : memref<1x32xf32, #tpu.memory_space<vmem>>, vector<1x32xf32>
    %cst_335 = arith.constant dense<0.000000e+00> : vector<2xf32>
    %975 = vector.multi_reduction <add>, %972, %cst_335 [1] : vector<2x32xf32> to vector<2xf32>
    %976 = vector.shape_cast %975 : vector<2xf32> to vector<2x1xf32>
    %cst_336 = arith.constant 3.200000e+01 : f32
    %977 = vector.broadcast %cst_336 : f32 to vector<2x1xf32>
    %978 = arith.divf %976, %977 : vector<2x1xf32>
    %979 = vector.broadcast %978 : vector<2x1xf32> to vector<2x32xf32>
    %980 = arith.subf %972, %979 : vector<2x32xf32>
    %981 = arith.mulf %980, %980 : vector<2x32xf32>
    %cst_337 = arith.constant dense<0.000000e+00> : vector<2xf32>
    %982 = vector.multi_reduction <add>, %981, %cst_337 [1] : vector<2x32xf32> to vector<2xf32>
    %983 = vector.shape_cast %982 : vector<2xf32> to vector<2x1xf32>
    %cst_338 = arith.constant 3.200000e+01 : f32
    %984 = vector.broadcast %cst_338 : f32 to vector<2x1xf32>
    %985 = arith.divf %983, %984 : vector<2x1xf32>
    %986 = vector.broadcast %978 : vector<2x1xf32> to vector<2x32xf32>
    %987 = arith.subf %972, %986 : vector<2x32xf32>
    %cst_339 = arith.constant 9.99999974E-6 : f32
    %988 = vector.broadcast %cst_339 : f32 to vector<2x1xf32>
    %989 = arith.addf %985, %988 : vector<2x1xf32>
    %990 = math.rsqrt %989 : vector<2x1xf32>
    %991 = vector.broadcast %990 : vector<2x1xf32> to vector<2x32xf32>
    %992 = arith.mulf %987, %991 : vector<2x32xf32>
    %993 = vector.broadcast %973 : vector<1x32xf32> to vector<2x32xf32>
    %994 = arith.mulf %992, %993 : vector<2x32xf32>
    %995 = vector.broadcast %974 : vector<1x32xf32> to vector<2x32xf32>
    %996 = arith.addf %994, %995 : vector<2x32xf32>
    %c0_340 = arith.constant 0 : index
    %c0_341 = arith.constant 0 : index
    %997 = vector.load %arg21[%c0_340, %c0_341] : memref<2x32xf32, #tpu.memory_space<vmem>>, vector<2x32xf32>
    tpu.vector_store %arg21[%c0_340, %c0_341], %996 {strides = array<i32>} : memref<2x32xf32, #tpu.memory_space<vmem>>, vector<2x32xf32>,
    return
  }
}

</mosaic_0001>

<bundles_post_ra>
// kernel: vit_extractor.1
= control target key start
LH: loop header
LB: loop body
LE: loop exit
PB: predicated region body
PF: predicated region fallthrough
CT: control target
= control target key end

     0   :  { %s17794_s0 = inlined_call_operand.vmem [shape: f32[2,17,64], index: 0, kind: input, shape index: {}]   ;;  %s17795_s1 = inlined_call_operand.vmem [shape: f32[64,32], index: 1, kind: input, shape index: {}]   ;;  %s17796_s2 = inlined_call_operand.vmem [shape: f32[17,32], index: 2, kind: input, shape index: {}]   ;;  %s17797_s3 = inlined_call_operand.vmem [shape: f32[2,1,32], index: 3, kind: input, shape index: {}]   ;;  %s17798_s4 = inlined_call_operand.vmem [shape: f32[2,1,32], index: 4, kind: input, shape index: {}]   ;;  %s17799_s5 = inlined_call_operand.vmem [shape: f32[2,4,32,8], index: 5, kind: input, shape index: {}]   ;;  %s17800_s6 = inlined_call_operand.vmem [shape: f32[2,4,1,8], index: 6, kind: input, shape index: {}]   ;;  %s17801_s7 = inlined_call_operand.vmem [shape: f32[2,4,32,8], index: 7, kind: input, shape index: {}]   ;;  %s17802_s8 = inlined_call_operand.vmem [shape: f32[2,4,1,8], index: 8, kind: input, shape index: {}]   ;;  %s17803_s9 = inlined_call_operand.vmem [shape: f32[2,4,32,8], index: 9, kind: input, shape index: {}]   ;;  %s17804_s10 = inlined_call_operand.vmem [shape: f32[2,4,1,8], index: 10, kind: input, shape index: {}]   ;;  %s17805_s11 = inlined_call_operand.vmem [shape: f32[2,4,8,32], index: 11, kind: input, shape index: {}]   ;;  %s17806_s12 = inlined_call_operand.vmem [shape: f32[2,1,32], index: 12, kind: input, shape index: {}]   ;;  %s17807_s13 = inlined_call_operand.vmem [shape: f32[2,1,32], index: 13, kind: input, shape index: {}]   ;;  %s17808_s14 = inlined_call_operand.vmem [shape: f32[2,1,32], index: 14, kind: input, shape index: {}]   ;;  %s17809_s15 = inlined_call_operand.vmem [shape: f32[2,32,128], index: 15, kind: input, shape index: {}]   ;;  %s17810_s16 = inlined_call_operand.vmem [shape: f32[2,1,128], index: 16, kind: input, shape index: {}]   ;;  %s17811_s17 = inlined_call_operand.vmem [shape: f32[2,128,32], index: 17, kind: input, shape index: {}]   ;;  %s17812_s18 = inlined_call_operand.vmem [shape: f32[2,1,32], index: 18, kind: input, shape index: {}]   ;;  %s17813_s19 = inlined_call_operand.vmem [shape: f32[1,32], index: 19, kind: input, shape index: {}]   ;;  %s17814_s20 = inlined_call_operand.vmem [shape: f32[1,32], index: 20, kind: input, shape index: {}]   ;;  %s17815_s21 = inlined_call_operand.hbm [shape: f32[2,32], index: 21, kind: output, shape index: {}]  }
   0x1   :  { %17826 = sst [smem:[#allocation5_spill]] %s17794_s0 }
   0x2   :  { %17827 = sst [smem:[#allocation6_spill]] %s17795_s1 }
   0x3   :  { %17828 = sst [smem:[#allocation7_spill]] %s17796_s2 }
   0x4   :  { %17829 = sst [smem:[#allocation8_spill]] %s17797_s3 }
   0x5   :  { %17830 = sst [smem:[#allocation9_spill]] %s17798_s4 }
   0x6   :  { %17831 = sst [smem:[#allocation10_spill]] %s17799_s5 }
   0x7   :  { %s17832_s26 = sld [smem:[#allocation6_spill]]  ;;  %v17822_v3 = vmov 0.0|0.0   ;;  %vm14723_vm0 = vmmov 0   ;;  %v17824_v6 = vmov 0.0  }
   0x8   :  { %13836 = vmatprep.subr.bf16.mxu0 %v17822_v3  ;;  %12098 = vmatprep.mubr.msk.f32.mxu0 %vm14723_vm0, %v17824_v6 }
   0x9   :  { %13848 = vmatprep.subr.bf16.mxu1 %v17822_v3  ;;  %12123 = vmatprep.mubr.msk.f32.mxu1 %vm14723_vm0, %v17824_v6 }
   0xd   :  { %v69_v0 = vld [vmem:[%s17832_s26] sm:$0xff]  ;;  %v70_v1 = vld [vmem:[%s17832_s26 + $0x8] sm:$0xff]  ;;  %v71_v2 = vld [vmem:[%s17832_s26 + $0x10] sm:$0xff] }
   0xe   :  { %v13837_v4 = vpack.c.bf16 %v70_v1, %v69_v0  ;;  %v72_v5 = vld [vmem:[%s17832_s26 + $0x18] sm:$0xff]  ;;  %v73_v8 = vld [vmem:[%s17832_s26 + $0x20] sm:$0xff]  ;;  %v74_v9 = vld [vmem:[%s17832_s26 + $0x28] sm:$0xff] }
   0xf   :  { %v13840_v7 = vpack.c.bf16 %v72_v5, %v71_v2 }
  0x10   :  { %13838 = vmatpush3.bf16.msra.mxu0 %v13837_v4  ;;  %13850 = vmatpush3.bf16.msra.mxu1 %v13837_v4 }
  0x11   :  { %13839 = vmatprep.subr.bf16.mxu0 %v17822_v3  ;;  %13851 = vmatprep.subr.bf16.mxu1 %v17822_v3 }
  0x12   :  { %26 = vsyncpa [#allocation3], 0  ;;  %v13843_v10 = vpack.c.bf16 %v74_v9, %v73_v8  ;;  %v75_v11 = vld [vmem:[%s17832_s26 + $0x30] sm:$0xff]  ;;  %v76_v12 = vld [vmem:[%s17832_s26 + $0x38] sm:$0xff]  ;;  %s17833_s28 = sld [smem:[#allocation5_spill]]  ;;  %vm83_vm1 = vcmask 523264  }
  0x13   :  { %v13846_v13 = vpack.c.bf16 %v76_v12, %v75_v11  ;;  %s17834_s22 = sld [smem:[#allocation7_spill]]  ;;  %vm357_vm2 = vcmask 261120   ;;  %vm364_vm3 = vcmask 253952   ;;  %s17835_s4 = sld [smem:[#allocation10_spill]]  ;;  %v302_v52 = vld [vmem:[%s17803_s9] sm:$0xff]  ;;  %v303_v53 = vld [vmem:[%s17803_s9 + $0x8] sm:$0xff] }
  0x14   :  { %13841 = vmatpush3.bf16.msra.mxu0 %v13840_v7  ;;  %13853 = vmatpush3.bf16.msra.mxu1 %v13840_v7  ;;  %v14951_v54 = vpack.c.bf16 %v303_v53, %v302_v52  ;;  %v304_v59 = vld [vmem:[%s17803_s9 + $0x10] sm:$0xff]  ;;  %v305_v60 = vld [vmem:[%s17803_s9 + $0x18] sm:$0xff]  ;;  %s17836_s2 = sld [smem:[#allocation8_spill]]  ;;  %v286_v12 = vld [vmem:[%s17801_s7] sm:$0xff]  ;;  %s17837_s30 = sld [smem:[#allocation9_spill]]  ;;  %vm830_vm4 = vcmask 1040384  }
  0x15   :  { %13842 = vmatprep.subr.bf16.mxu0 %v17822_v3  ;;  %13854 = vmatprep.subr.bf16.mxu1 %v17822_v3  ;;  %v14977_v61 = vpack.c.bf16 %v305_v60, %v304_v59  ;;  %v10875_v60 = vld [vmem:[%s17802_s8] ss:$0 sm:$0xff]  ;;  %vm684_vm5 = vcmask 64512   ;;  %vm786_vm7 = vcmask 138240   ;;  %vm793_vm8 = vcmask 131072   ;;  %s14725_s29 = smov [#allocation2]  }
  0x16   :  { %vm15072_vm6 = vmpackc.low %vm684_vm5, %vm684_vm5  ;;  %vm10817_vm9 = vcmask 254976  }
  0x18   :  { %13844 = vmatpush3.bf16.msra.mxu0 %v13843_v10  ;;  %13856 = vmatpush3.bf16.msra.mxu1 %v13843_v10  ;;  %v80_v14 = vld [vmem:[%s17833_s28] sm:$0xff]  ;;  %v81_v15 = vld [vmem:[%s17833_s28 + $0x8] sm:$0xff]  ;;  %v82_v16 = vld [vmem:[%s17833_s28 + $0x10] sm:$0x1] }
  0x19   :  { %13845 = vmatprep.subr.bf16.mxu0 %v17822_v3  ;;  %13857 = vmatprep.subr.bf16.mxu1 %v17822_v3  ;;  %v77_v17 = vld [vmem:[%s17834_s22] sm:$0xff]  ;;  %v78_v21 = vld [vmem:[%s17834_s22 + $0x8] sm:$0xff]  ;;  %v79_v26 = vld [vmem:[%s17834_s22 + $0x10] sm:$0x1] }
  0x1a   :  { %v10863_v47 = vld [vmem:[%s17833_s28 + $0x18] sm:$0xff]  ;;  %v10864_v48 = vld [vmem:[%s17833_s28 + $0x20] sm:$0xff]  ;;  %v271_v50 = vld [vmem:[%s17835_s4 + $0x8] sm:$0xff] }
  0x1b   :  { %v270_v49 = vld [vmem:[%s17835_s4] sm:$0xff]  ;;  %v10865_v55 = vld [vmem:[%s17833_s28 + $0x28] sm:$0x1]  ;;  %v272_v56 = vld [vmem:[%s17835_s4 + $0x10] sm:$0xff] }
  0x1c   :  { %13847 = vmatpush3.bf16.msra.mxu0 %v13846_v13  ;;  %13859 = vmatpush3.bf16.msra.mxu1 %v13846_v13  ;;  %v14943_v51 = vpack.c.bf16 %v271_v50, %v270_v49  ;;  %v273_v57 = vld [vmem:[%s17835_s4 + $0x18] sm:$0xff]  ;;  %v10869_v10 = vld [vmem:[%s17836_s2] ss:$0 sm:$0xff]  ;;  %v287_v13 = vld [vmem:[%s17801_s7 + $0x8] sm:$0xff] }
  0x1d   :  { %13860 = vmatprep.subr.bf16.mxu1 %v17822_v3  ;;  %13872 = vmatprep.subr.bf16.mxu0 %v17822_v3  ;;  %v14969_v58 = vpack.c.bf16 %v273_v57, %v272_v56 }
  0x1f   :  { %12099 = vmatmul.mubr.msk.f32.vlgmr.msra.gmra.mrb[0].mxu0 %vm83_vm1, %v80_v14  ;;  %12124 = vmatmul.mubr.msk.f32.vlgmr.msra.gmra.mrb[0].mxu1 %vm83_vm1, %v10863_v47  ;;  %v10870_v14 = vld [vmem:[%s17837_s30] ss:$0 sm:$0xff] }
  0x20   :  { %12101 = vmatprep.mubr.msk.f32.mxu0 %vm14723_vm0, %v17824_v6  ;;  %12126 = vmatprep.mubr.msk.f32.mxu1 %vm14723_vm0, %v17824_v6 }
  0x21   :  { %13862 = vmatpush3.bf16.msra.mxu1 %v14943_v51  ;;  %13874 = vmatpush3.bf16.msra.mxu0 %v14951_v54 }
  0x22   :  { %13863 = vmatprep.subr.bf16.mxu1 %v17822_v3  ;;  %13875 = vmatprep.subr.bf16.mxu0 %v17822_v3 }
  0x23   :  { %12102 = vmatmul.mubr.msk.f32.gmra.mrb[2].mxu0 %vm83_vm1, %v81_v15  ;;  %12127 = vmatmul.mubr.msk.f32.gmra.mrb[2].mxu1 %vm83_vm1, %v10864_v48 }
  0x24   :  { %12104 = vmatprep.mubr.msk.f32.mxu0 %vm14723_vm0, %v17824_v6  ;;  %12129 = vmatprep.mubr.msk.f32.mxu1 %vm14723_vm0, %v17824_v6 }
  0x25   :  { %13865 = vmatpush3.bf16.msra.mxu1 %v14969_v58  ;;  %13877 = vmatpush3.bf16.msra.mxu0 %v14977_v61 }
  0x26   :  { %13866 = vmatprep.subr.bf16.mxu1 %v17822_v3  ;;  %13882 = vmatprep.subr.bf16.mxu0 %v17822_v3 }
  0x27   :  { %12105 = vmatmul.mubr.msk.f32.gmra.mrb[4].mxu0 %vm83_vm1, %v82_v16  ;;  %12130 = vmatmul.mubr.msk.f32.gmra.mrb[4].mxu1 %vm83_vm1, %v10865_v55 }
  0x28   :  { %12174 = vmatprep.mubr.msk.f32.mxu0 %vm14723_vm0, %v17824_v6  ;;  %12140 = vmatprep.mubr.msk.f32.mxu1 %vm14723_vm0, %v17824_v6 }
  0xf2   :  { %v159_v18 = vpop.f32.mrb[0].mxu0 }
  0xf3   :  { %v14895_v19 = vadd.f32 %v159_v18, %v77_v17  ;;  %v12100_v20 = vpop.f32.mrb[1].mxu0  ;;  %v14997_v17 = vpack.c.bf16 %v287_v13, %v286_v12 }
  0xf5   :  { %v358_v22 = vsel %vm357_vm2, %v14895_v19, 0.0 }
  0xf6   :  { %359 = vadd.xlane.f32.xlu0 %v358_v22  ;;  %v164_v23 = vpop.f32.mrb[2].mxu0  ;;  %v289_v22 = vld [vmem:[%s17801_s7 + $0x18] sm:$0xff] }
  0xf7   :  { %v14902_v24 = vadd.f32 %v164_v23, %v78_v21  ;;  %v12103_v25 = vpop.f32.mrb[3].mxu0  ;;  %v288_v21 = vld [vmem:[%s17801_s7 + $0x10] sm:$0xff] }
  0xf9   :  { %v361_v27 = vsel %vm357_vm2, %v14902_v24, 0.0 }
  0xfa   :  { %362 = vadd.xlane.f32.xlu0 %v361_v27  ;;  %v169_v28 = vpop.f32.mrb[4].mxu0 }
  0xfb   :  { %v14909_v29 = vadd.f32 %v169_v28, %v79_v26  ;;  %v12106_v30 = vpop.f32.mrb[5].mxu0  ;;  %v15021_v28 = vpack.c.bf16 %v289_v22, %v288_v21  ;;  %v306_v22 = vld [vmem:[%s17803_s9 + $0x20] sm:$0xff] }
  0xfd   :  { %v365_v31 = vsel %vm364_vm3, %v14909_v29, 0.0 }
  0xfe   :  { %366 = vadd.xlane.f32.xlu1 %v365_v31 }
 0x183   :  { %v360_v32 = vpop.xlane.xlu0 %359 }
 0x184   :  { %v369_v33 = vmul.f32 0.03125, %v360_v32  ;;  %v15055_v32 = vpop.f32.mrb[0].mxu1 }
 0x186   :  { %v372_v34 = vsub.f32 %v14895_v19, %v369_v33  ;;  %v12125_v33 = vpop.f32.mrb[1].mxu1 }
 0x187   :  { %v363_v35 = vpop.xlane.xlu0 %362 }
 0x188   :  { %v370_v36 = vmul.f32 0.03125, %v363_v35  ;;  %v375_v37 = vmul.f32 %v372_v34, %v372_v34 }
 0x18a   :  { %v14915_v38 = vsub.f32 %v14902_v24, %v370_v36  ;;  %v378_v39 = vsel %vm357_vm2, %v375_v37, 0.0 }
 0x18b   :  { %379 = vadd.xlane.f32.xlu1 %v378_v39  ;;  %v367_v40 = vpop.xlane.xlu1 %366 }
 0x18c   :  { %v371_v41 = vmul.f32 0.03125, %v367_v40  ;;  %v376_v42 = vmul.f32 %v14915_v38, %v14915_v38 }
 0x18e   :  { %v14921_v43 = vsub.f32 %v14909_v29, %v371_v41  ;;  %v381_v44 = vsel %vm357_vm2, %v376_v42, 0.0  ;;  %v10879_v42 = vld [vmem:[%s17804_s10] ss:$0 sm:$0xff] }
 0x18f   :  { %382 = vadd.xlane.f32.xlu0 %v381_v44 }
 0x190   :  { %v377_v45 = vmul.f32 %v14921_v43, %v14921_v43 }
 0x192   :  { %v384_v46 = vsel %vm364_vm3, %v377_v45, 0.0 }
 0x193   :  { %385 = vadd.xlane.f32.xlu1 %v384_v46 }
 0x218   :  { %v380_v62 = vpop.xlane.xlu1 %379 }
 0x219   :  { %v387_v63 = vmul.f32 0.03125, %v380_v62 }
 0x21b   :  { %v390_v0 = vadd.f32 1e-05, %v387_v63 }
 0x21c   :  { %v383_v1 = vpop.xlane.xlu0 %382 }
 0x21d   :  { %14384 = vrsqrt.f32 %v390_v0  ;;  %v388_v2 = vmul.f32 0.03125, %v383_v1 }
 0x21f   :  { %v391_v4 = vadd.f32 1e-05, %v388_v2  ;;  %v14693_v2 = vld [vmem:[%s17805_s11 + $0x38] sm:$0xff] }
 0x220   :  { %v386_v5 = vpop.xlane.xlu1 %385 }
 0x221   :  { %14386 = vrsqrt.f32 %v391_v4  ;;  %v389_v7 = vmul.f32 0.03125, %v386_v5 }
 0x223   :  { %v392_v8 = vadd.f32 1e-05, %v389_v7 }
 0x225   :  { %14388 = vrsqrt.f32 %v392_v8  ;;  %v274_v8 = vld [vmem:[%s17835_s4 + $0x20] sm:$0xff] }
 0x227   :  { %v14385_v9 = vpop.eup %14384 }
 0x228   :  { %v396_v11 = vmul.f32 %v14385_v9, %v372_v34  ;;  %v15057_v34 = vpop.f32.mrb[2].mxu1  ;;  %v275_v9 = vld [vmem:[%s17835_s4 + $0x28] sm:$0xff] }
 0x229   :  { %v12128_v35 = vpop.f32.mrb[3].mxu1  ;;  %v15089_v12 = vpack.c.bf16 %v275_v9, %v274_v8 }
 0x22a   :  { %v405_v15 = vmul.f32 %v10869_v10, %v396_v11  ;;  %v15059_v36 = vpop.f32.mrb[4].mxu1 }
 0x22b   :  { %v14387_v16 = vpop.eup %14386  ;;  %v12131_v37 = vpop.f32.mrb[5].mxu1 }
 0x22c   :  { %v14999_v18 = vadd.f32 %v10870_v14, %v405_v15  ;;  %v397_v20 = vmul.f32 %v14387_v16, %v14915_v38  ;;  %v277_v15 = vld [vmem:[%s17835_s4 + $0x38] sm:$0xff] }
 0x22e   :  { %v406_v23 = vmul.f32 %v10869_v10, %v397_v20  ;;  %12141 = vmatmul.mubr.msk.f32.vlgmr.msra.gmra.mrb[6].mxu1 %vm357_vm2, %v14999_v18  ;;  %12175 = vmatmul.mubr.msk.f32.vlgmr.msra.gmra.mrb[6].mxu0 %vm357_vm2, %v14999_v18 }
 0x22f   :  { %v14389_v25 = vpop.eup %14388  ;;  %12143 = vmatprep.mubr.msk.f32.mxu1 %vm14723_vm0, %v17824_v6  ;;  %13868 = vmatpush3.bf16.msra.mxu1 %v14997_v17 }
 0x230   :  { %v15015_v26 = vadd.f32 %v10870_v14, %v406_v23  ;;  %v398_v27 = vmul.f32 %v14389_v25, %v14921_v43  ;;  %12177 = vmatprep.mubr.msk.f32.mxu0 %vm14723_vm0, %v17824_v6  ;;  %13869 = vmatprep.subr.bf16.mxu1 %v17822_v3  ;;  %v307_v23 = vld [vmem:[%s17803_s9 + $0x28] sm:$0xff] }
 0x231   :  { %v15119_v25 = vpack.c.bf16 %v307_v23, %v306_v22 }
 0x232   :  { %v407_v30 = vmul.f32 %v10869_v10, %v398_v27  ;;  %12144 = vmatmul.mubr.msk.f32.gmra.mrb[8].mxu1 %vm357_vm2, %v15015_v26  ;;  %12178 = vmatmul.mubr.msk.f32.gmra.mrb[8].mxu0 %vm357_vm2, %v15015_v26  ;;  %v10871_v10 = vld [vmem:[%s17800_s6] ss:$0 sm:$0xff]  ;;  %v308_v27 = vld [vmem:[%s17803_s9 + $0x30] sm:$0xff] }
 0x233   :  { %12146 = vmatprep.mubr.msk.f32.mxu1 %vm14723_vm0, %v17824_v6  ;;  %12180 = vmatprep.mubr.msk.f32.mxu0 %vm14723_vm0, %v17824_v6 }
 0x234   :  { %v15031_v31 = vadd.f32 %v10870_v14, %v407_v30  ;;  %13871 = vmatpush3.bf16.msra.mxu1 %v15021_v28  ;;  %v276_v14 = vld [vmem:[%s17835_s4 + $0x30] sm:$0xff]  ;;  %v309_v30 = vld [vmem:[%s17803_s9 + $0x38] sm:$0xff] }
 0x235   :  { %13878 = vmatprep.subr.bf16.mxu1 %v17822_v3  ;;  %v15102_v16 = vpack.c.bf16 %v277_v15, %v276_v14  ;;  %v15132_v33 = vpack.c.bf16 %v309_v30, %v308_v27 }
 0x236   :  { %12147 = vmatmul.mubr.msk.f32.gmra.mrb[10].mxu1 %vm357_vm2, %v15031_v31  ;;  %12181 = vmatmul.mubr.msk.f32.gmra.mrb[10].mxu0 %vm357_vm2, %v15031_v31 }
 0x237   :  { %12157 = vmatprep.mubr.msk.f32.mxu1 %vm14723_vm0, %v17824_v6  ;;  %12204 = vmatprep.mubr.msk.f32.mxu0 %vm14723_vm0, %v17824_v6 }
 0x23a   :  { %12158 = vmatmul.mubr.msk.f32.vlgmr.msra.gmra.mrb[12].mxu1 %vm357_vm2, %v14999_v18 }
 0x23b   :  { %12160 = vmatprep.mubr.msk.f32.mxu1 %vm14723_vm0, %v17824_v6 }
 0x23e   :  { %12161 = vmatmul.mubr.msk.f32.gmra.mrb[14].mxu1 %vm357_vm2, %v15015_v26 }
 0x23f   :  { %12163 = vmatprep.mubr.msk.f32.mxu1 %vm14723_vm0, %v17824_v6 }
 0x242   :  { %12164 = vmatmul.mubr.msk.f32.gmra.mrb[16].mxu1 %vm357_vm2, %v15031_v31 }
 0x243   :  { %12189 = vmatprep.mubr.msk.f32.mxu1 %vm14723_vm0, %v17824_v6 }
 0x301   :  { %v498_v38 = vpop.f32.mrb[6].mxu1  ;;  %v670_v39 = vpop.f32.mrb[6].mxu0 }
 0x302   :  { %v12142_v40 = vpop.f32.mrb[7].mxu1  ;;  %v12176_v41 = vpop.f32.mrb[7].mxu0  ;;  %v671_v45 = vadd.f32 %v10879_v42, %v670_v39  ;;  %v499_v13 = vadd.f32 %v10871_v10, %v498_v38 }
 0x305   :  { %v503_v43 = vpop.f32.mrb[8].mxu1  ;;  %v675_v44 = vpop.f32.mrb[8].mxu0 }
 0x306   :  { %v676_v46 = vadd.f32 %v10879_v42, %v675_v44  ;;  %v12145_v47 = vpop.f32.mrb[9].mxu1  ;;  %v12179_v48 = vpop.f32.mrb[9].mxu0  ;;  %v504_v20 = vadd.f32 %v10871_v10, %v503_v43 }
 0x308   :  { %v13883_v49 = vpack.c.bf16 %v676_v46, %v671_v45 }
 0x309   :  { %v508_v50 = vpop.f32.mrb[10].mxu1  ;;  %v680_v52 = vpop.f32.mrb[10].mxu0 }
 0x30a   :  { %v12148_v53 = vpop.f32.mrb[11].mxu1  ;;  %v12182_v55 = vpop.f32.mrb[11].mxu0  ;;  %13884 = vmatpush3.bf16.msra.mxu0 %v13883_v49  ;;  %v681_v56 = vadd.f32 %v10879_v42, %v680_v52  ;;  %v509_v21 = vadd.f32 %v10871_v10, %v508_v50 }
 0x30b   :  { %12202 = vmatprep.subr.mxu0 %v17824_v6 }
 0x30d   :  { %v584_v57 = vpop.f32.mrb[12].mxu1 }
 0x30e   :  { %v12159_v59 = vpop.f32.mrb[13].mxu1  ;;  %12203 = vmatpush3.msk.msra.mxu0 %vm830_vm4, %v681_v56  ;;  %v585_v63 = vadd.f32 %v10875_v60, %v584_v57 }
 0x30f   :  { %13891 = vmatprep.subr.bf16.mxu0 %v17822_v3  ;;  %v10901_v59 = vld [vmem:[%s17804_s10 + $0x1] ss:$0 sm:$0xff] }
 0x311   :  { %v589_v62 = vpop.f32.mrb[14].mxu1 }
 0x312   :  { %v590_v0 = vadd.f32 %v10875_v60, %v589_v62  ;;  %v12162_v1 = vpop.f32.mrb[15].mxu1 }
 0x314   :  { %v13879_v4 = vpack.c.bf16 %v590_v0, %v585_v63 }
 0x315   :  { %v594_v5 = vpop.f32.mrb[16].mxu1 }
 0x316   :  { %v12165_v7 = vpop.f32.mrb[17].mxu1  ;;  %13881 = vmatpush3.bf16.xpose.msk.msra.mxu1 %vm15072_vm6, %v13879_v4  ;;  %v595_v11 = vadd.f32 %v10875_v60, %v594_v5 }
 0x317   :  { %12187 = vmatprep.subr.mxu1 %v17824_v6 }
 0x31e   :  { %12188 = vmatpush3.xpose.msk.msra.mxu1 %vm684_vm5, %v595_v11 }
 0x31f   :  { %13885 = vmatprep.subr.bf16.mxu1 %v17822_v3 }
 0x321   :  { %12190 = vmatmul.mubr.msk.f32.vlgmr.msra.gmra.mrb[18].mxu1 %vm684_vm5, %v499_v13 }
 0x322   :  { %12192 = vmatprep.mubr.msk.f32.mxu1 %vm14723_vm0, %v17824_v6  ;;  %13887 = vmatpush3.bf16.msra.mxu1 %v15089_v12 }
 0x323   :  { %13888 = vmatprep.subr.bf16.mxu1 %v17822_v3 }
 0x325   :  { %12193 = vmatmul.mubr.msk.f32.gmra.mrb[20].mxu1 %vm684_vm5, %v504_v20 }
 0x326   :  { %12195 = vmatprep.mubr.msk.f32.mxu1 %vm14723_vm0, %v17824_v6  ;;  %13890 = vmatpush3.bf16.msra.mxu1 %v15102_v16 }
 0x327   :  { %13897 = vmatprep.subr.bf16.mxu1 %v17822_v3 }
 0x329   :  { %12196 = vmatmul.mubr.msk.f32.gmra.mrb[22].mxu1 %vm684_vm5, %v509_v21 }
 0x32a   :  { %12221 = vmatprep.mubr.msk.f32.mxu1 %vm14723_vm0, %v17824_v6 }
 0x32d   :  { %12222 = vmatmul.mubr.msk.f32.vlgmr.msra.gmra.mrb[24].mxu1 %vm357_vm2, %v14999_v18 }
 0x32e   :  { %12224 = vmatprep.mubr.msk.f32.mxu1 %vm14723_vm0, %v17824_v6  ;;  %13899 = vmatpush3.bf16.msra.mxu1 %v15119_v25 }
 0x32f   :  { %13900 = vmatprep.subr.bf16.mxu1 %v17822_v3 }
 0x331   :  { %12225 = vmatmul.mubr.msk.f32.gmra.mrb[26].mxu1 %vm357_vm2, %v15015_v26 }
 0x332   :  { %12227 = vmatprep.mubr.msk.f32.mxu1 %vm14723_vm0, %v17824_v6  ;;  %13902 = vmatpush3.bf16.msra.mxu1 %v15132_v33 }
 0x333   :  { %13907 = vmatprep.subr.bf16.mxu1 %v17822_v3 }
 0x335   :  { %12228 = vmatmul.mubr.msk.f32.gmra.mrb[28].mxu1 %vm357_vm2, %v15031_v31 }
 0x336   :  { %12255 = vmatprep.mubr.msk.f32.mxu1 %vm14723_vm0, %v17824_v6 }
 0x339   :  { %12256 = vmatmul.mubr.msk.f32.vlgmr.msra.gmra.mrb[30].mxu1 %vm357_vm2, %v14999_v18 }
 0x33a   :  { %12258 = vmatprep.mubr.msk.f32.mxu1 %vm14723_vm0, %v17824_v6 }
 0x33d   :  { %12259 = vmatmul.mubr.msk.f32.gmra.mrb[32].mxu1 %vm357_vm2, %v15015_v26 }
 0x33e   :  { %12261 = vmatprep.mubr.msk.f32.mxu1 %vm14723_vm0, %v17824_v6 }
 0x341   :  { %12262 = vmatmul.mubr.msk.f32.gmra.mrb[34].mxu1 %vm357_vm2, %v15031_v31 }
 0x342   :  { %12285 = vmatprep.mubr.msk.f32.mxu1 %vm14723_vm0, %v17824_v6 }
 0x3f4   :  { %v769_v35 = vpop.f32.mrb[18].mxu1 }
 0x3f5   :  { %v12191_v37 = vpop.f32.mrb[19].mxu1  ;;  %v783_v38 = vmul.f32 0.35355338, %v769_v35 }
 0x3f7   :  { %v787_v39 = vsel %vm786_vm7, %v783_v38, -inf }
 0x3f8   :  { %788 = vmax.xlane.f32.xlu0 %v787_v39  ;;  %v774_v40 = vpop.f32.mrb[20].mxu1 }
 0x3f9   :  { %v12194_v41 = vpop.f32.mrb[21].mxu1  ;;  %v784_v42 = vmul.f32 0.35355338, %v774_v40 }
 0x3fa   :  { %v290_v41 = vld [vmem:[%s17801_s7 + $0x20] sm:$0xff] }
 0x3fb   :  { %v790_v43 = vsel %vm786_vm7, %v784_v42, -inf }
 0x3fc   :  { %791 = vmax.xlane.f32.xlu1 %v790_v43  ;;  %v779_v44 = vpop.f32.mrb[22].mxu1 }
 0x3fd   :  { %v12197_v45 = vpop.f32.mrb[23].mxu1  ;;  %v785_v46 = vmul.f32 0.35355338, %v779_v44 }
 0x3ff   :  { %v794_v47 = vsel %vm793_vm8, %v785_v46, -inf }
 0x400   :  { %795 = vmax.xlane.f32.xlu0 %v794_v47  ;;  %v15160_v48 = vpop.f32.mrb[24].mxu1  ;;  %v293_v47 = vld [vmem:[%s17801_s7 + $0x38] sm:$0xff] }
 0x401   :  { %v12223_v49 = vpop.f32.mrb[25].mxu1 }
 0x404   :  { %v15162_v50 = vpop.f32.mrb[26].mxu1 }
 0x405   :  { %v12226_v52 = vpop.f32.mrb[27].mxu1 }
 0x408   :  { %v15164_v53 = vpop.f32.mrb[28].mxu1 }
 0x409   :  { %v12229_v55 = vpop.f32.mrb[29].mxu1 }
 0x40c   :  { %v1158_v56 = vpop.f32.mrb[30].mxu1 }
 0x40d   :  { %v12257_v57 = vpop.f32.mrb[31].mxu1  ;;  %v1159_v62 = vadd.f32 %v10901_v59, %v1158_v56 }
 0x410   :  { %v1163_v60 = vpop.f32.mrb[32].mxu1 }
 0x411   :  { %v1164_v63 = vadd.f32 %v10901_v59, %v1163_v60  ;;  %v12260_v0 = vpop.f32.mrb[33].mxu1 }
 0x413   :  { %v13908_v1 = vpack.c.bf16 %v1164_v63, %v1159_v62 }
 0x414   :  { %v1168_v4 = vpop.f32.mrb[34].mxu1 }
 0x415   :  { %v12263_v5 = vpop.f32.mrb[35].mxu1  ;;  %13909 = vmatpush3.bf16.msra.mxu1 %v13908_v1  ;;  %v1169_v7 = vadd.f32 %v10901_v59, %v1168_v4 }
 0x416   :  { %12283 = vmatprep.subr.mxu1 %v17824_v6 }
 0x419   :  { %12284 = vmatpush3.msk.msra.mxu1 %vm830_vm4, %v1169_v7  ;;  %v10897_v7 = vld [vmem:[%s17802_s8 + $0x1] ss:$0 sm:$0xff] }
 0x41a   :  { %12305 = vmatprep.subr.mxu1 %v17824_v6 }
 0x485   :  { %v789_v8 = vpop.xlane.xlu0 %788 }
 0x486   :  { %v797_v9 = vsub.f32 %v783_v38, %v789_v8 }
 0x488   :  { %v800_v10 = vmul.f32 1.442695, %v797_v9 }
 0x489   :  { %v792_v11 = vpop.xlane.xlu1 %791 }
 0x48a   :  { %14390 = vpow2.f32 %v800_v10  ;;  %v798_v13 = vsub.f32 %v784_v42, %v792_v11  ;;  %v291_v42 = vld [vmem:[%s17801_s7 + $0x28] sm:$0xff] }
 0x48b   :  { %v15181_v44 = vpack.c.bf16 %v291_v42, %v290_v41 }
 0x48c   :  { %v802_v14 = vmul.f32 1.442695, %v798_v13 }
 0x48d   :  { %v796_v15 = vpop.xlane.xlu0 %795 }
 0x48e   :  { %14392 = vpow2.f32 %v802_v14  ;;  %v799_v20 = vsub.f32 %v785_v46, %v796_v15  ;;  %v292_v46 = vld [vmem:[%s17801_s7 + $0x30] sm:$0xff] }
 0x48f   :  { %v15193_v52 = vpack.c.bf16 %v293_v47, %v292_v46 }
 0x490   :  { %v804_v21 = vmul.f32 1.442695, %v799_v20  ;;  %v10893_v20 = vld [vmem:[%s17800_s6 + $0x1] ss:$0 sm:$0xff] }
 0x492   :  { %14394 = vpow2.f32 %v804_v21 }
 0x494   :  { %v14391_v22 = vpop.eup %14390 }
 0x495   :  { %v806_v23 = vsel %vm786_vm7, %v14391_v22, 0.0 }
 0x496   :  { %807 = vadd.xlane.f32.xlu1 %v806_v23  ;;  %v992_v23 = vadd.f32 %v10893_v20, %v15162_v50 }
 0x498   :  { %v14393_v27 = vpop.eup %14392 }
 0x499   :  { %v809_v30 = vsel %vm786_vm7, %v14393_v27, 0.0 }
 0x49a   :  { %810 = vadd.xlane.f32.xlu0 %v809_v30 }
 0x49c   :  { %v14395_v35 = vpop.eup %14394 }
 0x49d   :  { %v812_v37 = vsel %vm793_vm8, %v14395_v35, 0.0 }
 0x49e   :  { %813 = vadd.xlane.f32.xlu1 %v812_v37 }
 0x523   :  { %v808_v38 = vpop.xlane.xlu1 %807 }
 0x524   :  { %14396 = vrcp.f32 %v808_v38 }
 0x527   :  { %v811_v39 = vpop.xlane.xlu0 %810 }
 0x528   :  { %14398 = vrcp.f32 %v811_v39 }
 0x52b   :  { %v814_v40 = vpop.xlane.xlu1 %813 }
 0x52c   :  { %14400 = vrcp.f32 %v814_v40 }
 0x52e   :  { %v14397_v43 = vpop.eup %14396 }
 0x52f   :  { %v818_v45 = vmul.f32 %v14397_v43, %v14391_v22  ;;  %v987_v22 = vadd.f32 %v10893_v20, %v15160_v48 }
 0x531   :  { %12205 = vmatmul.mubr.msk.f32.vlgmr.msra.gmra.mrb[12].mxu0 %vm786_vm7, %v818_v45 }
 0x532   :  { %v14399_v49 = vpop.eup %14398  ;;  %12207 = vmatprep.mubr.msk.f32.mxu0 %vm14723_vm0, %v17824_v6  ;;  %13893 = vmatpush3.bf16.msra.mxu0 %v15181_v44 }
 0x533   :  { %v819_v55 = vmul.f32 %v14399_v49, %v14393_v27  ;;  %13894 = vmatprep.subr.bf16.mxu0 %v17822_v3  ;;  %v997_v27 = vadd.f32 %v10893_v20, %v15164_v53 }
 0x535   :  { %12208 = vmatmul.mubr.msk.f32.gmra.mrb[14].mxu0 %vm786_vm7, %v819_v55 }
 0x536   :  { %v14401_v56 = vpop.eup %14400  ;;  %12210 = vmatprep.mubr.msk.f32.mxu0 %vm14723_vm0, %v17824_v6  ;;  %13896 = vmatpush3.bf16.msra.mxu0 %v15193_v52 }
 0x537   :  { %v820_v57 = vmul.f32 %v14401_v56, %v14395_v35  ;;  %13903 = vmatprep.subr.bf16.mxu0 %v17822_v3 }
 0x539   :  { %12211 = vmatmul.mubr.msk.f32.gmra.mrb[16].mxu0 %vm786_vm7, %v820_v57 }
 0x53a   :  { %12238 = vmatprep.mubr.msk.f32.mxu0 %vm14723_vm0, %v17824_v6 }
 0x53d   :  { %12239 = vmatmul.mubr.msk.f32.vlgmr.msra.gmra.mrb[18].mxu0 %vm357_vm2, %v14999_v18 }
 0x53e   :  { %12241 = vmatprep.mubr.msk.f32.mxu0 %vm14723_vm0, %v17824_v6 }
 0x541   :  { %12242 = vmatmul.mubr.msk.f32.gmra.mrb[20].mxu0 %vm357_vm2, %v15015_v26 }
 0x542   :  { %12244 = vmatprep.mubr.msk.f32.mxu0 %vm14723_vm0, %v17824_v6 }
 0x545   :  { %12245 = vmatmul.mubr.msk.f32.gmra.mrb[22].mxu0 %vm357_vm2, %v15031_v31 }
 0x546   :  { %12270 = vmatprep.mubr.msk.f32.mxu0 %vm14723_vm0, %v17824_v6 }
 0x604   :  { %v15216_v59 = vpop.f32.mrb[12].mxu0 }
 0x605   :  { %v12206_v60 = vpop.f32.mrb[13].mxu0 }
 0x608   :  { %v15218_v62 = vpop.f32.mrb[14].mxu0 }
 0x609   :  { %v12209_v63 = vpop.f32.mrb[15].mxu0 }
 0x60c   :  { %v15220_v0 = vpop.f32.mrb[16].mxu0 }
 0x60d   :  { %v12212_v1 = vpop.f32.mrb[17].mxu0 }
 0x610   :  { %v1072_v4 = vpop.f32.mrb[18].mxu0 }
 0x611   :  { %v12240_v5 = vpop.f32.mrb[19].mxu0  ;;  %v1073_v9 = vadd.f32 %v10897_v7, %v1072_v4 }
 0x614   :  { %v1077_v8 = vpop.f32.mrb[20].mxu0 }
 0x615   :  { %v1078_v10 = vadd.f32 %v10897_v7, %v1077_v8  ;;  %v12243_v11 = vpop.f32.mrb[21].mxu0 }
 0x617   :  { %v13904_v13 = vpack.c.bf16 %v1078_v10, %v1073_v9  ;;  %v331_v10 = vld [vmem:[%s17805_s11 + $0x8] sm:$0xff] }
 0x618   :  { %v1082_v14 = vpop.f32.mrb[22].mxu0 }
 0x619   :  { %v12246_v15 = vpop.f32.mrb[23].mxu0  ;;  %13906 = vmatpush3.bf16.xpose.msk.msra.mxu0 %vm15072_vm6, %v13904_v13  ;;  %v1083_v21 = vadd.f32 %v10897_v7, %v1082_v14 }
 0x61a   :  { %12268 = vmatprep.subr.mxu0 %v17824_v6 }
 0x621   :  { %12269 = vmatpush3.xpose.msk.msra.mxu0 %vm684_vm5, %v1083_v21  ;;  %v330_v21 = vld [vmem:[%s17805_s11] sm:$0xff] }
 0x622   :  { %12294 = vmatprep.subr.mxu0 %v17824_v6 }
 0x624   :  { %12271 = vmatmul.mubr.msk.f32.vlgmr.msra.gmra.mrb[24].mxu0 %vm684_vm5, %v987_v22 }
 0x625   :  { %12273 = vmatprep.mubr.msk.f32.mxu0 %vm14723_vm0, %v17824_v6  ;;  %12295 = vmatpush3.msra.mxu0 %v331_v10 }
 0x626   :  { %13910 = vmatprep.subr.bf16.mxu0 %v17822_v3 }
 0x628   :  { %12274 = vmatmul.mubr.msk.f32.gmra.mrb[26].mxu0 %vm684_vm5, %v992_v23 }
 0x629   :  { %12276 = vmatprep.mubr.msk.f32.mxu0 %vm14723_vm0, %v17824_v6 }
 0x62c   :  { %12277 = vmatmul.mubr.msk.f32.gmra.mrb[28].mxu0 %vm684_vm5, %v997_v27 }
 0x62d   :  { %12296 = vmatprep.mubr.msk.f32.mxu0 %vm14723_vm0, %v17824_v6 }
 0x6f7   :  { %v1256_v48 = vpop.f32.mrb[24].mxu0 }
 0x6f8   :  { %v12272_v30 = vpop.f32.mrb[25].mxu0  ;;  %v1270_v35 = vmul.f32 0.35355338, %v1256_v48 }
 0x6f9   :  { %v294_v30 = vld [vmem:[%s17801_s7 + $0x40] sm:$0xff] }
 0x6fa   :  { %v1273_v37 = vsel %vm786_vm7, %v1270_v35, -inf }
 0x6fb   :  { %1274 = vmax.xlane.f32.xlu0 %v1273_v37  ;;  %v1261_v38 = vpop.f32.mrb[26].mxu0 }
 0x6fc   :  { %v12275_v50 = vpop.f32.mrb[27].mxu0  ;;  %v1271_v39 = vmul.f32 0.35355338, %v1261_v38  ;;  %v296_v38 = vld [vmem:[%s17801_s7 + $0x50] sm:$0xff] }
 0x6fd   :  { %v297_v50 = vld [vmem:[%s17801_s7 + $0x58] sm:$0xff] }
 0x6fe   :  { %v1276_v40 = vsel %vm786_vm7, %v1271_v39, -inf }
 0x6ff   :  { %1277 = vmax.xlane.f32.xlu1 %v1276_v40  ;;  %v1266_v41 = vpop.f32.mrb[28].mxu0  ;;  %v280_v40 = vld [vmem:[%s17835_s4 + $0x50] sm:$0xff] }
 0x700   :  { %v12278_v42 = vpop.f32.mrb[29].mxu0  ;;  %v1272_v53 = vmul.f32 0.35355338, %v1266_v41  ;;  %v281_v41 = vld [vmem:[%s17835_s4 + $0x58] sm:$0xff] }
 0x702   :  { %v1279_v43 = vsel %vm793_vm8, %v1272_v53, -inf }
 0x703   :  { %1280 = vmax.xlane.f32.xlu0 %v1279_v43  ;;  %v15330_v43 = vpack.c.bf16 %v281_v41, %v280_v40 }
 0x788   :  { %v1275_v45 = vpop.xlane.xlu0 %1274 }
 0x789   :  { %v1282_v46 = vsub.f32 %v1270_v35, %v1275_v45  ;;  %v295_v35 = vld [vmem:[%s17801_s7 + $0x48] sm:$0xff] }
 0x78a   :  { %v15274_v37 = vpack.c.bf16 %v295_v35, %v294_v30 }
 0x78b   :  { %v1285_v47 = vmul.f32 1.442695, %v1282_v46 }
 0x78c   :  { %v1278_v49 = vpop.xlane.xlu1 %1277 }
 0x78d   :  { %14402 = vpow2.f32 %v1285_v47  ;;  %v1283_v55 = vsub.f32 %v1271_v39, %v1278_v49  ;;  %v15287_v39 = vpack.c.bf16 %v297_v50, %v296_v38  ;;  %v310_v47 = vld [vmem:[%s17803_s9 + $0x40] sm:$0xff]  ;;  %v311_v49 = vld [vmem:[%s17803_s9 + $0x48] sm:$0xff] }
 0x78f   :  { %v1287_v56 = vmul.f32 1.442695, %v1283_v55 }
 0x790   :  { %v1281_v57 = vpop.xlane.xlu0 %1280 }
 0x791   :  { %14404 = vpow2.f32 %v1287_v56  ;;  %v1284_v60 = vsub.f32 %v1272_v53, %v1281_v57  ;;  %v15347_v57 = vpack.c.bf16 %v311_v49, %v310_v47 }
 0x793   :  { %v1289_v63 = vmul.f32 1.442695, %v1284_v60  ;;  %v312_v60 = vld [vmem:[%s17803_s9 + $0x50] sm:$0xff] }
 0x795   :  { %14406 = vpow2.f32 %v1289_v63  ;;  %v313_v63 = vld [vmem:[%s17803_s9 + $0x58] sm:$0xff] }
 0x797   :  { %v14403_v1 = vpop.eup %14402 }
 0x798   :  { %v1291_v4 = vsel %vm786_vm7, %v14403_v1, 0.0 }
 0x799   :  { %1292 = vadd.xlane.f32.xlu1 %v1291_v4 }
 0x79b   :  { %v14405_v5 = vpop.eup %14404 }
 0x79c   :  { %v1294_v7 = vsel %vm786_vm7, %v14405_v5, 0.0 }
 0x79d   :  { %1295 = vadd.xlane.f32.xlu0 %v1294_v7 }
 0x79f   :  { %v14407_v8 = vpop.eup %14406 }
 0x7a0   :  { %v1297_v9 = vsel %vm793_vm8, %v14407_v8, 0.0 }
 0x7a1   :  { %1298 = vadd.xlane.f32.xlu1 %v1297_v9 }
 0x826   :  { %v1293_v11 = vpop.xlane.xlu1 %1292 }
 0x827   :  { %14408 = vrcp.f32 %v1293_v11 }
 0x82a   :  { %v1296_v13 = vpop.xlane.xlu0 %1295 }
 0x82b   :  { %14410 = vrcp.f32 %v1296_v13 }
 0x82e   :  { %v1299_v14 = vpop.xlane.xlu1 %1298 }
 0x82f   :  { %14412 = vrcp.f32 %v1299_v14  ;;  %v10925_v14 = vld [vmem:[%s17802_s8 + $0x2] ss:$0 sm:$0xff] }
 0x831   :  { %v14409_v15 = vpop.eup %14408 }
 0x832   :  { %v1303_v20 = vmul.f32 %v14409_v15, %v14403_v1 }
 0x834   :  { %12286 = vmatmul.mubr.msk.f32.vlgmr.msra.gmra.mrb[36].mxu1 %vm786_vm7, %v1303_v20 }
 0x835   :  { %v14411_v22 = vpop.eup %14410  ;;  %12288 = vmatprep.mubr.msk.f32.mxu1 %vm14723_vm0, %v17824_v6  ;;  %12306 = vmatpush3.msra.mxu1 %v330_v21 }
 0x836   :  { %v1304_v23 = vmul.f32 %v14411_v22, %v14405_v5  ;;  %13916 = vmatprep.subr.bf16.mxu1 %v17822_v3  ;;  %v15360_v5 = vpack.c.bf16 %v313_v63, %v312_v60 }
 0x838   :  { %12289 = vmatmul.mubr.msk.f32.gmra.mrb[38].mxu1 %vm786_vm7, %v1304_v23 }
 0x839   :  { %v14413_v27 = vpop.eup %14412  ;;  %12291 = vmatprep.mubr.msk.f32.mxu1 %vm14723_vm0, %v17824_v6 }
 0x83a   :  { %v1305_v48 = vmul.f32 %v14413_v27, %v14407_v8 }
 0x83c   :  { %12292 = vmatmul.mubr.msk.f32.gmra.mrb[40].mxu1 %vm786_vm7, %v1305_v48 }
 0x83d   :  { %12307 = vmatprep.mubr.msk.f32.mxu1 %vm14723_vm0, %v17824_v6 }
 0x840   :  { %12308 = vmatmul.mubr.msk.f32.vlgmr.msra.gmra.mrb[42].mxu1 %vm684_vm5, %v15216_v59  ;;  %v278_v59 = vld [vmem:[%s17835_s4 + $0x40] sm:$0xff] }
 0x841   :  { %12310 = vmatprep.mubr.msk.f32.mxu1 %vm14723_vm0, %v17824_v6  ;;  %13918 = vmatpush3.bf16.msra.mxu1 %v15274_v37 }
 0x842   :  { %13919 = vmatprep.subr.bf16.mxu1 %v17822_v3 }
 0x844   :  { %12311 = vmatmul.mubr.msk.f32.gmra.mrb[44].mxu1 %vm684_vm5, %v15218_v62  ;;  %v279_v62 = vld [vmem:[%s17835_s4 + $0x48] sm:$0xff] }
 0x845   :  { %12313 = vmatprep.mubr.msk.f32.mxu1 %vm14723_vm0, %v17824_v6  ;;  %13921 = vmatpush3.bf16.msra.mxu1 %v15287_v39 }
 0x846   :  { %13928 = vmatprep.subr.bf16.mxu1 %v17822_v3 }
 0x848   :  { %12314 = vmatmul.mubr.msk.f32.gmra.mrb[46].mxu1 %vm684_vm5, %v15220_v0  ;;  %v15318_v0 = vpack.c.bf16 %v279_v62, %v278_v59 }
 0x849   :  { %12341 = vmatprep.mubr.msk.f32.mxu1 %vm14723_vm0, %v17824_v6 }
 0x84c   :  { %12342 = vmatmul.mubr.msk.f32.vlgmr.msra.gmra.mrb[48].mxu1 %vm357_vm2, %v14999_v18 }
 0x84d   :  { %12344 = vmatprep.mubr.msk.f32.mxu1 %vm14723_vm0, %v17824_v6 }
 0x850   :  { %12345 = vmatmul.mubr.msk.f32.gmra.mrb[50].mxu1 %vm357_vm2, %v15015_v26 }
 0x851   :  { %12347 = vmatprep.mubr.msk.f32.mxu1 %vm14723_vm0, %v17824_v6 }
 0x854   :  { %12348 = vmatmul.mubr.msk.f32.gmra.mrb[52].mxu1 %vm357_vm2, %v15031_v31 }
 0x855   :  { %12373 = vmatprep.mubr.msk.f32.mxu1 %vm14723_vm0, %v17824_v6 }
 0x907   :  { %v1384_v42 = vpop.f32.mrb[36].mxu1 }
 0x908   :  { %v12287_v53 = vpop.f32.mrb[37].mxu1  ;;  %12297 = vmatmul.mubr.msk.f32.vlgmr.msra.gmra.mrb[30].mxu0 %vm684_vm5, %v1384_v42 }
 0x909   :  { %12299 = vmatprep.mubr.msk.f32.mxu0 %vm14723_vm0, %v17824_v6  ;;  %13912 = vmatpush3.bf16.msra.mxu0 %v15318_v0 }
 0x90a   :  { %13913 = vmatprep.subr.bf16.mxu0 %v17822_v3 }
 0x90b   :  { %v1389_v45 = vpop.f32.mrb[38].mxu1 }
 0x90c   :  { %v12290_v46 = vpop.f32.mrb[39].mxu1  ;;  %12300 = vmatmul.mubr.msk.f32.gmra.mrb[32].mxu0 %vm684_vm5, %v1389_v45  ;;  %v10921_v45 = vld [vmem:[%s17800_s6 + $0x2] ss:$0 sm:$0xff] }
 0x90d   :  { %12302 = vmatprep.mubr.msk.f32.mxu0 %vm14723_vm0, %v17824_v6  ;;  %13915 = vmatpush3.bf16.msra.mxu0 %v15330_v43 }
 0x90e   :  { %13922 = vmatprep.subr.bf16.mxu0 %v17822_v3 }
 0x90f   :  { %v1394_v55 = vpop.f32.mrb[40].mxu1 }
 0x910   :  { %v12293_v56 = vpop.f32.mrb[41].mxu1  ;;  %12303 = vmatmul.mubr.msk.f32.gmra.mrb[34].mxu0 %vm684_vm5, %v1394_v55 }
 0x911   :  { %12324 = vmatprep.mubr.msk.f32.mxu0 %vm14723_vm0, %v17824_v6 }
 0x913   :  { %v1562_v1 = vpop.f32.mrb[42].mxu1 }
 0x914   :  { %v12309_v4 = vpop.f32.mrb[43].mxu1  ;;  %12325 = vmatmul.mubr.msk.f32.vlgmr.msra.gmra.mrb[36].mxu0 %vm357_vm2, %v14999_v18 }
 0x915   :  { %12327 = vmatprep.mubr.msk.f32.mxu0 %vm14723_vm0, %v17824_v6  ;;  %13924 = vmatpush3.bf16.msra.mxu0 %v15347_v57 }
 0x916   :  { %13925 = vmatprep.subr.bf16.mxu0 %v17822_v3 }
 0x917   :  { %v1567_v7 = vpop.f32.mrb[44].mxu1 }
 0x918   :  { %v12312_v8 = vpop.f32.mrb[45].mxu1  ;;  %12328 = vmatmul.mubr.msk.f32.gmra.mrb[38].mxu0 %vm357_vm2, %v15015_v26 }
 0x919   :  { %12330 = vmatprep.mubr.msk.f32.mxu0 %vm14723_vm0, %v17824_v6  ;;  %13927 = vmatpush3.bf16.msra.mxu0 %v15360_v5 }
 0x91a   :  { %13932 = vmatprep.subr.bf16.mxu0 %v17822_v3 }
 0x91b   :  { %v1572_v9 = vpop.f32.mrb[46].mxu1 }
 0x91c   :  { %v12315_v10 = vpop.f32.mrb[47].mxu1  ;;  %12331 = vmatmul.mubr.msk.f32.gmra.mrb[40].mxu0 %vm357_vm2, %v15031_v31 }
 0x91d   :  { %12358 = vmatprep.mubr.msk.f32.mxu0 %vm14723_vm0, %v17824_v6 }
 0x91f   :  { %v1734_v11 = vpop.f32.mrb[48].mxu1 }
 0x920   :  { %v12343_v13 = vpop.f32.mrb[49].mxu1  ;;  %12359 = vmatmul.mubr.msk.f32.vlgmr.msra.gmra.mrb[42].mxu0 %vm357_vm2, %v14999_v18  ;;  %v1735_v20 = vadd.f32 %v10925_v14, %v1734_v11 }
 0x921   :  { %12361 = vmatprep.mubr.msk.f32.mxu0 %vm14723_vm0, %v17824_v6 }
 0x923   :  { %v1739_v15 = vpop.f32.mrb[50].mxu1 }
 0x924   :  { %v1740_v21 = vadd.f32 %v10925_v14, %v1739_v15  ;;  %v12346_v22 = vpop.f32.mrb[51].mxu1  ;;  %12362 = vmatmul.mubr.msk.f32.gmra.mrb[44].mxu0 %vm357_vm2, %v15015_v26 }
 0x925   :  { %12364 = vmatprep.mubr.msk.f32.mxu0 %vm14723_vm0, %v17824_v6 }
 0x926   :  { %v13929_v23 = vpack.c.bf16 %v1740_v21, %v1735_v20 }
 0x927   :  { %v1744_v27 = vpop.f32.mrb[52].mxu1 }
 0x928   :  { %v12349_v48 = vpop.f32.mrb[53].mxu1  ;;  %12365 = vmatmul.mubr.msk.f32.gmra.mrb[46].mxu0 %vm357_vm2, %v15031_v31  ;;  %13931 = vmatpush3.bf16.xpose.msk.msra.mxu1 %vm15072_vm6, %v13929_v23  ;;  %v1745_v30 = vadd.f32 %v10925_v14, %v1744_v27 }
 0x929   :  { %12371 = vmatprep.subr.mxu1 %v17824_v6  ;;  %12388 = vmatprep.mubr.msk.f32.mxu0 %vm14723_vm0, %v17824_v6 }
 0x930   :  { %12372 = vmatpush3.xpose.msk.msra.mxu1 %vm684_vm5, %v1745_v30 }
 0x931   :  { %12397 = vmatprep.subr.mxu1 %v17824_v6 }
 0x9db   :  { %v1473_v35 = vpop.f32.mrb[30].mxu0 }
 0x9dc   :  { %v15393_v38 = vadd.f32 %v1562_v1, %v1473_v35  ;;  %v12298_v50 = vpop.f32.mrb[31].mxu0 }
 0x9df   :  { %v1478_v59 = vpop.f32.mrb[32].mxu0 }
 0x9e0   :  { %v12301_v62 = vpop.f32.mrb[33].mxu0  ;;  %v15395_v40 = vadd.f32 %v1567_v7, %v1478_v59 }
 0x9e3   :  { %v1483_v41 = vpop.f32.mrb[34].mxu0 }
 0x9e4   :  { %v12304_v42 = vpop.f32.mrb[35].mxu0  ;;  %v15397_v53 = vadd.f32 %v1572_v9, %v1483_v41  ;;  %v10929_v9 = vld [vmem:[%s17804_s10 + $0x2] ss:$0 sm:$0xff] }
 0x9e7   :  { %v1648_v46 = vpop.f32.mrb[36].mxu0 }
 0x9e8   :  { %v1649_v47 = vadd.f32 %v10921_v45, %v1648_v46  ;;  %v12326_v49 = vpop.f32.mrb[37].mxu0 }
 0x9ea   :  { %12374 = vmatmul.mubr.msk.f32.vlgmr.msra.gmra.mrb[54].mxu1 %vm684_vm5, %v1649_v47 }
 0x9eb   :  { %v1653_v55 = vpop.f32.mrb[38].mxu0  ;;  %12376 = vmatprep.mubr.msk.f32.mxu1 %vm14723_vm0, %v17824_v6 }
 0x9ec   :  { %v1654_v56 = vadd.f32 %v10921_v45, %v1653_v55  ;;  %v12329_v60 = vpop.f32.mrb[39].mxu0 }
 0x9ee   :  { %12377 = vmatmul.mubr.msk.f32.gmra.mrb[56].mxu1 %vm684_vm5, %v1654_v56 }
 0x9ef   :  { %v1658_v63 = vpop.f32.mrb[40].mxu0  ;;  %12379 = vmatprep.mubr.msk.f32.mxu1 %vm14723_vm0, %v17824_v6 }
 0x9f0   :  { %v1659_v1 = vadd.f32 %v10921_v45, %v1658_v63  ;;  %v12332_v4 = vpop.f32.mrb[41].mxu0 }
 0x9f2   :  { %12380 = vmatmul.mubr.msk.f32.gmra.mrb[58].mxu1 %vm684_vm5, %v1659_v1 }
 0x9f3   :  { %v1820_v7 = vpop.f32.mrb[42].mxu0  ;;  %12399 = vmatprep.mubr.msk.f32.mxu1 %vm14723_vm0, %v17824_v6 }
 0x9f4   :  { %v12360_v8 = vpop.f32.mrb[43].mxu0  ;;  %v1821_v11 = vadd.f32 %v10929_v9, %v1820_v7 }
 0x9f7   :  { %v1825_v10 = vpop.f32.mrb[44].mxu0 }
 0x9f8   :  { %v1826_v13 = vadd.f32 %v10929_v9, %v1825_v10  ;;  %v12363_v14 = vpop.f32.mrb[45].mxu0 }
 0x9fa   :  { %v13933_v15 = vpack.c.bf16 %v1826_v13, %v1821_v11 }
 0x9fb   :  { %v1830_v20 = vpop.f32.mrb[46].mxu0 }
 0x9fc   :  { %v12366_v21 = vpop.f32.mrb[47].mxu0  ;;  %13934 = vmatpush3.bf16.msra.mxu0 %v13933_v15  ;;  %v1831_v22 = vadd.f32 %v10929_v9, %v1830_v20  ;;  %v332_v15 = vld [vmem:[%s17805_s11 + $0x10] sm:$0xff] }
 0x9fd   :  { %12386 = vmatprep.subr.mxu0 %v17824_v6  ;;  %12398 = vmatpush3.msra.mxu1 %v332_v15 }
 0x9fe   :  { %13941 = vmatprep.subr.bf16.mxu1 %v17822_v3 }
 0xa00   :  { %12387 = vmatpush3.msk.msra.mxu0 %vm830_vm4, %v1831_v22 }
 0xa01   :  { %13935 = vmatprep.subr.bf16.mxu0 %v17822_v3 }
 0xabd   :  { %v1918_v23 = vpop.f32.mrb[54].mxu1 }
 0xabe   :  { %v12375_v27 = vpop.f32.mrb[55].mxu1  ;;  %v1932_v48 = vmul.f32 0.35355338, %v1918_v23  ;;  %v282_v23 = vld [vmem:[%s17835_s4 + $0x60] sm:$0xff] }
 0xabf   :  { %v283_v27 = vld [vmem:[%s17835_s4 + $0x68] sm:$0xff] }
 0xac0   :  { %v1935_v30 = vsel %vm786_vm7, %v1932_v48, -inf }
 0xac1   :  { %1936 = vmax.xlane.f32.xlu0 %v1935_v30  ;;  %v1923_v35 = vpop.f32.mrb[56].mxu1  ;;  %v15433_v30 = vpack.c.bf16 %v283_v27, %v282_v23 }
 0xac2   :  { %v12378_v50 = vpop.f32.mrb[57].mxu1  ;;  %v1933_v59 = vmul.f32 0.35355338, %v1923_v35 }
 0xac3   :  { %v284_v50 = vld [vmem:[%s17835_s4 + $0x70] sm:$0xff] }
 0xac4   :  { %v1938_v62 = vsel %vm786_vm7, %v1933_v59, -inf }
 0xac5   :  { %1939 = vmax.xlane.f32.xlu1 %v1938_v62  ;;  %v1928_v41 = vpop.f32.mrb[58].mxu1 }
 0xac6   :  { %v12381_v42 = vpop.f32.mrb[59].mxu1  ;;  %v1934_v45 = vmul.f32 0.35355338, %v1928_v41 }
 0xac8   :  { %v1941_v46 = vsel %vm793_vm8, %v1934_v45, -inf }
 0xac9   :  { %1942 = vmax.xlane.f32.xlu0 %v1941_v46 }
 0xb4e   :  { %v1937_v47 = vpop.xlane.xlu0 %1936 }
 0xb4f   :  { %v1944_v49 = vsub.f32 %v1932_v48, %v1937_v47  ;;  %v314_v47 = vld [vmem:[%s17803_s9 + $0x60] sm:$0xff] }
 0xb51   :  { %v1947_v55 = vmul.f32 1.442695, %v1944_v49  ;;  %v315_v49 = vld [vmem:[%s17803_s9 + $0x68] sm:$0xff] }
 0xb52   :  { %v1940_v56 = vpop.xlane.xlu1 %1939 }
 0xb53   :  { %14414 = vpow2.f32 %v1947_v55  ;;  %v1945_v60 = vsub.f32 %v1933_v59, %v1940_v56  ;;  %v285_v59 = vld [vmem:[%s17835_s4 + $0x78] sm:$0xff]  ;;  %v15462_v55 = vpack.c.bf16 %v315_v49, %v314_v47  ;;  %v316_v56 = vld [vmem:[%s17803_s9 + $0x70] sm:$0xff] }
 0xb54   :  { %v15445_v41 = vpack.c.bf16 %v285_v59, %v284_v50 }
 0xb55   :  { %v1949_v63 = vmul.f32 1.442695, %v1945_v60  ;;  %v317_v60 = vld [vmem:[%s17803_s9 + $0x78] sm:$0xff] }
 0xb56   :  { %v1943_v1 = vpop.xlane.xlu0 %1942 }
 0xb57   :  { %14416 = vpow2.f32 %v1949_v63  ;;  %v1946_v4 = vsub.f32 %v1934_v45, %v1943_v1  ;;  %v15475_v63 = vpack.c.bf16 %v317_v60, %v316_v56  ;;  %v298_v1 = vld [vmem:[%s17801_s7 + $0x60] sm:$0xff] }
 0xb59   :  { %v1951_v7 = vmul.f32 1.442695, %v1946_v4  ;;  %v299_v4 = vld [vmem:[%s17801_s7 + $0x68] sm:$0xff] }
 0xb5b   :  { %14418 = vpow2.f32 %v1951_v7  ;;  %v15506_v7 = vpack.c.bf16 %v299_v4, %v298_v1 }
 0xb5d   :  { %v14415_v8 = vpop.eup %14414 }
 0xb5e   :  { %v1953_v9 = vsel %vm786_vm7, %v14415_v8, 0.0 }
 0xb5f   :  { %1954 = vadd.xlane.f32.xlu1 %v1953_v9  ;;  %v301_v9 = vld [vmem:[%s17801_s7 + $0x78] sm:$0xff] }
 0xb61   :  { %v14417_v10 = vpop.eup %14416 }
 0xb62   :  { %v1956_v11 = vsel %vm786_vm7, %v14417_v10, 0.0 }
 0xb63   :  { %1957 = vadd.xlane.f32.xlu0 %v1956_v11 }
 0xb65   :  { %v14419_v13 = vpop.eup %14418 }
 0xb66   :  { %v1959_v14 = vsel %vm793_vm8, %v14419_v13, 0.0 }
 0xb67   :  { %1960 = vadd.xlane.f32.xlu1 %v1959_v14 }
 0xbec   :  { %v1955_v20 = vpop.xlane.xlu1 %1954 }
 0xbed   :  { %14420 = vrcp.f32 %v1955_v20 }
 0xbf0   :  { %v1958_v21 = vpop.xlane.xlu0 %1957 }
 0xbf1   :  { %14422 = vrcp.f32 %v1958_v21 }
 0xbf4   :  { %v1961_v22 = vpop.xlane.xlu1 %1960 }
 0xbf5   :  { %14424 = vrcp.f32 %v1961_v22 }
 0xbf7   :  { %v14421_v48 = vpop.eup %14420 }
 0xbf8   :  { %v1965_v35 = vmul.f32 %v14421_v48, %v14415_v8  ;;  %v300_v8 = vld [vmem:[%s17801_s7 + $0x70] sm:$0xff] }
 0xbfa   :  { %12389 = vmatmul.mubr.msk.f32.vlgmr.msra.gmra.mrb[48].mxu0 %vm786_vm7, %v1965_v35 }
 0xbfb   :  { %v14423_v62 = vpop.eup %14422  ;;  %12391 = vmatprep.mubr.msk.f32.mxu0 %vm14723_vm0, %v17824_v6  ;;  %13937 = vmatpush3.bf16.msra.mxu0 %v15433_v30 }
 0xbfc   :  { %v1966_v42 = vmul.f32 %v14423_v62, %v14417_v10  ;;  %13938 = vmatprep.subr.bf16.mxu0 %v17822_v3  ;;  %v10954_v62 = vld [vmem:[%s17804_s10 + $0x3] ss:$0 sm:$0xff] }
 0xbfe   :  { %12392 = vmatmul.mubr.msk.f32.gmra.mrb[50].mxu0 %vm786_vm7, %v1966_v42 }
 0xbff   :  { %v14425_v45 = vpop.eup %14424  ;;  %12394 = vmatprep.mubr.msk.f32.mxu0 %vm14723_vm0, %v17824_v6  ;;  %13940 = vmatpush3.bf16.msra.mxu0 %v15445_v41 }
 0xc00   :  { %v1967_v46 = vmul.f32 %v14425_v45, %v14419_v13  ;;  %13947 = vmatprep.subr.bf16.mxu0 %v17822_v3  ;;  %v15518_v13 = vpack.c.bf16 %v301_v9, %v300_v8 }
 0xc02   :  { %12395 = vmatmul.mubr.msk.f32.gmra.mrb[52].mxu0 %vm786_vm7, %v1967_v46 }
 0xc03   :  { %12416 = vmatprep.mubr.msk.f32.mxu0 %vm14723_vm0, %v17824_v6 }
 0xc06   :  { %12417 = vmatmul.mubr.msk.f32.vlgmr.msra.gmra.mrb[54].mxu0 %vm357_vm2, %v14999_v18 }
 0xc07   :  { %12419 = vmatprep.mubr.msk.f32.mxu0 %vm14723_vm0, %v17824_v6  ;;  %13949 = vmatpush3.bf16.msra.mxu0 %v15462_v55 }
 0xc08   :  { %13950 = vmatprep.subr.bf16.mxu0 %v17822_v3 }
 0xc0a   :  { %12420 = vmatmul.mubr.msk.f32.gmra.mrb[56].mxu0 %vm357_vm2, %v15015_v26 }
 0xc0b   :  { %12422 = vmatprep.mubr.msk.f32.mxu0 %vm14723_vm0, %v17824_v6  ;;  %13952 = vmatpush3.bf16.msra.mxu0 %v15475_v63 }
 0xc0c   :  { %13957 = vmatprep.subr.bf16.mxu0 %v17822_v3 }
 0xc0e   :  { %12423 = vmatmul.mubr.msk.f32.gmra.mrb[58].mxu0 %vm357_vm2, %v15031_v31 }
 0xc0f   :  { %12450 = vmatprep.mubr.msk.f32.mxu0 %vm14723_vm0, %v17824_v6 }
 0xc12   :  { %12451 = vmatmul.mubr.msk.f32.vlgmr.msra.gmra.mrb[60].mxu0 %vm357_vm2, %v14999_v18 }
 0xc13   :  { %12453 = vmatprep.mubr.msk.f32.mxu0 %vm14723_vm0, %v17824_v6 }
 0xc16   :  { %12454 = vmatmul.mubr.msk.f32.gmra.mrb[62].mxu0 %vm357_vm2, %v15015_v26 }
 0xc17   :  { %12456 = vmatprep.mubr.msk.f32.mxu0 %vm14723_vm0, %v17824_v6 }
 0xc1a   :  { %12457 = vmatmul.mubr.msk.f32.gmra.mrb[64].mxu0 %vm357_vm2, %v15031_v31 }
 0xc1b   :  { %12480 = vmatprep.mubr.msk.f32.mxu0 %vm14723_vm0, %v17824_v6 }
 0xccd   :  { %v2046_v10 = vpop.f32.mrb[48].mxu0 }
 0xcce   :  { %v12390_v11 = vpop.f32.mrb[49].mxu0  ;;  %12400 = vmatmul.mubr.msk.f32.vlgmr.msra.gmra.mrb[60].mxu1 %vm684_vm5, %v2046_v10 }
 0xccf   :  { %12402 = vmatprep.mubr.msk.f32.mxu1 %vm14723_vm0, %v17824_v6  ;;  %13943 = vmatpush3.bf16.msra.mxu1 %v15506_v7 }
 0xcd0   :  { %13944 = vmatprep.subr.bf16.mxu1 %v17822_v3 }
 0xcd1   :  { %v2051_v14 = vpop.f32.mrb[50].mxu0 }
 0xcd2   :  { %v12393_v15 = vpop.f32.mrb[51].mxu0  ;;  %12403 = vmatmul.mubr.msk.f32.gmra.mrb[62].mxu1 %vm684_vm5, %v2051_v14 }
 0xcd3   :  { %12405 = vmatprep.mubr.msk.f32.mxu1 %vm14723_vm0, %v17824_v6  ;;  %13946 = vmatpush3.bf16.msra.mxu1 %v15518_v13 }
 0xcd4   :  { %13953 = vmatprep.subr.bf16.mxu1 %v17822_v3 }
 0xcd5   :  { %v2056_v20 = vpop.f32.mrb[52].mxu0 }
 0xcd6   :  { %v12396_v21 = vpop.f32.mrb[53].mxu0  ;;  %12406 = vmatmul.mubr.msk.f32.gmra.mrb[64].mxu1 %vm684_vm5, %v2056_v20 }
 0xcd7   :  { %12433 = vmatprep.mubr.msk.f32.mxu1 %vm14723_vm0, %v17824_v6 }
 0xcd9   :  { %v2224_v22 = vpop.f32.mrb[54].mxu0 }
 0xcda   :  { %v12418_v23 = vpop.f32.mrb[55].mxu0  ;;  %12434 = vmatmul.mubr.msk.f32.vlgmr.msra.gmra.mrb[66].mxu1 %vm357_vm2, %v14999_v18 }
 0xcdb   :  { %12436 = vmatprep.mubr.msk.f32.mxu1 %vm14723_vm0, %v17824_v6  ;;  %v10950_v23 = vld [vmem:[%s17802_s8 + $0x3] ss:$0 sm:$0xff] }
 0xcdd   :  { %v2229_v27 = vpop.f32.mrb[56].mxu0 }
 0xcde   :  { %v12421_v48 = vpop.f32.mrb[57].mxu0  ;;  %12437 = vmatmul.mubr.msk.f32.gmra.mrb[68].mxu1 %vm357_vm2, %v15015_v26 }
 0xcdf   :  { %12439 = vmatprep.mubr.msk.f32.mxu1 %vm14723_vm0, %v17824_v6 }
 0xce1   :  { %v2234_v35 = vpop.f32.mrb[58].mxu0 }
 0xce2   :  { %v12424_v50 = vpop.f32.mrb[59].mxu0  ;;  %12440 = vmatmul.mubr.msk.f32.gmra.mrb[70].mxu1 %vm357_vm2, %v15031_v31 }
 0xce3   :  { %12465 = vmatprep.mubr.msk.f32.mxu1 %vm14723_vm0, %v17824_v6 }
 0xce5   :  { %v2396_v18 = vpop.f32.mrb[60].mxu0 }
 0xce6   :  { %v12452_v59 = vpop.f32.mrb[61].mxu0  ;;  %v2397_v45 = vadd.f32 %v10954_v62, %v2396_v18 }
 0xce9   :  { %v2401_v42 = vpop.f32.mrb[62].mxu0 }
 0xcea   :  { %v2402_v26 = vadd.f32 %v10954_v62, %v2401_v42  ;;  %v12455_v46 = vpop.f32.mrb[63].mxu0 }
 0xcec   :  { %v13958_v47 = vpack.c.bf16 %v2402_v26, %v2397_v45 }
 0xced   :  { %v2406_v49 = vpop.f32.mrb[64].mxu0 }
 0xcee   :  { %v12458_v56 = vpop.f32.mrb[65].mxu0  ;;  %13959 = vmatpush3.bf16.msra.mxu0 %v13958_v47  ;;  %v2407_v31 = vadd.f32 %v10954_v62, %v2406_v49 }
 0xcef   :  { %12478 = vmatprep.subr.mxu0 %v17824_v6 }
 0xcf2   :  { %12479 = vmatpush3.msk.msra.mxu0 %vm830_vm4, %v2407_v31 }
 0xcf3   :  { %13960 = vmatprep.subr.bf16.mxu0 %v17822_v3 }
 0xda1   :  { %v2135_v60 = vpop.f32.mrb[60].mxu1 }
 0xda2   :  { %v12401_v1 = vpop.f32.mrb[61].mxu1  ;;  %v15548_v4 = vadd.f32 %v2135_v60, %v15393_v38 }
 0xda5   :  { %v2140_v8 = vpop.f32.mrb[62].mxu1 }
 0xda6   :  { %v15551_v9 = vadd.f32 %v2140_v8, %v15395_v40  ;;  %v12404_v10 = vpop.f32.mrb[63].mxu1 }
 0xda9   :  { %v2145_v11 = vpop.f32.mrb[64].mxu1 }
 0xdaa   :  { %v15554_v14 = vadd.f32 %v2145_v11, %v15397_v53  ;;  %v12407_v15 = vpop.f32.mrb[65].mxu1  ;;  %v10946_v53 = vld [vmem:[%s17800_s6 + $0x3] ss:$0 sm:$0xff] }
 0xdab   :  { %v2225_v45 = vadd.f32 %v10946_v53, %v2224_v22  ;;  %v2230_v26 = vadd.f32 %v10946_v53, %v2229_v27  ;;  %v2235_v46 = vadd.f32 %v10946_v53, %v2234_v35 }
 0xdad   :  { %v2310_v20 = vpop.f32.mrb[66].mxu1 }
 0xdae   :  { %v12435_v21 = vpop.f32.mrb[67].mxu1  ;;  %v2311_v50 = vadd.f32 %v10950_v23, %v2310_v20 }
 0xdb1   :  { %v2315_v48 = vpop.f32.mrb[68].mxu1 }
 0xdb2   :  { %v2316_v38 = vadd.f32 %v10950_v23, %v2315_v48  ;;  %v12438_v18 = vpop.f32.mrb[69].mxu1 }
 0xdb4   :  { %v13954_v59 = vpack.c.bf16 %v2316_v38, %v2311_v50 }
 0xdb5   :  { %v2320_v62 = vpop.f32.mrb[70].mxu1 }
 0xdb6   :  { %v12441_v40 = vpop.f32.mrb[71].mxu1  ;;  %13956 = vmatpush3.bf16.xpose.msk.msra.mxu1 %vm15072_vm6, %v13954_v59  ;;  %v2321_v42 = vadd.f32 %v10950_v23, %v2320_v62 }
 0xdb7   :  { %12463 = vmatprep.subr.mxu1 %v17824_v6 }
 0xdbe   :  { %12464 = vmatpush3.xpose.msk.msra.mxu1 %vm684_vm5, %v2321_v42 }
 0xdbf   :  { %12489 = vmatprep.subr.mxu1 %v17824_v6 }
 0xdc1   :  { %12466 = vmatmul.mubr.msk.f32.vlgmr.msra.gmra.mrb[72].mxu1 %vm684_vm5, %v2225_v45 }
 0xdc2   :  { %12468 = vmatprep.mubr.msk.f32.mxu1 %vm14723_vm0, %v17824_v6 }
 0xdc5   :  { %12469 = vmatmul.mubr.msk.f32.gmra.mrb[74].mxu1 %vm684_vm5, %v2230_v26 }
 0xdc6   :  { %12471 = vmatprep.mubr.msk.f32.mxu1 %vm14723_vm0, %v17824_v6 }
 0xdc9   :  { %12472 = vmatmul.mubr.msk.f32.gmra.mrb[76].mxu1 %vm684_vm5, %v2235_v46  ;;  %v333_v46 = vld [vmem:[%s17805_s11 + $0x18] sm:$0xff] }
 0xdca   :  { %12491 = vmatprep.mubr.msk.f32.mxu1 %vm14723_vm0, %v17824_v6  ;;  %12490 = vmatpush3.msra.mxu1 %v333_v46 }
 0xdcb   :  { %13966 = vmatprep.subr.bf16.mxu1 %v17822_v3 }
 0xe94   :  { %v2494_v22 = vpop.f32.mrb[72].mxu1 }
 0xe95   :  { %v2508_v47 = vmul.f32 0.35355338, %v2494_v22  ;;  %v12467_v49 = vpop.f32.mrb[73].mxu1 }
 0xe97   :  { %v2511_v56 = vsel %vm786_vm7, %v2508_v47, -inf }
 0xe98   :  { %2512 = vmax.xlane.f32.xlu0 %v2511_v56  ;;  %v2499_v31 = vpop.f32.mrb[74].mxu1 }
 0xe99   :  { %v2509_v60 = vmul.f32 0.35355338, %v2499_v31  ;;  %v12470_v27 = vpop.f32.mrb[75].mxu1 }
 0xe9b   :  { %v2514_v1 = vsel %vm786_vm7, %v2509_v60, -inf }
 0xe9c   :  { %2515 = vmax.xlane.f32.xlu1 %v2514_v1  ;;  %v2504_v8 = vpop.f32.mrb[76].mxu1 }
 0xe9d   :  { %v2510_v10 = vmul.f32 0.35355338, %v2504_v8  ;;  %v12473_v35 = vpop.f32.mrb[77].mxu1 }
 0xe9f   :  { %v2517_v11 = vsel %vm793_vm8, %v2510_v10, -inf }
 0xea0   :  { %2518 = vmax.xlane.f32.xlu0 %v2517_v11 }
 0xf25   :  { %v2513_v15 = vpop.xlane.xlu0 %2512 }
 0xf26   :  { %v2520_v20 = vsub.f32 %v2508_v47, %v2513_v15 }
 0xf28   :  { %v2523_v21 = vmul.f32 1.442695, %v2520_v20 }
 0xf29   :  { %v2516_v23 = vpop.xlane.xlu1 %2515 }
 0xf2a   :  { %14426 = vpow2.f32 %v2523_v21  ;;  %v2521_v48 = vsub.f32 %v2509_v60, %v2516_v23 }
 0xf2c   :  { %v2525_v50 = vmul.f32 1.442695, %v2521_v48 }
 0xf2d   :  { %v2519_v38 = vpop.xlane.xlu0 %2518 }
 0xf2e   :  { %14428 = vpow2.f32 %v2525_v50  ;;  %v2522_v18 = vsub.f32 %v2510_v10, %v2519_v38  ;;  %v10971_v38 = vld [vmem:[%s17806_s12] ss:$0 sm:$0xff] }
 0xf30   :  { %v2527_v59 = vmul.f32 1.442695, %v2522_v18 }
 0xf32   :  { %14430 = vpow2.f32 %v2527_v59 }
 0xf34   :  { %v14427_v62 = vpop.eup %14426 }
 0xf35   :  { %v2529_v40 = vsel %vm786_vm7, %v14427_v62, 0.0 }
 0xf36   :  { %2530 = vadd.xlane.f32.xlu1 %v2529_v40 }
 0xf38   :  { %v14429_v53 = vpop.eup %14428 }
 0xf39   :  { %v2532_v42 = vsel %vm786_vm7, %v14429_v53, 0.0 }
 0xf3a   :  { %2533 = vadd.xlane.f32.xlu0 %v2532_v42 }
 0xf3c   :  { %v14431_v45 = vpop.eup %14430 }
 0xf3d   :  { %v2535_v26 = vsel %vm793_vm8, %v14431_v45, 0.0 }
 0xf3e   :  { %2536 = vadd.xlane.f32.xlu1 %v2535_v26 }
 0xfc3   :  { %v2531_v22 = vpop.xlane.xlu1 %2530 }
 0xfc4   :  { %14432 = vrcp.f32 %v2531_v22 }
 0xfc7   :  { %v2534_v47 = vpop.xlane.xlu0 %2533 }
 0xfc8   :  { %14434 = vrcp.f32 %v2534_v47 }
 0xfcb   :  { %v2537_v49 = vpop.xlane.xlu1 %2536 }
 0xfcc   :  { %14436 = vrcp.f32 %v2537_v49 }
 0xfce   :  { %v14433_v56 = vpop.eup %14432 }
 0xfcf   :  { %v2541_v31 = vmul.f32 %v14433_v56, %v14427_v62 }
 0xfd1   :  { %12481 = vmatmul.mubr.msk.f32.vlgmr.msra.gmra.mrb[66].mxu0 %vm786_vm7, %v2541_v31 }
 0xfd2   :  { %v14435_v60 = vpop.eup %14434  ;;  %12483 = vmatprep.mubr.msk.f32.mxu0 %vm14723_vm0, %v17824_v6 }
 0xfd3   :  { %v2542_v27 = vmul.f32 %v14435_v60, %v14429_v53 }
 0xfd5   :  { %12484 = vmatmul.mubr.msk.f32.gmra.mrb[68].mxu0 %vm786_vm7, %v2542_v27 }
 0xfd6   :  { %v14437_v1 = vpop.eup %14436  ;;  %12486 = vmatprep.mubr.msk.f32.mxu0 %vm14723_vm0, %v17824_v6 }
 0xfd7   :  { %v2543_v8 = vmul.f32 %v14437_v1, %v14431_v45 }
 0xfd9   :  { %12487 = vmatmul.mubr.msk.f32.gmra.mrb[70].mxu0 %vm786_vm7, %v2543_v8 }
 0xfda   :  { %12508 = vmatprep.mubr.msk.f32.mxu0 %vm14723_vm0, %v17824_v6 }
0x10a4   :  { %v2622_v10 = vpop.f32.mrb[66].mxu0 }
0x10a5   :  { %v12482_v35 = vpop.f32.mrb[67].mxu0  ;;  %12492 = vmatmul.mubr.msk.f32.vlgmr.msra.gmra.mrb[78].mxu1 %vm684_vm5, %v2622_v10 }
0x10a6   :  { %12494 = vmatprep.mubr.msk.f32.mxu1 %vm14723_vm0, %v17824_v6 }
0x10a8   :  { %v2627_v11 = vpop.f32.mrb[68].mxu0 }
0x10a9   :  { %v12485_v15 = vpop.f32.mrb[69].mxu0  ;;  %12495 = vmatmul.mubr.msk.f32.gmra.mrb[80].mxu1 %vm684_vm5, %v2627_v11 }
0x10aa   :  { %12497 = vmatprep.mubr.msk.f32.mxu1 %vm14723_vm0, %v17824_v6 }
0x10ac   :  { %v2632_v20 = vpop.f32.mrb[70].mxu0 }
0x10ad   :  { %v12488_v21 = vpop.f32.mrb[71].mxu0  ;;  %12498 = vmatmul.mubr.msk.f32.gmra.mrb[82].mxu1 %vm684_vm5, %v2632_v20 }
0x10ae   :  { %12549 = vmatprep.mubr.msk.f32.mxu1 %vm14723_vm0, %v17824_v6 }
0x1178   :  { %v2711_v23 = vpop.f32.mrb[78].mxu1 }
0x1179   :  { %v2725_v48 = vadd.f32 %v2711_v23, %v15548_v4  ;;  %v12493_v50 = vpop.f32.mrb[79].mxu1 }
0x117b   :  { %v2728_v18 = vadd.f32 %v2725_v48, %v14895_v19  ;;  %v14650_v19 = vld [vmem:[%s17834_s22] sm:$0xff] }
0x117c   :  { %v2716_v59 = vpop.f32.mrb[80].mxu1  ;;  %v15622_v47 = vadd.f32 %v14650_v19, %v15055_v32  ;;  %v14652_v32 = vld [vmem:[%s17834_s22 + $0x10] sm:$0x1] }
0x117d   :  { %v15609_v62 = vadd.f32 %v10971_v38, %v2728_v18  ;;  %v2726_v40 = vadd.f32 %v2716_v59, %v15551_v9  ;;  %v12496_v53 = vpop.f32.mrb[81].mxu1  ;;  %v15639_v31 = vadd.f32 %v14652_v32, %v15059_v36 }
0x117f   :  { %v2729_v42 = vadd.f32 %v2726_v40, %v14902_v24  ;;  %v2740_v45 = vsel %vm357_vm2, %v15609_v62, 0.0  ;;  %v3014_v27 = vsel %vm364_vm3, %v15639_v31, 0.0 }
0x1180   :  { %2741 = vadd.xlane.f32.xlu0 %v2740_v45  ;;  %v2721_v4 = vpop.f32.mrb[82].mxu1 }
0x1181   :  { %v15615_v26 = vadd.f32 %v10971_v38, %v2729_v42  ;;  %v2727_v46 = vadd.f32 %v2721_v4, %v15554_v14  ;;  %v12499_v22 = vpop.f32.mrb[83].mxu1  ;;  %v14651_v14 = vld [vmem:[%s17834_s22 + $0x8] sm:$0xff] }
0x1182   :  { %v15633_v56 = vadd.f32 %v14651_v14, %v15057_v34 }
0x1183   :  { %v2730_v9 = vadd.f32 %v2727_v46, %v14909_v29  ;;  %v2743_v24 = vsel %vm357_vm2, %v15615_v26, 0.0  ;;  %v3008_v29 = vsel %vm357_vm2, %v15622_v47, 0.0 }
0x1184   :  { %2744 = vadd.xlane.f32.xlu1 %v2743_v24  ;;  %v3011_v34 = vsel %vm357_vm2, %v15633_v56, 0.0 }
0x1185   :  { %v15627_v49 = vadd.f32 %v10971_v38, %v2730_v9 }
0x1187   :  { %v2746_v60 = vsel %vm364_vm3, %v15627_v49, 0.0 }
0x1188   :  { %3009 = vadd.xlane.f32.xlu1 %v3008_v29  ;;  %2747 = vadd.xlane.f32.xlu0 %v2746_v60 }
0x118c   :  { %3015 = vadd.xlane.f32.xlu1 %v3014_v27  ;;  %3012 = vadd.xlane.f32.xlu0 %v3011_v34  ;;  %v335_v34 = vld [vmem:[%s17809_s15] sm:$0xff] }
0x120d   :  { %v2742_v1 = vpop.xlane.xlu0 %2741 }
0x120e   :  { %v2749_v8 = vmul.f32 0.03125, %v2742_v1  ;;  %v336_v1 = vld [vmem:[%s17809_s15 + $0x8] sm:$0xff] }
0x1210   :  { %v15650_v36 = vsub.f32 %v15609_v62, %v2749_v8  ;;  %v15691_v8 = vpack.c.bf16 %v336_v1, %v335_v34  ;;  %v10972_v1 = vld [vmem:[%s17807_s13] ss:$0 sm:$0xff] }
0x1211   :  { %v2745_v10 = vpop.xlane.xlu1 %2744 }
0x1212   :  { %v2750_v35 = vmul.f32 0.03125, %v2745_v10  ;;  %v2755_v11 = vmul.f32 %v15650_v36, %v15650_v36  ;;  %13962 = vmatpush3.bf16.msra.mxu0 %v15691_v8  ;;  %v337_v10 = vld [vmem:[%s17809_s15 + $0x10] sm:$0xff] }
0x1213   :  { %13963 = vmatprep.subr.bf16.mxu0 %v17822_v3 }
0x1214   :  { %v15655_v15 = vsub.f32 %v15615_v26, %v2750_v35  ;;  %v2758_v20 = vsel %vm357_vm2, %v2755_v11, 0.0  ;;  %v338_v35 = vld [vmem:[%s17809_s15 + $0x18] sm:$0xff] }
0x1215   :  { %v3010_v21 = vpop.xlane.xlu1 %3009  ;;  %2759 = vadd.xlane.f32.xlu0 %v2758_v20  ;;  %v2748_v23 = vpop.xlane.xlu0 %2747  ;;  %v15701_v11 = vpack.c.bf16 %v338_v35, %v337_v10  ;;  %v340_v20 = vld [vmem:[%s17811_s17] sm:$0xff] }
0x1216   :  { %v3017_v48 = vmul.f32 0.03125, %v3010_v21  ;;  %v2751_v50 = vmul.f32 0.03125, %v2748_v23  ;;  %v2756_v38 = vmul.f32 %v15655_v15, %v15655_v15  ;;  %v341_v21 = vld [vmem:[%s17811_s17 + $0x8] sm:$0xff] }
0x1217   :  { %13965 = vmatpush3.bf16.msra.mxu0 %v15701_v11  ;;  %v15711_v23 = vpack.c.bf16 %v341_v21, %v340_v20  ;;  %v10973_v21 = vld [vmem:[%s17808_s14] ss:$0 sm:$0xff] }
0x1218   :  { %v15661_v18 = vsub.f32 %v15622_v47, %v3017_v48  ;;  %v15664_v59 = vsub.f32 %v15627_v49, %v2751_v50  ;;  %v2761_v40 = vsel %vm357_vm2, %v2756_v38, 0.0  ;;  %13990 = vmatprep.subr.bf16.mxu0 %v17822_v3 }
0x1219   :  { %2762 = vadd.xlane.f32.xlu1 %v2761_v40  ;;  %v3016_v53 = vpop.xlane.xlu1 %3015  ;;  %v3013_v42 = vpop.xlane.xlu0 %3012  ;;  %13968 = vmatpush3.bf16.msra.mxu1 %v15711_v23 }
0x121a   :  { %v3019_v45 = vmul.f32 0.03125, %v3016_v53  ;;  %v3018_v4 = vmul.f32 0.03125, %v3013_v42  ;;  %v3023_v46 = vmul.f32 %v15661_v18, %v15661_v18  ;;  %v2757_v22 = vmul.f32 %v15664_v59, %v15664_v59  ;;  %13969 = vmatprep.subr.bf16.mxu1 %v17822_v3 }
0x121c   :  { %v15672_v19 = vsub.f32 %v15639_v31, %v3019_v45  ;;  %v15675_v9 = vsub.f32 %v15633_v56, %v3018_v4  ;;  %v3026_v24 = vsel %vm357_vm2, %v3023_v46, 0.0  ;;  %v2764_v14 = vsel %vm364_vm3, %v2757_v22, 0.0 }
0x121d   :  { %3027 = vadd.xlane.f32.xlu1 %v3026_v24  ;;  %2765 = vadd.xlane.f32.xlu0 %v2764_v14 }
0x121e   :  { %v3025_v32 = vmul.f32 %v15672_v19, %v15672_v19  ;;  %v3024_v29 = vmul.f32 %v15675_v9, %v15675_v9 }
0x1220   :  { %v3032_v60 = vsel %vm364_vm3, %v3025_v32, 0.0  ;;  %v3029_v27 = vsel %vm357_vm2, %v3024_v29, 0.0 }
0x1221   :  { %3033 = vadd.xlane.f32.xlu1 %v3032_v60  ;;  %3030 = vadd.xlane.f32.xlu0 %v3029_v27 }
0x12a2   :  { %v2760_v48 = vpop.xlane.xlu0 %2759 }
0x12a3   :  { %v2767_v50 = vmul.f32 0.03125, %v2760_v48 }
0x12a5   :  { %v2770_v38 = vadd.f32 1e-05, %v2767_v50 }
0x12a6   :  { %v2763_v40 = vpop.xlane.xlu1 %2762 }
0x12a7   :  { %14438 = vrsqrt.f32 %v2770_v38  ;;  %v2768_v53 = vmul.f32 0.03125, %v2763_v40 }
0x12a9   :  { %v2771_v42 = vadd.f32 1e-05, %v2768_v53 }
0x12aa   :  { %v3028_v45 = vpop.xlane.xlu1 %3027  ;;  %v2766_v4 = vpop.xlane.xlu0 %2765 }
0x12ab   :  { %14440 = vrsqrt.f32 %v2771_v42  ;;  %v3035_v46 = vmul.f32 0.03125, %v3028_v45  ;;  %v2769_v22 = vmul.f32 0.03125, %v2766_v4 }
0x12ad   :  { %v3038_v24 = vadd.f32 1e-05, %v3035_v46  ;;  %v2772_v14 = vadd.f32 1e-05, %v2769_v22 }
0x12ae   :  { %v3034_v32 = vpop.xlane.xlu1 %3033  ;;  %v3031_v29 = vpop.xlane.xlu0 %3030 }
0x12af   :  { %14442 = vrsqrt.f32 %v3038_v24  ;;  %v3037_v60 = vmul.f32 0.03125, %v3034_v32  ;;  %v3036_v27 = vmul.f32 0.03125, %v3031_v29 }
0x12b0   :  { %14444 = vrsqrt.f32 %v2772_v14 }
0x12b1   :  { %v14439_v34 = vpop.eup %14438  ;;  %v3039_v10 = vadd.f32 1e-05, %v3036_v27  ;;  %v3040_v20 = vadd.f32 1e-05, %v3037_v60 }
0x12b2   :  { %v2776_v35 = vmul.f32 %v14439_v34, %v15650_v36 }
0x12b3   :  { %14446 = vrsqrt.f32 %v3039_v10  ;;  %v345_v10 = vld [vmem:[%s17811_s17 + $0x28] sm:$0xff] }
0x12b4   :  { %v2785_v48 = vmul.f32 %v10972_v1, %v2776_v35  ;;  %14448 = vrsqrt.f32 %v3040_v20  ;;  %v346_v20 = vld [vmem:[%s17811_s17 + $0x30] sm:$0xff] }
0x12b5   :  { %v14441_v50 = vpop.eup %14440 }
0x12b6   :  { %v2794_v38 = vadd.f32 %v10973_v21, %v2785_v48  ;;  %v2777_v40 = vmul.f32 %v14441_v50, %v15655_v15  ;;  %v348_v50 = vld [vmem:[%s17811_s17 + $0x40] sm:$0xff] }
0x12b8   :  { %12509 = vmatmul.mubr.msk.f32.vlgmr.msra.gmra.mrb[72].mxu0 %vm357_vm2, %v2794_v38  ;;  %v2786_v53 = vmul.f32 %v10972_v1, %v2777_v40  ;;  %v349_v38 = vld [vmem:[%s17811_s17 + $0x48] sm:$0xff] }
0x12b9   :  { %v14443_v42 = vpop.eup %14442  ;;  %12511 = vmatprep.mubr.msk.f32.mxu0 %vm14723_vm0, %v17824_v6  ;;  %13992 = vmatpush3.bf16.msra.mxu0 %v14943_v51  ;;  %v14653_v51 = vld [vmem:[%s17836_s2] ss:$0 sm:$0xff]  ;;  %v15816_v40 = vpack.c.bf16 %v349_v38, %v348_v50 }
0x12ba   :  { %v14445_v36 = vpop.eup %14444  ;;  %v2795_v45 = vadd.f32 %v10973_v21, %v2786_v53  ;;  %13993 = vmatprep.subr.bf16.mxu0 %v17822_v3  ;;  %v3044_v4 = vmul.f32 %v14443_v42, %v15661_v18  ;;  %v350_v53 = vld [vmem:[%s17811_s17 + $0x50] sm:$0xff]  ;;  %v351_v42 = vld [vmem:[%s17811_s17 + $0x58] sm:$0xff] }
0x12bb   :  { %v2778_v46 = vmul.f32 %v14445_v36, %v15664_v59  ;;  %v15826_v36 = vpack.c.bf16 %v351_v42, %v350_v53 }
0x12bc   :  { %12512 = vmatmul.mubr.msk.f32.gmra.mrb[74].mxu0 %vm357_vm2, %v2795_v45  ;;  %v3047_v24 = vmul.f32 %v14653_v51, %v3044_v4  ;;  %v352_v45 = vld [vmem:[%s17811_s17 + $0x60] sm:$0xff]  ;;  %v353_v4 = vld [vmem:[%s17811_s17 + $0x68] sm:$0xff] }
0x12bd   :  { %12514 = vmatprep.mubr.msk.f32.mxu0 %vm14723_vm0, %v17824_v6  ;;  %v2787_v15 = vmul.f32 %v10972_v1, %v2778_v46  ;;  %13995 = vmatpush3.bf16.msra.mxu0 %v14969_v58  ;;  %v14447_v22 = vpop.eup %14446  ;;  %v14654_v58 = vld [vmem:[%s17837_s30] ss:$0 sm:$0xff]  ;;  %v15836_v46 = vpack.c.bf16 %v353_v4, %v352_v45 }
0x12be   :  { %13996 = vmatprep.subr.bf16.mxu0 %v17822_v3  ;;  %v3045_v18 = vmul.f32 %v14447_v22, %v15675_v9  ;;  %v14449_v59 = vpop.eup %14448  ;;  %v15745_v32 = vadd.f32 %v14654_v58, %v3047_v24  ;;  %v344_v1 = vld [vmem:[%s17811_s17 + $0x20] sm:$0xff]  ;;  %v355_v22 = vld [vmem:[%s17811_s17 + $0x78] sm:$0xff] }
0x12bf   :  { %v2796_v14 = vadd.f32 %v10973_v21, %v2787_v15  ;;  %v3046_v29 = vmul.f32 %v14449_v59, %v15672_v19  ;;  %v15796_v35 = vpack.c.bf16 %v345_v10, %v344_v1  ;;  %v347_v21 = vld [vmem:[%s17811_s17 + $0x38] sm:$0xff]  ;;  %v354_v15 = vld [vmem:[%s17811_s17 + $0x70] sm:$0xff]  ;;  %v10974_v24 = vld [vmem:[%s17810_s16] ss:$0 sm:$0xff] }
0x12c0   :  { %v3048_v60 = vmul.f32 %v14653_v51, %v3045_v18  ;;  %v15806_v48 = vpack.c.bf16 %v347_v21, %v346_v20 }
0x12c1   :  { %12515 = vmatmul.mubr.msk.f32.gmra.mrb[76].mxu0 %vm357_vm2, %v2796_v14  ;;  %v3049_v9 = vmul.f32 %v14653_v51, %v3046_v29  ;;  %v15846_v51 = vpack.c.bf16 %v355_v22, %v354_v15 }
0x12c2   :  { %12566 = vmatprep.mubr.msk.f32.mxu0 %vm14723_vm0, %v17824_v6  ;;  %v15753_v27 = vadd.f32 %v14654_v58, %v3048_v60 }
0x12c3   :  { %v15761_v19 = vadd.f32 %v14654_v58, %v3049_v9 }
0x12c5   :  { %12567 = vmatmul.mubr.msk.f32.vlgmr.msra.gmra.mrb[78].mxu0 %vm357_vm2, %v15745_v32 }
0x12c6   :  { %12569 = vmatprep.mubr.msk.f32.mxu0 %vm14723_vm0, %v17824_v6  ;;  %13998 = vmatpush3.bf16.msra.mxu0 %v14997_v17  ;;  %v342_v17 = vld [vmem:[%s17811_s17 + $0x10] sm:$0xff] }
0x12c7   :  { %13999 = vmatprep.subr.bf16.mxu0 %v17822_v3 }
0x12c9   :  { %12570 = vmatmul.mubr.msk.f32.gmra.mrb[80].mxu0 %vm357_vm2, %v15753_v27 }
0x12ca   :  { %12572 = vmatprep.mubr.msk.f32.mxu0 %vm14723_vm0, %v17824_v6  ;;  %14001 = vmatpush3.bf16.msra.mxu0 %v15021_v28  ;;  %v343_v28 = vld [vmem:[%s17811_s17 + $0x18] sm:$0xff] }
0x12cb   :  { %14008 = vmatprep.subr.bf16.mxu0 %v17822_v3  ;;  %v15786_v34 = vpack.c.bf16 %v343_v28, %v342_v17 }
0x12cd   :  { %12573 = vmatmul.mubr.msk.f32.gmra.mrb[82].mxu0 %vm357_vm2, %v15761_v19  ;;  %13971 = vmatpush3.bf16.msra.mxu1 %v15786_v34 }
0x12ce   :  { %12583 = vmatprep.mubr.msk.f32.mxu0 %vm14723_vm0, %v17824_v6  ;;  %13972 = vmatprep.subr.bf16.mxu1 %v17822_v3 }
0x12d1   :  { %12584 = vmatmul.mubr.msk.f32.vlgmr.msra.gmra.mrb[84].mxu0 %vm357_vm2, %v15745_v32  ;;  %13974 = vmatpush3.bf16.msra.mxu1 %v15796_v35 }
0x12d2   :  { %12586 = vmatprep.mubr.msk.f32.mxu0 %vm14723_vm0, %v17824_v6  ;;  %13975 = vmatprep.subr.bf16.mxu1 %v17822_v3 }
0x12d5   :  { %12587 = vmatmul.mubr.msk.f32.gmra.mrb[86].mxu0 %vm357_vm2, %v15753_v27  ;;  %13977 = vmatpush3.bf16.msra.mxu1 %v15806_v48 }
0x12d6   :  { %12589 = vmatprep.mubr.msk.f32.mxu0 %vm14723_vm0, %v17824_v6  ;;  %13978 = vmatprep.subr.bf16.mxu1 %v17822_v3 }
0x12d9   :  { %12590 = vmatmul.mubr.msk.f32.gmra.mrb[88].mxu0 %vm357_vm2, %v15761_v19  ;;  %13980 = vmatpush3.bf16.msra.mxu1 %v15816_v40 }
0x12da   :  { %12615 = vmatprep.mubr.msk.f32.mxu0 %vm14723_vm0, %v17824_v6  ;;  %13981 = vmatprep.subr.bf16.mxu1 %v17822_v3 }
0x12dd   :  { %13983 = vmatpush3.bf16.msra.mxu1 %v15826_v36 }
0x12de   :  { %13984 = vmatprep.subr.bf16.mxu1 %v17822_v3 }
0x12e1   :  { %13986 = vmatpush3.bf16.msra.mxu1 %v15836_v46 }
0x12e2   :  { %13987 = vmatprep.subr.bf16.mxu1 %v17822_v3 }
0x12e5   :  { %13989 = vmatpush3.bf16.msra.mxu1 %v15846_v51 }
0x12e6   :  { %14002 = vmatprep.subr.bf16.mxu1 %v17822_v3 }
0x138b   :  { %v2878_v18 = vpop.f32.mrb[72].mxu0 }
0x138c   :  { %v2879_v14 = vadd.f32 %v10974_v24, %v2878_v18  ;;  %v12510_v59 = vpop.f32.mrb[73].mxu0 }
0x138e   :  { %v2895_v58 = vmul.f32 0.044715, %v2879_v14 }
0x138f   :  { %v2883_v29 = vpop.f32.mrb[74].mxu0 }
0x1390   :  { %v2898_v60 = vmul.f32 %v2895_v58, %v2879_v14  ;;  %v2884_v9 = vadd.f32 %v10974_v24, %v2883_v29  ;;  %v12513_v17 = vpop.f32.mrb[75].mxu0 }
0x1392   :  { %v2901_v28 = vmul.f32 %v2898_v60, %v2879_v14  ;;  %v2896_v1 = vmul.f32 0.044715, %v2884_v9 }
0x1394   :  { %v2904_v10 = vadd.f32 %v2901_v28, %v2879_v14  ;;  %v2899_v20 = vmul.f32 %v2896_v1, %v2884_v9  ;;  %v2888_v21 = vpop.f32.mrb[76].mxu0 }
0x1395   :  { %v2889_v50 = vadd.f32 %v10974_v24, %v2888_v21  ;;  %v12516_v38 = vpop.f32.mrb[77].mxu0  ;;  %v2892_v21 = vmul.f32 0.5, %v2879_v14 }
0x1396   :  { %v2907_v53 = vmul.f32 0.7978846, %v2904_v10  ;;  %v2902_v42 = vmul.f32 %v2899_v20, %v2884_v9 }
0x1397   :  { %v2897_v45 = vmul.f32 0.044715, %v2889_v50 }
0x1398   :  { %14450 = vtanh.f32 %v2907_v53  ;;  %v3128_v4 = vpop.f32.mrb[78].mxu0  ;;  %v2905_v15 = vadd.f32 %v2902_v42, %v2884_v9  ;;  %v2893_v42 = vmul.f32 0.5, %v2884_v9  ;;  %v2894_v9 = vmul.f32 0.5, %v2889_v50 }
0x1399   :  { %v2900_v22 = vmul.f32 %v2897_v45, %v2889_v50  ;;  %v12568_v18 = vpop.f32.mrb[79].mxu0 }
0x139a   :  { %v2908_v59 = vmul.f32 0.7978846, %v2905_v15 }
0x139b   :  { %v2903_v3 = vmul.f32 %v2900_v22, %v2889_v50  ;;  %v17840_v22 = vmov 0.0  }
0x139c   :  { %v3133_v58 = vpop.f32.mrb[80].mxu0  ;;  %14452 = vtanh.f32 %v2908_v59 }
0x139d   :  { %v12571_v29 = vpop.f32.mrb[81].mxu0  ;;  %v2906_v60 = vadd.f32 %v2903_v3, %v2889_v50  ;;  %v14655_v3 = vld [vmem:[%s17802_s8] ss:$0 sm:$0xff] }
0x139f   :  { %v2909_v17 = vmul.f32 0.7978846, %v2906_v60  ;;  %v17841_v60 = vmov 0.0|0.0  }
0x13a0   :  { %v3138_v28 = vpop.f32.mrb[82].mxu0 }
0x13a1   :  { %v12574_v1 = vpop.f32.mrb[83].mxu0  ;;  %14454 = vtanh.f32 %v2909_v17 }
0x13a2   :  { %v14451_v24 = vpop.eup %14450 }
0x13a3   :  { %v2913_v10 = vadd.f32 1.0, %v14451_v24 }
0x13a4   :  { %v3208_v20 = vpop.f32.mrb[84].mxu0 }
0x13a5   :  { %v12585_v38 = vpop.f32.mrb[85].mxu0  ;;  %v2916_v53 = vmul.f32 %v2913_v10, %v2892_v21  ;;  %v3209_v18 = vadd.f32 %v14655_v3, %v3208_v20 }
0x13a6   :  { %v14453_v6 = vpop.eup %14452 }
0x13a7   :  { %12550 = vmatmul.mubr.f32.vlgmr.msra.gmra.mrb[84].mxu1 %v2916_v53  ;;  %v2914_v45 = vadd.f32 1.0, %v14453_v6 }
0x13a8   :  { %v3213_v15 = vpop.f32.mrb[86].mxu0  ;;  %12552 = vmatprep.mubr.msk.f32.mxu1 %vm14723_vm0, %v17840_v22  ;;  %14004 = vmatpush3.bf16.msra.mxu1 %v14951_v54 }
0x13a9   :  { %v3214_v14 = vadd.f32 %v14655_v3, %v3213_v15  ;;  %v12588_v59 = vpop.f32.mrb[87].mxu0  ;;  %v2917_v29 = vmul.f32 %v2914_v45, %v2893_v42  ;;  %14005 = vmatprep.subr.bf16.mxu1 %v17841_v60  ;;  %v14657_v15 = vld [vmem:[%s17804_s10] ss:$0 sm:$0xff] }
0x13ab   :  { %v14455_v17 = vpop.eup %14454  ;;  %v14009_v1 = vpack.c.bf16 %v3214_v14, %v3209_v18  ;;  %12553 = vmatmul.mubr.f32.gmra.mrb[86].mxu1 %v2917_v29 }
0x13ac   :  { %v3218_v6 = vpop.f32.mrb[88].mxu0  ;;  %12555 = vmatprep.mubr.msk.f32.mxu1 %vm14723_vm0, %v17840_v22  ;;  %v2915_v24 = vadd.f32 1.0, %v14455_v17  ;;  %14007 = vmatpush3.bf16.msra.mxu1 %v14977_v61  ;;  %v14656_v61 = vld [vmem:[%s17800_s6] ss:$0 sm:$0xff] }
0x13ad   :  { %v12591_v54 = vpop.f32.mrb[89].mxu0  ;;  %14011 = vmatpush3.bf16.xpose.msk.msra.mxu0 %vm15072_vm6, %v14009_v1  ;;  %14012 = vmatprep.subr.bf16.mxu1 %v17841_v60  ;;  %v3219_v10 = vadd.f32 %v14655_v3, %v3218_v6  ;;  %v3129_v50 = vadd.f32 %v14656_v61, %v3128_v4  ;;  %v3134_v20 = vadd.f32 %v14656_v61, %v3133_v58 }
0x13ae   :  { %v2918_v21 = vmul.f32 %v2915_v24, %v2894_v9  ;;  %12613 = vmatprep.subr.mxu0 %v17840_v22  ;;  %v3139_v4 = vadd.f32 %v14656_v61, %v3138_v28 }
0x13b0   :  { %12556 = vmatmul.mubr.f32.gmra.mrb[88].mxu1 %v2918_v21 }
0x13b1   :  { %12600 = vmatprep.mubr.msk.f32.mxu1 %vm14723_vm0, %v17840_v22 }
0x13b4   :  { %12601 = vmatmul.mubr.msk.f32.vlgmr.msra.gmra.mrb[90].mxu1 %vm357_vm2, %v15745_v32 }
0x13b5   :  { %12614 = vmatpush3.xpose.msk.msra.mxu0 %vm684_vm5, %v3219_v10  ;;  %12603 = vmatprep.mubr.msk.f32.mxu1 %vm14723_vm0, %v17840_v22 }
0x13b6   :  { %14015 = vmatprep.subr.bf16.mxu0 %v17841_v60 }
0x13b8   :  { %12604 = vmatmul.mubr.msk.f32.gmra.mrb[92].mxu1 %vm357_vm2, %v15753_v27  ;;  %12616 = vmatmul.mubr.msk.f32.vlgmr.msra.gmra.mrb[90].mxu0 %vm684_vm5, %v3129_v50 }
0x13b9   :  { %12606 = vmatprep.mubr.msk.f32.mxu1 %vm14723_vm0, %v17840_v22  ;;  %12618 = vmatprep.mubr.msk.f32.mxu0 %vm14723_vm0, %v17840_v22 }
0x13ba   :  { %14017 = vmatpush3.bf16.msra.mxu0 %v15089_v12 }
0x13bb   :  { %14018 = vmatprep.subr.bf16.mxu0 %v17841_v60 }
0x13bc   :  { %12607 = vmatmul.mubr.msk.f32.gmra.mrb[94].mxu1 %vm357_vm2, %v15761_v19  ;;  %12619 = vmatmul.mubr.msk.f32.gmra.mrb[92].mxu0 %vm684_vm5, %v3134_v20 }
0x13bd   :  { %12621 = vmatprep.mubr.msk.f32.mxu0 %vm14723_vm0, %v17840_v22  ;;  %12630 = vmatprep.mubr.msk.f32.mxu1 %vm14723_vm0, %v17840_v22 }
0x13be   :  { %14020 = vmatpush3.bf16.msra.mxu0 %v15102_v16 }
0x13bf   :  { %14027 = vmatprep.subr.bf16.mxu0 %v17841_v60 }
0x13c0   :  { %12622 = vmatmul.mubr.msk.f32.gmra.mrb[94].mxu0 %vm684_vm5, %v3139_v4 }
0x13c1   :  { %12647 = vmatprep.mubr.msk.f32.mxu0 %vm14723_vm0, %v17840_v22 }
0x13c4   :  { %12648 = vmatmul.mubr.msk.f32.vlgmr.msra.gmra.mrb[96].mxu0 %vm357_vm2, %v15745_v32 }
0x13c5   :  { %12650 = vmatprep.mubr.msk.f32.mxu0 %vm14723_vm0, %v17840_v22  ;;  %14029 = vmatpush3.bf16.msra.mxu0 %v15119_v25 }
0x13c6   :  { %14030 = vmatprep.subr.bf16.mxu0 %v17841_v60 }
0x13c8   :  { %12651 = vmatmul.mubr.msk.f32.gmra.mrb[98].mxu0 %vm357_vm2, %v15753_v27 }
0x13c9   :  { %12653 = vmatprep.mubr.msk.f32.mxu0 %vm14723_vm0, %v17840_v22  ;;  %14032 = vmatpush3.bf16.msra.mxu0 %v15132_v33 }
0x13ca   :  { %14037 = vmatprep.subr.bf16.mxu0 %v17841_v60 }
0x13cc   :  { %12654 = vmatmul.mubr.msk.f32.gmra.mrb[100].mxu0 %vm357_vm2, %v15761_v19 }
0x13cd   :  { %12681 = vmatprep.mubr.msk.f32.mxu0 %vm14723_vm0, %v17840_v22 }
0x13d0   :  { %12682 = vmatmul.mubr.msk.f32.vlgmr.msra.gmra.mrb[102].mxu0 %vm357_vm2, %v15745_v32 }
0x13d1   :  { %12684 = vmatprep.mubr.msk.f32.mxu0 %vm14723_vm0, %v17840_v22 }
0x13d4   :  { %12685 = vmatmul.mubr.msk.f32.gmra.mrb[104].mxu0 %vm357_vm2, %v15753_v27 }
0x13d5   :  { %12687 = vmatprep.mubr.msk.f32.mxu0 %vm14723_vm0, %v17840_v22 }
0x13d8   :  { %12688 = vmatmul.mubr.msk.f32.gmra.mrb[106].mxu0 %vm357_vm2, %v15761_v19 }
0x13d9   :  { %12711 = vmatprep.mubr.msk.f32.mxu0 %vm14723_vm0, %v17840_v22 }
0x147a   :  { %v15927_v12 = vpop.f32.mrb[84].mxu1 }
0x147b   :  { %v12551_v16 = vpop.f32.mrb[85].mxu1 }
0x147e   :  { %v15929_v25 = vpop.f32.mrb[86].mxu1 }
0x147f   :  { %v12554_v33 = vpop.f32.mrb[87].mxu1 }
0x1483   :  { %v15931_v58 = vpop.f32.mrb[88].mxu1 }
0x1484   :  { %v12557_v28 = vpop.f32.mrb[89].mxu1 }
0x1487   :  { %v3288_v38 = vpop.f32.mrb[90].mxu1 }
0x1488   :  { %v12602_v53 = vpop.f32.mrb[91].mxu1  ;;  %v3289_v3 = vadd.f32 %v14657_v15, %v3288_v38 }
0x148b   :  { %v3293_v42 = vpop.f32.mrb[92].mxu1  ;;  %v3386_v45 = vpop.f32.mrb[90].mxu0 }
0x148c   :  { %v3294_v18 = vadd.f32 %v14657_v15, %v3293_v42  ;;  %v3400_v14 = vmul.f32 0.35355338, %v3386_v45  ;;  %v12605_v59 = vpop.f32.mrb[93].mxu1  ;;  %v12617_v29 = vpop.f32.mrb[91].mxu0 }
0x148d   :  { %v14658_v59 = vld [vmem:[%s17804_s10 + $0x1] ss:$0 sm:$0xff] }
0x148e   :  { %v14013_v17 = vpack.c.bf16 %v3294_v18, %v3289_v3  ;;  %v3403_v1 = vsel %vm786_vm7, %v3400_v14, -inf }
0x148f   :  { %v3298_v6 = vpop.f32.mrb[94].mxu1  ;;  %3404 = vmax.xlane.f32.xlu0 %v3403_v1  ;;  %v3391_v9 = vpop.f32.mrb[92].mxu0 }
0x1490   :  { %v3401_v24 = vmul.f32 0.35355338, %v3391_v9  ;;  %v12608_v54 = vpop.f32.mrb[95].mxu1  ;;  %v12620_v21 = vpop.f32.mrb[93].mxu0  ;;  %14014 = vmatpush3.bf16.msra.mxu1 %v14013_v17  ;;  %v3299_v10 = vadd.f32 %v14657_v15, %v3298_v6 }
0x1491   :  { %12628 = vmatprep.subr.mxu1 %v17840_v22 }
0x1492   :  { %v3406_v61 = vsel %vm786_vm7, %v3401_v24, -inf }
0x1493   :  { %3407 = vmax.xlane.f32.xlu1 %v3406_v61  ;;  %v3396_v50 = vpop.f32.mrb[94].mxu0 }
0x1494   :  { %v3402_v20 = vmul.f32 0.35355338, %v3396_v50  ;;  %v12623_v4 = vpop.f32.mrb[95].mxu0  ;;  %12629 = vmatpush3.msk.msra.mxu1 %vm830_vm4, %v3299_v10 }
0x1495   :  { %14021 = vmatprep.subr.bf16.mxu1 %v17841_v60 }
0x1496   :  { %v3409_v16 = vsel %vm793_vm8, %v3402_v20, -inf }
0x1497   :  { %3410 = vmax.xlane.f32.xlu0 %v3409_v16  ;;  %v15942_v33 = vpop.f32.mrb[96].mxu0 }
0x1498   :  { %v12649_v28 = vpop.f32.mrb[97].mxu0 }
0x149b   :  { %v15944_v38 = vpop.f32.mrb[98].mxu0 }
0x149c   :  { %v12652_v53 = vpop.f32.mrb[99].mxu0 }
0x149f   :  { %v15946_v42 = vpop.f32.mrb[100].mxu0 }
0x14a0   :  { %v12655_v45 = vpop.f32.mrb[101].mxu0 }
0x14a3   :  { %v3754_v15 = vpop.f32.mrb[102].mxu0 }
0x14a4   :  { %v12683_v3 = vpop.f32.mrb[103].mxu0  ;;  %v3755_v29 = vadd.f32 %v14658_v59, %v3754_v15 }
0x14a7   :  { %v3759_v18 = vpop.f32.mrb[104].mxu0 }
0x14a8   :  { %v3760_v17 = vadd.f32 %v14658_v59, %v3759_v18  ;;  %v12686_v1 = vpop.f32.mrb[105].mxu0 }
0x14aa   :  { %v14038_v6 = vpack.c.bf16 %v3760_v17, %v3755_v29 }
0x14ab   :  { %v3764_v9 = vpop.f32.mrb[106].mxu0 }
0x14ac   :  { %v12689_v54 = vpop.f32.mrb[107].mxu0  ;;  %14039 = vmatpush3.bf16.msra.mxu0 %v14038_v6  ;;  %v3765_v21 = vadd.f32 %v14658_v59, %v3764_v9 }
0x14ad   :  { %12709 = vmatprep.subr.mxu0 %v17840_v22 }
0x14b0   :  { %12710 = vmatpush3.msk.msra.mxu0 %vm830_vm4, %v3765_v21 }
0x14b1   :  { %12731 = vmatprep.subr.mxu0 %v17840_v22 }
0x151c   :  { %v3405_v10 = vpop.xlane.xlu0 %3404 }
0x151d   :  { %v3412_v61 = vsub.f32 %v3400_v14, %v3405_v10 }
0x151f   :  { %v3415_v50 = vmul.f32 1.442695, %v3412_v61 }
0x1520   :  { %v3408_v4 = vpop.xlane.xlu1 %3407 }
0x1521   :  { %14456 = vpow2.f32 %v3415_v50  ;;  %v3413_v16 = vsub.f32 %v3401_v24, %v3408_v4 }
0x1523   :  { %v3417_v28 = vmul.f32 1.442695, %v3413_v16 }
0x1524   :  { %v3411_v53 = vpop.xlane.xlu0 %3410 }
0x1525   :  { %14458 = vpow2.f32 %v3417_v28  ;;  %v3414_v45 = vsub.f32 %v3402_v20, %v3411_v53 }
0x1527   :  { %v3419_v15 = vmul.f32 1.442695, %v3414_v45 }
0x1529   :  { %14460 = vpow2.f32 %v3419_v15 }
0x152b   :  { %v14457_v3 = vpop.eup %14456 }
0x152c   :  { %v3421_v18 = vsel %vm786_vm7, %v14457_v3, 0.0 }
0x152d   :  { %3422 = vadd.xlane.f32.xlu1 %v3421_v18 }
0x152f   :  { %v14459_v59 = vpop.eup %14458 }
0x1530   :  { %v3424_v29 = vsel %vm786_vm7, %v14459_v59, 0.0 }
0x1531   :  { %3425 = vadd.xlane.f32.xlu0 %v3424_v29 }
0x1533   :  { %v14461_v17 = vpop.eup %14460 }
0x1534   :  { %v3427_v14 = vsel %vm793_vm8, %v14461_v17, 0.0 }
0x1535   :  { %3428 = vadd.xlane.f32.xlu1 %v3427_v14 }
0x15ba   :  { %v3423_v1 = vpop.xlane.xlu1 %3422 }
0x15bb   :  { %14462 = vrcp.f32 %v3423_v1 }
0x15be   :  { %v3426_v24 = vpop.xlane.xlu0 %3425 }
0x15bf   :  { %14464 = vrcp.f32 %v3426_v24 }
0x15c2   :  { %v3429_v6 = vpop.xlane.xlu1 %3428 }
0x15c3   :  { %14466 = vrcp.f32 %v3429_v6  ;;  %v14660_v6 = vld [vmem:[%s17800_s6 + $0x1] ss:$0 sm:$0xff] }
0x15c5   :  { %v14463_v20 = vpop.eup %14462 }
0x15c6   :  { %v3433_v9 = vmul.f32 %v14463_v20, %v14457_v3  ;;  %v14659_v3 = vld [vmem:[%s17802_s8 + $0x1] ss:$0 sm:$0xff]  ;;  %v3595_v20 = vadd.f32 %v14660_v6, %v15942_v33  ;;  %v3605_v33 = vadd.f32 %v14660_v6, %v15946_v42 }
0x15c8   :  { %12631 = vmatmul.mubr.msk.f32.vlgmr.msra.gmra.mrb[96].mxu1 %vm786_vm7, %v3433_v9  ;;  %v14661_v9 = vld [vmem:[%s17805_s11 + $0x8] sm:$0xff] }
0x15c9   :  { %v14465_v54 = vpop.eup %14464  ;;  %12633 = vmatprep.mubr.msk.f32.mxu1 %vm14723_vm0, %v17840_v22  ;;  %14023 = vmatpush3.bf16.msra.mxu1 %v15181_v44 }
0x15ca   :  { %v3434_v21 = vmul.f32 %v14465_v54, %v14459_v59  ;;  %14024 = vmatprep.subr.bf16.mxu1 %v17841_v60  ;;  %v3600_v54 = vadd.f32 %v14660_v6, %v15944_v38 }
0x15cc   :  { %12634 = vmatmul.mubr.msk.f32.gmra.mrb[98].mxu1 %vm786_vm7, %v3434_v21 }
0x15cd   :  { %v14467_v10 = vpop.eup %14466  ;;  %12636 = vmatprep.mubr.msk.f32.mxu1 %vm14723_vm0, %v17840_v22  ;;  %14026 = vmatpush3.bf16.msra.mxu1 %v15193_v52 }
0x15ce   :  { %v3435_v61 = vmul.f32 %v14467_v10, %v14461_v17  ;;  %14033 = vmatprep.subr.bf16.mxu1 %v17841_v60 }
0x15d0   :  { %12637 = vmatmul.mubr.msk.f32.gmra.mrb[100].mxu1 %vm786_vm7, %v3435_v61 }
0x15d1   :  { %12664 = vmatprep.mubr.msk.f32.mxu1 %vm14723_vm0, %v17840_v22 }
0x15d4   :  { %12665 = vmatmul.mubr.msk.f32.vlgmr.msra.gmra.mrb[102].mxu1 %vm357_vm2, %v15745_v32 }
0x15d5   :  { %12667 = vmatprep.mubr.msk.f32.mxu1 %vm14723_vm0, %v17840_v22 }
0x15d8   :  { %12668 = vmatmul.mubr.msk.f32.gmra.mrb[104].mxu1 %vm357_vm2, %v15753_v27 }
0x15d9   :  { %12670 = vmatprep.mubr.msk.f32.mxu1 %vm14723_vm0, %v17840_v22 }
0x15dc   :  { %12671 = vmatmul.mubr.msk.f32.gmra.mrb[106].mxu1 %vm357_vm2, %v15761_v19 }
0x15dd   :  { %12696 = vmatprep.mubr.msk.f32.mxu1 %vm14723_vm0, %v17840_v22 }
0x169b   :  { %v15982_v44 = vpop.f32.mrb[96].mxu1 }
0x169c   :  { %v12632_v52 = vpop.f32.mrb[97].mxu1 }
0x169f   :  { %v15984_v50 = vpop.f32.mrb[98].mxu1 }
0x16a0   :  { %v12635_v4 = vpop.f32.mrb[99].mxu1 }
0x16a3   :  { %v15986_v16 = vpop.f32.mrb[100].mxu1 }
0x16a4   :  { %v12638_v28 = vpop.f32.mrb[101].mxu1 }
0x16a7   :  { %v3674_v53 = vpop.f32.mrb[102].mxu1 }
0x16a8   :  { %v12666_v45 = vpop.f32.mrb[103].mxu1  ;;  %v3675_v18 = vadd.f32 %v14659_v3, %v3674_v53 }
0x16ab   :  { %v3679_v15 = vpop.f32.mrb[104].mxu1 }
0x16ac   :  { %v3680_v59 = vadd.f32 %v14659_v3, %v3679_v15  ;;  %v12669_v29 = vpop.f32.mrb[105].mxu1 }
0x16ae   :  { %v14034_v17 = vpack.c.bf16 %v3680_v59, %v3675_v18 }
0x16af   :  { %v3684_v14 = vpop.f32.mrb[106].mxu1 }
0x16b0   :  { %v12672_v1 = vpop.f32.mrb[107].mxu1  ;;  %14036 = vmatpush3.bf16.xpose.msk.msra.mxu1 %vm15072_vm6, %v14034_v17  ;;  %v3685_v24 = vadd.f32 %v14659_v3, %v3684_v14 }
0x16b1   :  { %12694 = vmatprep.subr.mxu1 %v17840_v22 }
0x16b8   :  { %12695 = vmatpush3.xpose.msk.msra.mxu1 %vm684_vm5, %v3685_v24 }
0x16b9   :  { %12720 = vmatprep.subr.mxu1 %v17840_v22 }
0x16bb   :  { %12697 = vmatmul.mubr.msk.f32.vlgmr.msra.gmra.mrb[108].mxu1 %vm684_vm5, %v3595_v20 }
0x16bc   :  { %12699 = vmatprep.mubr.msk.f32.mxu1 %vm14723_vm0, %v17840_v22  ;;  %12721 = vmatpush3.msra.mxu1 %v14661_v9 }
0x16bd   :  { %14040 = vmatprep.subr.bf16.mxu1 %v17841_v60 }
0x16bf   :  { %12700 = vmatmul.mubr.msk.f32.gmra.mrb[110].mxu1 %vm684_vm5, %v3600_v54 }
0x16c0   :  { %12702 = vmatprep.mubr.msk.f32.mxu1 %vm14723_vm0, %v17840_v22 }
0x16c3   :  { %12703 = vmatmul.mubr.msk.f32.gmra.mrb[112].mxu1 %vm684_vm5, %v3605_v33 }
0x16c4   :  { %12722 = vmatprep.mubr.msk.f32.mxu1 %vm14723_vm0, %v17840_v22 }
0x178e   :  { %v3852_v21 = vpop.f32.mrb[108].mxu1 }
0x178f   :  { %v3866_v10 = vmul.f32 0.35355338, %v3852_v21  ;;  %v12698_v61 = vpop.f32.mrb[109].mxu1 }
0x1791   :  { %v3869_v52 = vsel %vm786_vm7, %v3866_v10, -inf }
0x1792   :  { %3870 = vmax.xlane.f32.xlu0 %v3869_v52  ;;  %v3857_v38 = vpop.f32.mrb[110].mxu1 }
0x1793   :  { %v3867_v4 = vmul.f32 0.35355338, %v3857_v38  ;;  %v12701_v28 = vpop.f32.mrb[111].mxu1 }
0x1795   :  { %v3872_v53 = vsel %vm786_vm7, %v3867_v4, -inf }
0x1796   :  { %3873 = vmax.xlane.f32.xlu1 %v3872_v53  ;;  %v3862_v45 = vpop.f32.mrb[112].mxu1 }
0x1797   :  { %v3868_v15 = vmul.f32 0.35355338, %v3862_v45  ;;  %v12704_v42 = vpop.f32.mrb[113].mxu1 }
0x1799   :  { %v3875_v3 = vsel %vm793_vm8, %v3868_v15, -inf }
0x179a   :  { %3876 = vmax.xlane.f32.xlu0 %v3875_v3 }
0x181f   :  { %v3871_v18 = vpop.xlane.xlu0 %3870 }
0x1820   :  { %v3878_v59 = vsub.f32 %v3866_v10, %v3871_v18 }
0x1822   :  { %v3881_v29 = vmul.f32 1.442695, %v3878_v59 }
0x1823   :  { %v3874_v17 = vpop.xlane.xlu1 %3873 }
0x1824   :  { %14468 = vpow2.f32 %v3881_v29  ;;  %v3879_v14 = vsub.f32 %v3867_v4, %v3874_v17 }
0x1826   :  { %v3883_v1 = vmul.f32 1.442695, %v3879_v14 }
0x1827   :  { %v3877_v24 = vpop.xlane.xlu0 %3876 }
0x1828   :  { %14470 = vpow2.f32 %v3883_v1  ;;  %v3880_v6 = vsub.f32 %v3868_v15, %v3877_v24  ;;  %v14662_v15 = vld [vmem:[%s17805_s11] sm:$0xff] }
0x182a   :  { %v3885_v20 = vmul.f32 1.442695, %v3880_v6 }
0x182c   :  { %14472 = vpow2.f32 %v3885_v20 }
0x182e   :  { %v14469_v9 = vpop.eup %14468 }
0x182f   :  { %v3887_v54 = vsel %vm786_vm7, %v14469_v9, 0.0 }
0x1830   :  { %3888 = vadd.xlane.f32.xlu1 %v3887_v54 }
0x1832   :  { %v14471_v33 = vpop.eup %14470 }
0x1833   :  { %v3890_v21 = vsel %vm786_vm7, %v14471_v33, 0.0 }
0x1834   :  { %3891 = vadd.xlane.f32.xlu0 %v3890_v21 }
0x1836   :  { %v14473_v61 = vpop.eup %14472 }
0x1837   :  { %v3893_v10 = vsel %vm793_vm8, %v14473_v61, 0.0 }
0x1838   :  { %3894 = vadd.xlane.f32.xlu1 %v3893_v10 }
0x18bd   :  { %v3889_v52 = vpop.xlane.xlu1 %3888 }
0x18be   :  { %14474 = vrcp.f32 %v3889_v52 }
0x18c1   :  { %v3892_v38 = vpop.xlane.xlu0 %3891 }
0x18c2   :  { %14476 = vrcp.f32 %v3892_v38 }
0x18c5   :  { %v3895_v4 = vpop.xlane.xlu1 %3894 }
0x18c6   :  { %14478 = vrcp.f32 %v3895_v4 }
0x18c8   :  { %v14475_v28 = vpop.eup %14474 }
0x18c9   :  { %v3899_v53 = vmul.f32 %v14475_v28, %v14469_v9 }
0x18cb   :  { %12712 = vmatmul.mubr.msk.f32.vlgmr.msra.gmra.mrb[108].mxu0 %vm786_vm7, %v3899_v53 }
0x18cc   :  { %v14477_v45 = vpop.eup %14476  ;;  %12714 = vmatprep.mubr.msk.f32.mxu0 %vm14723_vm0, %v17840_v22  ;;  %12732 = vmatpush3.msra.mxu0 %v14662_v15 }
0x18cd   :  { %v3900_v42 = vmul.f32 %v14477_v45, %v14471_v33  ;;  %14046 = vmatprep.subr.bf16.mxu0 %v17841_v60 }
0x18cf   :  { %12715 = vmatmul.mubr.msk.f32.gmra.mrb[110].mxu0 %vm786_vm7, %v3900_v42 }
0x18d0   :  { %v14479_v3 = vpop.eup %14478  ;;  %12717 = vmatprep.mubr.msk.f32.mxu0 %vm14723_vm0, %v17840_v22 }
0x18d1   :  { %v3901_v18 = vmul.f32 %v14479_v3, %v14473_v61 }
0x18d3   :  { %12718 = vmatmul.mubr.msk.f32.gmra.mrb[112].mxu0 %vm786_vm7, %v3901_v18 }
0x18d4   :  { %12733 = vmatprep.mubr.msk.f32.mxu0 %vm14723_vm0, %v17840_v22 }
0x18d7   :  { %12734 = vmatmul.mubr.msk.f32.vlgmr.msra.gmra.mrb[114].mxu0 %vm684_vm5, %v15982_v44 }
0x18d8   :  { %12736 = vmatprep.mubr.msk.f32.mxu0 %vm14723_vm0, %v17840_v22  ;;  %14048 = vmatpush3.bf16.msra.mxu0 %v15274_v37 }
0x18d9   :  { %14049 = vmatprep.subr.bf16.mxu0 %v17841_v60 }
0x18db   :  { %12737 = vmatmul.mubr.msk.f32.gmra.mrb[116].mxu0 %vm684_vm5, %v15984_v50 }
0x18dc   :  { %12739 = vmatprep.mubr.msk.f32.mxu0 %vm14723_vm0, %v17840_v22  ;;  %14051 = vmatpush3.bf16.msra.mxu0 %v15287_v39 }
0x18dd   :  { %14058 = vmatprep.subr.bf16.mxu0 %v17841_v60 }
0x18df   :  { %12740 = vmatmul.mubr.msk.f32.gmra.mrb[118].mxu0 %vm684_vm5, %v15986_v16 }
0x18e0   :  { %12767 = vmatprep.mubr.msk.f32.mxu0 %vm14723_vm0, %v17840_v22 }
0x18e3   :  { %12768 = vmatmul.mubr.msk.f32.vlgmr.msra.gmra.mrb[120].mxu0 %vm357_vm2, %v15745_v32 }
0x18e4   :  { %12770 = vmatprep.mubr.msk.f32.mxu0 %vm14723_vm0, %v17840_v22 }
0x18e7   :  { %12771 = vmatmul.mubr.msk.f32.gmra.mrb[122].mxu0 %vm357_vm2, %v15753_v27 }
0x18e8   :  { %12773 = vmatprep.mubr.msk.f32.mxu0 %vm14723_vm0, %v17840_v22 }
0x18eb   :  { %12774 = vmatmul.mubr.msk.f32.gmra.mrb[124].mxu0 %vm357_vm2, %v15761_v19 }
0x18ec   :  { %12799 = vmatprep.mubr.msk.f32.mxu0 %vm14723_vm0, %v17840_v22 }
0x199e   :  { %v3980_v37 = vpop.f32.mrb[108].mxu0 }
0x199f   :  { %v12713_v39 = vpop.f32.mrb[109].mxu0  ;;  %12723 = vmatmul.mubr.msk.f32.vlgmr.msra.gmra.mrb[114].mxu1 %vm684_vm5, %v3980_v37  ;;  %v14664_v37 = vld [vmem:[%s17800_s6 + $0x2] ss:$0 sm:$0xff] }
0x19a0   :  { %12725 = vmatprep.mubr.msk.f32.mxu1 %vm14723_vm0, %v17840_v22  ;;  %14042 = vmatpush3.bf16.msra.mxu1 %v15318_v0 }
0x19a1   :  { %14043 = vmatprep.subr.bf16.mxu1 %v17841_v60 }
0x19a2   :  { %v3985_v44 = vpop.f32.mrb[110].mxu0 }
0x19a3   :  { %v12716_v50 = vpop.f32.mrb[111].mxu0  ;;  %12726 = vmatmul.mubr.msk.f32.gmra.mrb[116].mxu1 %vm684_vm5, %v3985_v44 }
0x19a4   :  { %12728 = vmatprep.mubr.msk.f32.mxu1 %vm14723_vm0, %v17840_v22  ;;  %14045 = vmatpush3.bf16.msra.mxu1 %v15330_v43 }
0x19a5   :  { %14052 = vmatprep.subr.bf16.mxu1 %v17841_v60 }
0x19a6   :  { %v3990_v16 = vpop.f32.mrb[112].mxu0 }
0x19a7   :  { %v12719_v59 = vpop.f32.mrb[113].mxu0  ;;  %12729 = vmatmul.mubr.msk.f32.gmra.mrb[118].mxu1 %vm684_vm5, %v3990_v16  ;;  %v14665_v16 = vld [vmem:[%s17805_s11 + $0x10] sm:$0xff] }
0x19a8   :  { %12750 = vmatprep.mubr.msk.f32.mxu1 %vm14723_vm0, %v17840_v22 }
0x19aa   :  { %v4158_v0 = vpop.f32.mrb[114].mxu0 }
0x19ab   :  { %v12735_v29 = vpop.f32.mrb[115].mxu0  ;;  %12751 = vmatmul.mubr.msk.f32.vlgmr.msra.gmra.mrb[120].mxu1 %vm357_vm2, %v15745_v32 }
0x19ac   :  { %12753 = vmatprep.mubr.msk.f32.mxu1 %vm14723_vm0, %v17840_v22  ;;  %14054 = vmatpush3.bf16.msra.mxu1 %v15347_v57 }
0x19ad   :  { %14055 = vmatprep.subr.bf16.mxu1 %v17841_v60 }
0x19ae   :  { %v4163_v43 = vpop.f32.mrb[116].mxu0 }
0x19af   :  { %v12738_v17 = vpop.f32.mrb[117].mxu0  ;;  %12754 = vmatmul.mubr.msk.f32.gmra.mrb[122].mxu1 %vm357_vm2, %v15753_v27 }
0x19b0   :  { %12756 = vmatprep.mubr.msk.f32.mxu1 %vm14723_vm0, %v17840_v22  ;;  %14057 = vmatpush3.bf16.msra.mxu1 %v15360_v5  ;;  %v14663_v5 = vld [vmem:[%s17802_s8 + $0x2] ss:$0 sm:$0xff] }
0x19b1   :  { %14062 = vmatprep.subr.bf16.mxu1 %v17841_v60 }
0x19b2   :  { %v4168_v14 = vpop.f32.mrb[118].mxu0 }
0x19b3   :  { %v12741_v1 = vpop.f32.mrb[119].mxu0  ;;  %12757 = vmatmul.mubr.msk.f32.gmra.mrb[124].mxu1 %vm357_vm2, %v15761_v19 }
0x19b4   :  { %12784 = vmatprep.mubr.msk.f32.mxu1 %vm14723_vm0, %v17840_v22 }
0x19b6   :  { %v4318_v57 = vpop.f32.mrb[120].mxu0 }
0x19b7   :  { %v12769_v24 = vpop.f32.mrb[121].mxu0  ;;  %12785 = vmatmul.mubr.msk.f32.vlgmr.msra.gmra.mrb[126].mxu1 %vm357_vm2, %v15745_v32  ;;  %v4319_v20 = vadd.f32 %v14663_v5, %v4318_v57 }
0x19b8   :  { %12787 = vmatprep.mubr.msk.f32.mxu1 %vm14723_vm0, %v17840_v22  ;;  %v14666_v24 = vld [vmem:[%s17804_s10 + $0x2] ss:$0 sm:$0xff] }
0x19ba   :  { %v4323_v6 = vpop.f32.mrb[122].mxu0 }
0x19bb   :  { %v4324_v9 = vadd.f32 %v14663_v5, %v4323_v6  ;;  %v12772_v54 = vpop.f32.mrb[123].mxu0  ;;  %12788 = vmatmul.mubr.msk.f32.gmra.mrb[128].mxu1 %vm357_vm2, %v15753_v27 }
0x19bc   :  { %12790 = vmatprep.mubr.msk.f32.mxu1 %vm14723_vm0, %v17840_v22 }
0x19bd   :  { %v14059_v33 = vpack.c.bf16 %v4324_v9, %v4319_v20 }
0x19be   :  { %v4328_v21 = vpop.f32.mrb[124].mxu0 }
0x19bf   :  { %v12775_v61 = vpop.f32.mrb[125].mxu0  ;;  %12791 = vmatmul.mubr.msk.f32.gmra.mrb[130].mxu1 %vm357_vm2, %v15761_v19  ;;  %14061 = vmatpush3.bf16.xpose.msk.msra.mxu0 %vm15072_vm6, %v14059_v33  ;;  %v4329_v10 = vadd.f32 %v14663_v5, %v4328_v21 }
0x19c0   :  { %12797 = vmatprep.subr.mxu0 %v17840_v22  ;;  %12814 = vmatprep.mubr.msk.f32.mxu1 %vm14723_vm0, %v17840_v22 }
0x19c7   :  { %12798 = vmatpush3.xpose.msk.msra.mxu0 %vm684_vm5, %v4329_v10 }
0x19c8   :  { %12823 = vmatprep.subr.mxu0 %v17840_v22 }
0x1a72   :  { %v4069_v52 = vpop.f32.mrb[114].mxu1 }
0x1a73   :  { %v16111_v38 = vadd.f32 %v4158_v0, %v4069_v52  ;;  %v12724_v4 = vpop.f32.mrb[115].mxu1 }
0x1a76   :  { %v4074_v28 = vpop.f32.mrb[116].mxu1 }
0x1a77   :  { %v16113_v53 = vadd.f32 %v4163_v43, %v4074_v28  ;;  %v12727_v45 = vpop.f32.mrb[117].mxu1 }
0x1a7a   :  { %v4079_v15 = vpop.f32.mrb[118].mxu1 }
0x1a7b   :  { %v16115_v42 = vadd.f32 %v4168_v14, %v4079_v15  ;;  %v12730_v3 = vpop.f32.mrb[119].mxu1 }
0x1a7e   :  { %v4238_v18 = vpop.f32.mrb[120].mxu1 }
0x1a7f   :  { %v4239_v39 = vadd.f32 %v14664_v37, %v4238_v18  ;;  %v12752_v44 = vpop.f32.mrb[121].mxu1 }
0x1a81   :  { %12800 = vmatmul.mubr.msk.f32.vlgmr.msra.gmra.mrb[126].mxu0 %vm684_vm5, %v4239_v39 }
0x1a82   :  { %v4243_v50 = vpop.f32.mrb[122].mxu1  ;;  %12802 = vmatprep.mubr.msk.f32.mxu0 %vm14723_vm0, %v17840_v22  ;;  %12824 = vmatpush3.msra.mxu0 %v14665_v16 }
0x1a83   :  { %v4244_v59 = vadd.f32 %v14664_v37, %v4243_v50  ;;  %v12755_v0 = vpop.f32.mrb[123].mxu1  ;;  %14071 = vmatprep.subr.bf16.mxu0 %v17841_v60 }
0x1a85   :  { %12803 = vmatmul.mubr.msk.f32.gmra.mrb[128].mxu0 %vm684_vm5, %v4244_v59 }
0x1a86   :  { %v4248_v29 = vpop.f32.mrb[124].mxu1  ;;  %12805 = vmatprep.mubr.msk.f32.mxu0 %vm14723_vm0, %v17840_v22 }
0x1a87   :  { %v4249_v43 = vadd.f32 %v14664_v37, %v4248_v29  ;;  %v12758_v17 = vpop.f32.mrb[125].mxu1 }
0x1a89   :  { %12806 = vmatmul.mubr.msk.f32.gmra.mrb[130].mxu0 %vm684_vm5, %v4249_v43 }
0x1a8a   :  { %v4398_v14 = vpop.f32.mrb[126].mxu1  ;;  %12825 = vmatprep.mubr.msk.f32.mxu0 %vm14723_vm0, %v17840_v22 }
0x1a8b   :  { %v12786_v1 = vpop.f32.mrb[127].mxu1  ;;  %v4399_v6 = vadd.f32 %v14666_v24, %v4398_v14 }
0x1a8e   :  { %v4403_v57 = vpop.f32.mrb[128].mxu1 }
0x1a8f   :  { %v4404_v5 = vadd.f32 %v14666_v24, %v4403_v57  ;;  %v12789_v20 = vpop.f32.mrb[129].mxu1 }
0x1a91   :  { %v14063_v9 = vpack.c.bf16 %v4404_v5, %v4399_v6 }
0x1a92   :  { %v4408_v54 = vpop.f32.mrb[130].mxu1 }
0x1a93   :  { %v12792_v33 = vpop.f32.mrb[131].mxu1  ;;  %14064 = vmatpush3.bf16.msra.mxu1 %v14063_v9  ;;  %v4409_v21 = vadd.f32 %v14666_v24, %v4408_v54 }
0x1a94   :  { %12812 = vmatprep.subr.mxu1 %v17840_v22 }
0x1a97   :  { %12813 = vmatpush3.msk.msra.mxu1 %vm830_vm4, %v4409_v21 }
0x1a98   :  { %14065 = vmatprep.subr.bf16.mxu1 %v17841_v60 }
0x1b54   :  { %v4496_v61 = vpop.f32.mrb[126].mxu0 }
0x1b55   :  { %v4510_v10 = vmul.f32 0.35355338, %v4496_v61  ;;  %v12801_v52 = vpop.f32.mrb[127].mxu0 }
0x1b57   :  { %v4513_v4 = vsel %vm786_vm7, %v4510_v10, -inf }
0x1b58   :  { %4514 = vmax.xlane.f32.xlu0 %v4513_v4  ;;  %v4501_v28 = vpop.f32.mrb[128].mxu0 }
0x1b59   :  { %v4511_v45 = vmul.f32 0.35355338, %v4501_v28  ;;  %v12804_v15 = vpop.f32.mrb[129].mxu0 }
0x1b5b   :  { %v4516_v3 = vsel %vm786_vm7, %v4511_v45, -inf }
0x1b5c   :  { %4517 = vmax.xlane.f32.xlu1 %v4516_v3  ;;  %v4506_v18 = vpop.f32.mrb[130].mxu0 }
0x1b5d   :  { %v4512_v37 = vmul.f32 0.35355338, %v4506_v18  ;;  %v12807_v39 = vpop.f32.mrb[131].mxu0 }
0x1b5f   :  { %v4519_v44 = vsel %vm793_vm8, %v4512_v37, -inf }
0x1b60   :  { %4520 = vmax.xlane.f32.xlu0 %v4519_v44 }
0x1be5   :  { %v4515_v50 = vpop.xlane.xlu0 %4514 }
0x1be6   :  { %v4522_v16 = vsub.f32 %v4510_v10, %v4515_v50 }
0x1be8   :  { %v4525_v59 = vmul.f32 1.442695, %v4522_v16 }
0x1be9   :  { %v4518_v0 = vpop.xlane.xlu1 %4517 }
0x1bea   :  { %14480 = vpow2.f32 %v4525_v59  ;;  %v4523_v29 = vsub.f32 %v4511_v45, %v4518_v0  ;;  %v14667_v59 = vld [vmem:[%s17804_s10 + $0x3] ss:$0 sm:$0xff] }
0x1bec   :  { %v4527_v43 = vmul.f32 1.442695, %v4523_v29 }
0x1bed   :  { %v4521_v17 = vpop.xlane.xlu0 %4520 }
0x1bee   :  { %14482 = vpow2.f32 %v4527_v43  ;;  %v4524_v14 = vsub.f32 %v4512_v37, %v4521_v17 }
0x1bf0   :  { %v4529_v1 = vmul.f32 1.442695, %v4524_v14 }
0x1bf2   :  { %14484 = vpow2.f32 %v4529_v1 }
0x1bf4   :  { %v14481_v57 = vpop.eup %14480 }
0x1bf5   :  { %v4531_v24 = vsel %vm786_vm7, %v14481_v57, 0.0 }
0x1bf6   :  { %4532 = vadd.xlane.f32.xlu1 %v4531_v24 }
0x1bf8   :  { %v14483_v6 = vpop.eup %14482 }
0x1bf9   :  { %v4534_v5 = vsel %vm786_vm7, %v14483_v6, 0.0 }
0x1bfa   :  { %4535 = vadd.xlane.f32.xlu0 %v4534_v5 }
0x1bfc   :  { %v14485_v20 = vpop.eup %14484 }
0x1bfd   :  { %v4537_v9 = vsel %vm793_vm8, %v14485_v20, 0.0 }
0x1bfe   :  { %4538 = vadd.xlane.f32.xlu1 %v4537_v9 }
0x1c83   :  { %v4533_v54 = vpop.xlane.xlu1 %4532 }
0x1c84   :  { %14486 = vrcp.f32 %v4533_v54 }
0x1c87   :  { %v4536_v33 = vpop.xlane.xlu0 %4535 }
0x1c88   :  { %14488 = vrcp.f32 %v4536_v33 }
0x1c8b   :  { %v4539_v21 = vpop.xlane.xlu1 %4538 }
0x1c8c   :  { %14490 = vrcp.f32 %v4539_v21 }
0x1c8e   :  { %v14487_v61 = vpop.eup %14486 }
0x1c8f   :  { %v4543_v10 = vmul.f32 %v14487_v61, %v14481_v57 }
0x1c91   :  { %12815 = vmatmul.mubr.msk.f32.vlgmr.msra.gmra.mrb[132].mxu1 %vm786_vm7, %v4543_v10 }
0x1c92   :  { %v14489_v52 = vpop.eup %14488  ;;  %12817 = vmatprep.mubr.msk.f32.mxu1 %vm14723_vm0, %v17840_v22  ;;  %14067 = vmatpush3.bf16.msra.mxu1 %v15433_v30 }
0x1c93   :  { %v4544_v4 = vmul.f32 %v14489_v52, %v14483_v6  ;;  %14068 = vmatprep.subr.bf16.mxu1 %v17841_v60  ;;  %v14668_v52 = vld [vmem:[%s17802_s8 + $0x3] ss:$0 sm:$0xff] }
0x1c95   :  { %12818 = vmatmul.mubr.msk.f32.gmra.mrb[134].mxu1 %vm786_vm7, %v4544_v4 }
0x1c96   :  { %v14491_v28 = vpop.eup %14490  ;;  %12820 = vmatprep.mubr.msk.f32.mxu1 %vm14723_vm0, %v17840_v22  ;;  %14070 = vmatpush3.bf16.msra.mxu1 %v15445_v41 }
0x1c97   :  { %v4545_v45 = vmul.f32 %v14491_v28, %v14485_v20  ;;  %14077 = vmatprep.subr.bf16.mxu1 %v17841_v60 }
0x1c99   :  { %12821 = vmatmul.mubr.msk.f32.gmra.mrb[136].mxu1 %vm786_vm7, %v4545_v45 }
0x1c9a   :  { %12842 = vmatprep.mubr.msk.f32.mxu1 %vm14723_vm0, %v17840_v22 }
0x1c9d   :  { %12843 = vmatmul.mubr.msk.f32.vlgmr.msra.gmra.mrb[138].mxu1 %vm357_vm2, %v15745_v32 }
0x1c9e   :  { %12845 = vmatprep.mubr.msk.f32.mxu1 %vm14723_vm0, %v17840_v22  ;;  %14079 = vmatpush3.bf16.msra.mxu1 %v15462_v55 }
0x1c9f   :  { %14080 = vmatprep.subr.bf16.mxu1 %v17841_v60 }
0x1ca1   :  { %12846 = vmatmul.mubr.msk.f32.gmra.mrb[140].mxu1 %vm357_vm2, %v15753_v27 }
0x1ca2   :  { %12848 = vmatprep.mubr.msk.f32.mxu1 %vm14723_vm0, %v17840_v22  ;;  %14082 = vmatpush3.bf16.msra.mxu1 %v15475_v63 }
0x1ca3   :  { %14087 = vmatprep.subr.bf16.mxu1 %v17841_v60 }
0x1ca5   :  { %12849 = vmatmul.mubr.msk.f32.gmra.mrb[142].mxu1 %vm357_vm2, %v15761_v19 }
0x1ca6   :  { %12876 = vmatprep.mubr.msk.f32.mxu1 %vm14723_vm0, %v17840_v22 }
0x1ca9   :  { %12877 = vmatmul.mubr.msk.f32.vlgmr.msra.gmra.mrb[144].mxu1 %vm357_vm2, %v15745_v32 }
0x1caa   :  { %12879 = vmatprep.mubr.msk.f32.mxu1 %vm14723_vm0, %v17840_v22 }
0x1cad   :  { %12880 = vmatmul.mubr.msk.f32.gmra.mrb[146].mxu1 %vm357_vm2, %v15753_v27 }
0x1cae   :  { %12882 = vmatprep.mubr.msk.f32.mxu1 %vm14723_vm0, %v17840_v22 }
0x1cb1   :  { %12883 = vmatmul.mubr.msk.f32.gmra.mrb[148].mxu1 %vm357_vm2, %v15761_v19 }
0x1cb2   :  { %12906 = vmatprep.mubr.msk.f32.mxu1 %vm14723_vm0, %v17840_v22 }
0x1d64   :  { %v4624_v30 = vpop.f32.mrb[132].mxu1 }
0x1d65   :  { %v12816_v41 = vpop.f32.mrb[133].mxu1  ;;  %12826 = vmatmul.mubr.msk.f32.vlgmr.msra.gmra.mrb[132].mxu0 %vm684_vm5, %v4624_v30 }
0x1d66   :  { %12828 = vmatprep.mubr.msk.f32.mxu0 %vm14723_vm0, %v17840_v22  ;;  %14073 = vmatpush3.bf16.msra.mxu0 %v15506_v7  ;;  %v14669_v41 = vld [vmem:[%s17800_s6 + $0x3] ss:$0 sm:$0xff] }
0x1d67   :  { %14074 = vmatprep.subr.bf16.mxu0 %v17841_v60 }
0x1d68   :  { %v4629_v55 = vpop.f32.mrb[134].mxu1 }
0x1d69   :  { %v12819_v63 = vpop.f32.mrb[135].mxu1  ;;  %12829 = vmatmul.mubr.msk.f32.gmra.mrb[134].mxu0 %vm684_vm5, %v4629_v55 }
0x1d6a   :  { %12831 = vmatprep.mubr.msk.f32.mxu0 %vm14723_vm0, %v17840_v22  ;;  %14076 = vmatpush3.bf16.msra.mxu0 %v15518_v13  ;;  %v14670_v63 = vld [vmem:[%s17805_s11 + $0x18] sm:$0xff] }
0x1d6b   :  { %14083 = vmatprep.subr.bf16.mxu0 %v17841_v60 }
0x1d6c   :  { %v4634_v15 = vpop.f32.mrb[136].mxu1 }
0x1d6d   :  { %v12822_v3 = vpop.f32.mrb[137].mxu1  ;;  %12832 = vmatmul.mubr.msk.f32.gmra.mrb[136].mxu0 %vm684_vm5, %v4634_v15 }
0x1d6e   :  { %12859 = vmatprep.mubr.msk.f32.mxu0 %vm14723_vm0, %v17840_v22 }
0x1d70   :  { %v4796_v7 = vpop.f32.mrb[138].mxu1 }
0x1d71   :  { %v12844_v18 = vpop.f32.mrb[139].mxu1  ;;  %12860 = vmatmul.mubr.msk.f32.vlgmr.msra.gmra.mrb[138].mxu0 %vm357_vm2, %v15745_v32  ;;  %v4797_v55 = vadd.f32 %v14669_v41, %v4796_v7 }
0x1d72   :  { %12862 = vmatprep.mubr.msk.f32.mxu0 %vm14723_vm0, %v17840_v22 }
0x1d74   :  { %v4801_v37 = vpop.f32.mrb[140].mxu1 }
0x1d75   :  { %v12847_v39 = vpop.f32.mrb[141].mxu1  ;;  %12863 = vmatmul.mubr.msk.f32.gmra.mrb[140].mxu0 %vm357_vm2, %v15753_v27  ;;  %v4802_v15 = vadd.f32 %v14669_v41, %v4801_v37 }
0x1d76   :  { %12865 = vmatprep.mubr.msk.f32.mxu0 %vm14723_vm0, %v17840_v22 }
0x1d78   :  { %v4806_v13 = vpop.f32.mrb[142].mxu1 }
0x1d79   :  { %v12850_v44 = vpop.f32.mrb[143].mxu1  ;;  %12866 = vmatmul.mubr.msk.f32.gmra.mrb[142].mxu0 %vm357_vm2, %v15761_v19  ;;  %v4807_v3 = vadd.f32 %v14669_v41, %v4806_v13 }
0x1d7a   :  { %12891 = vmatprep.mubr.msk.f32.mxu0 %vm14723_vm0, %v17840_v22 }
0x1d7c   :  { %v4956_v32 = vpop.f32.mrb[144].mxu1 }
0x1d7d   :  { %v12878_v50 = vpop.f32.mrb[145].mxu1  ;;  %v4957_v0 = vadd.f32 %v14667_v59, %v4956_v32 }
0x1d80   :  { %v4961_v16 = vpop.f32.mrb[146].mxu1 }
0x1d81   :  { %v4962_v27 = vadd.f32 %v14667_v59, %v4961_v16  ;;  %v12881_v29 = vpop.f32.mrb[147].mxu1 }
0x1d83   :  { %v14088_v43 = vpack.c.bf16 %v4962_v27, %v4957_v0 }
0x1d84   :  { %v4966_v17 = vpop.f32.mrb[148].mxu1 }
0x1d85   :  { %v12884_v14 = vpop.f32.mrb[149].mxu1  ;;  %14089 = vmatpush3.bf16.msra.mxu1 %v14088_v43  ;;  %v4967_v19 = vadd.f32 %v14667_v59, %v4966_v17 }
0x1d86   :  { %12904 = vmatprep.subr.mxu1 %v17840_v22 }
0x1d89   :  { %12905 = vmatpush3.msk.msra.mxu1 %vm830_vm4, %v4967_v19 }
0x1d8a   :  { %14090 = vmatprep.subr.bf16.mxu1 %v17841_v60 }
0x1e38   :  { %v4713_v1 = vpop.f32.mrb[132].mxu0 }
0x1e39   :  { %v16218_v57 = vadd.f32 %v4713_v1, %v16111_v38  ;;  %v12827_v24 = vpop.f32.mrb[133].mxu0 }
0x1e3c   :  { %v4718_v6 = vpop.f32.mrb[134].mxu0 }
0x1e3d   :  { %v16221_v5 = vadd.f32 %v4718_v6, %v16113_v53  ;;  %v12830_v20 = vpop.f32.mrb[135].mxu0 }
0x1e40   :  { %v4723_v9 = vpop.f32.mrb[136].mxu0 }
0x1e41   :  { %v16224_v54 = vadd.f32 %v4723_v9, %v16115_v42  ;;  %v12833_v33 = vpop.f32.mrb[137].mxu0 }
0x1e44   :  { %v4876_v21 = vpop.f32.mrb[138].mxu0 }
0x1e45   :  { %v12861_v61 = vpop.f32.mrb[139].mxu0  ;;  %v4877_v38 = vadd.f32 %v14668_v52, %v4876_v21 }
0x1e48   :  { %v4881_v10 = vpop.f32.mrb[140].mxu0 }
0x1e49   :  { %v4882_v4 = vadd.f32 %v14668_v52, %v4881_v10  ;;  %v12864_v28 = vpop.f32.mrb[141].mxu0 }
0x1e4b   :  { %v14084_v45 = vpack.c.bf16 %v4882_v4, %v4877_v38 }
0x1e4c   :  { %v4886_v30 = vpop.f32.mrb[142].mxu0 }
0x1e4d   :  { %v12867_v53 = vpop.f32.mrb[143].mxu0  ;;  %14086 = vmatpush3.bf16.xpose.msk.msra.mxu0 %vm15072_vm6, %v14084_v45  ;;  %v4887_v42 = vadd.f32 %v14668_v52, %v4886_v30 }
0x1e4e   :  { %12889 = vmatprep.subr.mxu0 %v17840_v22 }
0x1e55   :  { %12890 = vmatpush3.xpose.msk.msra.mxu0 %vm684_vm5, %v4887_v42 }
0x1e56   :  { %12915 = vmatprep.subr.mxu0 %v17840_v22 }
0x1e58   :  { %12892 = vmatmul.mubr.msk.f32.vlgmr.msra.gmra.mrb[144].mxu0 %vm684_vm5, %v4797_v55 }
0x1e59   :  { %12894 = vmatprep.mubr.msk.f32.mxu0 %vm14723_vm0, %v17840_v22  ;;  %12916 = vmatpush3.msra.mxu0 %v14670_v63 }
0x1e5a   :  { %14096 = vmatprep.subr.bf16.mxu0 %v17841_v60 }
0x1e5c   :  { %12895 = vmatmul.mubr.msk.f32.gmra.mrb[146].mxu0 %vm684_vm5, %v4802_v15 }
0x1e5d   :  { %12897 = vmatprep.mubr.msk.f32.mxu0 %vm14723_vm0, %v17840_v22 }
0x1e60   :  { %12898 = vmatmul.mubr.msk.f32.gmra.mrb[148].mxu0 %vm684_vm5, %v4807_v3 }
0x1e61   :  { %12917 = vmatprep.mubr.msk.f32.mxu0 %vm14723_vm0, %v17840_v22 }
0x1f2b   :  { %v5054_v7 = vpop.f32.mrb[144].mxu0 }
0x1f2c   :  { %v5068_v18 = vmul.f32 0.35355338, %v5054_v7  ;;  %v12893_v39 = vpop.f32.mrb[145].mxu0 }
0x1f2e   :  { %v5071_v44 = vsel %vm786_vm7, %v5068_v18, -inf }
0x1f2f   :  { %5072 = vmax.xlane.f32.xlu0 %v5071_v44  ;;  %v5059_v37 = vpop.f32.mrb[146].mxu0 }
0x1f30   :  { %v5069_v32 = vmul.f32 0.35355338, %v5059_v37  ;;  %v12896_v50 = vpop.f32.mrb[147].mxu0 }
0x1f32   :  { %v5074_v16 = vsel %vm786_vm7, %v5069_v32, -inf }
0x1f33   :  { %5075 = vmax.xlane.f32.xlu1 %v5074_v16  ;;  %v5064_v59 = vpop.f32.mrb[148].mxu0 }
0x1f34   :  { %v5070_v0 = vmul.f32 0.35355338, %v5064_v59  ;;  %v12899_v13 = vpop.f32.mrb[149].mxu0 }
0x1f36   :  { %v5077_v27 = vsel %vm793_vm8, %v5070_v0, -inf }
0x1f37   :  { %5078 = vmax.xlane.f32.xlu0 %v5077_v27 }
0x1fbc   :  { %v5073_v29 = vpop.xlane.xlu0 %5072 }
0x1fbd   :  { %v5080_v43 = vsub.f32 %v5068_v18, %v5073_v29 }
0x1fbf   :  { %v5083_v17 = vmul.f32 1.442695, %v5080_v43 }
0x1fc0   :  { %v5076_v14 = vpop.xlane.xlu1 %5075 }
0x1fc1   :  { %14492 = vpow2.f32 %v5083_v17  ;;  %v5081_v19 = vsub.f32 %v5069_v32, %v5076_v14 }
0x1fc3   :  { %v5085_v1 = vmul.f32 1.442695, %v5081_v19 }
0x1fc4   :  { %v5079_v24 = vpop.xlane.xlu0 %5078 }
0x1fc5   :  { %14494 = vpow2.f32 %v5085_v1  ;;  %v5082_v6 = vsub.f32 %v5070_v0, %v5079_v24 }
0x1fc7   :  { %v5087_v20 = vmul.f32 1.442695, %v5082_v6 }
0x1fc9   :  { %14496 = vpow2.f32 %v5087_v20 }
0x1fcb   :  { %v14493_v9 = vpop.eup %14492 }
0x1fcc   :  { %v5089_v33 = vsel %vm786_vm7, %v14493_v9, 0.0 }
0x1fcd   :  { %5090 = vadd.xlane.f32.xlu1 %v5089_v33 }
0x1fcf   :  { %v14495_v21 = vpop.eup %14494 }
0x1fd0   :  { %v5092_v61 = vsel %vm786_vm7, %v14495_v21, 0.0 }
0x1fd1   :  { %5093 = vadd.xlane.f32.xlu0 %v5092_v61 }
0x1fd3   :  { %v14497_v10 = vpop.eup %14496 }
0x1fd4   :  { %v5095_v52 = vsel %vm793_vm8, %v14497_v10, 0.0 }
0x1fd5   :  { %5096 = vadd.xlane.f32.xlu1 %v5095_v52 }
0x205a   :  { %v5091_v38 = vpop.xlane.xlu1 %5090 }
0x205b   :  { %14498 = vrcp.f32 %v5091_v38 }
0x205e   :  { %v5094_v4 = vpop.xlane.xlu0 %5093 }
0x205f   :  { %14500 = vrcp.f32 %v5094_v4 }
0x2062   :  { %v5097_v28 = vpop.xlane.xlu1 %5096 }
0x2063   :  { %14502 = vrcp.f32 %v5097_v28 }
0x2065   :  { %v14499_v45 = vpop.eup %14498 }
0x2066   :  { %v5101_v30 = vmul.f32 %v14499_v45, %v14493_v9 }
0x2068   :  { %12907 = vmatmul.mubr.msk.f32.vlgmr.msra.gmra.mrb[150].mxu1 %vm786_vm7, %v5101_v30 }
0x2069   :  { %v14501_v53 = vpop.eup %14500  ;;  %12909 = vmatprep.mubr.msk.f32.mxu1 %vm14723_vm0, %v17840_v22  ;;  %14092 = vmatpush3.bf16.msra.mxu1 %v15691_v8 }
0x206a   :  { %v5102_v42 = vmul.f32 %v14501_v53, %v14495_v21  ;;  %14093 = vmatprep.subr.bf16.mxu1 %v17841_v60 }
0x206c   :  { %12910 = vmatmul.mubr.msk.f32.gmra.mrb[152].mxu1 %vm786_vm7, %v5102_v42 }
0x206d   :  { %v14503_v41 = vpop.eup %14502  ;;  %12912 = vmatprep.mubr.msk.f32.mxu1 %vm14723_vm0, %v17840_v22  ;;  %14095 = vmatpush3.bf16.msra.mxu1 %v15701_v11 }
0x206e   :  { %v5103_v55 = vmul.f32 %v14503_v41, %v14497_v10  ;;  %14120 = vmatprep.subr.bf16.mxu1 %v17841_v60 }
0x2070   :  { %12913 = vmatmul.mubr.msk.f32.gmra.mrb[154].mxu1 %vm786_vm7, %v5103_v55 }
0x2071   :  { %12934 = vmatprep.mubr.msk.f32.mxu1 %vm14723_vm0, %v17840_v22 }
0x213b   :  { %v5182_v8 = vpop.f32.mrb[150].mxu1 }
0x213c   :  { %v12908_v63 = vpop.f32.mrb[151].mxu1  ;;  %12918 = vmatmul.mubr.msk.f32.vlgmr.msra.gmra.mrb[150].mxu0 %vm684_vm5, %v5182_v8 }
0x213d   :  { %12920 = vmatprep.mubr.msk.f32.mxu0 %vm14723_vm0, %v17840_v22  ;;  %14098 = vmatpush3.bf16.msra.mxu0 %v15711_v23 }
0x213e   :  { %14099 = vmatprep.subr.bf16.mxu0 %v17841_v60 }
0x213f   :  { %v5187_v11 = vpop.f32.mrb[152].mxu1 }
0x2140   :  { %v12911_v15 = vpop.f32.mrb[153].mxu1  ;;  %12921 = vmatmul.mubr.msk.f32.gmra.mrb[152].mxu0 %vm684_vm5, %v5187_v11 }
0x2141   :  { %12923 = vmatprep.mubr.msk.f32.mxu0 %vm14723_vm0, %v17840_v22  ;;  %14101 = vmatpush3.bf16.msra.mxu0 %v15786_v34 }
0x2142   :  { %14102 = vmatprep.subr.bf16.mxu0 %v17841_v60 }
0x2143   :  { %v5192_v3 = vpop.f32.mrb[154].mxu1 }
0x2144   :  { %v12914_v7 = vpop.f32.mrb[155].mxu1  ;;  %12924 = vmatmul.mubr.msk.f32.gmra.mrb[154].mxu0 %vm684_vm5, %v5192_v3 }
0x2145   :  { %14104 = vmatpush3.bf16.msra.mxu0 %v15796_v35  ;;  %12975 = vmatprep.mubr.msk.f32.mxu0 %vm14723_vm0, %v17840_v22 }
0x2146   :  { %14105 = vmatprep.subr.bf16.mxu0 %v17841_v60 }
0x2149   :  { %14107 = vmatpush3.bf16.msra.mxu0 %v15806_v48  ;;  %v10978_v48 = vld [vmem:[%s17812_s18] ss:$0 sm:$0xff] }
0x214a   :  { %14108 = vmatprep.subr.bf16.mxu0 %v17841_v60  ;;  %v2992_v44 = vadd.f32 %v10978_v48, %v15927_v12  ;;  %v3002_v0 = vadd.f32 %v10978_v48, %v15931_v58 }
0x214c   :  { %v16313_v59 = vadd.f32 %v2992_v44, %v15609_v62 }
0x214d   :  { %14110 = vmatpush3.bf16.msra.mxu0 %v15816_v40 }
0x214e   :  { %14111 = vmatprep.subr.bf16.mxu0 %v17841_v60  ;;  %v5645_v62 = vsel %vm357_vm2, %v16313_v59, 0.0 }
0x2151   :  { %14113 = vmatpush3.bf16.msra.mxu0 %v15826_v36 }
0x2152   :  { %14114 = vmatprep.subr.bf16.mxu0 %v17841_v60 }
0x2155   :  { %14116 = vmatpush3.bf16.msra.mxu0 %v15836_v46  ;;  %v14671_v46 = vld [vmem:[%s17806_s12] ss:$0 sm:$0xff] }
0x2156   :  { %14117 = vmatprep.subr.bf16.mxu0 %v17841_v60 }
0x2159   :  { %14119 = vmatpush3.bf16.msra.mxu0 %v15846_v51 }
0x215a   :  { %14132 = vmatprep.subr.bf16.mxu0 %v17841_v60 }
0x220f   :  { %v5271_v23 = vpop.f32.mrb[150].mxu0 }
0x2210   :  { %v5285_v34 = vadd.f32 %v5271_v23, %v16218_v57  ;;  %v12919_v35 = vpop.f32.mrb[151].mxu0 }
0x2212   :  { %v5288_v40 = vadd.f32 %v5285_v34, %v15622_v47 }
0x2213   :  { %v5276_v36 = vpop.f32.mrb[152].mxu0 }
0x2214   :  { %v16302_v18 = vadd.f32 %v14671_v46, %v5288_v40  ;;  %v5286_v51 = vadd.f32 %v5276_v36, %v16221_v5  ;;  %v12922_v39 = vpop.f32.mrb[153].mxu0  ;;  %v2997_v5 = vadd.f32 %v10978_v48, %v15929_v25 }
0x2216   :  { %v5289_v57 = vadd.f32 %v5286_v51, %v15633_v56  ;;  %v5294_v37 = vsel %vm357_vm2, %v16302_v18, 0.0  ;;  %v16323_v27 = vadd.f32 %v2997_v5, %v15615_v26 }
0x2217   :  { %5295 = vadd.xlane.f32.xlu0 %v5294_v37  ;;  %v5281_v32 = vpop.f32.mrb[154].mxu0 }
0x2218   :  { %v16309_v47 = vadd.f32 %v14671_v46, %v5289_v57  ;;  %v5287_v50 = vadd.f32 %v5281_v32, %v16224_v54  ;;  %v12925_v16 = vpop.f32.mrb[155].mxu0  ;;  %v16326_v54 = vadd.f32 %v3002_v0, %v15627_v49  ;;  %v5648_v58 = vsel %vm357_vm2, %v16323_v27, 0.0 }
0x221a   :  { %v5290_v12 = vadd.f32 %v5287_v50, %v15639_v31  ;;  %v5297_v56 = vsel %vm357_vm2, %v16309_v47, 0.0  ;;  %v5651_v31 = vsel %vm364_vm3, %v16326_v54, 0.0 }
0x221b   :  { %5298 = vadd.xlane.f32.xlu1 %v5297_v56  ;;  %v11074_v56 = vld [vmem:[%s17835_s4 + $0x80] sm:$0xff] }
0x221c   :  { %v16320_v13 = vadd.f32 %v14671_v46, %v5290_v12 }
0x221e   :  { %v5300_v25 = vsel %vm364_vm3, %v16320_v13, 0.0 }
0x221f   :  { %5646 = vadd.xlane.f32.xlu1 %v5645_v62  ;;  %5301 = vadd.xlane.f32.xlu0 %v5300_v25  ;;  %v11075_v62 = vld [vmem:[%s17835_s4 + $0x88] sm:$0xff]  ;;  %v14672_v25 = vld [vmem:[%s17807_s13] ss:$0 sm:$0xff] }
0x2223   :  { %5652 = vadd.xlane.f32.xlu1 %v5651_v31  ;;  %5649 = vadd.xlane.f32.xlu0 %v5648_v58 }
0x22a4   :  { %v5296_v26 = vpop.xlane.xlu0 %5295 }
0x22a5   :  { %v5303_v29 = vmul.f32 0.03125, %v5296_v26  ;;  %v16377_v26 = vpack.c.bf16 %v11075_v62, %v11074_v56 }
0x22a7   :  { %v5306_v49 = vsub.f32 %v16302_v18, %v5303_v29  ;;  %v14673_v29 = vld [vmem:[%s17808_s14] ss:$0 sm:$0xff] }
0x22a8   :  { %v5299_v43 = vpop.xlane.xlu1 %5298 }
0x22a9   :  { %v5304_v17 = vmul.f32 0.03125, %v5299_v43  ;;  %v5309_v14 = vmul.f32 %v5306_v49, %v5306_v49 }
0x22ab   :  { %v16338_v19 = vsub.f32 %v16309_v47, %v5304_v17  ;;  %v5312_v1 = vsel %vm357_vm2, %v5309_v14, 0.0  ;;  %v11076_v17 = vld [vmem:[%s17835_s4 + $0x90] sm:$0xff]  ;;  %v11077_v14 = vld [vmem:[%s17835_s4 + $0x98] sm:$0xff] }
0x22ac   :  { %v5647_v24 = vpop.xlane.xlu1 %5646  ;;  %5313 = vadd.xlane.f32.xlu0 %v5312_v1  ;;  %v5302_v6 = vpop.xlane.xlu0 %5301 }
0x22ad   :  { %v5654_v20 = vmul.f32 0.03125, %v5647_v24  ;;  %v5305_v9 = vmul.f32 0.03125, %v5302_v6  ;;  %v5310_v33 = vmul.f32 %v16338_v19, %v16338_v19  ;;  %v16393_v6 = vpack.c.bf16 %v11077_v14, %v11076_v17 }
0x22af   :  { %v16344_v21 = vsub.f32 %v16313_v59, %v5654_v20  ;;  %v16347_v61 = vsub.f32 %v16320_v13, %v5305_v9  ;;  %v5315_v10 = vsel %vm357_vm2, %v5310_v33, 0.0 }
0x22b0   :  { %5316 = vadd.xlane.f32.xlu1 %v5315_v10  ;;  %v5653_v52 = vpop.xlane.xlu1 %5652  ;;  %v5650_v38 = vpop.xlane.xlu0 %5649  ;;  %v11161_v10 = vld [vmem:[%s17836_s2 + $0x1] ss:$0 sm:$0xff] }
0x22b1   :  { %v5656_v4 = vmul.f32 0.03125, %v5653_v52  ;;  %v5655_v28 = vmul.f32 0.03125, %v5650_v38  ;;  %v5660_v45 = vmul.f32 %v16344_v21, %v16344_v21  ;;  %v5311_v30 = vmul.f32 %v16347_v61, %v16347_v61 }
0x22b3   :  { %v16355_v53 = vsub.f32 %v16326_v54, %v5656_v4  ;;  %v16358_v42 = vsub.f32 %v16323_v27, %v5655_v28  ;;  %v5663_v41 = vsel %vm357_vm2, %v5660_v45, 0.0  ;;  %v5318_v55 = vsel %vm364_vm3, %v5311_v30, 0.0  ;;  %v11091_v45 = vld [vmem:[%s17801_s7 + $0x88] sm:$0xff] }
0x22b4   :  { %5664 = vadd.xlane.f32.xlu1 %v5663_v41  ;;  %5319 = vadd.xlane.f32.xlu0 %v5318_v55  ;;  %v11162_v41 = vld [vmem:[%s17837_s30 + $0x1] ss:$0 sm:$0xff] }
0x22b5   :  { %v5662_v8 = vmul.f32 %v16355_v53, %v16355_v53  ;;  %v5661_v63 = vmul.f32 %v16358_v42, %v16358_v42 }
0x22b7   :  { %v5669_v11 = vsel %vm364_vm3, %v5662_v8, 0.0  ;;  %v5666_v15 = vsel %vm357_vm2, %v5661_v63, 0.0 }
0x22b8   :  { %5670 = vadd.xlane.f32.xlu1 %v5669_v11  ;;  %5667 = vadd.xlane.f32.xlu0 %v5666_v15  ;;  %v11092_v11 = vld [vmem:[%s17801_s7 + $0x90] sm:$0xff]  ;;  %v11093_v15 = vld [vmem:[%s17801_s7 + $0x98] sm:$0xff] }
0x2339   :  { %v5314_v3 = vpop.xlane.xlu0 %5313 }
0x233a   :  { %v5321_v7 = vmul.f32 0.03125, %v5314_v3  ;;  %v16435_v3 = vpack.c.bf16 %v11093_v15, %v11092_v11 }
0x233c   :  { %v5324_v23 = vadd.f32 1e-05, %v5321_v7 }
0x233d   :  { %v5317_v34 = vpop.xlane.xlu1 %5316 }
0x233e   :  { %14504 = vrsqrt.f32 %v5324_v23  ;;  %v5322_v35 = vmul.f32 0.03125, %v5317_v34 }
0x2340   :  { %v5325_v48 = vadd.f32 1e-05, %v5322_v35  ;;  %v14674_v35 = vld [vmem:[%s17810_s16] ss:$0 sm:$0xff] }
0x2341   :  { %v5665_v40 = vpop.xlane.xlu1 %5664  ;;  %v5320_v36 = vpop.xlane.xlu0 %5319 }
0x2342   :  { %14506 = vrsqrt.f32 %v5325_v48  ;;  %v5672_v46 = vmul.f32 0.03125, %v5665_v40  ;;  %v5323_v51 = vmul.f32 0.03125, %v5320_v36 }
0x2344   :  { %v5675_v39 = vadd.f32 1e-05, %v5672_v46  ;;  %v5326_v44 = vadd.f32 1e-05, %v5323_v51 }
0x2345   :  { %v5671_v57 = vpop.xlane.xlu1 %5670  ;;  %v5668_v37 = vpop.xlane.xlu0 %5667 }
0x2346   :  { %14508 = vrsqrt.f32 %v5675_v39  ;;  %v5674_v32 = vmul.f32 0.03125, %v5671_v57  ;;  %v5673_v50 = vmul.f32 0.03125, %v5668_v37 }
0x2347   :  { %14510 = vrsqrt.f32 %v5326_v44 }
0x2348   :  { %v14505_v16 = vpop.eup %14504  ;;  %v5676_v5 = vadd.f32 1e-05, %v5673_v50  ;;  %v5677_v12 = vadd.f32 1e-05, %v5674_v32 }
0x2349   :  { %v5330_v0 = vmul.f32 %v14505_v16, %v5306_v49 }
0x234a   :  { %14512 = vrsqrt.f32 %v5676_v5 }
0x234b   :  { %v5333_v31 = vmul.f32 %v14672_v25, %v5330_v0  ;;  %14514 = vrsqrt.f32 %v5677_v12 }
0x234c   :  { %v14507_v58 = vpop.eup %14506 }
0x234d   :  { %v5336_v49 = vadd.f32 %v14673_v29, %v5333_v31  ;;  %v5331_v43 = vmul.f32 %v14507_v58, %v16338_v19 }
0x234f   :  { %12935 = vmatmul.mubr.msk.f32.vlgmr.msra.gmra.mrb[156].mxu1 %vm357_vm2, %v5336_v49  ;;  %v5334_v1 = vmul.f32 %v14672_v25, %v5331_v43 }
0x2350   :  { %v14509_v24 = vpop.eup %14508  ;;  %12937 = vmatprep.mubr.msk.f32.mxu1 %vm14723_vm0, %v17840_v22  ;;  %14122 = vmatpush3.bf16.msra.mxu1 %v16377_v26 }
0x2351   :  { %v14511_v19 = vpop.eup %14510  ;;  %v5337_v20 = vadd.f32 %v14673_v29, %v5334_v1  ;;  %14123 = vmatprep.subr.bf16.mxu1 %v17841_v60  ;;  %v5681_v9 = vmul.f32 %v14509_v24, %v16344_v21 }
0x2352   :  { %v5332_v33 = vmul.f32 %v14511_v19, %v16347_v61  ;;  %v11090_v61 = vld [vmem:[%s17801_s7 + $0x80] sm:$0xff] }
0x2353   :  { %12938 = vmatmul.mubr.msk.f32.gmra.mrb[158].mxu1 %vm357_vm2, %v5337_v20  ;;  %v5690_v4 = vmul.f32 %v11161_v10, %v5681_v9  ;;  %v11106_v9 = vld [vmem:[%s17803_s9 + $0x80] sm:$0xff] }
0x2354   :  { %12940 = vmatprep.mubr.msk.f32.mxu1 %vm14723_vm0, %v17840_v22  ;;  %v5335_v52 = vmul.f32 %v14672_v25, %v5332_v33  ;;  %14125 = vmatpush3.bf16.msra.mxu1 %v16393_v6  ;;  %v14513_v38 = vpop.eup %14512  ;;  %v11107_v33 = vld [vmem:[%s17803_s9 + $0x88] sm:$0xff] }
0x2355   :  { %14126 = vmatprep.subr.bf16.mxu1 %v17841_v60  ;;  %v5682_v21 = vmul.f32 %v14513_v38, %v16358_v42  ;;  %v14515_v30 = vpop.eup %14514  ;;  %v16419_v42 = vpack.c.bf16 %v11091_v45, %v11090_v61  ;;  %v16421_v55 = vadd.f32 %v11162_v41, %v5690_v4  ;;  %v11108_v45 = vld [vmem:[%s17803_s9 + $0x90] sm:$0xff] }
0x2356   :  { %v5338_v28 = vadd.f32 %v14673_v29, %v5335_v52  ;;  %v5683_v8 = vmul.f32 %v14515_v30, %v16355_v53  ;;  %v11109_v30 = vld [vmem:[%s17803_s9 + $0x98] sm:$0xff] }
0x2357   :  { %v5691_v63 = vmul.f32 %v11161_v10, %v5682_v21  ;;  %v16477_v21 = vpack.c.bf16 %v11107_v33, %v11106_v9 }
0x2358   :  { %12941 = vmatmul.mubr.msk.f32.gmra.mrb[160].mxu1 %vm357_vm2, %v5338_v28  ;;  %v5692_v53 = vmul.f32 %v11161_v10, %v5683_v8  ;;  %v11167_v8 = vld [vmem:[%s17802_s8 + $0x4] ss:$0 sm:$0xff] }
0x2359   :  { %12992 = vmatprep.mubr.msk.f32.mxu1 %vm14723_vm0, %v17840_v22  ;;  %v16437_v7 = vadd.f32 %v11162_v41, %v5691_v63 }
0x235a   :  { %v16445_v23 = vadd.f32 %v11162_v41, %v5692_v53  ;;  %v16491_v53 = vpack.c.bf16 %v11109_v30, %v11108_v45 }
0x235c   :  { %12993 = vmatmul.mubr.msk.f32.vlgmr.msra.gmra.mrb[162].mxu1 %vm357_vm2, %v16421_v55 }
0x235d   :  { %12995 = vmatprep.mubr.msk.f32.mxu1 %vm14723_vm0, %v17840_v22  ;;  %14128 = vmatpush3.bf16.msra.mxu1 %v16419_v42 }
0x235e   :  { %14129 = vmatprep.subr.bf16.mxu1 %v17841_v60 }
0x2360   :  { %12996 = vmatmul.mubr.msk.f32.gmra.mrb[164].mxu1 %vm357_vm2, %v16437_v7 }
0x2361   :  { %12998 = vmatprep.mubr.msk.f32.mxu1 %vm14723_vm0, %v17840_v22  ;;  %14131 = vmatpush3.bf16.msra.mxu1 %v16435_v3 }
0x2362   :  { %14138 = vmatprep.subr.bf16.mxu1 %v17841_v60 }
0x2364   :  { %12999 = vmatmul.mubr.msk.f32.gmra.mrb[166].mxu1 %vm357_vm2, %v16445_v23 }
0x2365   :  { %13009 = vmatprep.mubr.msk.f32.mxu1 %vm14723_vm0, %v17840_v22 }
0x2368   :  { %13010 = vmatmul.mubr.msk.f32.vlgmr.msra.gmra.mrb[168].mxu1 %vm357_vm2, %v16421_v55 }
0x2369   :  { %13012 = vmatprep.mubr.msk.f32.mxu1 %vm14723_vm0, %v17840_v22 }
0x236c   :  { %13013 = vmatmul.mubr.msk.f32.gmra.mrb[170].mxu1 %vm357_vm2, %v16437_v7 }
0x236d   :  { %13015 = vmatprep.mubr.msk.f32.mxu1 %vm14723_vm0, %v17840_v22 }
0x2370   :  { %13016 = vmatmul.mubr.msk.f32.gmra.mrb[172].mxu1 %vm357_vm2, %v16445_v23 }
0x2371   :  { %13041 = vmatprep.mubr.msk.f32.mxu1 %vm14723_vm0, %v17840_v22 }
0x2422   :  { %v5414_v34 = vpop.f32.mrb[156].mxu1 }
0x2423   :  { %v5415_v48 = vadd.f32 %v14674_v35, %v5414_v34  ;;  %v12936_v40 = vpop.f32.mrb[157].mxu1 }
0x2425   :  { %v5431_v36 = vmul.f32 0.044715, %v5415_v48  ;;  %v5428_v52 = vmul.f32 0.5, %v5415_v48 }
0x2426   :  { %v5419_v46 = vpop.f32.mrb[158].mxu1 }
0x2427   :  { %v5434_v51 = vmul.f32 %v5431_v36, %v5415_v48  ;;  %v5420_v39 = vadd.f32 %v14674_v35, %v5419_v46  ;;  %v12939_v44 = vpop.f32.mrb[159].mxu1 }
0x2429   :  { %v5437_v57 = vmul.f32 %v5434_v51, %v5415_v48  ;;  %v5432_v37 = vmul.f32 0.044715, %v5420_v39  ;;  %v5429_v63 = vmul.f32 0.5, %v5420_v39 }
0x242b   :  { %v5440_v32 = vadd.f32 %v5437_v57, %v5415_v48  ;;  %v5435_v50 = vmul.f32 %v5432_v37, %v5420_v39  ;;  %v5424_v16 = vpop.f32.mrb[160].mxu1 }
0x242c   :  { %v5425_v5 = vadd.f32 %v14674_v35, %v5424_v16  ;;  %v12942_v0 = vpop.f32.mrb[161].mxu1  ;;  %v11078_v16 = vld [vmem:[%s17835_s4 + $0xa0] sm:$0xff] }
0x242d   :  { %v5443_v12 = vmul.f32 0.7978846, %v5440_v32  ;;  %v5438_v56 = vmul.f32 %v5435_v50, %v5420_v39  ;;  %v11163_v32 = vld [vmem:[%s17800_s6 + $0x4] ss:$0 sm:$0xff] }
0x242e   :  { %v5433_v62 = vmul.f32 0.044715, %v5425_v5 }
0x242f   :  { %14516 = vtanh.f32 %v5443_v12  ;;  %v5783_v25 = vpop.f32.mrb[162].mxu1  ;;  %v5441_v31 = vadd.f32 %v5438_v56, %v5420_v39  ;;  %v5430_v39 = vmul.f32 0.5, %v5425_v5  ;;  %v11080_v56 = vld [vmem:[%s17835_s4 + $0xb0] sm:$0xff] }
0x2430   :  { %v5436_v58 = vmul.f32 %v5433_v62, %v5425_v5  ;;  %v12994_v29 = vpop.f32.mrb[163].mxu1  ;;  %v5784_v0 = vadd.f32 %v11163_v32, %v5783_v25  ;;  %v11081_v62 = vld [vmem:[%s17835_s4 + $0xb8] sm:$0xff] }
0x2431   :  { %v5444_v49 = vmul.f32 0.7978846, %v5441_v31  ;;  %v16535_v31 = vpack.c.bf16 %v11081_v62, %v11080_v56  ;;  %v11110_v29 = vld [vmem:[%s17803_s9 + $0xa0] sm:$0xff] }
0x2432   :  { %v5439_v43 = vmul.f32 %v5436_v58, %v5425_v5 }
0x2433   :  { %v16467_v17 = vpop.f32.mrb[164].mxu1  ;;  %14518 = vtanh.f32 %v5444_v49  ;;  %v11111_v49 = vld [vmem:[%s17803_s9 + $0xa8] sm:$0xff] }
0x2434   :  { %v12997_v14 = vpop.f32.mrb[165].mxu1  ;;  %v5442_v1 = vadd.f32 %v5439_v43, %v5425_v5  ;;  %v11079_v5 = vld [vmem:[%s17835_s4 + $0xa8] sm:$0xff]  ;;  %v5789_v25 = vadd.f32 %v11163_v32, %v16467_v17  ;;  %v16557_v43 = vpack.c.bf16 %v11111_v49, %v11110_v29  ;;  %v11112_v17 = vld [vmem:[%s17803_s9 + $0xb0] sm:$0xff] }
0x2435   :  { %v16518_v12 = vpack.c.bf16 %v11079_v5, %v11078_v16  ;;  %v11113_v14 = vld [vmem:[%s17803_s9 + $0xb8] sm:$0xff] }
0x2436   :  { %v5445_v24 = vmul.f32 0.7978846, %v5442_v1  ;;  %v16570_v1 = vpack.c.bf16 %v11113_v14, %v11112_v17 }
0x2437   :  { %v16469_v19 = vpop.f32.mrb[166].mxu1 }
0x2438   :  { %v13000_v20 = vpop.f32.mrb[167].mxu1  ;;  %14520 = vtanh.f32 %v5445_v24  ;;  %v5794_v58 = vadd.f32 %v11163_v32, %v16469_v19 }
0x2439   :  { %v14517_v10 = vpop.eup %14516 }
0x243a   :  { %v5449_v38 = vadd.f32 1.0, %v14517_v10 }
0x243b   :  { %v5869_v4 = vpop.f32.mrb[168].mxu1 }
0x243c   :  { %v13011_v28 = vpop.f32.mrb[169].mxu1  ;;  %v5452_v61 = vmul.f32 %v5449_v38, %v5428_v52  ;;  %v5870_v34 = vadd.f32 %v11167_v8, %v5869_v4  ;;  %v11171_v4 = vld [vmem:[%s17804_s10 + $0x4] ss:$0 sm:$0xff] }
0x243d   :  { %v14519_v41 = vpop.eup %14518 }
0x243e   :  { %12976 = vmatmul.mubr.f32.vlgmr.msra.gmra.mrb[156].mxu0 %v5452_v61  ;;  %v5450_v11 = vadd.f32 1.0, %v14519_v41 }
0x243f   :  { %v5874_v15 = vpop.f32.mrb[170].mxu1  ;;  %12978 = vmatprep.mubr.msk.f32.mxu0 %vm14723_vm0, %v17840_v22  ;;  %14134 = vmatpush3.bf16.msra.mxu0 %v16477_v21 }
0x2440   :  { %v5875_v35 = vadd.f32 %v11167_v8, %v5874_v15  ;;  %v13014_v48 = vpop.f32.mrb[171].mxu1  ;;  %v5453_v40 = vmul.f32 %v5450_v11, %v5429_v63  ;;  %14135 = vmatprep.subr.bf16.mxu0 %v17841_v60 }
0x2442   :  { %v14521_v36 = vpop.eup %14520  ;;  %v14139_v46 = vpack.c.bf16 %v5875_v35, %v5870_v34  ;;  %12979 = vmatmul.mubr.f32.gmra.mrb[158].mxu0 %v5453_v40 }
0x2443   :  { %v5879_v51 = vpop.f32.mrb[172].mxu1  ;;  %12981 = vmatprep.mubr.msk.f32.mxu0 %vm14723_vm0, %v17840_v22  ;;  %v5451_v44 = vadd.f32 1.0, %v14521_v36  ;;  %14137 = vmatpush3.bf16.msra.mxu0 %v16491_v53 }
0x2444   :  { %v13017_v57 = vpop.f32.mrb[173].mxu1  ;;  %14141 = vmatpush3.bf16.xpose.msk.msra.mxu1 %vm15072_vm6, %v14139_v46  ;;  %14142 = vmatprep.subr.bf16.mxu0 %v17841_v60  ;;  %v5880_v50 = vadd.f32 %v11167_v8, %v5879_v51 }
0x2445   :  { %v5454_v37 = vmul.f32 %v5451_v44, %v5430_v39  ;;  %13039 = vmatprep.subr.mxu1 %v17840_v22 }
0x2447   :  { %12982 = vmatmul.mubr.f32.gmra.mrb[160].mxu0 %v5454_v37 }
0x2448   :  { %13026 = vmatprep.mubr.msk.f32.mxu0 %vm14723_vm0, %v17840_v22 }
0x244b   :  { %13027 = vmatmul.mubr.msk.f32.vlgmr.msra.gmra.mrb[162].mxu0 %vm357_vm2, %v16421_v55 }
0x244c   :  { %13040 = vmatpush3.xpose.msk.msra.mxu1 %vm684_vm5, %v5880_v50  ;;  %13029 = vmatprep.mubr.msk.f32.mxu0 %vm14723_vm0, %v17840_v22 }
0x244d   :  { %14145 = vmatprep.subr.bf16.mxu1 %v17841_v60 }
0x244f   :  { %13030 = vmatmul.mubr.msk.f32.gmra.mrb[164].mxu0 %vm357_vm2, %v16437_v7  ;;  %13042 = vmatmul.mubr.msk.f32.vlgmr.msra.gmra.mrb[174].mxu1 %vm684_vm5, %v5784_v0 }
0x2450   :  { %13032 = vmatprep.mubr.msk.f32.mxu0 %vm14723_vm0, %v17840_v22  ;;  %13044 = vmatprep.mubr.msk.f32.mxu1 %vm14723_vm0, %v17840_v22 }
0x2451   :  { %14147 = vmatpush3.bf16.msra.mxu1 %v16518_v12 }
0x2452   :  { %14148 = vmatprep.subr.bf16.mxu1 %v17841_v60 }
0x2453   :  { %13033 = vmatmul.mubr.msk.f32.gmra.mrb[166].mxu0 %vm357_vm2, %v16445_v23  ;;  %13045 = vmatmul.mubr.msk.f32.gmra.mrb[176].mxu1 %vm684_vm5, %v5789_v25 }
0x2454   :  { %13047 = vmatprep.mubr.msk.f32.mxu1 %vm14723_vm0, %v17840_v22  ;;  %13056 = vmatprep.mubr.msk.f32.mxu0 %vm14723_vm0, %v17840_v22 }
0x2455   :  { %14150 = vmatpush3.bf16.msra.mxu1 %v16535_v31 }
0x2456   :  { %14157 = vmatprep.subr.bf16.mxu1 %v17841_v60 }
0x2457   :  { %13048 = vmatmul.mubr.msk.f32.gmra.mrb[178].mxu1 %vm684_vm5, %v5794_v58  ;;  %v11193_v58 = vld [vmem:[%s17804_s10 + $0x5] ss:$0 sm:$0xff] }
0x2458   :  { %13073 = vmatprep.mubr.msk.f32.mxu1 %vm14723_vm0, %v17840_v22 }
0x245b   :  { %13074 = vmatmul.mubr.msk.f32.vlgmr.msra.gmra.mrb[180].mxu1 %vm357_vm2, %v16421_v55 }
0x245c   :  { %13076 = vmatprep.mubr.msk.f32.mxu1 %vm14723_vm0, %v17840_v22  ;;  %14159 = vmatpush3.bf16.msra.mxu1 %v16557_v43 }
0x245d   :  { %14160 = vmatprep.subr.bf16.mxu1 %v17841_v60 }
0x245f   :  { %13077 = vmatmul.mubr.msk.f32.gmra.mrb[182].mxu1 %vm357_vm2, %v16437_v7 }
0x2460   :  { %13079 = vmatprep.mubr.msk.f32.mxu1 %vm14723_vm0, %v17840_v22  ;;  %14162 = vmatpush3.bf16.msra.mxu1 %v16570_v1 }
0x2461   :  { %14167 = vmatprep.subr.bf16.mxu1 %v17841_v60 }
0x2463   :  { %13080 = vmatmul.mubr.msk.f32.gmra.mrb[184].mxu1 %vm357_vm2, %v16445_v23 }
0x2464   :  { %13107 = vmatprep.mubr.msk.f32.mxu1 %vm14723_vm0, %v17840_v22 }
0x2467   :  { %13108 = vmatmul.mubr.msk.f32.vlgmr.msra.gmra.mrb[186].mxu1 %vm357_vm2, %v16421_v55 }
0x2468   :  { %13110 = vmatprep.mubr.msk.f32.mxu1 %vm14723_vm0, %v17840_v22 }
0x246b   :  { %13111 = vmatmul.mubr.msk.f32.gmra.mrb[188].mxu1 %vm357_vm2, %v16437_v7 }
0x246c   :  { %13113 = vmatprep.mubr.msk.f32.mxu1 %vm14723_vm0, %v17840_v22 }
0x246f   :  { %13114 = vmatmul.mubr.msk.f32.gmra.mrb[190].mxu1 %vm357_vm2, %v16445_v23 }
0x2470   :  { %13137 = vmatprep.mubr.msk.f32.mxu1 %vm14723_vm0, %v17840_v22 }
0x2511   :  { %v16595_v24 = vpop.f32.mrb[156].mxu0 }
0x2512   :  { %v12977_v19 = vpop.f32.mrb[157].mxu0 }
0x2515   :  { %v16597_v20 = vpop.f32.mrb[158].mxu0 }
0x2516   :  { %v12980_v9 = vpop.f32.mrb[159].mxu0 }
0x251a   :  { %v16599_v33 = vpop.f32.mrb[160].mxu0 }
0x251b   :  { %v12983_v10 = vpop.f32.mrb[161].mxu0 }
0x251e   :  { %v5955_v52 = vpop.f32.mrb[162].mxu0 }
0x251f   :  { %v13028_v38 = vpop.f32.mrb[163].mxu0  ;;  %v5956_v45 = vadd.f32 %v11171_v4, %v5955_v52 }
0x2522   :  { %v5960_v28 = vpop.f32.mrb[164].mxu0  ;;  %v6053_v61 = vpop.f32.mrb[174].mxu1 }
0x2523   :  { %v5961_v30 = vadd.f32 %v11171_v4, %v5960_v28  ;;  %v6067_v41 = vmul.f32 0.35355338, %v6053_v61  ;;  %v13031_v8 = vpop.f32.mrb[165].mxu0  ;;  %v13043_v63 = vpop.f32.mrb[175].mxu1 }
0x2525   :  { %v14143_v11 = vpack.c.bf16 %v5961_v30, %v5956_v45  ;;  %v6070_v15 = vsel %vm786_vm7, %v6067_v41, -inf }
0x2526   :  { %6071 = vmax.xlane.f32.xlu0 %v6070_v15  ;;  %v5965_v34 = vpop.f32.mrb[166].mxu0  ;;  %v6058_v35 = vpop.f32.mrb[176].mxu1 }
0x2527   :  { %v6068_v48 = vmul.f32 0.35355338, %v6058_v35  ;;  %v13034_v40 = vpop.f32.mrb[167].mxu0  ;;  %v13046_v36 = vpop.f32.mrb[177].mxu1  ;;  %14144 = vmatpush3.bf16.msra.mxu0 %v14143_v11  ;;  %v5966_v46 = vadd.f32 %v11171_v4, %v5965_v34 }
0x2528   :  { %13054 = vmatprep.subr.mxu0 %v17840_v22 }
0x2529   :  { %v6073_v51 = vsel %vm786_vm7, %v6068_v48, -inf }
0x252a   :  { %6074 = vmax.xlane.f32.xlu1 %v6073_v51  ;;  %v6063_v39 = vpop.f32.mrb[178].mxu1 }
0x252b   :  { %v6069_v44 = vmul.f32 0.35355338, %v6063_v39  ;;  %v13049_v57 = vpop.f32.mrb[179].mxu1  ;;  %13055 = vmatpush3.msk.msra.mxu0 %vm830_vm4, %v5966_v46  ;;  %v11094_v39 = vld [vmem:[%s17801_s7 + $0xa0] sm:$0xff] }
0x252c   :  { %14151 = vmatprep.subr.bf16.mxu0 %v17841_v60 }
0x252d   :  { %v6076_v37 = vsel %vm793_vm8, %v6069_v44, -inf }
0x252e   :  { %6077 = vmax.xlane.f32.xlu0 %v6076_v37  ;;  %v16610_v32 = vpop.f32.mrb[180].mxu1 }
0x252f   :  { %v13075_v50 = vpop.f32.mrb[181].mxu1 }
0x2532   :  { %v16612_v16 = vpop.f32.mrb[182].mxu1 }
0x2533   :  { %v13078_v5 = vpop.f32.mrb[183].mxu1 }
0x2534   :  { %v11096_v5 = vld [vmem:[%s17801_s7 + $0xb0] sm:$0xff] }
0x2536   :  { %v16614_v0 = vpop.f32.mrb[184].mxu1 }
0x2537   :  { %v13081_v56 = vpop.f32.mrb[185].mxu1 }
0x2538   :  { %v11097_v56 = vld [vmem:[%s17801_s7 + $0xb8] sm:$0xff] }
0x253a   :  { %v6439_v62 = vpop.f32.mrb[186].mxu1 }
0x253b   :  { %v13109_v25 = vpop.f32.mrb[187].mxu1  ;;  %v6440_v49 = vadd.f32 %v11193_v58, %v6439_v62 }
0x253c   :  { %v16643_v25 = vpack.c.bf16 %v11097_v56, %v11096_v5 }
0x253e   :  { %v6444_v29 = vpop.f32.mrb[188].mxu1 }
0x253f   :  { %v6445_v17 = vadd.f32 %v11193_v58, %v6444_v29  ;;  %v13112_v14 = vpop.f32.mrb[189].mxu1 }
0x2541   :  { %v14168_v19 = vpack.c.bf16 %v6445_v17, %v6440_v49 }
0x2542   :  { %v6449_v9 = vpop.f32.mrb[190].mxu1 }
0x2543   :  { %v13115_v10 = vpop.f32.mrb[191].mxu1  ;;  %14169 = vmatpush3.bf16.msra.mxu1 %v14168_v19  ;;  %v6450_v52 = vadd.f32 %v11193_v58, %v6449_v9 }
0x2544   :  { %13135 = vmatprep.subr.mxu1 %v17840_v22 }
0x2547   :  { %13136 = vmatpush3.msk.msra.mxu1 %vm830_vm4, %v6450_v52 }
0x2548   :  { %13157 = vmatprep.subr.mxu1 %v17840_v22 }
0x25b3   :  { %v6072_v38 = vpop.xlane.xlu0 %6071 }
0x25b4   :  { %v6079_v4 = vsub.f32 %v6067_v41, %v6072_v38 }
0x25b6   :  { %v6082_v28 = vmul.f32 1.442695, %v6079_v4 }
0x25b7   :  { %v6075_v61 = vpop.xlane.xlu1 %6074 }
0x25b8   :  { %14522 = vpow2.f32 %v6082_v28  ;;  %v6080_v45 = vsub.f32 %v6068_v48, %v6075_v61  ;;  %v11189_v28 = vld [vmem:[%s17802_s8 + $0x5] ss:$0 sm:$0xff] }
0x25ba   :  { %v6084_v30 = vmul.f32 1.442695, %v6080_v45 }
0x25bb   :  { %v6078_v8 = vpop.xlane.xlu0 %6077 }
0x25bc   :  { %14524 = vpow2.f32 %v6084_v30  ;;  %v6081_v63 = vsub.f32 %v6069_v44, %v6078_v8  ;;  %v11095_v44 = vld [vmem:[%s17801_s7 + $0xa8] sm:$0xff] }
0x25bd   :  { %v16631_v37 = vpack.c.bf16 %v11095_v44, %v11094_v39 }
0x25be   :  { %v6086_v11 = vmul.f32 1.442695, %v6081_v63 }
0x25c0   :  { %14526 = vpow2.f32 %v6086_v11 }
0x25c2   :  { %v14523_v15 = vpop.eup %14522 }
0x25c3   :  { %v6088_v34 = vsel %vm786_vm7, %v14523_v15, 0.0 }
0x25c4   :  { %6089 = vadd.xlane.f32.xlu1 %v6088_v34  ;;  %v11185_v34 = vld [vmem:[%s17800_s6 + $0x5] ss:$0 sm:$0xff] }
0x25c6   :  { %v14525_v35 = vpop.eup %14524 }
0x25c7   :  { %v6091_v40 = vsel %vm786_vm7, %v14525_v35, 0.0 }
0x25c8   :  { %6092 = vadd.xlane.f32.xlu0 %v6091_v40  ;;  %v6268_v40 = vadd.f32 %v11185_v34, %v16610_v32 }
0x25ca   :  { %v14527_v36 = vpop.eup %14526 }
0x25cb   :  { %v6094_v41 = vsel %vm793_vm8, %v14527_v36, 0.0 }
0x25cc   :  { %6095 = vadd.xlane.f32.xlu1 %v6094_v41  ;;  %v6278_v41 = vadd.f32 %v11185_v34, %v16614_v0 }
0x2651   :  { %v6090_v46 = vpop.xlane.xlu1 %6089 }
0x2652   :  { %14528 = vrcp.f32 %v6090_v46 }
0x2655   :  { %v6093_v48 = vpop.xlane.xlu0 %6092 }
0x2656   :  { %14530 = vrcp.f32 %v6093_v48 }
0x2659   :  { %v6096_v51 = vpop.xlane.xlu1 %6095 }
0x265a   :  { %14532 = vrcp.f32 %v6096_v51 }
0x265c   :  { %v14529_v57 = vpop.eup %14528 }
0x265d   :  { %v6100_v50 = vmul.f32 %v14529_v57, %v14523_v15 }
0x265f   :  { %13057 = vmatmul.mubr.msk.f32.vlgmr.msra.gmra.mrb[168].mxu0 %vm786_vm7, %v6100_v50 }
0x2660   :  { %v14531_v62 = vpop.eup %14530  ;;  %13059 = vmatprep.mubr.msk.f32.mxu0 %vm14723_vm0, %v17840_v22  ;;  %14153 = vmatpush3.bf16.msra.mxu0 %v16631_v37 }
0x2661   :  { %v6101_v58 = vmul.f32 %v14531_v62, %v14525_v35  ;;  %14154 = vmatprep.subr.bf16.mxu0 %v17841_v60 }
0x2663   :  { %13060 = vmatmul.mubr.msk.f32.gmra.mrb[170].mxu0 %vm786_vm7, %v6101_v58 }
0x2664   :  { %v14533_v29 = vpop.eup %14532  ;;  %13062 = vmatprep.mubr.msk.f32.mxu0 %vm14723_vm0, %v17840_v22  ;;  %14156 = vmatpush3.bf16.msra.mxu0 %v16643_v25 }
0x2665   :  { %v6102_v49 = vmul.f32 %v14533_v29, %v14527_v36  ;;  %14163 = vmatprep.subr.bf16.mxu0 %v17841_v60  ;;  %v6273_v36 = vadd.f32 %v11185_v34, %v16612_v16 }
0x2667   :  { %13063 = vmatmul.mubr.msk.f32.gmra.mrb[172].mxu0 %vm786_vm7, %v6102_v49 }
0x2668   :  { %13090 = vmatprep.mubr.msk.f32.mxu0 %vm14723_vm0, %v17840_v22 }
0x266b   :  { %13091 = vmatmul.mubr.msk.f32.vlgmr.msra.gmra.mrb[174].mxu0 %vm357_vm2, %v16421_v55 }
0x266c   :  { %13093 = vmatprep.mubr.msk.f32.mxu0 %vm14723_vm0, %v17840_v22 }
0x266f   :  { %13094 = vmatmul.mubr.msk.f32.gmra.mrb[176].mxu0 %vm357_vm2, %v16437_v7 }
0x2670   :  { %13096 = vmatprep.mubr.msk.f32.mxu0 %vm14723_vm0, %v17840_v22 }
0x2673   :  { %13097 = vmatmul.mubr.msk.f32.gmra.mrb[178].mxu0 %vm357_vm2, %v16445_v23 }
0x2674   :  { %13122 = vmatprep.mubr.msk.f32.mxu0 %vm14723_vm0, %v17840_v22 }
0x2732   :  { %v16666_v17 = vpop.f32.mrb[168].mxu0 }
0x2733   :  { %v13058_v14 = vpop.f32.mrb[169].mxu0 }
0x2736   :  { %v16668_v19 = vpop.f32.mrb[170].mxu0 }
0x2737   :  { %v13061_v9 = vpop.f32.mrb[171].mxu0 }
0x273a   :  { %v16670_v10 = vpop.f32.mrb[172].mxu0 }
0x273b   :  { %v13064_v52 = vpop.f32.mrb[173].mxu0 }
0x273e   :  { %v6353_v38 = vpop.f32.mrb[174].mxu0 }
0x273f   :  { %v13092_v4 = vpop.f32.mrb[175].mxu0  ;;  %v6354_v45 = vadd.f32 %v11189_v28, %v6353_v38 }
0x2742   :  { %v6358_v61 = vpop.f32.mrb[176].mxu0 }
0x2743   :  { %v6359_v30 = vadd.f32 %v11189_v28, %v6358_v61  ;;  %v13095_v8 = vpop.f32.mrb[177].mxu0 }
0x2745   :  { %v14164_v63 = vpack.c.bf16 %v6359_v30, %v6354_v45 }
0x2746   :  { %v6363_v11 = vpop.f32.mrb[178].mxu0 }
0x2747   :  { %v13098_v15 = vpop.f32.mrb[179].mxu0  ;;  %14166 = vmatpush3.bf16.xpose.msk.msra.mxu0 %vm15072_vm6, %v14164_v63  ;;  %v6364_v35 = vadd.f32 %v11189_v28, %v6363_v11  ;;  %v11135_v11 = vld [vmem:[%s17805_s11 + $0x28] sm:$0xff] }
0x2748   :  { %13120 = vmatprep.subr.mxu0 %v17840_v22 }
0x274f   :  { %13121 = vmatpush3.xpose.msk.msra.mxu0 %vm684_vm5, %v6364_v35 }
0x2750   :  { %13146 = vmatprep.subr.mxu0 %v17840_v22 }
0x2752   :  { %13123 = vmatmul.mubr.msk.f32.vlgmr.msra.gmra.mrb[180].mxu0 %vm684_vm5, %v6268_v40 }
0x2753   :  { %13125 = vmatprep.mubr.msk.f32.mxu0 %vm14723_vm0, %v17840_v22  ;;  %13147 = vmatpush3.msra.mxu0 %v11135_v11 }
0x2754   :  { %14170 = vmatprep.subr.bf16.mxu0 %v17841_v60 }
0x2756   :  { %13126 = vmatmul.mubr.msk.f32.gmra.mrb[182].mxu0 %vm684_vm5, %v6273_v36 }
0x2757   :  { %13128 = vmatprep.mubr.msk.f32.mxu0 %vm14723_vm0, %v17840_v22 }
0x275a   :  { %13129 = vmatmul.mubr.msk.f32.gmra.mrb[184].mxu0 %vm684_vm5, %v6278_v41  ;;  %v11134_v41 = vld [vmem:[%s17805_s11 + $0x20] sm:$0xff] }
0x275b   :  { %13148 = vmatprep.mubr.msk.f32.mxu0 %vm14723_vm0, %v17840_v22 }
0x2825   :  { %v6537_v32 = vpop.f32.mrb[180].mxu0 }
0x2826   :  { %v6551_v46 = vmul.f32 0.35355338, %v6537_v32  ;;  %v13124_v48 = vpop.f32.mrb[181].mxu0 }
0x2828   :  { %v6554_v51 = vsel %vm786_vm7, %v6551_v46, -inf }
0x2829   :  { %6555 = vmax.xlane.f32.xlu0 %v6554_v51  ;;  %v6542_v39 = vpop.f32.mrb[182].mxu0 }
0x282a   :  { %v6552_v16 = vmul.f32 0.35355338, %v6542_v39  ;;  %v13127_v44 = vpop.f32.mrb[183].mxu0  ;;  %v11098_v39 = vld [vmem:[%s17801_s7 + $0xc0] sm:$0xff] }
0x282c   :  { %v6557_v57 = vsel %vm786_vm7, %v6552_v16, -inf }
0x282d   :  { %6558 = vmax.xlane.f32.xlu1 %v6557_v57  ;;  %v6547_v50 = vpop.f32.mrb[184].mxu0  ;;  %v11100_v57 = vld [vmem:[%s17801_s7 + $0xd0] sm:$0xff] }
0x282e   :  { %v6553_v5 = vmul.f32 0.35355338, %v6547_v50  ;;  %v13130_v0 = vpop.f32.mrb[185].mxu0  ;;  %v11101_v50 = vld [vmem:[%s17801_s7 + $0xd8] sm:$0xff] }
0x282f   :  { %v11084_v0 = vld [vmem:[%s17835_s4 + $0xd0] sm:$0xff] }
0x2830   :  { %v6560_v56 = vsel %vm793_vm8, %v6553_v5, -inf }
0x2831   :  { %6561 = vmax.xlane.f32.xlu0 %v6560_v56  ;;  %v11085_v56 = vld [vmem:[%s17835_s4 + $0xd8] sm:$0xff] }
0x28b6   :  { %v6556_v62 = vpop.xlane.xlu0 %6555 }
0x28b7   :  { %v6563_v58 = vsub.f32 %v6551_v46, %v6556_v62 }
0x28b9   :  { %v6566_v29 = vmul.f32 1.442695, %v6563_v58 }
0x28ba   :  { %v6559_v49 = vpop.xlane.xlu1 %6558 }
0x28bb   :  { %14534 = vpow2.f32 %v6566_v29  ;;  %v6564_v14 = vsub.f32 %v6552_v16, %v6559_v49  ;;  %v11099_v16 = vld [vmem:[%s17801_s7 + $0xc8] sm:$0xff]  ;;  %v16780_v29 = vpack.c.bf16 %v11085_v56, %v11084_v0 }
0x28bc   :  { %v16724_v44 = vpack.c.bf16 %v11099_v16, %v11098_v39 }
0x28bd   :  { %v6568_v9 = vmul.f32 1.442695, %v6564_v14 }
0x28be   :  { %v6562_v52 = vpop.xlane.xlu0 %6561 }
0x28bf   :  { %14536 = vpow2.f32 %v6568_v9  ;;  %v6565_v38 = vsub.f32 %v6553_v5, %v6562_v52  ;;  %v16737_v5 = vpack.c.bf16 %v11101_v50, %v11100_v57  ;;  %v11114_v9 = vld [vmem:[%s17803_s9 + $0xc0] sm:$0xff]  ;;  %v11115_v52 = vld [vmem:[%s17803_s9 + $0xc8] sm:$0xff] }
0x28c1   :  { %v6570_v4 = vmul.f32 1.442695, %v6565_v38 }
0x28c3   :  { %14538 = vpow2.f32 %v6570_v4 }
0x28c5   :  { %v14535_v28 = vpop.eup %14534 }
0x28c6   :  { %v6572_v61 = vsel %vm786_vm7, %v14535_v28, 0.0 }
0x28c7   :  { %6573 = vadd.xlane.f32.xlu1 %v6572_v61  ;;  %v11116_v61 = vld [vmem:[%s17803_s9 + $0xd0] sm:$0xff] }
0x28c9   :  { %v14537_v45 = vpop.eup %14536 }
0x28ca   :  { %v6575_v30 = vsel %vm786_vm7, %v14537_v45, 0.0 }
0x28cb   :  { %6576 = vadd.xlane.f32.xlu0 %v6575_v30 }
0x28cd   :  { %v14539_v8 = vpop.eup %14538 }
0x28ce   :  { %v6578_v63 = vsel %vm793_vm8, %v14539_v8, 0.0 }
0x28cf   :  { %6579 = vadd.xlane.f32.xlu1 %v6578_v63 }
0x2954   :  { %v6574_v15 = vpop.xlane.xlu1 %6573 }
0x2955   :  { %14540 = vrcp.f32 %v6574_v15 }
0x2958   :  { %v6577_v34 = vpop.xlane.xlu0 %6576 }
0x2959   :  { %14542 = vrcp.f32 %v6577_v34 }
0x295c   :  { %v6580_v35 = vpop.xlane.xlu1 %6579 }
0x295d   :  { %14544 = vrcp.f32 %v6580_v35 }
0x295f   :  { %v14541_v40 = vpop.eup %14540 }
0x2960   :  { %v6584_v36 = vmul.f32 %v14541_v40, %v14535_v28  ;;  %v16797_v28 = vpack.c.bf16 %v11115_v52, %v11114_v9  ;;  %v11213_v52 = vld [vmem:[%s17800_s6 + $0x6] ss:$0 sm:$0xff] }
0x2962   :  { %13138 = vmatmul.mubr.msk.f32.vlgmr.msra.gmra.mrb[192].mxu1 %vm786_vm7, %v6584_v36 }
0x2963   :  { %v14543_v32 = vpop.eup %14542  ;;  %13140 = vmatprep.mubr.msk.f32.mxu1 %vm14723_vm0, %v17840_v22  ;;  %13158 = vmatpush3.msra.mxu1 %v11134_v41  ;;  %v11217_v41 = vld [vmem:[%s17802_s8 + $0x6] ss:$0 sm:$0xff] }
0x2964   :  { %v6585_v46 = vmul.f32 %v14543_v32, %v14537_v45  ;;  %14176 = vmatprep.subr.bf16.mxu1 %v17841_v60  ;;  %v11117_v45 = vld [vmem:[%s17803_s9 + $0xd8] sm:$0xff] }
0x2965   :  { %v16810_v63 = vpack.c.bf16 %v11117_v45, %v11116_v61 }
0x2966   :  { %13141 = vmatmul.mubr.msk.f32.gmra.mrb[194].mxu1 %vm786_vm7, %v6585_v46 }
0x2967   :  { %v14545_v48 = vpop.eup %14544  ;;  %13143 = vmatprep.mubr.msk.f32.mxu1 %vm14723_vm0, %v17840_v22 }
0x2968   :  { %v6586_v51 = vmul.f32 %v14545_v48, %v14539_v8 }
0x296a   :  { %13144 = vmatmul.mubr.msk.f32.gmra.mrb[196].mxu1 %vm786_vm7, %v6586_v51 }
0x296b   :  { %13159 = vmatprep.mubr.msk.f32.mxu1 %vm14723_vm0, %v17840_v22 }
0x296e   :  { %13160 = vmatmul.mubr.msk.f32.vlgmr.msra.gmra.mrb[198].mxu1 %vm684_vm5, %v16666_v17  ;;  %v11082_v17 = vld [vmem:[%s17835_s4 + $0xc0] sm:$0xff] }
0x296f   :  { %13162 = vmatprep.mubr.msk.f32.mxu1 %vm14723_vm0, %v17840_v22  ;;  %14178 = vmatpush3.bf16.msra.mxu1 %v16724_v44 }
0x2970   :  { %14179 = vmatprep.subr.bf16.mxu1 %v17841_v60 }
0x2972   :  { %13163 = vmatmul.mubr.msk.f32.gmra.mrb[200].mxu1 %vm684_vm5, %v16668_v19  ;;  %v11083_v19 = vld [vmem:[%s17835_s4 + $0xc8] sm:$0xff] }
0x2973   :  { %13165 = vmatprep.mubr.msk.f32.mxu1 %vm14723_vm0, %v17840_v22  ;;  %14181 = vmatpush3.bf16.msra.mxu1 %v16737_v5 }
0x2974   :  { %14188 = vmatprep.subr.bf16.mxu1 %v17841_v60 }
0x2976   :  { %13166 = vmatmul.mubr.msk.f32.gmra.mrb[202].mxu1 %vm684_vm5, %v16670_v10  ;;  %v16768_v10 = vpack.c.bf16 %v11083_v19, %v11082_v17 }
0x2977   :  { %13193 = vmatprep.mubr.msk.f32.mxu1 %vm14723_vm0, %v17840_v22 }
0x297a   :  { %13194 = vmatmul.mubr.msk.f32.vlgmr.msra.gmra.mrb[204].mxu1 %vm357_vm2, %v16421_v55 }
0x297b   :  { %13196 = vmatprep.mubr.msk.f32.mxu1 %vm14723_vm0, %v17840_v22 }
0x297e   :  { %13197 = vmatmul.mubr.msk.f32.gmra.mrb[206].mxu1 %vm357_vm2, %v16437_v7 }
0x297f   :  { %13199 = vmatprep.mubr.msk.f32.mxu1 %vm14723_vm0, %v17840_v22 }
0x2982   :  { %13200 = vmatmul.mubr.msk.f32.gmra.mrb[208].mxu1 %vm357_vm2, %v16445_v23 }
0x2983   :  { %13225 = vmatprep.mubr.msk.f32.mxu1 %vm14723_vm0, %v17840_v22 }
0x2a35   :  { %v6665_v62 = vpop.f32.mrb[192].mxu1 }
0x2a36   :  { %v13139_v58 = vpop.f32.mrb[193].mxu1  ;;  %13149 = vmatmul.mubr.msk.f32.vlgmr.msra.gmra.mrb[186].mxu0 %vm684_vm5, %v6665_v62 }
0x2a37   :  { %13151 = vmatprep.mubr.msk.f32.mxu0 %vm14723_vm0, %v17840_v22  ;;  %14172 = vmatpush3.bf16.msra.mxu0 %v16768_v10 }
0x2a38   :  { %14173 = vmatprep.subr.bf16.mxu0 %v17841_v60 }
0x2a39   :  { %v6670_v49 = vpop.f32.mrb[194].mxu1 }
0x2a3a   :  { %v13142_v14 = vpop.f32.mrb[195].mxu1  ;;  %13152 = vmatmul.mubr.msk.f32.gmra.mrb[188].mxu0 %vm684_vm5, %v6670_v49 }
0x2a3b   :  { %13154 = vmatprep.mubr.msk.f32.mxu0 %vm14723_vm0, %v17840_v22  ;;  %14175 = vmatpush3.bf16.msra.mxu0 %v16780_v29 }
0x2a3c   :  { %14182 = vmatprep.subr.bf16.mxu0 %v17841_v60 }
0x2a3d   :  { %v6675_v38 = vpop.f32.mrb[196].mxu1 }
0x2a3e   :  { %v13145_v4 = vpop.f32.mrb[197].mxu1  ;;  %13155 = vmatmul.mubr.msk.f32.gmra.mrb[190].mxu0 %vm684_vm5, %v6675_v38 }
0x2a3f   :  { %13176 = vmatprep.mubr.msk.f32.mxu0 %vm14723_vm0, %v17840_v22 }
0x2a41   :  { %v6843_v30 = vpop.f32.mrb[198].mxu1 }
0x2a42   :  { %v13161_v8 = vpop.f32.mrb[199].mxu1  ;;  %13177 = vmatmul.mubr.msk.f32.vlgmr.msra.gmra.mrb[192].mxu0 %vm357_vm2, %v16421_v55 }
0x2a43   :  { %13179 = vmatprep.mubr.msk.f32.mxu0 %vm14723_vm0, %v17840_v22  ;;  %14184 = vmatpush3.bf16.msra.mxu0 %v16797_v28 }
0x2a44   :  { %14185 = vmatprep.subr.bf16.mxu0 %v17841_v60 }
0x2a45   :  { %v6848_v11 = vpop.f32.mrb[200].mxu1 }
0x2a46   :  { %v13164_v15 = vpop.f32.mrb[201].mxu1  ;;  %13180 = vmatmul.mubr.msk.f32.gmra.mrb[194].mxu0 %vm357_vm2, %v16437_v7 }
0x2a47   :  { %13182 = vmatprep.mubr.msk.f32.mxu0 %vm14723_vm0, %v17840_v22  ;;  %14187 = vmatpush3.bf16.msra.mxu0 %v16810_v63 }
0x2a48   :  { %14192 = vmatprep.subr.bf16.mxu0 %v17841_v60 }
0x2a49   :  { %v6853_v34 = vpop.f32.mrb[202].mxu1 }
0x2a4a   :  { %v13167_v35 = vpop.f32.mrb[203].mxu1  ;;  %13183 = vmatmul.mubr.msk.f32.gmra.mrb[196].mxu0 %vm357_vm2, %v16445_v23 }
0x2a4b   :  { %13210 = vmatprep.mubr.msk.f32.mxu0 %vm14723_vm0, %v17840_v22 }
0x2a4d   :  { %v7015_v40 = vpop.f32.mrb[204].mxu1 }
0x2a4e   :  { %v13195_v36 = vpop.f32.mrb[205].mxu1  ;;  %13211 = vmatmul.mubr.msk.f32.vlgmr.msra.gmra.mrb[198].mxu0 %vm357_vm2, %v16421_v55  ;;  %v7016_v46 = vadd.f32 %v11217_v41, %v7015_v40 }
0x2a4f   :  { %13213 = vmatprep.mubr.msk.f32.mxu0 %vm14723_vm0, %v17840_v22  ;;  %v11221_v36 = vld [vmem:[%s17804_s10 + $0x6] ss:$0 sm:$0xff] }
0x2a51   :  { %v7020_v32 = vpop.f32.mrb[206].mxu1 }
0x2a52   :  { %v7021_v48 = vadd.f32 %v11217_v41, %v7020_v32  ;;  %v13198_v51 = vpop.f32.mrb[207].mxu1  ;;  %13214 = vmatmul.mubr.msk.f32.gmra.mrb[200].mxu0 %vm357_vm2, %v16437_v7 }
0x2a53   :  { %13216 = vmatprep.mubr.msk.f32.mxu0 %vm14723_vm0, %v17840_v22 }
0x2a54   :  { %v14189_v39 = vpack.c.bf16 %v7021_v48, %v7016_v46 }
0x2a55   :  { %v7025_v16 = vpop.f32.mrb[208].mxu1 }
0x2a56   :  { %v13201_v57 = vpop.f32.mrb[209].mxu1  ;;  %13217 = vmatmul.mubr.msk.f32.gmra.mrb[202].mxu0 %vm357_vm2, %v16445_v23  ;;  %14191 = vmatpush3.bf16.xpose.msk.msra.mxu1 %vm15072_vm6, %v14189_v39  ;;  %v7026_v50 = vadd.f32 %v11217_v41, %v7025_v16 }
0x2a57   :  { %13223 = vmatprep.subr.mxu1 %v17840_v22  ;;  %13240 = vmatprep.mubr.msk.f32.mxu0 %vm14723_vm0, %v17840_v22 }
0x2a5e   :  { %13224 = vmatpush3.xpose.msk.msra.mxu1 %vm684_vm5, %v7026_v50 }
0x2a5f   :  { %13249 = vmatprep.subr.mxu1 %v17840_v22 }
0x2b09   :  { %v6754_v17 = vpop.f32.mrb[186].mxu0 }
0x2b0a   :  { %v16843_v19 = vadd.f32 %v6843_v30, %v6754_v17  ;;  %v13150_v0 = vpop.f32.mrb[187].mxu0 }
0x2b0d   :  { %v6759_v56 = vpop.f32.mrb[188].mxu0 }
0x2b0e   :  { %v16845_v62 = vadd.f32 %v6848_v11, %v6759_v56  ;;  %v13153_v58 = vpop.f32.mrb[189].mxu0 }
0x2b11   :  { %v6764_v49 = vpop.f32.mrb[190].mxu0 }
0x2b12   :  { %v16847_v14 = vadd.f32 %v6853_v34, %v6764_v49  ;;  %v13156_v9 = vpop.f32.mrb[191].mxu0 }
0x2b15   :  { %v6929_v38 = vpop.f32.mrb[192].mxu0 }
0x2b16   :  { %v6930_v4 = vadd.f32 %v11213_v52, %v6929_v38  ;;  %v13178_v61 = vpop.f32.mrb[193].mxu0 }
0x2b18   :  { %13226 = vmatmul.mubr.msk.f32.vlgmr.msra.gmra.mrb[210].mxu1 %vm684_vm5, %v6930_v4 }
0x2b19   :  { %v6934_v45 = vpop.f32.mrb[194].mxu0  ;;  %13228 = vmatprep.mubr.msk.f32.mxu1 %vm14723_vm0, %v17840_v22 }
0x2b1a   :  { %v6935_v30 = vadd.f32 %v11213_v52, %v6934_v45  ;;  %v13181_v8 = vpop.f32.mrb[195].mxu0 }
0x2b1c   :  { %13229 = vmatmul.mubr.msk.f32.gmra.mrb[212].mxu1 %vm684_vm5, %v6935_v30 }
0x2b1d   :  { %v6939_v11 = vpop.f32.mrb[196].mxu0  ;;  %13231 = vmatprep.mubr.msk.f32.mxu1 %vm14723_vm0, %v17840_v22 }
0x2b1e   :  { %v6940_v15 = vadd.f32 %v11213_v52, %v6939_v11  ;;  %v13184_v34 = vpop.f32.mrb[197].mxu0 }
0x2b20   :  { %13232 = vmatmul.mubr.msk.f32.gmra.mrb[214].mxu1 %vm684_vm5, %v6940_v15 }
0x2b21   :  { %v7101_v35 = vpop.f32.mrb[198].mxu0  ;;  %13251 = vmatprep.mubr.msk.f32.mxu1 %vm14723_vm0, %v17840_v22 }
0x2b22   :  { %v13212_v40 = vpop.f32.mrb[199].mxu0  ;;  %v7102_v32 = vadd.f32 %v11221_v36, %v7101_v35 }
0x2b25   :  { %v7106_v41 = vpop.f32.mrb[200].mxu0 }
0x2b26   :  { %v7107_v46 = vadd.f32 %v11221_v36, %v7106_v41  ;;  %v13215_v48 = vpop.f32.mrb[201].mxu0 }
0x2b28   :  { %v14193_v51 = vpack.c.bf16 %v7107_v46, %v7102_v32 }
0x2b29   :  { %v7111_v39 = vpop.f32.mrb[202].mxu0 }
0x2b2a   :  { %v13218_v16 = vpop.f32.mrb[203].mxu0  ;;  %14194 = vmatpush3.bf16.msra.mxu0 %v14193_v51  ;;  %v7112_v57 = vadd.f32 %v11221_v36, %v7111_v39 }
0x2b2b   :  { %13238 = vmatprep.subr.mxu0 %v17840_v22 }
0x2b2e   :  { %13239 = vmatpush3.msk.msra.mxu0 %vm830_vm4, %v7112_v57  ;;  %v11136_v57 = vld [vmem:[%s17805_s11 + $0x30] sm:$0xff] }
0x2b2f   :  { %14195 = vmatprep.subr.bf16.mxu0 %v17841_v60  ;;  %13250 = vmatpush3.msra.mxu1 %v11136_v57 }
0x2b30   :  { %14201 = vmatprep.subr.bf16.mxu1 %v17841_v60 }
0x2beb   :  { %v7199_v50 = vpop.f32.mrb[210].mxu1 }
0x2bec   :  { %v7213_v17 = vmul.f32 0.35355338, %v7199_v50  ;;  %v13227_v0 = vpop.f32.mrb[211].mxu1 }
0x2bee   :  { %v7216_v56 = vsel %vm786_vm7, %v7213_v17, -inf }
0x2bef   :  { %7217 = vmax.xlane.f32.xlu0 %v7216_v56  ;;  %v7204_v58 = vpop.f32.mrb[212].mxu1  ;;  %v11086_v56 = vld [vmem:[%s17835_s4 + $0xe0] sm:$0xff] }
0x2bf0   :  { %v7214_v49 = vmul.f32 0.35355338, %v7204_v58  ;;  %v13230_v9 = vpop.f32.mrb[213].mxu1  ;;  %v11087_v58 = vld [vmem:[%s17835_s4 + $0xe8] sm:$0xff] }
0x2bf1   :  { %v16883_v9 = vpack.c.bf16 %v11087_v58, %v11086_v56 }
0x2bf2   :  { %v7219_v52 = vsel %vm786_vm7, %v7214_v49, -inf }
0x2bf3   :  { %7220 = vmax.xlane.f32.xlu1 %v7219_v52  ;;  %v7209_v38 = vpop.f32.mrb[214].mxu1 }
0x2bf4   :  { %v7215_v4 = vmul.f32 0.35355338, %v7209_v38  ;;  %v13233_v61 = vpop.f32.mrb[215].mxu1  ;;  %v11088_v38 = vld [vmem:[%s17835_s4 + $0xf0] sm:$0xff] }
0x2bf6   :  { %v7222_v45 = vsel %vm793_vm8, %v7215_v4, -inf }
0x2bf7   :  { %7223 = vmax.xlane.f32.xlu0 %v7222_v45 }
0x2c7c   :  { %v7218_v30 = vpop.xlane.xlu0 %7217 }
0x2c7d   :  { %v7225_v8 = vsub.f32 %v7213_v17, %v7218_v30 }
0x2c7f   :  { %v7228_v11 = vmul.f32 1.442695, %v7225_v8 }
0x2c80   :  { %v7221_v15 = vpop.xlane.xlu1 %7220 }
0x2c81   :  { %14546 = vpow2.f32 %v7228_v11  ;;  %v7226_v34 = vsub.f32 %v7214_v49, %v7221_v15  ;;  %v11118_v15 = vld [vmem:[%s17803_s9 + $0xe0] sm:$0xff] }
0x2c83   :  { %v7230_v35 = vmul.f32 1.442695, %v7226_v34  ;;  %v11119_v34 = vld [vmem:[%s17803_s9 + $0xe8] sm:$0xff] }
0x2c84   :  { %v7224_v40 = vpop.xlane.xlu0 %7223 }
0x2c85   :  { %14548 = vpow2.f32 %v7230_v35  ;;  %v7227_v36 = vsub.f32 %v7215_v4, %v7224_v40  ;;  %v11089_v4 = vld [vmem:[%s17835_s4 + $0xf8] sm:$0xff]  ;;  %v16912_v35 = vpack.c.bf16 %v11119_v34, %v11118_v15  ;;  %v11120_v40 = vld [vmem:[%s17803_s9 + $0xf0] sm:$0xff] }
0x2c86   :  { %v16895_v45 = vpack.c.bf16 %v11089_v4, %v11088_v38 }
0x2c87   :  { %v7232_v41 = vmul.f32 1.442695, %v7227_v36  ;;  %v11121_v36 = vld [vmem:[%s17803_s9 + $0xf8] sm:$0xff] }
0x2c89   :  { %14550 = vpow2.f32 %v7232_v41  ;;  %v16925_v41 = vpack.c.bf16 %v11121_v36, %v11120_v40 }
0x2c8b   :  { %v14547_v32 = vpop.eup %14546 }
0x2c8c   :  { %v7234_v46 = vsel %vm786_vm7, %v14547_v32, 0.0 }
0x2c8d   :  { %7235 = vadd.xlane.f32.xlu1 %v7234_v46  ;;  %v11103_v46 = vld [vmem:[%s17801_s7 + $0xe8] sm:$0xff] }
0x2c8f   :  { %v14549_v48 = vpop.eup %14548 }
0x2c90   :  { %v7237_v51 = vsel %vm786_vm7, %v14549_v48, 0.0 }
0x2c91   :  { %7238 = vadd.xlane.f32.xlu0 %v7237_v51  ;;  %v11104_v51 = vld [vmem:[%s17801_s7 + $0xf0] sm:$0xff] }
0x2c93   :  { %v14551_v39 = vpop.eup %14550 }
0x2c94   :  { %v7240_v16 = vsel %vm793_vm8, %v14551_v39, 0.0 }
0x2c95   :  { %7241 = vadd.xlane.f32.xlu1 %v7240_v16 }
0x2d1a   :  { %v7236_v50 = vpop.xlane.xlu1 %7235 }
0x2d1b   :  { %14552 = vrcp.f32 %v7236_v50 }
0x2d1e   :  { %v7239_v17 = vpop.xlane.xlu0 %7238 }
0x2d1f   :  { %14554 = vrcp.f32 %v7239_v17 }
0x2d22   :  { %v7242_v0 = vpop.xlane.xlu1 %7241 }
0x2d23   :  { %14556 = vrcp.f32 %v7242_v0 }
0x2d25   :  { %v14553_v49 = vpop.eup %14552 }
0x2d26   :  { %v7246_v52 = vmul.f32 %v14553_v49, %v14547_v32  ;;  %v11102_v32 = vld [vmem:[%s17801_s7 + $0xe0] sm:$0xff] }
0x2d28   :  { %13241 = vmatmul.mubr.msk.f32.vlgmr.msra.gmra.mrb[204].mxu0 %vm786_vm7, %v7246_v52 }
0x2d29   :  { %v14555_v61 = vpop.eup %14554  ;;  %13243 = vmatprep.mubr.msk.f32.mxu0 %vm14723_vm0, %v17840_v22  ;;  %14197 = vmatpush3.bf16.msra.mxu0 %v16883_v9 }
0x2d2a   :  { %v7247_v30 = vmul.f32 %v14555_v61, %v14549_v48  ;;  %14198 = vmatprep.subr.bf16.mxu0 %v17841_v60  ;;  %v16956_v48 = vpack.c.bf16 %v11103_v46, %v11102_v32 }
0x2d2c   :  { %13244 = vmatmul.mubr.msk.f32.gmra.mrb[206].mxu0 %vm786_vm7, %v7247_v30 }
0x2d2d   :  { %v14557_v8 = vpop.eup %14556  ;;  %13246 = vmatprep.mubr.msk.f32.mxu0 %vm14723_vm0, %v17840_v22  ;;  %14200 = vmatpush3.bf16.msra.mxu0 %v16895_v45 }
0x2d2e   :  { %v7248_v11 = vmul.f32 %v14557_v8, %v14551_v39  ;;  %14207 = vmatprep.subr.bf16.mxu0 %v17841_v60  ;;  %v11105_v39 = vld [vmem:[%s17801_s7 + $0xf8] sm:$0xff] }
0x2d2f   :  { %v16968_v50 = vpack.c.bf16 %v11105_v39, %v11104_v51 }
0x2d30   :  { %13247 = vmatmul.mubr.msk.f32.gmra.mrb[208].mxu0 %vm786_vm7, %v7248_v11  ;;  %v11246_v11 = vld [vmem:[%s17804_s10 + $0x7] ss:$0 sm:$0xff] }
0x2d31   :  { %13268 = vmatprep.mubr.msk.f32.mxu0 %vm14723_vm0, %v17840_v22 }
0x2d34   :  { %13269 = vmatmul.mubr.msk.f32.vlgmr.msra.gmra.mrb[210].mxu0 %vm357_vm2, %v16421_v55 }
0x2d35   :  { %13271 = vmatprep.mubr.msk.f32.mxu0 %vm14723_vm0, %v17840_v22  ;;  %14209 = vmatpush3.bf16.msra.mxu0 %v16912_v35 }
0x2d36   :  { %14210 = vmatprep.subr.bf16.mxu0 %v17841_v60 }
0x2d38   :  { %13272 = vmatmul.mubr.msk.f32.gmra.mrb[212].mxu0 %vm357_vm2, %v16437_v7 }
0x2d39   :  { %13274 = vmatprep.mubr.msk.f32.mxu0 %vm14723_vm0, %v17840_v22  ;;  %14212 = vmatpush3.bf16.msra.mxu0 %v16925_v41 }
0x2d3a   :  { %14217 = vmatprep.subr.bf16.mxu0 %v17841_v60 }
0x2d3c   :  { %13275 = vmatmul.mubr.msk.f32.gmra.mrb[214].mxu0 %vm357_vm2, %v16445_v23 }
0x2d3d   :  { %13302 = vmatprep.mubr.msk.f32.mxu0 %vm14723_vm0, %v17840_v22 }
0x2d40   :  { %13303 = vmatmul.mubr.msk.f32.vlgmr.msra.gmra.mrb[216].mxu0 %vm357_vm2, %v16421_v55 }
0x2d41   :  { %13305 = vmatprep.mubr.msk.f32.mxu0 %vm14723_vm0, %v17840_v22 }
0x2d44   :  { %13306 = vmatmul.mubr.msk.f32.gmra.mrb[218].mxu0 %vm357_vm2, %v16437_v7 }
0x2d45   :  { %13308 = vmatprep.mubr.msk.f32.mxu0 %vm14723_vm0, %v17840_v22 }
0x2d48   :  { %13309 = vmatmul.mubr.msk.f32.gmra.mrb[220].mxu0 %vm357_vm2, %v16445_v23 }
0x2d49   :  { %13332 = vmatprep.mubr.msk.f32.mxu0 %vm14723_vm0, %v17840_v22 }
0x2dfb   :  { %v7327_v16 = vpop.f32.mrb[204].mxu0 }
0x2dfc   :  { %v13242_v57 = vpop.f32.mrb[205].mxu0  ;;  %13252 = vmatmul.mubr.msk.f32.vlgmr.msra.gmra.mrb[216].mxu1 %vm684_vm5, %v7327_v16 }
0x2dfd   :  { %13254 = vmatprep.mubr.msk.f32.mxu1 %vm14723_vm0, %v17840_v22  ;;  %14203 = vmatpush3.bf16.msra.mxu1 %v16956_v48 }
0x2dfe   :  { %14204 = vmatprep.subr.bf16.mxu1 %v17841_v60 }
0x2dff   :  { %v7332_v17 = vpop.f32.mrb[206].mxu0 }
0x2e00   :  { %v13245_v0 = vpop.f32.mrb[207].mxu0  ;;  %13255 = vmatmul.mubr.msk.f32.gmra.mrb[218].mxu1 %vm684_vm5, %v7332_v17 }
0x2e01   :  { %13257 = vmatprep.mubr.msk.f32.mxu1 %vm14723_vm0, %v17840_v22  ;;  %14206 = vmatpush3.bf16.msra.mxu1 %v16968_v50 }
0x2e02   :  { %14213 = vmatprep.subr.bf16.mxu1 %v17841_v60 }
0x2e03   :  { %v7337_v56 = vpop.f32.mrb[208].mxu0 }
0x2e04   :  { %v13248_v58 = vpop.f32.mrb[209].mxu0  ;;  %13258 = vmatmul.mubr.msk.f32.gmra.mrb[220].mxu1 %vm684_vm5, %v7337_v56 }
0x2e05   :  { %13285 = vmatprep.mubr.msk.f32.mxu1 %vm14723_vm0, %v17840_v22 }
0x2e07   :  { %v7505_v49 = vpop.f32.mrb[210].mxu0 }
0x2e08   :  { %v13270_v52 = vpop.f32.mrb[211].mxu0  ;;  %13286 = vmatmul.mubr.msk.f32.vlgmr.msra.gmra.mrb[222].mxu1 %vm357_vm2, %v16421_v55 }
0x2e09   :  { %13288 = vmatprep.mubr.msk.f32.mxu1 %vm14723_vm0, %v17840_v22 }
0x2e0b   :  { %v7510_v38 = vpop.f32.mrb[212].mxu0 }
0x2e0c   :  { %v13273_v4 = vpop.f32.mrb[213].mxu0  ;;  %13289 = vmatmul.mubr.msk.f32.gmra.mrb[224].mxu1 %vm357_vm2, %v16437_v7 }
0x2e0d   :  { %13291 = vmatprep.mubr.msk.f32.mxu1 %vm14723_vm0, %v17840_v22 }
0x2e0f   :  { %v7515_v61 = vpop.f32.mrb[214].mxu0 }
0x2e10   :  { %v13276_v30 = vpop.f32.mrb[215].mxu0  ;;  %13292 = vmatmul.mubr.msk.f32.gmra.mrb[226].mxu1 %vm357_vm2, %v16445_v23 }
0x2e11   :  { %13317 = vmatprep.mubr.msk.f32.mxu1 %vm14723_vm0, %v17840_v22 }
0x2e13   :  { %v7677_v55 = vpop.f32.mrb[216].mxu0 }
0x2e14   :  { %v13304_v8 = vpop.f32.mrb[217].mxu0  ;;  %v7678_v34 = vadd.f32 %v11246_v11, %v7677_v55  ;;  %v11242_v55 = vld [vmem:[%s17802_s8 + $0x7] ss:$0 sm:$0xff] }
0x2e17   :  { %v7682_v15 = vpop.f32.mrb[218].mxu0 }
0x2e18   :  { %v7683_v7 = vadd.f32 %v11246_v11, %v7682_v15  ;;  %v13307_v40 = vpop.f32.mrb[219].mxu0 }
0x2e1a   :  { %v14218_v36 = vpack.c.bf16 %v7683_v7, %v7678_v34 }
0x2e1b   :  { %v7687_v32 = vpop.f32.mrb[220].mxu0 }
0x2e1c   :  { %v13310_v46 = vpop.f32.mrb[221].mxu0  ;;  %14219 = vmatpush3.bf16.msra.mxu0 %v14218_v36  ;;  %v7688_v23 = vadd.f32 %v11246_v11, %v7687_v32 }
0x2e1d   :  { %13330 = vmatprep.subr.mxu0 %v17840_v22 }
0x2e20   :  { %13331 = vmatpush3.msk.msra.mxu0 %vm830_vm4, %v7688_v23 }
0x2e21   :  { %14220 = vmatprep.subr.bf16.mxu0 %v17841_v60 }
0x2ecf   :  { %v7416_v51 = vpop.f32.mrb[216].mxu1 }
0x2ed0   :  { %v16998_v39 = vadd.f32 %v7416_v51, %v16843_v19  ;;  %v13253_v16 = vpop.f32.mrb[217].mxu1 }
0x2ed3   :  { %v7421_v57 = vpop.f32.mrb[218].mxu1 }
0x2ed4   :  { %v17001_v17 = vadd.f32 %v7421_v57, %v16845_v62  ;;  %v13256_v0 = vpop.f32.mrb[219].mxu1 }
0x2ed7   :  { %v7426_v56 = vpop.f32.mrb[220].mxu1 }
0x2ed8   :  { %v17004_v58 = vadd.f32 %v7426_v56, %v16847_v14  ;;  %v13259_v52 = vpop.f32.mrb[221].mxu1  ;;  %v11238_v14 = vld [vmem:[%s17800_s6 + $0x7] ss:$0 sm:$0xff] }
0x2ed9   :  { %v7506_v36 = vadd.f32 %v11238_v14, %v7505_v49  ;;  %v7511_v32 = vadd.f32 %v11238_v14, %v7510_v38  ;;  %v7516_v46 = vadd.f32 %v11238_v14, %v7515_v61 }
0x2edb   :  { %v7591_v4 = vpop.f32.mrb[222].mxu1 }
0x2edc   :  { %v13287_v30 = vpop.f32.mrb[223].mxu1  ;;  %v7592_v19 = vadd.f32 %v11242_v55, %v7591_v4 }
0x2edf   :  { %v7596_v8 = vpop.f32.mrb[224].mxu1 }
0x2ee0   :  { %v7597_v11 = vadd.f32 %v11242_v55, %v7596_v8  ;;  %v13290_v15 = vpop.f32.mrb[225].mxu1 }
0x2ee2   :  { %v14214_v34 = vpack.c.bf16 %v7597_v11, %v7592_v19 }
0x2ee3   :  { %v7601_v7 = vpop.f32.mrb[226].mxu1 }
0x2ee4   :  { %v13293_v62 = vpop.f32.mrb[227].mxu1  ;;  %14216 = vmatpush3.bf16.xpose.msk.msra.mxu1 %vm15072_vm6, %v14214_v34  ;;  %v7602_v40 = vadd.f32 %v11242_v55, %v7601_v7 }
0x2ee5   :  { %13315 = vmatprep.subr.mxu1 %v17840_v22 }
0x2eec   :  { %13316 = vmatpush3.xpose.msk.msra.mxu1 %vm684_vm5, %v7602_v40 }
0x2eed   :  { %13341 = vmatprep.subr.mxu1 %v17840_v22 }
0x2eef   :  { %13318 = vmatmul.mubr.msk.f32.vlgmr.msra.gmra.mrb[228].mxu1 %vm684_vm5, %v7506_v36 }
0x2ef0   :  { %13320 = vmatprep.mubr.msk.f32.mxu1 %vm14723_vm0, %v17840_v22 }
0x2ef3   :  { %13321 = vmatmul.mubr.msk.f32.gmra.mrb[230].mxu1 %vm684_vm5, %v7511_v32 }
0x2ef4   :  { %13323 = vmatprep.mubr.msk.f32.mxu1 %vm14723_vm0, %v17840_v22 }
0x2ef7   :  { %13324 = vmatmul.mubr.msk.f32.gmra.mrb[232].mxu1 %vm684_vm5, %v7516_v46 }
0x2ef8   :  { %13343 = vmatprep.mubr.msk.f32.mxu1 %vm14723_vm0, %v17840_v22 }
0x2fc2   :  { %v7775_v49 = vpop.f32.mrb[228].mxu1 }
0x2fc3   :  { %v7789_v23 = vmul.f32 0.35355338, %v7775_v49  ;;  %v13319_v51 = vpop.f32.mrb[229].mxu1 }
0x2fc4   :  { %v11137_v51 = vld [vmem:[%s17805_s11 + $0x38] sm:$0xff] }
0x2fc5   :  { %v7792_v16 = vsel %vm786_vm7, %v7789_v23, -inf  ;;  %13342 = vmatpush3.msra.mxu1 %v11137_v51  ;;  %v14675_v51 = vld [vmem:[%s17812_s18] ss:$0 sm:$0xff] }
0x2fc6   :  { %7793 = vmax.xlane.f32.xlu0 %v7792_v16  ;;  %v7780_v57 = vpop.f32.mrb[230].mxu1  ;;  %14226 = vmatprep.subr.bf16.mxu1 %v17841_v60 }
0x2fc7   :  { %v7790_v0 = vmul.f32 0.35355338, %v7780_v57  ;;  %v13322_v38 = vpop.f32.mrb[231].mxu1 }
0x2fc9   :  { %v7795_v56 = vsel %vm786_vm7, %v7790_v0, -inf }
0x2fca   :  { %7796 = vmax.xlane.f32.xlu1 %v7795_v56  ;;  %v7785_v52 = vpop.f32.mrb[232].mxu1 }
0x2fcb   :  { %v7791_v4 = vmul.f32 0.35355338, %v7785_v52  ;;  %v13325_v61 = vpop.f32.mrb[233].mxu1 }
0x2fcd   :  { %v7798_v30 = vsel %vm793_vm8, %v7791_v4, -inf }
0x2fce   :  { %7799 = vmax.xlane.f32.xlu0 %v7798_v30 }
0x3053   :  { %v7794_v55 = vpop.xlane.xlu0 %7793 }
0x3054   :  { %v7801_v8 = vsub.f32 %v7789_v23, %v7794_v55 }
0x3056   :  { %v7804_v19 = vmul.f32 1.442695, %v7801_v8 }
0x3057   :  { %v7797_v11 = vpop.xlane.xlu1 %7796 }
0x3058   :  { %14558 = vpow2.f32 %v7804_v19  ;;  %v7802_v15 = vsub.f32 %v7790_v0, %v7797_v11 }
0x305a   :  { %v7806_v34 = vmul.f32 1.442695, %v7802_v15 }
0x305b   :  { %v7800_v7 = vpop.xlane.xlu0 %7799 }
0x305c   :  { %14560 = vpow2.f32 %v7806_v34  ;;  %v7803_v62 = vsub.f32 %v7791_v4, %v7800_v7 }
0x305e   :  { %v7808_v14 = vmul.f32 1.442695, %v7803_v62 }
0x3060   :  { %14562 = vpow2.f32 %v7808_v14 }
0x3062   :  { %v14559_v40 = vpop.eup %14558 }
0x3063   :  { %v7810_v36 = vsel %vm786_vm7, %v14559_v40, 0.0 }
0x3064   :  { %7811 = vadd.xlane.f32.xlu1 %v7810_v36 }
0x3066   :  { %v14561_v32 = vpop.eup %14560 }
0x3067   :  { %v7813_v46 = vsel %vm786_vm7, %v14561_v32, 0.0 }
0x3068   :  { %7814 = vadd.xlane.f32.xlu0 %v7813_v46 }
0x306a   :  { %v14563_v49 = vpop.eup %14562 }
0x306b   :  { %v7816_v23 = vsel %vm793_vm8, %v14563_v49, 0.0 }
0x306c   :  { %7817 = vadd.xlane.f32.xlu1 %v7816_v23 }
0x30f1   :  { %v7812_v16 = vpop.xlane.xlu1 %7811 }
0x30f2   :  { %14564 = vrcp.f32 %v7812_v16  ;;  %v5522_v16 = vadd.f32 %v14675_v51, %v16595_v24 }
0x30f5   :  { %v7815_v57 = vpop.xlane.xlu0 %7814 }
0x30f6   :  { %14566 = vrcp.f32 %v7815_v57 }
0x30f9   :  { %v7818_v0 = vpop.xlane.xlu1 %7817 }
0x30fa   :  { %14568 = vrcp.f32 %v7818_v0 }
0x30fc   :  { %v14565_v38 = vpop.eup %14564 }
0x30fd   :  { %v7822_v56 = vmul.f32 %v14565_v38, %v14559_v40  ;;  %v11263_v40 = vld [vmem:[%s17806_s12 + $0x1] ss:$0 sm:$0xff] }
0x30ff   :  { %13333 = vmatmul.mubr.msk.f32.vlgmr.msra.gmra.mrb[222].mxu0 %vm786_vm7, %v7822_v56 }
0x3100   :  { %v14567_v52 = vpop.eup %14566  ;;  %13335 = vmatprep.mubr.msk.f32.mxu0 %vm14723_vm0, %v17840_v22 }
0x3101   :  { %v7823_v4 = vmul.f32 %v14567_v52, %v14561_v32  ;;  %v5527_v52 = vadd.f32 %v14675_v51, %v16597_v20 }
0x3103   :  { %13336 = vmatmul.mubr.msk.f32.gmra.mrb[224].mxu0 %vm786_vm7, %v7823_v4  ;;  %v5532_v4 = vadd.f32 %v14675_v51, %v16599_v33 }
0x3104   :  { %v14569_v61 = vpop.eup %14568  ;;  %13338 = vmatprep.mubr.msk.f32.mxu0 %vm14723_vm0, %v17840_v22 }
0x3105   :  { %v7824_v30 = vmul.f32 %v14569_v61, %v14563_v49 }
0x3107   :  { %13339 = vmatmul.mubr.msk.f32.gmra.mrb[226].mxu0 %vm786_vm7, %v7824_v30  ;;  %v17078_v30 = vadd.f32 %v5527_v52, %v16309_v47 }
0x3108   :  { %13360 = vmatprep.mubr.msk.f32.mxu0 %vm14723_vm0, %v17840_v22 }
0x3109   :  { %v8288_v20 = vsel %vm357_vm2, %v17078_v30, 0.0 }
0x31d2   :  { %v7903_v55 = vpop.f32.mrb[222].mxu0 }
0x31d3   :  { %v13334_v8 = vpop.f32.mrb[223].mxu0  ;;  %13344 = vmatmul.mubr.msk.f32.vlgmr.msra.gmra.mrb[234].mxu1 %vm684_vm5, %v7903_v55 }
0x31d4   :  { %13346 = vmatprep.mubr.msk.f32.mxu1 %vm14723_vm0, %v17840_v22 }
0x31d6   :  { %v7908_v19 = vpop.f32.mrb[224].mxu0 }
0x31d7   :  { %v13337_v11 = vpop.f32.mrb[225].mxu0  ;;  %13347 = vmatmul.mubr.msk.f32.gmra.mrb[236].mxu1 %vm684_vm5, %v7908_v19 }
0x31d8   :  { %13349 = vmatprep.mubr.msk.f32.mxu1 %vm14723_vm0, %v17840_v22 }
0x31da   :  { %v7913_v15 = vpop.f32.mrb[226].mxu0 }
0x31db   :  { %v13340_v34 = vpop.f32.mrb[227].mxu0  ;;  %13350 = vmatmul.mubr.msk.f32.gmra.mrb[238].mxu1 %vm684_vm5, %v7913_v15 }
0x31dc   :  { %13401 = vmatprep.mubr.msk.f32.mxu1 %vm14723_vm0, %v17840_v22 }
0x32a6   :  { %v7992_v7 = vpop.f32.mrb[234].mxu1 }
0x32a7   :  { %v8006_v62 = vadd.f32 %v7992_v7, %v16998_v39  ;;  %v13345_v14 = vpop.f32.mrb[235].mxu1 }
0x32a9   :  { %v8009_v36 = vadd.f32 %v8006_v62, %v16313_v59 }
0x32aa   :  { %v7997_v32 = vpop.f32.mrb[236].mxu1 }
0x32ab   :  { %v17059_v46 = vadd.f32 %v11263_v40, %v8009_v36  ;;  %v8007_v49 = vadd.f32 %v7997_v32, %v17001_v17  ;;  %v13348_v23 = vpop.f32.mrb[237].mxu1  ;;  %v17071_v17 = vadd.f32 %v5522_v16, %v16302_v18 }
0x32ad   :  { %v8010_v39 = vadd.f32 %v8007_v49, %v16323_v27  ;;  %v8021_v57 = vsel %vm357_vm2, %v17059_v46, 0.0  ;;  %v8285_v18 = vsel %vm357_vm2, %v17071_v17, 0.0 }
0x32ae   :  { %8022 = vadd.xlane.f32.xlu0 %v8021_v57  ;;  %v8002_v0 = vpop.f32.mrb[238].mxu1 }
0x32af   :  { %v8008_v59 = vadd.f32 %v8002_v0, %v17004_v58  ;;  %v13351_v38 = vpop.f32.mrb[239].mxu1  ;;  %v8019_v56 = vadd.f32 %v11263_v40, %v8010_v39  ;;  %v17081_v58 = vadd.f32 %v5532_v4, %v16320_v13 }
0x32b1   :  { %v8011_v24 = vadd.f32 %v8008_v59, %v16326_v54  ;;  %v8024_v27 = vsel %vm357_vm2, %v8019_v56, 0.0  ;;  %v8291_v54 = vsel %vm364_vm3, %v17081_v58, 0.0 }
0x32b2   :  { %8025 = vadd.xlane.f32.xlu1 %v8024_v27 }
0x32b3   :  { %v8020_v61 = vadd.f32 %v11263_v40, %v8011_v24 }
0x32b5   :  { %v8027_v55 = vsel %vm364_vm3, %v8020_v61, 0.0 }
0x32b6   :  { %8286 = vadd.xlane.f32.xlu1 %v8285_v18  ;;  %8028 = vadd.xlane.f32.xlu0 %v8027_v55  ;;  %v11139_v55 = vld [vmem:[%s17809_s15 + $0x20] sm:$0xff] }
0x32ba   :  { %8292 = vadd.xlane.f32.xlu1 %v8291_v54  ;;  %8289 = vadd.xlane.f32.xlu0 %v8288_v20  ;;  %v11140_v54 = vld [vmem:[%s17809_s15 + $0x28] sm:$0xff] }
0x32bb   :  { %v17130_v20 = vpack.c.bf16 %v11140_v54, %v11139_v55 }
0x32bd   :  { %14222 = vmatpush3.bf16.msra.mxu0 %v17130_v20 }
0x32be   :  { %14223 = vmatprep.subr.bf16.mxu0 %v17841_v60 }
0x333b   :  { %v8023_v47 = vpop.xlane.xlu0 %8022 }
0x333c   :  { %v8030_v33 = vmul.f32 0.03125, %v8023_v47  ;;  %v11141_v47 = vld [vmem:[%s17809_s15 + $0x30] sm:$0xff] }
0x333e   :  { %v17091_v13 = vsub.f32 %v17059_v46, %v8030_v33  ;;  %v11142_v33 = vld [vmem:[%s17809_s15 + $0x38] sm:$0xff] }
0x333f   :  { %v8026_v8 = vpop.xlane.xlu1 %8025 }
0x3340   :  { %v8031_v19 = vmul.f32 0.03125, %v8026_v8  ;;  %v8036_v11 = vmul.f32 %v17091_v13, %v17091_v13  ;;  %v17140_v8 = vpack.c.bf16 %v11142_v33, %v11141_v47  ;;  %v11265_v33 = vld [vmem:[%s17808_s14 + $0x1] ss:$0 sm:$0xff] }
0x3342   :  { %v17095_v15 = vsub.f32 %v8019_v56, %v8031_v19  ;;  %v8039_v34 = vsel %vm357_vm2, %v8036_v11, 0.0  ;;  %14225 = vmatpush3.bf16.msra.mxu0 %v17140_v8  ;;  %v11144_v19 = vld [vmem:[%s17811_s17 + $0x80] sm:$0xff]  ;;  %v11145_v11 = vld [vmem:[%s17811_s17 + $0x88] sm:$0xff] }
0x3343   :  { %v8287_v7 = vpop.xlane.xlu1 %8286  ;;  %8040 = vadd.xlane.f32.xlu0 %v8039_v34  ;;  %v8029_v62 = vpop.xlane.xlu0 %8028  ;;  %14250 = vmatprep.subr.bf16.mxu0 %v17841_v60  ;;  %v17150_v34 = vpack.c.bf16 %v11145_v11, %v11144_v19 }
0x3344   :  { %v8294_v14 = vmul.f32 0.03125, %v8287_v7  ;;  %v8032_v40 = vmul.f32 0.03125, %v8029_v62  ;;  %v8037_v36 = vmul.f32 %v17095_v15, %v17095_v15 }
0x3345   :  { %14228 = vmatpush3.bf16.msra.mxu1 %v17150_v34 }
0x3346   :  { %v17101_v32 = vsub.f32 %v17071_v17, %v8294_v14  ;;  %v17103_v49 = vsub.f32 %v8020_v61, %v8032_v40  ;;  %v8042_v23 = vsel %vm357_vm2, %v8037_v36, 0.0  ;;  %14229 = vmatprep.subr.bf16.mxu1 %v17841_v60 }
0x3347   :  { %8043 = vadd.xlane.f32.xlu1 %v8042_v23  ;;  %v8293_v51 = vpop.xlane.xlu1 %8292  ;;  %v8290_v16 = vpop.xlane.xlu0 %8289 }
0x3348   :  { %v8296_v39 = vmul.f32 0.03125, %v8293_v51  ;;  %v8295_v57 = vmul.f32 0.03125, %v8290_v16  ;;  %v8300_v0 = vmul.f32 %v17101_v32, %v17101_v32  ;;  %v8038_v59 = vmul.f32 %v17103_v49, %v17103_v49 }
0x334a   :  { %v17111_v38 = vsub.f32 %v17081_v58, %v8296_v39  ;;  %v17114_v56 = vsub.f32 %v17078_v30, %v8295_v57  ;;  %v8303_v52 = vsel %vm357_vm2, %v8300_v0, 0.0  ;;  %v8045_v4 = vsel %vm364_vm3, %v8038_v59, 0.0 }
0x334b   :  { %8304 = vadd.xlane.f32.xlu1 %v8303_v52  ;;  %8046 = vadd.xlane.f32.xlu0 %v8045_v4 }
0x334c   :  { %v8302_v24 = vmul.f32 %v17111_v38, %v17111_v38  ;;  %v8301_v27 = vmul.f32 %v17114_v56, %v17114_v56 }
0x334e   :  { %v8309_v61 = vsel %vm364_vm3, %v8302_v24, 0.0  ;;  %v8306_v18 = vsel %vm357_vm2, %v8301_v27, 0.0 }
0x334f   :  { %8310 = vadd.xlane.f32.xlu1 %v8309_v61  ;;  %8307 = vadd.xlane.f32.xlu0 %v8306_v18  ;;  %v11264_v18 = vld [vmem:[%s17807_s13 + $0x1] ss:$0 sm:$0xff] }
0x33d0   :  { %v8041_v7 = vpop.xlane.xlu0 %8040 }
0x33d1   :  { %v8048_v62 = vmul.f32 0.03125, %v8041_v7 }
0x33d3   :  { %v8051_v14 = vadd.f32 1e-05, %v8048_v62 }
0x33d4   :  { %v8044_v40 = vpop.xlane.xlu1 %8043 }
0x33d5   :  { %14570 = vrsqrt.f32 %v8051_v14  ;;  %v8049_v36 = vmul.f32 0.03125, %v8044_v40 }
0x33d7   :  { %v8052_v23 = vadd.f32 1e-05, %v8049_v36 }
0x33d8   :  { %v8305_v51 = vpop.xlane.xlu1 %8304  ;;  %v8047_v16 = vpop.xlane.xlu0 %8046 }
0x33d9   :  { %14572 = vrsqrt.f32 %v8052_v23  ;;  %v8312_v39 = vmul.f32 0.03125, %v8305_v51  ;;  %v8050_v57 = vmul.f32 0.03125, %v8047_v16 }
0x33db   :  { %v8315_v0 = vadd.f32 1e-05, %v8312_v39  ;;  %v8053_v59 = vadd.f32 1e-05, %v8050_v57 }
0x33dc   :  { %v8311_v52 = vpop.xlane.xlu1 %8310  ;;  %v8308_v4 = vpop.xlane.xlu0 %8307 }
0x33dd   :  { %14574 = vrsqrt.f32 %v8315_v0  ;;  %v8314_v24 = vmul.f32 0.03125, %v8311_v52  ;;  %v8313_v27 = vmul.f32 0.03125, %v8308_v4 }
0x33de   :  { %14576 = vrsqrt.f32 %v8053_v59 }
0x33df   :  { %v14571_v61 = vpop.eup %14570  ;;  %v8316_v55 = vadd.f32 1e-05, %v8313_v27  ;;  %v8317_v47 = vadd.f32 1e-05, %v8314_v24  ;;  %v11148_v27 = vld [vmem:[%s17811_s17 + $0xa0] sm:$0xff] }
0x33e0   :  { %v8057_v54 = vmul.f32 %v14571_v61, %v17091_v13  ;;  %v11149_v61 = vld [vmem:[%s17811_s17 + $0xa8] sm:$0xff] }
0x33e1   :  { %14578 = vrsqrt.f32 %v8316_v55  ;;  %v11150_v55 = vld [vmem:[%s17811_s17 + $0xb0] sm:$0xff] }
0x33e2   :  { %v8066_v19 = vmul.f32 %v11264_v18, %v8057_v54  ;;  %14580 = vrsqrt.f32 %v8317_v47  ;;  %v11151_v54 = vld [vmem:[%s17811_s17 + $0xb8] sm:$0xff] }
0x33e3   :  { %v14573_v11 = vpop.eup %14572  ;;  %v17245_v47 = vpack.c.bf16 %v11151_v54, %v11150_v55 }
0x33e4   :  { %v8075_v7 = vadd.f32 %v11265_v33, %v8066_v19  ;;  %v8058_v62 = vmul.f32 %v14573_v11, %v17095_v15  ;;  %v11153_v19 = vld [vmem:[%s17811_s17 + $0xc8] sm:$0xff] }
0x33e6   :  { %13361 = vmatmul.mubr.msk.f32.vlgmr.msra.gmra.mrb[228].mxu0 %vm357_vm2, %v8075_v7  ;;  %v8067_v14 = vmul.f32 %v11264_v18, %v8058_v62  ;;  %v11154_v7 = vld [vmem:[%s17811_s17 + $0xd0] sm:$0xff]  ;;  %v11155_v62 = vld [vmem:[%s17811_s17 + $0xd8] sm:$0xff] }
0x33e7   :  { %v14575_v40 = vpop.eup %14574  ;;  %13363 = vmatprep.mubr.msk.f32.mxu0 %vm14723_vm0, %v17840_v22  ;;  %14252 = vmatpush3.bf16.msra.mxu0 %v16377_v26  ;;  %v14676_v26 = vld [vmem:[%s17836_s2 + $0x1] ss:$0 sm:$0xff] }
0x33e8   :  { %v14577_v13 = vpop.eup %14576  ;;  %v8076_v36 = vadd.f32 %v11265_v33, %v8067_v14  ;;  %14253 = vmatprep.subr.bf16.mxu0 %v17841_v60  ;;  %v8321_v23 = vmul.f32 %v14575_v40, %v17101_v32  ;;  %v17265_v14 = vpack.c.bf16 %v11155_v62, %v11154_v7  ;;  %v11156_v40 = vld [vmem:[%s17811_s17 + $0xe0] sm:$0xff] }
0x33e9   :  { %v8059_v51 = vmul.f32 %v14577_v13, %v17103_v49  ;;  %v11157_v13 = vld [vmem:[%s17811_s17 + $0xe8] sm:$0xff] }
0x33ea   :  { %13364 = vmatmul.mubr.msk.f32.gmra.mrb[230].mxu0 %vm357_vm2, %v8076_v36  ;;  %v8324_v39 = vmul.f32 %v14676_v26, %v8321_v23  ;;  %v17275_v36 = vpack.c.bf16 %v11157_v13, %v11156_v40  ;;  %v11158_v23 = vld [vmem:[%s17811_s17 + $0xf0] sm:$0xff] }
0x33eb   :  { %13366 = vmatprep.mubr.msk.f32.mxu0 %vm14723_vm0, %v17840_v22  ;;  %v8068_v15 = vmul.f32 %v11264_v18, %v8059_v51  ;;  %14255 = vmatpush3.bf16.msra.mxu0 %v16393_v6  ;;  %v14579_v16 = vpop.eup %14578  ;;  %v14677_v6 = vld [vmem:[%s17837_s30 + $0x1] ss:$0 sm:$0xff]  ;;  %v17235_v18 = vpack.c.bf16 %v11149_v61, %v11148_v27  ;;  %v11159_v51 = vld [vmem:[%s17811_s17 + $0xf8] sm:$0xff] }
0x33ec   :  { %14256 = vmatprep.subr.bf16.mxu0 %v17841_v60  ;;  %v8322_v32 = vmul.f32 %v14579_v16, %v17114_v56  ;;  %v14581_v49 = vpop.eup %14580  ;;  %v17184_v0 = vadd.f32 %v14677_v6, %v8324_v39  ;;  %v11266_v16 = vld [vmem:[%s17810_s16 + $0x1] ss:$0 sm:$0xff] }
0x33ed   :  { %v8077_v57 = vadd.f32 %v11265_v33, %v8068_v15  ;;  %v8323_v59 = vmul.f32 %v14581_v49, %v17111_v38  ;;  %v11152_v33 = vld [vmem:[%s17811_s17 + $0xc0] sm:$0xff]  ;;  %v17285_v15 = vpack.c.bf16 %v11159_v51, %v11158_v23 }
0x33ee   :  { %v8325_v52 = vmul.f32 %v14676_v26, %v8322_v32  ;;  %v17255_v11 = vpack.c.bf16 %v11153_v19, %v11152_v33 }
0x33ef   :  { %13367 = vmatmul.mubr.msk.f32.gmra.mrb[232].mxu0 %vm357_vm2, %v8077_v57  ;;  %v8326_v56 = vmul.f32 %v14676_v26, %v8323_v59 }
0x33f0   :  { %13418 = vmatprep.mubr.msk.f32.mxu0 %vm14723_vm0, %v17840_v22  ;;  %v17192_v4 = vadd.f32 %v14677_v6, %v8325_v52 }
0x33f1   :  { %v17200_v38 = vadd.f32 %v14677_v6, %v8326_v56 }
0x33f3   :  { %13419 = vmatmul.mubr.msk.f32.vlgmr.msra.gmra.mrb[234].mxu0 %vm357_vm2, %v17184_v0 }
0x33f4   :  { %13421 = vmatprep.mubr.msk.f32.mxu0 %vm14723_vm0, %v17840_v22  ;;  %14258 = vmatpush3.bf16.msra.mxu0 %v16419_v42  ;;  %v11146_v42 = vld [vmem:[%s17811_s17 + $0x90] sm:$0xff] }
0x33f5   :  { %14259 = vmatprep.subr.bf16.mxu0 %v17841_v60 }
0x33f7   :  { %13422 = vmatmul.mubr.msk.f32.gmra.mrb[236].mxu0 %vm357_vm2, %v17192_v4 }
0x33f8   :  { %13424 = vmatprep.mubr.msk.f32.mxu0 %vm14723_vm0, %v17840_v22  ;;  %14261 = vmatpush3.bf16.msra.mxu0 %v16435_v3  ;;  %v11147_v3 = vld [vmem:[%s17811_s17 + $0x98] sm:$0xff]  ;;  %s10852_s17 = sshll.u32 %s14725_s29, 4  ;;  %s10853_s17 = int_to_ptr.vmem [resolvable:$true] %s10852_s17 }
0x33f9   :  { %14268 = vmatprep.subr.bf16.mxu0 %v17841_v60  ;;  %v17225_v24 = vpack.c.bf16 %v11147_v3, %v11146_v42  ;;  %s14698_s0 = scalar_lea.vmem %s10853_s17, 32  ;;  %p14703_p1 = scmp.lt.s32.totalorder %s10853_s17, %s10853_s17 }
0x33fa   :  { %p14699_p0 = scmp.ne.s32.totalorder %s10853_s17, %s14698_s0  ;;  %p14704_p2 = scmp.lt.s32.totalorder %s14698_s0, %s14698_s0 }
0x33fb   :  { %13425 = vmatmul.mubr.msk.f32.gmra.mrb[238].mxu0 %vm357_vm2, %v17200_v38  ;;  %14231 = vmatpush3.bf16.msra.mxu1 %v17225_v24 }
0x33fc   :  { %13435 = vmatprep.mubr.msk.f32.mxu0 %vm14723_vm0, %v17840_v22  ;;  %14232 = vmatprep.subr.bf16.mxu1 %v17841_v60  ;;  %p14705_p3 = por %p14704_p2, %p14703_p1 }
0x33fe   :  { %p14706_p4 = pnand %p14705_p3, %p14699_p0 }
0x33ff   :  { %13436 = vmatmul.mubr.msk.f32.vlgmr.msra.gmra.mrb[240].mxu0 %vm357_vm2, %v17184_v0  ;;  %14234 = vmatpush3.bf16.msra.mxu1 %v17235_v18 }
0x3400   :  { %13438 = vmatprep.mubr.msk.f32.mxu0 %vm14723_vm0, %v17840_v22  ;;  %14235 = vmatprep.subr.bf16.mxu1 %v17841_v60 }
0x3403   :  { %13439 = vmatmul.mubr.msk.f32.gmra.mrb[242].mxu0 %vm357_vm2, %v17192_v4  ;;  %14237 = vmatpush3.bf16.msra.mxu1 %v17245_v47 }
0x3404   :  { %13441 = vmatprep.mubr.msk.f32.mxu0 %vm14723_vm0, %v17840_v22  ;;  %14238 = vmatprep.subr.bf16.mxu1 %v17841_v60 }
0x3407   :  { %13442 = vmatmul.mubr.msk.f32.gmra.mrb[244].mxu0 %vm357_vm2, %v17200_v38  ;;  %14240 = vmatpush3.bf16.msra.mxu1 %v17255_v11 }
0x3408   :  { %13467 = vmatprep.mubr.msk.f32.mxu0 %vm14723_vm0, %v17840_v22  ;;  %14241 = vmatprep.subr.bf16.mxu1 %v17841_v60 }
0x340b   :  { %14243 = vmatpush3.bf16.msra.mxu1 %v17265_v14 }
0x340c   :  { %14244 = vmatprep.subr.bf16.mxu1 %v17841_v60 }
0x340f   :  { %14246 = vmatpush3.bf16.msra.mxu1 %v17275_v36 }
0x3410   :  { %14247 = vmatprep.subr.bf16.mxu1 %v17841_v60 }
0x3413   :  { %14249 = vmatpush3.bf16.msra.mxu1 %v17285_v15 }
0x3414   :  { %14262 = vmatprep.subr.bf16.mxu1 %v17841_v60 }
0x34b9   :  { %v8159_v26 = vpop.f32.mrb[228].mxu0 }
0x34ba   :  { %v8160_v39 = vadd.f32 %v11266_v16, %v8159_v26  ;;  %v13362_v32 = vpop.f32.mrb[229].mxu0 }
0x34bc   :  { %v8176_v57 = vmul.f32 0.044715, %v8160_v39 }
0x34bd   :  { %v8164_v49 = vpop.f32.mrb[230].mxu0 }
0x34be   :  { %v8179_v6 = vmul.f32 %v8176_v57, %v8160_v39  ;;  %v8165_v59 = vadd.f32 %v11266_v16, %v8164_v49  ;;  %v13365_v52 = vpop.f32.mrb[231].mxu0 }
0x34c0   :  { %v8182_v56 = vmul.f32 %v8179_v6, %v8160_v39  ;;  %v8177_v42 = vmul.f32 0.044715, %v8165_v59 }
0x34c2   :  { %v8185_v3 = vadd.f32 %v8182_v56, %v8160_v39  ;;  %v8180_v27 = vmul.f32 %v8177_v42, %v8165_v59  ;;  %v8169_v61 = vpop.f32.mrb[232].mxu0  ;;  %v8173_v42 = vmul.f32 0.5, %v8160_v39 }
0x34c3   :  { %v8170_v55 = vadd.f32 %v11266_v16, %v8169_v61  ;;  %v13368_v54 = vpop.f32.mrb[233].mxu0 }
0x34c4   :  { %v8188_v33 = vmul.f32 0.7978846, %v8185_v3  ;;  %v8183_v19 = vmul.f32 %v8180_v27, %v8165_v59 }
0x34c5   :  { %v8178_v7 = vmul.f32 0.044715, %v8170_v55 }
0x34c6   :  { %14582 = vtanh.f32 %v8188_v33  ;;  %v8405_v62 = vpop.f32.mrb[234].mxu0  ;;  %v8186_v40 = vadd.f32 %v8183_v19, %v8165_v59  ;;  %v8174_v19 = vmul.f32 0.5, %v8165_v59 }
0x34c7   :  { %v8181_v13 = vmul.f32 %v8178_v7, %v8170_v55  ;;  %v13420_v23 = vpop.f32.mrb[235].mxu0 }
0x34c8   :  { %v8189_v51 = vmul.f32 0.7978846, %v8186_v40 }
0x34c9   :  { %v8184_v26 = vmul.f32 %v8181_v13, %v8170_v55  ;;  %v14678_v13 = vld [vmem:[%s17802_s8 + $0x4] ss:$0 sm:$0xff] }
0x34ca   :  { %v8410_v32 = vpop.f32.mrb[236].mxu0  ;;  %14584 = vtanh.f32 %v8189_v51 }
0x34cb   :  { %v13423_v57 = vpop.f32.mrb[237].mxu0  ;;  %v8187_v49 = vadd.f32 %v8184_v26, %v8170_v55 }
0x34cd   :  { %v8190_v6 = vmul.f32 0.7978846, %v8187_v49 }
0x34ce   :  { %v8415_v52 = vpop.f32.mrb[238].mxu0 }
0x34cf   :  { %v13426_v56 = vpop.f32.mrb[239].mxu0  ;;  %14586 = vtanh.f32 %v8190_v6  ;;  %v8175_v6 = vmul.f32 0.5, %v8170_v55 }
0x34d0   :  { %v14583_v16 = vpop.eup %14582 }
0x34d1   :  { %v8194_v3 = vadd.f32 1.0, %v14583_v16 }
0x34d2   :  { %v8485_v27 = vpop.f32.mrb[240].mxu0 }
0x34d3   :  { %v13437_v61 = vpop.f32.mrb[241].mxu0  ;;  %v8197_v54 = vmul.f32 %v8194_v3, %v8173_v42  ;;  %v8486_v23 = vadd.f32 %v14678_v13, %v8485_v27 }
0x34d4   :  { %v14585_v33 = vpop.eup %14584 }
0x34d5   :  { %13402 = vmatmul.mubr.f32.vlgmr.msra.gmra.mrb[240].mxu1 %v8197_v54  ;;  %v8195_v7 = vadd.f32 1.0, %v14585_v33 }
0x34d6   :  { %v8490_v40 = vpop.f32.mrb[242].mxu0  ;;  %13404 = vmatprep.mubr.msk.f32.mxu1 %vm14723_vm0, %v17840_v22  ;;  %14264 = vmatpush3.bf16.msra.mxu1 %v16477_v21 }
0x34d7   :  { %v8491_v39 = vadd.f32 %v14678_v13, %v8490_v40  ;;  %v13440_v51 = vpop.f32.mrb[243].mxu0  ;;  %v8198_v26 = vmul.f32 %v8195_v7, %v8174_v19  ;;  %14265 = vmatprep.subr.bf16.mxu1 %v17841_v60  ;;  %v14680_v19 = vld [vmem:[%s17804_s10 + $0x4] ss:$0 sm:$0xff] }
0x34d9   :  { %v14587_v57 = vpop.eup %14586  ;;  %v14269_v49 = vpack.c.bf16 %v8491_v39, %v8486_v23  ;;  %13405 = vmatmul.mubr.f32.gmra.mrb[242].mxu1 %v8198_v26 }
0x34da   :  { %v8495_v59 = vpop.f32.mrb[244].mxu0  ;;  %13407 = vmatprep.mubr.msk.f32.mxu1 %vm14723_vm0, %v17840_v22  ;;  %v8196_v56 = vadd.f32 1.0, %v14587_v57  ;;  %14267 = vmatpush3.bf16.msra.mxu1 %v16491_v53  ;;  %v14679_v53 = vld [vmem:[%s17800_s6 + $0x4] ss:$0 sm:$0xff] }
0x34db   :  { %v13443_v21 = vpop.f32.mrb[245].mxu0  ;;  %14271 = vmatpush3.bf16.xpose.msk.msra.mxu0 %vm15072_vm6, %v14269_v49  ;;  %14272 = vmatprep.subr.bf16.mxu1 %v17841_v60  ;;  %v8496_v42 = vadd.f32 %v14678_v13, %v8495_v59  ;;  %v8406_v55 = vadd.f32 %v14679_v53, %v8405_v62  ;;  %v8411_v3 = vadd.f32 %v14679_v53, %v8410_v32 }
0x34dc   :  { %v8199_v16 = vmul.f32 %v8196_v56, %v8175_v6  ;;  %13465 = vmatprep.subr.mxu0 %v17840_v22  ;;  %v8416_v62 = vadd.f32 %v14679_v53, %v8415_v52 }
0x34de   :  { %13408 = vmatmul.mubr.f32.gmra.mrb[244].mxu1 %v8199_v16 }
0x34df   :  { %13452 = vmatprep.mubr.msk.f32.mxu1 %vm14723_vm0, %v17840_v22 }
0x34e2   :  { %13453 = vmatmul.mubr.msk.f32.vlgmr.msra.gmra.mrb[246].mxu1 %vm357_vm2, %v17184_v0 }
0x34e3   :  { %13466 = vmatpush3.xpose.msk.msra.mxu0 %vm684_vm5, %v8496_v42  ;;  %13455 = vmatprep.mubr.msk.f32.mxu1 %vm14723_vm0, %v17840_v22 }
0x34e4   :  { %14275 = vmatprep.subr.bf16.mxu0 %v17841_v60 }
0x34e6   :  { %13456 = vmatmul.mubr.msk.f32.gmra.mrb[248].mxu1 %vm357_vm2, %v17192_v4  ;;  %13468 = vmatmul.mubr.msk.f32.vlgmr.msra.gmra.mrb[246].mxu0 %vm684_vm5, %v8406_v55 }
0x34e7   :  { %13458 = vmatprep.mubr.msk.f32.mxu1 %vm14723_vm0, %v17840_v22  ;;  %13470 = vmatprep.mubr.msk.f32.mxu0 %vm14723_vm0, %v17840_v22 }
0x34e8   :  { %14277 = vmatpush3.bf16.msra.mxu0 %v16518_v12 }
0x34e9   :  { %14278 = vmatprep.subr.bf16.mxu0 %v17841_v60 }
0x34ea   :  { %13459 = vmatmul.mubr.msk.f32.gmra.mrb[250].mxu1 %vm357_vm2, %v17200_v38  ;;  %13471 = vmatmul.mubr.msk.f32.gmra.mrb[248].mxu0 %vm684_vm5, %v8411_v3 }
0x34eb   :  { %13473 = vmatprep.mubr.msk.f32.mxu0 %vm14723_vm0, %v17840_v22  ;;  %13482 = vmatprep.mubr.msk.f32.mxu1 %vm14723_vm0, %v17840_v22 }
0x34ec   :  { %14280 = vmatpush3.bf16.msra.mxu0 %v16535_v31 }
0x34ed   :  { %14287 = vmatprep.subr.bf16.mxu0 %v17841_v60 }
0x34ee   :  { %13474 = vmatmul.mubr.msk.f32.gmra.mrb[250].mxu0 %vm684_vm5, %v8416_v62 }
0x34ef   :  { %13499 = vmatprep.mubr.msk.f32.mxu0 %vm14723_vm0, %v17840_v22 }
0x34f2   :  { %13500 = vmatmul.mubr.msk.f32.vlgmr.msra.gmra.mrb[252].mxu0 %vm357_vm2, %v17184_v0 }
0x34f3   :  { %13502 = vmatprep.mubr.msk.f32.mxu0 %vm14723_vm0, %v17840_v22  ;;  %14289 = vmatpush3.bf16.msra.mxu0 %v16557_v43 }
0x34f4   :  { %14290 = vmatprep.subr.bf16.mxu0 %v17841_v60 }
0x34f6   :  { %13503 = vmatmul.mubr.msk.f32.gmra.mrb[254].mxu0 %vm357_vm2, %v17192_v4 }
0x34f7   :  { %13505 = vmatprep.mubr.msk.f32.mxu0 %vm14723_vm0, %v17840_v22  ;;  %14292 = vmatpush3.bf16.msra.mxu0 %v16570_v1 }
0x34f8   :  { %14297 = vmatprep.subr.bf16.mxu0 %v17841_v60 }
0x34fa   :  { %13506 = vmatmul.mubr.msk.f32.gmra.mrb[0].mxu0 %vm357_vm2, %v17200_v38 }
0x34fb   :  { %13533 = vmatprep.mubr.msk.f32.mxu0 %vm14723_vm0, %v17840_v22 }
0x34fe   :  { %13534 = vmatmul.mubr.msk.f32.vlgmr.msra.gmra.mrb[2].mxu0 %vm357_vm2, %v17184_v0 }
0x34ff   :  { %13536 = vmatprep.mubr.msk.f32.mxu0 %vm14723_vm0, %v17840_v22 }
0x3502   :  { %13537 = vmatmul.mubr.msk.f32.gmra.mrb[4].mxu0 %vm357_vm2, %v17192_v4 }
0x3503   :  { %13539 = vmatprep.mubr.msk.f32.mxu0 %vm14723_vm0, %v17840_v22 }
0x3506   :  { %13540 = vmatmul.mubr.msk.f32.gmra.mrb[6].mxu0 %vm357_vm2, %v17200_v38 }
0x3507   :  { %13563 = vmatprep.mubr.msk.f32.mxu0 %vm14723_vm0, %v17840_v22 }
0x35a8   :  { %v17366_v12 = vpop.f32.mrb[240].mxu1 }
0x35a9   :  { %v13403_v31 = vpop.f32.mrb[241].mxu1 }
0x35ac   :  { %v8277_v43 = vpop.f32.mrb[242].mxu1 }
0x35ad   :  { %v13406_v1 = vpop.f32.mrb[243].mxu1 }
0x35b1   :  { %v8281_v32 = vpop.f32.mrb[244].mxu1 }
0x35b2   :  { %v13409_v52 = vpop.f32.mrb[245].mxu1 }
0x35b5   :  { %v8565_v27 = vpop.f32.mrb[246].mxu1 }
0x35b6   :  { %v13454_v61 = vpop.f32.mrb[247].mxu1  ;;  %v8566_v7 = vadd.f32 %v14680_v19, %v8565_v27 }
0x35b9   :  { %v8570_v54 = vpop.f32.mrb[248].mxu1  ;;  %v8663_v33 = vpop.f32.mrb[246].mxu0 }
0x35ba   :  { %v8571_v40 = vadd.f32 %v14680_v19, %v8570_v54  ;;  %v8677_v13 = vmul.f32 0.35355338, %v8663_v33  ;;  %v13457_v23 = vpop.f32.mrb[249].mxu1  ;;  %v13469_v39 = vpop.f32.mrb[247].mxu0  ;;  %v14681_v33 = vld [vmem:[%s17804_s10 + $0x5] ss:$0 sm:$0xff] }
0x35bc   :  { %v14273_v51 = vpack.c.bf16 %v8571_v40, %v8566_v7  ;;  %v8680_v26 = vsel %vm786_vm7, %v8677_v13, -inf }
0x35bd   :  { %v8575_v57 = vpop.f32.mrb[250].mxu1  ;;  %8681 = vmax.xlane.f32.xlu0 %v8680_v26  ;;  %v8668_v49 = vpop.f32.mrb[248].mxu0 }
0x35be   :  { %v8678_v59 = vmul.f32 0.35355338, %v8668_v49  ;;  %v13460_v6 = vpop.f32.mrb[251].mxu1  ;;  %v13472_v56 = vpop.f32.mrb[249].mxu0  ;;  %14274 = vmatpush3.bf16.msra.mxu1 %v14273_v51  ;;  %v8576_v21 = vadd.f32 %v14680_v19, %v8575_v57 }
0x35bf   :  { %13480 = vmatprep.subr.mxu1 %v17840_v22 }
0x35c0   :  { %v8683_v16 = vsel %vm786_vm7, %v8678_v59, -inf }
0x35c1   :  { %8684 = vmax.xlane.f32.xlu1 %v8683_v16  ;;  %v8673_v42 = vpop.f32.mrb[250].mxu0 }
0x35c2   :  { %v8679_v53 = vmul.f32 0.35355338, %v8673_v42  ;;  %v13475_v55 = vpop.f32.mrb[251].mxu0  ;;  %13481 = vmatpush3.msk.msra.mxu1 %vm830_vm4, %v8576_v21 }
0x35c3   :  { %14281 = vmatprep.subr.bf16.mxu1 %v17841_v60 }
0x35c4   :  { %v8686_v3 = vsel %vm793_vm8, %v8679_v53, -inf }
0x35c5   :  { %8687 = vmax.xlane.f32.xlu0 %v8686_v3  ;;  %v17377_v62 = vpop.f32.mrb[252].mxu0 }
0x35c6   :  { %v13501_v31 = vpop.f32.mrb[253].mxu0 }
0x35c9   :  { %v17379_v43 = vpop.f32.mrb[254].mxu0 }
0x35ca   :  { %v13504_v1 = vpop.f32.mrb[255].mxu0 }
0x35cd   :  { %v17381_v32 = vpop.f32.mrb[0].mxu0 }
0x35ce   :  { %v13507_v52 = vpop.f32.mrb[1].mxu0 }
0x35d1   :  { %v9031_v27 = vpop.f32.mrb[2].mxu0 }
0x35d2   :  { %v13535_v61 = vpop.f32.mrb[3].mxu0  ;;  %v9032_v19 = vadd.f32 %v14681_v33, %v9031_v27 }
0x35d5   :  { %v9036_v54 = vpop.f32.mrb[4].mxu0 }
0x35d6   :  { %v9037_v7 = vadd.f32 %v14681_v33, %v9036_v54  ;;  %v13538_v40 = vpop.f32.mrb[5].mxu0 }
0x35d8   :  { %v14298_v23 = vpack.c.bf16 %v9037_v7, %v9032_v19 }
0x35d9   :  { %v9041_v39 = vpop.f32.mrb[6].mxu0 }
0x35da   :  { %v13541_v51 = vpop.f32.mrb[7].mxu0  ;;  %14299 = vmatpush3.bf16.msra.mxu0 %v14298_v23  ;;  %v9042_v26 = vadd.f32 %v14681_v33, %v9041_v39 }
0x35db   :  { %13561 = vmatprep.subr.mxu0 %v17840_v22 }
0x35de   :  { %13562 = vmatpush3.msk.msra.mxu0 %vm830_vm4, %v9042_v26 }
0x35df   :  { %13583 = vmatprep.subr.mxu0 %v17840_v22 }
0x364a   :  { %v8682_v57 = vpop.xlane.xlu0 %8681 }
0x364b   :  { %v8689_v49 = vsub.f32 %v8677_v13, %v8682_v57 }
0x364d   :  { %v8692_v6 = vmul.f32 1.442695, %v8689_v49 }
0x364e   :  { %v8685_v56 = vpop.xlane.xlu1 %8684 }
0x364f   :  { %14588 = vpow2.f32 %v8692_v6  ;;  %v8690_v21 = vsub.f32 %v8678_v59, %v8685_v56 }
0x3651   :  { %v8694_v16 = vmul.f32 1.442695, %v8690_v21 }
0x3652   :  { %v8688_v42 = vpop.xlane.xlu0 %8687 }
0x3653   :  { %14590 = vpow2.f32 %v8694_v16  ;;  %v8691_v55 = vsub.f32 %v8679_v53, %v8688_v42  ;;  %v14682_v16 = vld [vmem:[%s17802_s8 + $0x5] ss:$0 sm:$0xff] }
0x3655   :  { %v8696_v3 = vmul.f32 1.442695, %v8691_v55 }
0x3657   :  { %14592 = vpow2.f32 %v8696_v3 }
0x3659   :  { %v14589_v31 = vpop.eup %14588 }
0x365a   :  { %v8698_v1 = vsel %vm786_vm7, %v14589_v31, 0.0 }
0x365b   :  { %8699 = vadd.xlane.f32.xlu1 %v8698_v1 }
0x365d   :  { %v14591_v52 = vpop.eup %14590 }
0x365e   :  { %v8701_v27 = vsel %vm786_vm7, %v14591_v52, 0.0 }
0x365f   :  { %8702 = vadd.xlane.f32.xlu0 %v8701_v27 }
0x3661   :  { %v14593_v61 = vpop.eup %14592 }
0x3662   :  { %v8704_v13 = vsel %vm793_vm8, %v14593_v61, 0.0 }
0x3663   :  { %8705 = vadd.xlane.f32.xlu1 %v8704_v13 }
0x36e8   :  { %v8700_v54 = vpop.xlane.xlu1 %8699 }
0x36e9   :  { %14594 = vrcp.f32 %v8700_v54  ;;  %v14684_v54 = vld [vmem:[%s17805_s11 + $0x28] sm:$0xff] }
0x36ec   :  { %v8703_v59 = vpop.xlane.xlu0 %8702 }
0x36ed   :  { %14596 = vrcp.f32 %v8703_v59 }
0x36f0   :  { %v8706_v33 = vpop.xlane.xlu1 %8705 }
0x36f1   :  { %14598 = vrcp.f32 %v8706_v33 }
0x36f3   :  { %v14595_v53 = vpop.eup %14594 }
0x36f4   :  { %v8710_v19 = vmul.f32 %v14595_v53, %v14589_v31 }
0x36f6   :  { %13483 = vmatmul.mubr.msk.f32.vlgmr.msra.gmra.mrb[252].mxu1 %vm786_vm7, %v8710_v19 }
0x36f7   :  { %v14597_v7 = vpop.eup %14596  ;;  %13485 = vmatprep.mubr.msk.f32.mxu1 %vm14723_vm0, %v17840_v22  ;;  %14283 = vmatpush3.bf16.msra.mxu1 %v16631_v37 }
0x36f8   :  { %v8711_v40 = vmul.f32 %v14597_v7, %v14591_v52  ;;  %14284 = vmatprep.subr.bf16.mxu1 %v17841_v60 }
0x36fa   :  { %13486 = vmatmul.mubr.msk.f32.gmra.mrb[254].mxu1 %vm786_vm7, %v8711_v40 }
0x36fb   :  { %v14599_v23 = vpop.eup %14598  ;;  %13488 = vmatprep.mubr.msk.f32.mxu1 %vm14723_vm0, %v17840_v22  ;;  %14286 = vmatpush3.bf16.msra.mxu1 %v16643_v25 }
0x36fc   :  { %v8712_v39 = vmul.f32 %v14599_v23, %v14593_v61  ;;  %14293 = vmatprep.subr.bf16.mxu1 %v17841_v60  ;;  %v14683_v61 = vld [vmem:[%s17800_s6 + $0x5] ss:$0 sm:$0xff] }
0x36fd   :  { %v8872_v13 = vadd.f32 %v14683_v61, %v17377_v62  ;;  %v8877_v59 = vadd.f32 %v14683_v61, %v17379_v43  ;;  %v8882_v62 = vadd.f32 %v14683_v61, %v17381_v32 }
0x36fe   :  { %13489 = vmatmul.mubr.msk.f32.gmra.mrb[0].mxu1 %vm786_vm7, %v8712_v39 }
0x36ff   :  { %13516 = vmatprep.mubr.msk.f32.mxu1 %vm14723_vm0, %v17840_v22 }
0x3702   :  { %13517 = vmatmul.mubr.msk.f32.vlgmr.msra.gmra.mrb[2].mxu1 %vm357_vm2, %v17184_v0 }
0x3703   :  { %13519 = vmatprep.mubr.msk.f32.mxu1 %vm14723_vm0, %v17840_v22 }
0x3706   :  { %13520 = vmatmul.mubr.msk.f32.gmra.mrb[4].mxu1 %vm357_vm2, %v17192_v4 }
0x3707   :  { %13522 = vmatprep.mubr.msk.f32.mxu1 %vm14723_vm0, %v17840_v22 }
0x370a   :  { %13523 = vmatmul.mubr.msk.f32.gmra.mrb[6].mxu1 %vm357_vm2, %v17200_v38 }
0x370b   :  { %13548 = vmatprep.mubr.msk.f32.mxu1 %vm14723_vm0, %v17840_v22 }
0x37c9   :  { %v17417_v37 = vpop.f32.mrb[252].mxu1 }
0x37ca   :  { %v13484_v25 = vpop.f32.mrb[253].mxu1 }
0x37cd   :  { %v17419_v51 = vpop.f32.mrb[254].mxu1 }
0x37ce   :  { %v13487_v26 = vpop.f32.mrb[255].mxu1 }
0x37d1   :  { %v17421_v57 = vpop.f32.mrb[0].mxu1 }
0x37d2   :  { %v13490_v49 = vpop.f32.mrb[1].mxu1 }
0x37d5   :  { %v8951_v6 = vpop.f32.mrb[2].mxu1 }
0x37d6   :  { %v13518_v56 = vpop.f32.mrb[3].mxu1  ;;  %v8952_v42 = vadd.f32 %v14682_v16, %v8951_v6 }
0x37d9   :  { %v8956_v21 = vpop.f32.mrb[4].mxu1 }
0x37da   :  { %v8957_v55 = vadd.f32 %v14682_v16, %v8956_v21  ;;  %v13521_v3 = vpop.f32.mrb[5].mxu1 }
0x37dc   :  { %v14294_v31 = vpack.c.bf16 %v8957_v55, %v8952_v42 }
0x37dd   :  { %v8961_v1 = vpop.f32.mrb[6].mxu1 }
0x37de   :  { %v13524_v52 = vpop.f32.mrb[7].mxu1  ;;  %14296 = vmatpush3.bf16.xpose.msk.msra.mxu1 %vm15072_vm6, %v14294_v31  ;;  %v8962_v27 = vadd.f32 %v14682_v16, %v8961_v1 }
0x37df   :  { %13546 = vmatprep.subr.mxu1 %v17840_v22 }
0x37e6   :  { %13547 = vmatpush3.xpose.msk.msra.mxu1 %vm684_vm5, %v8962_v27 }
0x37e7   :  { %13572 = vmatprep.subr.mxu1 %v17840_v22 }
0x37e9   :  { %13549 = vmatmul.mubr.msk.f32.vlgmr.msra.gmra.mrb[8].mxu1 %vm684_vm5, %v8872_v13 }
0x37ea   :  { %13551 = vmatprep.mubr.msk.f32.mxu1 %vm14723_vm0, %v17840_v22  ;;  %13573 = vmatpush3.msra.mxu1 %v14684_v54 }
0x37eb   :  { %14300 = vmatprep.subr.bf16.mxu1 %v17841_v60 }
0x37ed   :  { %13552 = vmatmul.mubr.msk.f32.gmra.mrb[10].mxu1 %vm684_vm5, %v8877_v59 }
0x37ee   :  { %13554 = vmatprep.mubr.msk.f32.mxu1 %vm14723_vm0, %v17840_v22 }
0x37f1   :  { %13555 = vmatmul.mubr.msk.f32.gmra.mrb[12].mxu1 %vm684_vm5, %v8882_v62 }
0x37f2   :  { %13574 = vmatprep.mubr.msk.f32.mxu1 %vm14723_vm0, %v17840_v22 }
0x38bc   :  { %v9129_v33 = vpop.f32.mrb[8].mxu1 }
0x38bd   :  { %v9143_v53 = vmul.f32 0.35355338, %v9129_v33  ;;  %v13550_v19 = vpop.f32.mrb[9].mxu1 }
0x38bf   :  { %v9146_v7 = vsel %vm786_vm7, %v9143_v53, -inf }
0x38c0   :  { %9147 = vmax.xlane.f32.xlu0 %v9146_v7  ;;  %v9134_v43 = vpop.f32.mrb[10].mxu1 }
0x38c1   :  { %v9144_v40 = vmul.f32 0.35355338, %v9134_v43  ;;  %v13553_v23 = vpop.f32.mrb[11].mxu1 }
0x38c3   :  { %v9149_v39 = vsel %vm786_vm7, %v9144_v40, -inf }
0x38c4   :  { %9150 = vmax.xlane.f32.xlu1 %v9149_v39  ;;  %v9139_v25 = vpop.f32.mrb[12].mxu1 }
0x38c5   :  { %v9145_v26 = vmul.f32 0.35355338, %v9139_v25  ;;  %v13556_v32 = vpop.f32.mrb[13].mxu1 }
0x38c7   :  { %v9152_v49 = vsel %vm793_vm8, %v9145_v26, -inf }
0x38c8   :  { %9153 = vmax.xlane.f32.xlu0 %v9152_v49 }
0x394d   :  { %v9148_v6 = vpop.xlane.xlu0 %9147 }
0x394e   :  { %v9155_v56 = vsub.f32 %v9143_v53, %v9148_v6 }
0x3950   :  { %v9158_v21 = vmul.f32 1.442695, %v9155_v56 }
0x3951   :  { %v9151_v16 = vpop.xlane.xlu1 %9150 }
0x3952   :  { %14600 = vpow2.f32 %v9158_v21  ;;  %v9156_v42 = vsub.f32 %v9144_v40, %v9151_v16  ;;  %v14685_v40 = vld [vmem:[%s17805_s11 + $0x20] sm:$0xff] }
0x3954   :  { %v9160_v55 = vmul.f32 1.442695, %v9156_v42 }
0x3955   :  { %v9154_v3 = vpop.xlane.xlu0 %9153 }
0x3956   :  { %14602 = vpow2.f32 %v9160_v55  ;;  %v9157_v31 = vsub.f32 %v9145_v26, %v9154_v3 }
0x3958   :  { %v9162_v1 = vmul.f32 1.442695, %v9157_v31 }
0x395a   :  { %14604 = vpow2.f32 %v9162_v1 }
0x395c   :  { %v14601_v52 = vpop.eup %14600 }
0x395d   :  { %v9164_v27 = vsel %vm786_vm7, %v14601_v52, 0.0 }
0x395e   :  { %9165 = vadd.xlane.f32.xlu1 %v9164_v27 }
0x3960   :  { %v14603_v61 = vpop.eup %14602 }
0x3961   :  { %v9167_v13 = vsel %vm786_vm7, %v14603_v61, 0.0 }
0x3962   :  { %9168 = vadd.xlane.f32.xlu0 %v9167_v13 }
0x3964   :  { %v14605_v54 = vpop.eup %14604 }
0x3965   :  { %v9170_v59 = vsel %vm793_vm8, %v14605_v54, 0.0 }
0x3966   :  { %9171 = vadd.xlane.f32.xlu1 %v9170_v59 }
0x39eb   :  { %v9166_v62 = vpop.xlane.xlu1 %9165 }
0x39ec   :  { %14606 = vrcp.f32 %v9166_v62 }
0x39ef   :  { %v9169_v33 = vpop.xlane.xlu0 %9168 }
0x39f0   :  { %14608 = vrcp.f32 %v9169_v33 }
0x39f3   :  { %v9172_v53 = vpop.xlane.xlu1 %9171 }
0x39f4   :  { %14610 = vrcp.f32 %v9172_v53 }
0x39f6   :  { %v14607_v19 = vpop.eup %14606 }
0x39f7   :  { %v9176_v7 = vmul.f32 %v14607_v19, %v14601_v52 }
0x39f9   :  { %13564 = vmatmul.mubr.msk.f32.vlgmr.msra.gmra.mrb[8].mxu0 %vm786_vm7, %v9176_v7 }
0x39fa   :  { %v14609_v43 = vpop.eup %14608  ;;  %13566 = vmatprep.mubr.msk.f32.mxu0 %vm14723_vm0, %v17840_v22  ;;  %13584 = vmatpush3.msra.mxu0 %v14685_v40  ;;  %v14687_v40 = vld [vmem:[%s17800_s6 + $0x6] ss:$0 sm:$0xff] }
0x39fb   :  { %v9177_v23 = vmul.f32 %v14609_v43, %v14603_v61  ;;  %14306 = vmatprep.subr.bf16.mxu0 %v17841_v60 }
0x39fd   :  { %13567 = vmatmul.mubr.msk.f32.gmra.mrb[10].mxu0 %vm786_vm7, %v9177_v23 }
0x39fe   :  { %v14611_v39 = vpop.eup %14610  ;;  %13569 = vmatprep.mubr.msk.f32.mxu0 %vm14723_vm0, %v17840_v22 }
0x39ff   :  { %v9178_v25 = vmul.f32 %v14611_v39, %v14605_v54 }
0x3a01   :  { %13570 = vmatmul.mubr.msk.f32.gmra.mrb[12].mxu0 %vm786_vm7, %v9178_v25 }
0x3a02   :  { %13585 = vmatprep.mubr.msk.f32.mxu0 %vm14723_vm0, %v17840_v22 }
0x3a05   :  { %13586 = vmatmul.mubr.msk.f32.vlgmr.msra.gmra.mrb[14].mxu0 %vm684_vm5, %v17417_v37 }
0x3a06   :  { %13588 = vmatprep.mubr.msk.f32.mxu0 %vm14723_vm0, %v17840_v22  ;;  %14308 = vmatpush3.bf16.msra.mxu0 %v16724_v44 }
0x3a07   :  { %14309 = vmatprep.subr.bf16.mxu0 %v17841_v60 }
0x3a09   :  { %13589 = vmatmul.mubr.msk.f32.gmra.mrb[16].mxu0 %vm684_vm5, %v17419_v51 }
0x3a0a   :  { %13591 = vmatprep.mubr.msk.f32.mxu0 %vm14723_vm0, %v17840_v22  ;;  %14311 = vmatpush3.bf16.msra.mxu0 %v16737_v5 }
0x3a0b   :  { %14318 = vmatprep.subr.bf16.mxu0 %v17841_v60 }
0x3a0d   :  { %13592 = vmatmul.mubr.msk.f32.gmra.mrb[18].mxu0 %vm684_vm5, %v17421_v57 }
0x3a0e   :  { %13619 = vmatprep.mubr.msk.f32.mxu0 %vm14723_vm0, %v17840_v22 }
0x3a11   :  { %13620 = vmatmul.mubr.msk.f32.vlgmr.msra.gmra.mrb[20].mxu0 %vm357_vm2, %v17184_v0 }
0x3a12   :  { %13622 = vmatprep.mubr.msk.f32.mxu0 %vm14723_vm0, %v17840_v22 }
0x3a15   :  { %13623 = vmatmul.mubr.msk.f32.gmra.mrb[22].mxu0 %vm357_vm2, %v17192_v4 }
0x3a16   :  { %13625 = vmatprep.mubr.msk.f32.mxu0 %vm14723_vm0, %v17840_v22 }
0x3a19   :  { %13626 = vmatmul.mubr.msk.f32.gmra.mrb[24].mxu0 %vm357_vm2, %v17200_v38 }
0x3a1a   :  { %13651 = vmatprep.mubr.msk.f32.mxu0 %vm14723_vm0, %v17840_v22 }
0x3acc   :  { %v9257_v44 = vpop.f32.mrb[8].mxu0 }
0x3acd   :  { %v13565_v5 = vpop.f32.mrb[9].mxu0  ;;  %13575 = vmatmul.mubr.msk.f32.vlgmr.msra.gmra.mrb[14].mxu1 %vm684_vm5, %v9257_v44  ;;  %v14688_v44 = vld [vmem:[%s17805_s11 + $0x30] sm:$0xff] }
0x3ace   :  { %13577 = vmatprep.mubr.msk.f32.mxu1 %vm14723_vm0, %v17840_v22  ;;  %14302 = vmatpush3.bf16.msra.mxu1 %v16768_v10 }
0x3acf   :  { %14303 = vmatprep.subr.bf16.mxu1 %v17841_v60 }
0x3ad0   :  { %v9262_v37 = vpop.f32.mrb[10].mxu0 }
0x3ad1   :  { %v13568_v51 = vpop.f32.mrb[11].mxu0  ;;  %13578 = vmatmul.mubr.msk.f32.gmra.mrb[16].mxu1 %vm684_vm5, %v9262_v37 }
0x3ad2   :  { %13580 = vmatprep.mubr.msk.f32.mxu1 %vm14723_vm0, %v17840_v22  ;;  %14305 = vmatpush3.bf16.msra.mxu1 %v16780_v29 }
0x3ad3   :  { %14312 = vmatprep.subr.bf16.mxu1 %v17841_v60 }
0x3ad4   :  { %v9267_v57 = vpop.f32.mrb[12].mxu0 }
0x3ad5   :  { %v13571_v26 = vpop.f32.mrb[13].mxu0  ;;  %13581 = vmatmul.mubr.msk.f32.gmra.mrb[18].mxu1 %vm684_vm5, %v9267_v57 }
0x3ad6   :  { %13602 = vmatprep.mubr.msk.f32.mxu1 %vm14723_vm0, %v17840_v22 }
0x3ad8   :  { %v9435_v10 = vpop.f32.mrb[14].mxu0 }
0x3ad9   :  { %v13587_v32 = vpop.f32.mrb[15].mxu0  ;;  %13603 = vmatmul.mubr.msk.f32.vlgmr.msra.gmra.mrb[20].mxu1 %vm357_vm2, %v17184_v0 }
0x3ada   :  { %13605 = vmatprep.mubr.msk.f32.mxu1 %vm14723_vm0, %v17840_v22  ;;  %14314 = vmatpush3.bf16.msra.mxu1 %v16797_v28 }
0x3adb   :  { %14315 = vmatprep.subr.bf16.mxu1 %v17841_v60 }
0x3adc   :  { %v9440_v29 = vpop.f32.mrb[16].mxu0 }
0x3add   :  { %v13590_v49 = vpop.f32.mrb[17].mxu0  ;;  %13606 = vmatmul.mubr.msk.f32.gmra.mrb[22].mxu1 %vm357_vm2, %v17192_v4 }
0x3ade   :  { %13608 = vmatprep.mubr.msk.f32.mxu1 %vm14723_vm0, %v17840_v22  ;;  %14317 = vmatpush3.bf16.msra.mxu1 %v16810_v63  ;;  %v14686_v63 = vld [vmem:[%s17802_s8 + $0x6] ss:$0 sm:$0xff] }
0x3adf   :  { %14322 = vmatprep.subr.bf16.mxu1 %v17841_v60  ;;  %v14689_v49 = vld [vmem:[%s17804_s10 + $0x6] ss:$0 sm:$0xff] }
0x3ae0   :  { %v9445_v6 = vpop.f32.mrb[18].mxu0 }
0x3ae1   :  { %v13593_v56 = vpop.f32.mrb[19].mxu0  ;;  %13609 = vmatmul.mubr.msk.f32.gmra.mrb[24].mxu1 %vm357_vm2, %v17200_v38 }
0x3ae2   :  { %13636 = vmatprep.mubr.msk.f32.mxu1 %vm14723_vm0, %v17840_v22 }
0x3ae4   :  { %v9595_v28 = vpop.f32.mrb[20].mxu0 }
0x3ae5   :  { %v13621_v21 = vpop.f32.mrb[21].mxu0  ;;  %13637 = vmatmul.mubr.msk.f32.vlgmr.msra.gmra.mrb[26].mxu1 %vm357_vm2, %v17184_v0  ;;  %v9596_v42 = vadd.f32 %v14686_v63, %v9595_v28 }
0x3ae6   :  { %13639 = vmatprep.mubr.msk.f32.mxu1 %vm14723_vm0, %v17840_v22 }
0x3ae8   :  { %v9600_v16 = vpop.f32.mrb[22].mxu0 }
0x3ae9   :  { %v9601_v55 = vadd.f32 %v14686_v63, %v9600_v16  ;;  %v13624_v3 = vpop.f32.mrb[23].mxu0  ;;  %13640 = vmatmul.mubr.msk.f32.gmra.mrb[28].mxu1 %vm357_vm2, %v17192_v4 }
0x3aea   :  { %13642 = vmatprep.mubr.msk.f32.mxu1 %vm14723_vm0, %v17840_v22 }
0x3aeb   :  { %v14319_v31 = vpack.c.bf16 %v9601_v55, %v9596_v42 }
0x3aec   :  { %v9605_v1 = vpop.f32.mrb[24].mxu0 }
0x3aed   :  { %v13627_v52 = vpop.f32.mrb[25].mxu0  ;;  %13643 = vmatmul.mubr.msk.f32.gmra.mrb[30].mxu1 %vm357_vm2, %v17200_v38  ;;  %14321 = vmatpush3.bf16.xpose.msk.msra.mxu0 %vm15072_vm6, %v14319_v31  ;;  %v9606_v27 = vadd.f32 %v14686_v63, %v9605_v1 }
0x3aee   :  { %13649 = vmatprep.subr.mxu0 %v17840_v22  ;;  %13666 = vmatprep.mubr.msk.f32.mxu1 %vm14723_vm0, %v17840_v22 }
0x3af5   :  { %13650 = vmatpush3.xpose.msk.msra.mxu0 %vm684_vm5, %v9606_v27 }
0x3af6   :  { %13675 = vmatprep.subr.mxu0 %v17840_v22 }
0x3ba0   :  { %v9346_v61 = vpop.f32.mrb[14].mxu1 }
0x3ba1   :  { %v17546_v13 = vadd.f32 %v9435_v10, %v9346_v61  ;;  %v13576_v54 = vpop.f32.mrb[15].mxu1 }
0x3ba4   :  { %v9351_v59 = vpop.f32.mrb[16].mxu1 }
0x3ba5   :  { %v17548_v62 = vadd.f32 %v9440_v29, %v9351_v59  ;;  %v13579_v33 = vpop.f32.mrb[17].mxu1 }
0x3ba8   :  { %v9356_v53 = vpop.f32.mrb[18].mxu1 }
0x3ba9   :  { %v17550_v19 = vadd.f32 %v9445_v6, %v9356_v53  ;;  %v13582_v7 = vpop.f32.mrb[19].mxu1 }
0x3bac   :  { %v9515_v43 = vpop.f32.mrb[20].mxu1 }
0x3bad   :  { %v9516_v23 = vadd.f32 %v14687_v40, %v9515_v43  ;;  %v13604_v39 = vpop.f32.mrb[21].mxu1 }
0x3baf   :  { %13652 = vmatmul.mubr.msk.f32.vlgmr.msra.gmra.mrb[26].mxu0 %vm684_vm5, %v9516_v23 }
0x3bb0   :  { %v9520_v25 = vpop.f32.mrb[22].mxu1  ;;  %13654 = vmatprep.mubr.msk.f32.mxu0 %vm14723_vm0, %v17840_v22  ;;  %13676 = vmatpush3.msra.mxu0 %v14688_v44 }
0x3bb1   :  { %v9521_v5 = vadd.f32 %v14687_v40, %v9520_v25  ;;  %v13607_v37 = vpop.f32.mrb[23].mxu1  ;;  %14331 = vmatprep.subr.bf16.mxu0 %v17841_v60 }
0x3bb3   :  { %13655 = vmatmul.mubr.msk.f32.gmra.mrb[28].mxu0 %vm684_vm5, %v9521_v5 }
0x3bb4   :  { %v9525_v51 = vpop.f32.mrb[24].mxu1  ;;  %13657 = vmatprep.mubr.msk.f32.mxu0 %vm14723_vm0, %v17840_v22 }
0x3bb5   :  { %v9526_v57 = vadd.f32 %v14687_v40, %v9525_v51  ;;  %v13610_v26 = vpop.f32.mrb[25].mxu1 }
0x3bb7   :  { %13658 = vmatmul.mubr.msk.f32.gmra.mrb[30].mxu0 %vm684_vm5, %v9526_v57 }
0x3bb8   :  { %v9675_v10 = vpop.f32.mrb[26].mxu1  ;;  %13677 = vmatprep.mubr.msk.f32.mxu0 %vm14723_vm0, %v17840_v22 }
0x3bb9   :  { %v13638_v32 = vpop.f32.mrb[27].mxu1  ;;  %v9676_v6 = vadd.f32 %v14689_v49, %v9675_v10 }
0x3bbc   :  { %v9680_v29 = vpop.f32.mrb[28].mxu1 }
0x3bbd   :  { %v9681_v56 = vadd.f32 %v14689_v49, %v9680_v29  ;;  %v13641_v28 = vpop.f32.mrb[29].mxu1 }
0x3bbf   :  { %v14323_v21 = vpack.c.bf16 %v9681_v56, %v9676_v6 }
0x3bc0   :  { %v9685_v16 = vpop.f32.mrb[30].mxu1 }
0x3bc1   :  { %v13644_v63 = vpop.f32.mrb[31].mxu1  ;;  %14324 = vmatpush3.bf16.msra.mxu1 %v14323_v21  ;;  %v9686_v42 = vadd.f32 %v14689_v49, %v9685_v16 }
0x3bc2   :  { %13664 = vmatprep.subr.mxu1 %v17840_v22 }
0x3bc5   :  { %13665 = vmatpush3.msk.msra.mxu1 %vm830_vm4, %v9686_v42 }
0x3bc6   :  { %14325 = vmatprep.subr.bf16.mxu1 %v17841_v60 }
0x3c82   :  { %v9773_v55 = vpop.f32.mrb[26].mxu0 }
0x3c83   :  { %v9787_v3 = vmul.f32 0.35355338, %v9773_v55  ;;  %v13653_v31 = vpop.f32.mrb[27].mxu0 }
0x3c85   :  { %v9790_v1 = vsel %vm786_vm7, %v9787_v3, -inf }
0x3c86   :  { %9791 = vmax.xlane.f32.xlu0 %v9790_v1  ;;  %v9778_v52 = vpop.f32.mrb[28].mxu0 }
0x3c87   :  { %v9788_v27 = vmul.f32 0.35355338, %v9778_v52  ;;  %v13656_v61 = vpop.f32.mrb[29].mxu0 }
0x3c89   :  { %v9793_v54 = vsel %vm786_vm7, %v9788_v27, -inf }
0x3c8a   :  { %9794 = vmax.xlane.f32.xlu1 %v9793_v54  ;;  %v9783_v59 = vpop.f32.mrb[30].mxu0 }
0x3c8b   :  { %v9789_v33 = vmul.f32 0.35355338, %v9783_v59  ;;  %v13659_v53 = vpop.f32.mrb[31].mxu0 }
0x3c8c   :  { %v14690_v53 = vld [vmem:[%s17804_s10 + $0x7] ss:$0 sm:$0xff] }
0x3c8d   :  { %v9796_v7 = vsel %vm793_vm8, %v9789_v33, -inf }
0x3c8e   :  { %9797 = vmax.xlane.f32.xlu0 %v9796_v7 }
0x3d13   :  { %v9792_v43 = vpop.xlane.xlu0 %9791 }
0x3d14   :  { %v9799_v40 = vsub.f32 %v9787_v3, %v9792_v43 }
0x3d16   :  { %v9802_v23 = vmul.f32 1.442695, %v9799_v40 }
0x3d17   :  { %v9795_v39 = vpop.xlane.xlu1 %9794 }
0x3d18   :  { %14612 = vpow2.f32 %v9802_v23  ;;  %v9800_v25 = vsub.f32 %v9788_v27, %v9795_v39 }
0x3d1a   :  { %v9804_v44 = vmul.f32 1.442695, %v9800_v25 }
0x3d1b   :  { %v9798_v5 = vpop.xlane.xlu0 %9797 }
0x3d1c   :  { %14614 = vpow2.f32 %v9804_v44  ;;  %v9801_v37 = vsub.f32 %v9789_v33, %v9798_v5 }
0x3d1e   :  { %v9806_v51 = vmul.f32 1.442695, %v9801_v37 }
0x3d20   :  { %14616 = vpow2.f32 %v9806_v51 }
0x3d22   :  { %v14613_v57 = vpop.eup %14612 }
0x3d23   :  { %v9808_v26 = vsel %vm786_vm7, %v14613_v57, 0.0 }
0x3d24   :  { %9809 = vadd.xlane.f32.xlu1 %v9808_v26 }
0x3d26   :  { %v14615_v10 = vpop.eup %14614 }
0x3d27   :  { %v9811_v32 = vsel %vm786_vm7, %v14615_v10, 0.0 }
0x3d28   :  { %9812 = vadd.xlane.f32.xlu0 %v9811_v32 }
0x3d2a   :  { %v14617_v29 = vpop.eup %14616 }
0x3d2b   :  { %v9814_v49 = vsel %vm793_vm8, %v14617_v29, 0.0 }
0x3d2c   :  { %9815 = vadd.xlane.f32.xlu1 %v9814_v49 }
0x3db1   :  { %v9810_v6 = vpop.xlane.xlu1 %9809 }
0x3db2   :  { %14618 = vrcp.f32 %v9810_v6 }
0x3db5   :  { %v9813_v56 = vpop.xlane.xlu0 %9812 }
0x3db6   :  { %14620 = vrcp.f32 %v9813_v56  ;;  %v14691_v56 = vld [vmem:[%s17802_s8 + $0x7] ss:$0 sm:$0xff] }
0x3db9   :  { %v9816_v28 = vpop.xlane.xlu1 %9815 }
0x3dba   :  { %14622 = vrcp.f32 %v9816_v28 }
0x3dbc   :  { %v14619_v21 = vpop.eup %14618 }
0x3dbd   :  { %v9820_v16 = vmul.f32 %v14619_v21, %v14613_v57 }
0x3dbf   :  { %13667 = vmatmul.mubr.msk.f32.vlgmr.msra.gmra.mrb[32].mxu1 %vm786_vm7, %v9820_v16 }
0x3dc0   :  { %v14621_v63 = vpop.eup %14620  ;;  %13669 = vmatprep.mubr.msk.f32.mxu1 %vm14723_vm0, %v17840_v22  ;;  %14327 = vmatpush3.bf16.msra.mxu1 %v16883_v9 }
0x3dc1   :  { %v9821_v42 = vmul.f32 %v14621_v63, %v14615_v10  ;;  %14328 = vmatprep.subr.bf16.mxu1 %v17841_v60 }
0x3dc3   :  { %13670 = vmatmul.mubr.msk.f32.gmra.mrb[34].mxu1 %vm786_vm7, %v9821_v42  ;;  %v14692_v42 = vld [vmem:[%s17800_s6 + $0x7] ss:$0 sm:$0xff] }
0x3dc4   :  { %v14623_v55 = vpop.eup %14622  ;;  %13672 = vmatprep.mubr.msk.f32.mxu1 %vm14723_vm0, %v17840_v22  ;;  %14330 = vmatpush3.bf16.msra.mxu1 %v16895_v45 }
0x3dc5   :  { %v9822_v3 = vmul.f32 %v14623_v55, %v14617_v29  ;;  %14337 = vmatprep.subr.bf16.mxu1 %v17841_v60 }
0x3dc7   :  { %13673 = vmatmul.mubr.msk.f32.gmra.mrb[36].mxu1 %vm786_vm7, %v9822_v3 }
0x3dc8   :  { %13694 = vmatprep.mubr.msk.f32.mxu1 %vm14723_vm0, %v17840_v22 }
0x3dcb   :  { %13695 = vmatmul.mubr.msk.f32.vlgmr.msra.gmra.mrb[38].mxu1 %vm357_vm2, %v17184_v0 }
0x3dcc   :  { %13697 = vmatprep.mubr.msk.f32.mxu1 %vm14723_vm0, %v17840_v22  ;;  %14339 = vmatpush3.bf16.msra.mxu1 %v16912_v35 }
0x3dcd   :  { %14340 = vmatprep.subr.bf16.mxu1 %v17841_v60 }
0x3dcf   :  { %13698 = vmatmul.mubr.msk.f32.gmra.mrb[40].mxu1 %vm357_vm2, %v17192_v4 }
0x3dd0   :  { %13700 = vmatprep.mubr.msk.f32.mxu1 %vm14723_vm0, %v17840_v22  ;;  %14342 = vmatpush3.bf16.msra.mxu1 %v16925_v41 }
0x3dd1   :  { %14347 = vmatprep.subr.bf16.mxu1 %v17841_v60 }
0x3dd3   :  { %13701 = vmatmul.mubr.msk.f32.gmra.mrb[42].mxu1 %vm357_vm2, %v17200_v38 }
0x3dd4   :  { %13728 = vmatprep.mubr.msk.f32.mxu1 %vm14723_vm0, %v17840_v22 }
0x3dd7   :  { %13729 = vmatmul.mubr.msk.f32.vlgmr.msra.gmra.mrb[44].mxu1 %vm357_vm2, %v17184_v0 }
0x3dd8   :  { %13731 = vmatprep.mubr.msk.f32.mxu1 %vm14723_vm0, %v17840_v22 }
0x3ddb   :  { %13732 = vmatmul.mubr.msk.f32.gmra.mrb[46].mxu1 %vm357_vm2, %v17192_v4 }
0x3ddc   :  { %13734 = vmatprep.mubr.msk.f32.mxu1 %vm14723_vm0, %v17840_v22 }
0x3ddf   :  { %13735 = vmatmul.mubr.msk.f32.gmra.mrb[48].mxu1 %vm357_vm2, %v17200_v38 }
0x3de0   :  { %13758 = vmatprep.mubr.msk.f32.mxu1 %vm14723_vm0, %v17840_v22 }
0x3e92   :  { %v9901_v9 = vpop.f32.mrb[32].mxu1 }
0x3e93   :  { %v13668_v45 = vpop.f32.mrb[33].mxu1  ;;  %13678 = vmatmul.mubr.msk.f32.vlgmr.msra.gmra.mrb[32].mxu0 %vm684_vm5, %v9901_v9 }
0x3e94   :  { %13680 = vmatprep.mubr.msk.f32.mxu0 %vm14723_vm0, %v17840_v22  ;;  %14333 = vmatpush3.bf16.msra.mxu0 %v16956_v48 }
0x3e95   :  { %14334 = vmatprep.subr.bf16.mxu0 %v17841_v60 }
0x3e96   :  { %v9906_v35 = vpop.f32.mrb[34].mxu1 }
0x3e97   :  { %v13671_v41 = vpop.f32.mrb[35].mxu1  ;;  %13681 = vmatmul.mubr.msk.f32.gmra.mrb[34].mxu0 %vm684_vm5, %v9906_v35 }
0x3e98   :  { %13683 = vmatprep.mubr.msk.f32.mxu0 %vm14723_vm0, %v17840_v22  ;;  %14336 = vmatpush3.bf16.msra.mxu0 %v16968_v50 }
0x3e99   :  { %14343 = vmatprep.subr.bf16.mxu0 %v17841_v60 }
0x3e9a   :  { %v9911_v31 = vpop.f32.mrb[36].mxu1 }
0x3e9b   :  { %v13674_v1 = vpop.f32.mrb[37].mxu1  ;;  %13684 = vmatmul.mubr.msk.f32.gmra.mrb[36].mxu0 %vm684_vm5, %v9911_v31 }
0x3e9c   :  { %13711 = vmatprep.mubr.msk.f32.mxu0 %vm14723_vm0, %v17840_v22 }
0x3e9e   :  { %v10073_v48 = vpop.f32.mrb[38].mxu1 }
0x3e9f   :  { %v13696_v52 = vpop.f32.mrb[39].mxu1  ;;  %13712 = vmatmul.mubr.msk.f32.vlgmr.msra.gmra.mrb[38].mxu0 %vm357_vm2, %v17184_v0  ;;  %v10074_v55 = vadd.f32 %v14692_v42, %v10073_v48 }
0x3ea0   :  { %13714 = vmatprep.mubr.msk.f32.mxu0 %vm14723_vm0, %v17840_v22 }
0x3ea2   :  { %v10078_v27 = vpop.f32.mrb[40].mxu1 }
0x3ea3   :  { %v13699_v61 = vpop.f32.mrb[41].mxu1  ;;  %13715 = vmatmul.mubr.msk.f32.gmra.mrb[40].mxu0 %vm357_vm2, %v17192_v4  ;;  %v10079_v3 = vadd.f32 %v14692_v42, %v10078_v27 }
0x3ea4   :  { %13717 = vmatprep.mubr.msk.f32.mxu0 %vm14723_vm0, %v17840_v22 }
0x3ea6   :  { %v10083_v50 = vpop.f32.mrb[42].mxu1 }
0x3ea7   :  { %v13702_v54 = vpop.f32.mrb[43].mxu1  ;;  %13718 = vmatmul.mubr.msk.f32.gmra.mrb[42].mxu0 %vm357_vm2, %v17200_v38  ;;  %v10084_v9 = vadd.f32 %v14692_v42, %v10083_v50 }
0x3ea8   :  { %13743 = vmatprep.mubr.msk.f32.mxu0 %vm14723_vm0, %v17840_v22 }
0x3eaa   :  { %v10233_v0 = vpop.f32.mrb[44].mxu1 }
0x3eab   :  { %v13730_v59 = vpop.f32.mrb[45].mxu1  ;;  %v10234_v7 = vadd.f32 %v14690_v53, %v10233_v0 }
0x3eae   :  { %v10238_v33 = vpop.f32.mrb[46].mxu1 }
0x3eaf   :  { %v10239_v4 = vadd.f32 %v14690_v53, %v10238_v33  ;;  %v13733_v43 = vpop.f32.mrb[47].mxu1 }
0x3eb1   :  { %v14348_v40 = vpack.c.bf16 %v10239_v4, %v10234_v7 }
0x3eb2   :  { %v10243_v23 = vpop.f32.mrb[48].mxu1 }
0x3eb3   :  { %v13736_v39 = vpop.f32.mrb[49].mxu1  ;;  %14349 = vmatpush3.bf16.msra.mxu1 %v14348_v40  ;;  %v10244_v38 = vadd.f32 %v14690_v53, %v10243_v23 }
0x3eb4   :  { %13756 = vmatprep.subr.mxu1 %v17840_v22 }
0x3eb7   :  { %13757 = vmatpush3.msk.msra.mxu1 %vm830_vm4, %v10244_v38 }
0x3eb8   :  { %14350 = vmatprep.subr.bf16.mxu1 %v17841_v60 }
0x3f66   :  { %v9990_v25 = vpop.f32.mrb[32].mxu0 }
0x3f67   :  { %v17653_v44 = vadd.f32 %v9990_v25, %v17546_v13  ;;  %v13679_v5 = vpop.f32.mrb[33].mxu0 }
0x3f6a   :  { %v9995_v37 = vpop.f32.mrb[34].mxu0 }
0x3f6b   :  { %v17656_v51 = vadd.f32 %v9995_v37, %v17548_v62  ;;  %v13682_v57 = vpop.f32.mrb[35].mxu0 }
0x3f6e   :  { %v10000_v26 = vpop.f32.mrb[36].mxu0 }
0x3f6f   :  { %v17659_v10 = vadd.f32 %v10000_v26, %v17550_v19  ;;  %v13685_v32 = vpop.f32.mrb[37].mxu0 }
0x3f72   :  { %v10153_v29 = vpop.f32.mrb[38].mxu0 }
0x3f73   :  { %v13713_v49 = vpop.f32.mrb[39].mxu0  ;;  %v10154_v13 = vadd.f32 %v14691_v56, %v10153_v29 }
0x3f76   :  { %v10158_v6 = vpop.f32.mrb[40].mxu0 }
0x3f77   :  { %v10159_v28 = vadd.f32 %v14691_v56, %v10158_v6  ;;  %v13716_v21 = vpop.f32.mrb[41].mxu0 }
0x3f79   :  { %v14344_v16 = vpack.c.bf16 %v10159_v28, %v10154_v13 }
0x3f7a   :  { %v10163_v63 = vpop.f32.mrb[42].mxu0 }
0x3f7b   :  { %v13719_v62 = vpop.f32.mrb[43].mxu0  ;;  %14346 = vmatpush3.bf16.xpose.msk.msra.mxu0 %vm15072_vm6, %v14344_v16  ;;  %v10164_v19 = vadd.f32 %v14691_v56, %v10163_v63 }
0x3f7c   :  { %13741 = vmatprep.subr.mxu0 %v17840_v22 }
0x3f83   :  { %13742 = vmatpush3.xpose.msk.msra.mxu0 %vm684_vm5, %v10164_v19 }
0x3f84   :  { %13767 = vmatprep.subr.mxu0 %v17840_v22 }
0x3f86   :  { %13744 = vmatmul.mubr.msk.f32.vlgmr.msra.gmra.mrb[44].mxu0 %vm684_vm5, %v10074_v55 }
0x3f87   :  { %13746 = vmatprep.mubr.msk.f32.mxu0 %vm14723_vm0, %v17840_v22  ;;  %13768 = vmatpush3.msra.mxu0 %v14693_v2 }
0x3f88   :  { %14356 = vmatprep.subr.bf16.mxu0 %v17841_v60 }
0x3f8a   :  { %13747 = vmatmul.mubr.msk.f32.gmra.mrb[46].mxu0 %vm684_vm5, %v10079_v3 }
0x3f8b   :  { %13749 = vmatprep.mubr.msk.f32.mxu0 %vm14723_vm0, %v17840_v22 }
0x3f8e   :  { %13750 = vmatmul.mubr.msk.f32.gmra.mrb[48].mxu0 %vm684_vm5, %v10084_v9 }
0x3f8f   :  { %13769 = vmatprep.mubr.msk.f32.mxu0 %vm14723_vm0, %v17840_v22 }
0x4059   :  { %v10331_v45 = vpop.f32.mrb[44].mxu0 }
0x405a   :  { %v10345_v35 = vmul.f32 0.35355338, %v10331_v45  ;;  %v13745_v41 = vpop.f32.mrb[45].mxu0 }
0x405c   :  { %v10348_v31 = vsel %vm786_vm7, %v10345_v35, -inf }
0x405d   :  { %10349 = vmax.xlane.f32.xlu0 %v10348_v31  ;;  %v10336_v1 = vpop.f32.mrb[46].mxu0 }
0x405e   :  { %v10346_v48 = vmul.f32 0.35355338, %v10336_v1  ;;  %v13748_v52 = vpop.f32.mrb[47].mxu0 }
0x4060   :  { %v10351_v27 = vsel %vm786_vm7, %v10346_v48, -inf }
0x4061   :  { %10352 = vmax.xlane.f32.xlu0 %v10351_v27  ;;  %v10341_v61 = vpop.f32.mrb[48].mxu0 }
0x4062   :  { %v13751_v54 = vpop.f32.mrb[49].mxu0  ;;  %v10347_v43 = vmul.f32 0.35355338, %v10341_v61 }
0x4064   :  { %v10354_v38 = vsel %vm793_vm8, %v10347_v43, -inf }
0x40ea   :  { %v10350_v50 = vpop.xlane.xlu0 %10349 }
0x40eb   :  { %v10357_v0 = vsub.f32 %v10345_v35, %v10350_v50 }
0x40ed   :  { %v10360_v59 = vmul.f32 1.442695, %v10357_v0 }
0x40ee   :  { %v10353_v33 = vpop.xlane.xlu0 %10352 }
0x40ef   :  { %14624 = vpow2.f32 %v10360_v59  ;;  %v10358_v53 = vsub.f32 %v10346_v48, %v10353_v33 }
0x40f1   :  { %v10362_v7 = vmul.f32 1.442695, %v10358_v53 }
0x40f3   :  { %14626 = vpow2.f32 %v10362_v7 }
0x40f9   :  { %v14625_v4 = vpop.eup %14624 }
0x40fa   :  { %v10366_v40 = vsel %vm786_vm7, %v14625_v4, 0.0 }
0x40fb   :  { %10367 = vadd.xlane.f32.xlu1 %v10366_v40 }
0x40fd   :  { %v14627_v23 = vpop.eup %14626 }
0x40fe   :  { %v10369_v39 = vsel %vm786_vm7, %v14627_v23, 0.0 }
0x40ff   :  { %10370 = vadd.xlane.f32.xlu0 %v10369_v39  ;;  %10355 = vmax.xlane.f32.xlu1 %v10354_v38 }
0x4188   :  { %v10368_v25 = vpop.xlane.xlu1 %10367 }
0x4189   :  { %14628 = vrcp.f32 %v10368_v25 }
0x418c   :  { %v10371_v5 = vpop.xlane.xlu0 %10370  ;;  %v10356_v37 = vpop.xlane.xlu1 %10355 }
0x418d   :  { %14630 = vrcp.f32 %v10371_v5  ;;  %v10359_v57 = vsub.f32 %v10347_v43, %v10356_v37 }
0x418f   :  { %v10364_v26 = vmul.f32 1.442695, %v10359_v57  ;;  %v14696_v57 = vld [vmem:[%s17808_s14 + $0x1] ss:$0 sm:$0xff] }
0x4191   :  { %14632 = vpow2.f32 %v10364_v26 }
0x4193   :  { %v14629_v32 = vpop.eup %14628 }
0x4194   :  { %v10378_v29 = vmul.f32 %v14629_v32, %v14625_v4 }
0x4196   :  { %13759 = vmatmul.mubr.msk.f32.vlgmr.msra.gmra.mrb[50].mxu1 %vm786_vm7, %v10378_v29 }
0x4197   :  { %v14631_v49 = vpop.eup %14630  ;;  %13761 = vmatprep.mubr.msk.f32.mxu1 %vm14723_vm0, %v17840_v22  ;;  %14352 = vmatpush3.bf16.msra.mxu1 %v17130_v20 }
0x4198   :  { %v10379_v6 = vmul.f32 %v14631_v49, %v14627_v23  ;;  %14353 = vmatprep.subr.bf16.mxu1 %v17841_v60 }
0x419a   :  { %13762 = vmatmul.mubr.msk.f32.gmra.mrb[52].mxu1 %vm786_vm7, %v10379_v6 }
0x419b   :  { %v14633_v56 = vpop.eup %14632  ;;  %13764 = vmatprep.mubr.msk.f32.mxu1 %vm14723_vm0, %v17840_v22  ;;  %14355 = vmatpush3.bf16.msra.mxu1 %v17140_v8 }
0x419c   :  { %v10372_v13 = vsel %vm793_vm8, %v14633_v56, 0.0 }
0x419d   :  { %10373 = vadd.xlane.f32.xlu1 %v10372_v13 }
0x422a   :  { %v10374_v28 = vpop.xlane.xlu1 %10373 }
0x422b   :  { %14634 = vrcp.f32 %v10374_v28 }
0x4235   :  { %v14635_v21 = vpop.eup %14634 }
0x4236   :  { %v10380_v16 = vmul.f32 %v14635_v21, %v14633_v56 }
0x4238   :  { %13765 = vmatmul.mubr.msk.f32.gmra.mrb[54].mxu1 %vm786_vm7, %v10380_v16 }
0x4239   :  { %13786 = vmatprep.mubr.msk.f32.mxu1 %vm14723_vm0, %v17840_v22 }
0x4269   :  { %v10459_v20 = vpop.f32.mrb[50].mxu1 }
0x426a   :  { %v13760_v63 = vpop.f32.mrb[51].mxu1  ;;  %13770 = vmatmul.mubr.msk.f32.vlgmr.msra.gmra.mrb[50].mxu0 %vm684_vm5, %v10459_v20 }
0x426b   :  { %13772 = vmatprep.mubr.msk.f32.mxu0 %vm14723_vm0, %v17840_v22  ;;  %14358 = vmatpush3.bf16.msra.mxu0 %v17150_v34 }
0x426c   :  { %14359 = vmatprep.subr.bf16.mxu0 %v17841_v60 }
0x426d   :  { %v10464_v8 = vpop.f32.mrb[52].mxu1 }
0x426e   :  { %v13763_v62 = vpop.f32.mrb[53].mxu1  ;;  %13773 = vmatmul.mubr.msk.f32.gmra.mrb[52].mxu0 %vm684_vm5, %v10464_v8 }
0x426f   :  { %13775 = vmatprep.mubr.msk.f32.mxu0 %vm14723_vm0, %v17840_v22  ;;  %14361 = vmatpush3.bf16.msra.mxu0 %v17225_v24  ;;  %v14697_v62 = vld [vmem:[%s17810_s16 + $0x1] ss:$0 sm:$0xff] }
0x4270   :  { %14362 = vmatprep.subr.bf16.mxu0 %v17841_v60 }
0x4273   :  { %14364 = vmatpush3.bf16.msra.mxu0 %v17235_v18 }
0x4274   :  { %14365 = vmatprep.subr.bf16.mxu0 %v17841_v60 }
0x4277   :  { %14367 = vmatpush3.bf16.msra.mxu0 %v17245_v47 }
0x4278   :  { %14368 = vmatprep.subr.bf16.mxu0 %v17841_v60 }
0x427b   :  { %14370 = vmatpush3.bf16.msra.mxu0 %v17255_v11 }
0x427c   :  { %14371 = vmatprep.subr.bf16.mxu0 %v17841_v60 }
0x427f   :  { %14373 = vmatpush3.bf16.msra.mxu0 %v17265_v14 }
0x4280   :  { %14374 = vmatprep.subr.bf16.mxu0 %v17841_v60 }
0x4283   :  { %14376 = vmatpush3.bf16.msra.mxu0 %v17275_v36 }
0x4284   :  { %14377 = vmatprep.subr.bf16.mxu0 %v17841_v60  ;;  %v14694_v60 = vld [vmem:[%s17806_s12 + $0x1] ss:$0 sm:$0xff] }
0x4287   :  { %14379 = vmatpush3.bf16.msra.mxu0 %v17285_v15 }
0x430b   :  { %v10469_v34 = vpop.f32.mrb[54].mxu1 }
0x430c   :  { %v13766_v24 = vpop.f32.mrb[55].mxu1  ;;  %13776 = vmatmul.mubr.msk.f32.gmra.mrb[54].mxu0 %vm684_vm5, %v10469_v34 }
0x430d   :  { %13827 = vmatprep.mubr.msk.f32.mxu0 %vm14723_vm0, %v17840_v22 }
0x433d   :  { %v10548_v18 = vpop.f32.mrb[50].mxu0 }
0x433e   :  { %v10562_v47 = vadd.f32 %v10548_v18, %v17653_v44  ;;  %v13771_v11 = vpop.f32.mrb[51].mxu0 }
0x4340   :  { %v10565_v14 = vadd.f32 %v10562_v47, %v17071_v17 }
0x4341   :  { %v10553_v19 = vpop.f32.mrb[52].mxu0 }
0x4342   :  { %v17732_v36 = vadd.f32 %v14694_v60, %v10565_v14  ;;  %v10563_v15 = vadd.f32 %v10553_v19, %v17656_v51  ;;  %v13774_v42 = vpop.f32.mrb[53].mxu0 }
0x4344   :  { %v10566_v55 = vadd.f32 %v10563_v15, %v17078_v30  ;;  %v10571_v2 = vsel %vm357_vm2, %v17732_v36, 0.0 }
0x4345   :  { %10572 = vadd.xlane.f32.xlu0 %v10571_v2 }
0x4346   :  { %v10569_v44 = vadd.f32 %v14694_v60, %v10566_v55 }
0x4348   :  { %v10574_v3 = vsel %vm357_vm2, %v10569_v44, 0.0 }
0x4349   :  { %10575 = vadd.xlane.f32.xlu0 %v10574_v3 }
0x43d2   :  { %v10573_v17 = vpop.xlane.xlu0 %10572 }
0x43d3   :  { %v10580_v9 = vmul.f32 0.03125, %v10573_v17 }
0x43d5   :  { %v10583_v45 = vsub.f32 %v17732_v36, %v10580_v9 }
0x43d6   :  { %v10576_v35 = vpop.xlane.xlu0 %10575 }
0x43d7   :  { %v10581_v41 = vmul.f32 0.03125, %v10576_v35  ;;  %v10586_v31 = vmul.f32 %v10583_v45, %v10583_v45 }
0x43d9   :  { %v10584_v1 = vsub.f32 %v10569_v44, %v10581_v41  ;;  %v10589_v51 = vsel %vm357_vm2, %v10586_v31, 0.0 }
0x43da   :  { %10590 = vadd.xlane.f32.xlu1 %v10589_v51 }
0x43db   :  { %v10587_v30 = vmul.f32 %v10584_v1, %v10584_v1 }
0x43dd   :  { %v10592_v48 = vsel %vm357_vm2, %v10587_v30, 0.0 }
0x43de   :  { %10593 = vadd.xlane.f32.xlu0 %v10592_v48 }
0x43df   :  { %v10558_v52 = vpop.f32.mrb[54].mxu0 }
0x43e0   :  { %v10564_v27 = vadd.f32 %v10558_v52, %v17659_v10  ;;  %v13777_v61 = vpop.f32.mrb[55].mxu0 }
0x43e2   :  { %v10567_v54 = vadd.f32 %v10564_v27, %v17081_v58  ;;  %v14695_v58 = vld [vmem:[%s17807_s13 + $0x1] ss:$0 sm:$0xff] }
0x43e4   :  { %v10570_v50 = vadd.f32 %v14694_v60, %v10567_v54 }
0x43e6   :  { %v10577_v0 = vsel %vm364_vm3, %v10570_v50, 0.0 }
0x43e7   :  { %10578 = vadd.xlane.f32.xlu1 %v10577_v0 }
0x4467   :  { %v10591_v59 = vpop.xlane.xlu1 %10590 }
0x4468   :  { %v10598_v33 = vmul.f32 0.03125, %v10591_v59 }
0x446a   :  { %v10601_v53 = vadd.f32 1e-05, %v10598_v33 }
0x446b   :  { %v10594_v7 = vpop.xlane.xlu0 %10593 }
0x446c   :  { %14636 = vrsqrt.f32 %v10601_v53  ;;  %v10599_v4 = vmul.f32 0.03125, %v10594_v7 }
0x446e   :  { %v10602_v43 = vadd.f32 1e-05, %v10599_v4 }
0x4470   :  { %14638 = vrsqrt.f32 %v10602_v43  ;;  %v11270_v43 = vld [vmem:[%s17812_s18 + $0x1] ss:$0 sm:$0xff] }
0x4474   :  { %v10579_v40 = vpop.xlane.xlu1 %10578 }
0x4475   :  { %v10582_v23 = vmul.f32 0.03125, %v10579_v40 }
0x4476   :  { %v14637_v39 = vpop.eup %14636 }
0x4477   :  { %v10607_v38 = vmul.f32 %v14637_v39, %v10583_v45  ;;  %v10585_v10 = vsub.f32 %v10570_v50, %v10582_v23 }
0x4479   :  { %v10610_v25 = vmul.f32 %v14695_v58, %v10607_v38  ;;  %v10588_v5 = vmul.f32 %v10585_v10, %v10585_v10 }
0x447a   :  { %v14639_v37 = vpop.eup %14638 }
0x447b   :  { %v10613_v26 = vadd.f32 %v14696_v57, %v10610_v25  ;;  %v10608_v32 = vmul.f32 %v14639_v37, %v10584_v1  ;;  %v10595_v29 = vsel %vm364_vm3, %v10588_v5, 0.0 }
0x447c   :  { %10596 = vadd.xlane.f32.xlu1 %v10595_v29 }
0x447d   :  { %v10611_v49 = vmul.f32 %v14695_v58, %v10608_v32  ;;  %13787 = vmatmul.mubr.msk.f32.vlgmr.msra.gmra.mrb[56].mxu1 %vm357_vm2, %v10613_v26 }
0x447e   :  { %13789 = vmatprep.mubr.msk.f32.mxu1 %vm14723_vm0, %v17840_v22 }
0x447f   :  { %v10614_v6 = vadd.f32 %v14696_v57, %v10611_v49 }
0x4481   :  { %13790 = vmatmul.mubr.msk.f32.gmra.mrb[58].mxu1 %vm357_vm2, %v10614_v6 }
0x4482   :  { %13792 = vmatprep.mubr.msk.f32.mxu1 %vm14723_vm0, %v17840_v22 }
0x4509   :  { %v10597_v56 = vpop.xlane.xlu1 %10596 }
0x450a   :  { %v10600_v13 = vmul.f32 0.03125, %v10597_v56 }
0x450c   :  { %v10603_v28 = vadd.f32 1e-05, %v10600_v13 }
0x450e   :  { %14640 = vrsqrt.f32 %v10603_v28 }
0x4518   :  { %v14641_v21 = vpop.eup %14640 }
0x4519   :  { %v10609_v16 = vmul.f32 %v14641_v21, %v10585_v10  ;;  %v11362_v21 = vld [vmem:[%s17813_s19] ss:$0 sm:$0xff] }
0x451b   :  { %v10612_v20 = vmul.f32 %v14695_v58, %v10609_v16 }
0x451d   :  { %v10615_v63 = vadd.f32 %v14696_v57, %v10612_v20  ;;  %v11363_v20 = vld [vmem:[%s17814_s20] ss:$0 sm:$0xff] }
0x451f   :  { %13793 = vmatmul.mubr.msk.f32.gmra.mrb[60].mxu1 %vm357_vm2, %v10615_v63 }
0x4550   :  { %v10691_v8 = vpop.f32.mrb[56].mxu1 }
0x4551   :  { %v10692_v34 = vadd.f32 %v14697_v62, %v10691_v8  ;;  %v13788_v24 = vpop.f32.mrb[57].mxu1 }
0x4553   :  { %v10708_v18 = vmul.f32 0.044715, %v10692_v34  ;;  %v10705_v45 = vmul.f32 0.5, %v10692_v34 }
0x4554   :  { %v10696_v47 = vpop.f32.mrb[58].mxu1 }
0x4555   :  { %v10711_v11 = vmul.f32 %v10708_v18, %v10692_v34  ;;  %v10697_v14 = vadd.f32 %v14697_v62, %v10696_v47  ;;  %v13791_v19 = vpop.f32.mrb[59].mxu1 }
0x4557   :  { %v10714_v60 = vmul.f32 %v10711_v11, %v10692_v34  ;;  %v10709_v15 = vmul.f32 0.044715, %v10697_v14  ;;  %v10706_v1 = vmul.f32 0.5, %v10697_v14 }
0x4559   :  { %v10717_v42 = vadd.f32 %v10714_v60, %v10692_v34  ;;  %v10712_v55 = vmul.f32 %v10709_v15, %v10697_v14 }
0x455b   :  { %v10720_v2 = vmul.f32 0.7978846, %v10717_v42  ;;  %v10715_v44 = vmul.f32 %v10712_v55, %v10697_v14 }
0x455d   :  { %14642 = vtanh.f32 %v10720_v2  ;;  %v10718_v3 = vadd.f32 %v10715_v44, %v10697_v14 }
0x455f   :  { %v10721_v17 = vmul.f32 0.7978846, %v10718_v3 }
0x4561   :  { %14644 = vtanh.f32 %v10721_v17 }
0x4567   :  { %v14643_v9 = vpop.eup %14642 }
0x4568   :  { %v10726_v35 = vadd.f32 1.0, %v14643_v9 }
0x456a   :  { %v10729_v41 = vmul.f32 %v10726_v35, %v10705_v45 }
0x456b   :  { %v14645_v31 = vpop.eup %14644 }
0x456c   :  { %13828 = vmatmul.mubr.f32.vlgmr.msra.gmra.mrb[56].mxu0 %v10729_v41  ;;  %v10727_v51 = vadd.f32 1.0, %v14645_v31 }
0x456d   :  { %13830 = vmatprep.mubr.msk.f32.mxu0 %vm14723_vm0, %v17840_v22 }
0x456e   :  { %v10730_v30 = vmul.f32 %v10727_v51, %v10706_v1 }
0x4570   :  { %13831 = vmatmul.mubr.f32.gmra.mrb[58].mxu0 %v10730_v30 }
0x4571   :  { %13833 = vmatprep.mubr.msk.f32.mxu0 %vm14723_vm0, %v17840_v22  ;;  %v8273_v22 = vadd.f32 %v11270_v43, %v17366_v12 }
0x4573   :  { %v8284_v58 = vadd.f32 %v8273_v22, %v17059_v46 }
0x45f2   :  { %v10701_v48 = vpop.f32.mrb[60].mxu1 }
0x45f3   :  { %v10702_v52 = vadd.f32 %v14697_v62, %v10701_v48  ;;  %v13794_v27 = vpop.f32.mrb[61].mxu1 }
0x45f5   :  { %v10710_v61 = vmul.f32 0.044715, %v10702_v52  ;;  %v10707_v53 = vmul.f32 0.5, %v10702_v52 }
0x45f7   :  { %v10713_v54 = vmul.f32 %v10710_v61, %v10702_v52 }
0x45f9   :  { %v10716_v50 = vmul.f32 %v10713_v54, %v10702_v52 }
0x45fb   :  { %v10719_v0 = vadd.f32 %v10716_v50, %v10702_v52 }
0x45fd   :  { %v10722_v59 = vmul.f32 0.7978846, %v10719_v0 }
0x45ff   :  { %14646 = vtanh.f32 %v10722_v59 }
0x4609   :  { %v14647_v33 = vpop.eup %14646 }
0x460a   :  { %v10728_v7 = vadd.f32 1.0, %v14647_v33 }
0x460c   :  { %v10731_v4 = vmul.f32 %v10728_v7, %v10707_v53 }
0x460e   :  { %13834 = vmatmul.mubr.f32.gmra.mrb[60].mxu0 %v10731_v4 }
0x463f   :  { %v10798_v40 = vpop.f32.mrb[56].mxu0 }
0x4640   :  { %v10799_v23 = vadd.f32 %v11270_v43, %v10798_v40  ;;  %v13829_v39 = vpop.f32.mrb[57].mxu0 }
0x4642   :  { %v10810_v38 = vadd.f32 %v10799_v23, %v17732_v36 }
0x4643   :  { %v10803_v10 = vpop.f32.mrb[58].mxu0 }
0x4644   :  { %v10812_v25 = vrot.slane %v10810_v38, 7  ;;  %v13832_v5 = vpop.f32.mrb[59].mxu0 }
0x4646   :  { %v10814_v37 = vsel %vm830_vm4, %v8284_v58, %v10812_v25 }
0x4647   :  { %v10818_v57 = vsel %vm10817_vm9, %v10814_v37, 0.0 }
0x4648   :  { %10819 = vadd.xlane.f32.xlu0 %v10818_v57 }
0x46d5   :  { %v10820_v26 = vpop.xlane.xlu0 %10819 }
0x46d6   :  { %v10821_v32 = vmul.f32 0.03125, %v10820_v26 }
0x46d8   :  { %v10822_v29 = vsub.f32 %v10814_v37, %v10821_v32 }
0x46da   :  { %v10823_v49 = vmul.f32 %v10822_v29, %v10822_v29 }
0x46dc   :  { %v10824_v12 = vsel %vm10817_vm9, %v10823_v49, 0.0 }
0x46dd   :  { %10825 = vadd.xlane.f32.xlu1 %v10824_v12 }
0x46e1   :  { %v10807_v6 = vpop.f32.mrb[60].mxu0 }
0x46e2   :  { %v13835_v36 = vpop.f32.mrb[61].mxu0 }
0x476a   :  { %v10826_v56 = vpop.xlane.xlu1 %10825 }
0x476b   :  { %v10827_v13 = vmul.f32 0.03125, %v10826_v56 }
0x476d   :  { %v10828_v46 = vadd.f32 1e-05, %v10827_v13 }
0x476f   :  { %14648 = vrsqrt.f32 %v10828_v46 }
0x4779   :  { %v14649_v28 = vpop.eup %14648 }
0x477a   :  { %v10830_v16 = vmul.f32 %v14649_v28, %v10822_v29 }
0x477c   :  { %v10837_v63 = vmul.f32 %v11362_v21, %v10830_v16 }
0x477e   :  { %v10844_v8 = vadd.f32 %v11363_v20, %v10837_v63 }
0x4780   :  { %10845 = vst.msk [vmem:[#allocation2] sm:$0x3] %vm10817_vm9, %v10844_v8 }
0x4781   :  { %14709 = shalt.err (!%p14706_p4)
}
0x4782   :  { %s14710_s28 = scalar_lea.hbm %s17815_s21, 32 }
0x4783   :  { %p14711_p5 = scmp.ne.s32.totalorder %s17815_s21, %s14710_s28  ;;  %p14714_p6 = scmp.lt.u32.totalorder %s14710_s28, %s17815_s21 }
0x4785   :  { %p14716_p7 = pnand %p14714_p6, %p14711_p5 }
0x4787   :  { %14719 = shalt.err (!%p14716_p7)
}
0x4788   :  { %10855 = dma.vmem_to_hbm [thread:$0]  %s10853_s17, 32, %s17815_s21, [#allocation3]  }
0x4789   :  { %14720 = dma.done.wait [#allocation3], 32  }
0x478a   :  { %14721 = vsyncadd [#allocation3], 4294967264 }
0x478b   :  { %10859 = vsyncpa [#allocation3], 1 }

</bundles_post_ra>
